<compile_context>
chip_gen: v7x
topology: tpu7x:2x2x1
jax: 0.10.0
libtpu: 0.0.40
codegen_flags: <defaults>
</compile_context>

<pallas_src>
import functools

import jax
import jax.numpy as jnp
from jax.experimental import pallas as pl
from jax.experimental.pallas import tpu as pltpu


def round_up(x, m):
    return (x + m - 1) // m * m


# ----------------------------- Pallas kernels -----------------------------

def _matmul_bn_kernel(a_ref, b_ref, scale_ref, bias_ref, o_ref, *, relu):
    """(tm,Kp)x(Kp,tn) matmul + fused per-column scale/bias (+optional ReLU)."""
    acc = jnp.dot(a_ref[...], b_ref[...], preferred_element_type=jnp.float32)
    y = acc * scale_ref[...] + bias_ref[...]
    if relu:
        y = jnp.maximum(y, 0.0)
    o_ref[...] = y.astype(o_ref.dtype)


def _matmul_bn_add_relu_kernel(a_ref, b_ref, scale_ref, bias_ref, res_ref, o_ref):
    """Same matmul, with residual add + ReLU fused into the epilogue."""
    acc = jnp.dot(a_ref[...], b_ref[...], preferred_element_type=jnp.float32)
    y = acc * scale_ref[...] + bias_ref[...] + res_ref[...]
    o_ref[...] = jnp.maximum(y, 0.0).astype(o_ref.dtype)


def _maxpool_kernel(x_ref, o_ref):
    # x_ref block: (9, tm, Cp) -> max over the 9 pooling-window taps.
    o_ref[...] = jnp.max(x_ref[...], axis=0)


# ------------------------------ kernel wrappers ------------------------------

def matmul_bn(A, Wp, scale_p, bias_p, *, relu, residual=None):
    """out = act(A @ Wp * scale + bias [+ residual]).

    A:       (M, K)  f32 im2col patches (padded + cast to bf16 here, fused by XLA)
    Wp:      (Kp, Np) bf16, pre-padded at init (Kp, Np multiples of 128)
    scale_p: (1, Np)  f32, pre-padded
    bias_p:  (1, Np)  f32, pre-padded
    residual:(M, Cout) f32 or None; if given, epilogue is relu(y + residual).
    Returns padded (Mp, Np) f32; caller slices to (M, Cout).
    """
    M, K = A.shape
    Kp, Np = Wp.shape
    tm = min(512, round_up(M, 16))          # multiple of 16 for bf16 tiles
    tn = 128
    Mp = round_up(M, tm)

    Ap = jnp.pad(A, ((0, Mp - M), (0, Kp - K))).astype(jnp.bfloat16)

    in_specs = [
        pl.BlockSpec((tm, Kp), lambda i, j: (i, 0)),
        pl.BlockSpec((Kp, tn), lambda i, j: (0, j)),
        pl.BlockSpec((1, tn), lambda i, j: (0, j)),
        pl.BlockSpec((1, tn), lambda i, j: (0, j)),
    ]
    args = [Ap, Wp, scale_p, bias_p]

    if residual is not None:
        rM, rC = residual.shape
        rp = jnp.pad(residual, ((0, Mp - rM), (0, Np - rC)))
        in_specs.append(pl.BlockSpec((tm, tn), lambda i, j: (i, j)))
        args.append(rp)
        kernel = _matmul_bn_add_relu_kernel
    else:
        kernel = functools.partial(_matmul_bn_kernel, relu=relu)

    out = pl.pallas_call(
        kernel,
        out_shape=jax.ShapeDtypeStruct((Mp, Np), jnp.float32),
        grid_spec=pltpu.PrefetchScalarGridSpec(
            num_scalar_prefetch=0,
            grid=(Mp // tm, Np // tn),
            in_specs=in_specs,
            out_specs=pl.BlockSpec((tm, tn), lambda i, j: (i, j)),
        ),
        compiler_params=pltpu.CompilerParams(
            dimension_semantics=("parallel", "parallel")),
    )(*args)
    return out


def maxpool2d_3x3_s2(x):
    """MaxPool2d(kernel_size=3, stride=2, padding=1) on NHWC input."""
    # TODO(synk): the 9 taps are gathered by (jit-fused) XLA strided slices
    # before the kernel; an in-kernel gather would save the 9x HBM copy of f0,
    # but f0 is <100 KB here so the launch cost dominates either way.
    N, H, W, C = x.shape
    neg = jnp.finfo(jnp.float32).min
    xp = jnp.pad(x, ((0, 0), (1, 1), (1, 1), (0, 0)), constant_values=neg)
    OH = (H + 2 - 3) // 2 + 1
    OW = (W + 2 - 3) // 2 + 1
    views = []
    for i in range(3):
        for j in range(3):
            views.append(xp[:, i:i + (OH - 1) * 2 + 1:2,
                            j:j + (OW - 1) * 2 + 1:2, :])
    stacked = jnp.stack(views, axis=0).reshape(9, N * OH * OW, C)

    M = N * OH * OW
    tm = min(512, round_up(M, 8))
    Mp, Cp = round_up(M, tm), round_up(C, 128)
    sp = jnp.pad(stacked, ((0, 0), (0, Mp - M), (0, Cp - C)),
                 constant_values=neg)
    out = pl.pallas_call(
        _maxpool_kernel,
        out_shape=jax.ShapeDtypeStruct((Mp, Cp), jnp.float32),
        grid_spec=pltpu.PrefetchScalarGridSpec(
            num_scalar_prefetch=0,
            grid=(Mp // tm,),
            in_specs=[pl.BlockSpec((9, tm, Cp), lambda i: (0, i, 0))],
            out_specs=pl.BlockSpec((tm, Cp), lambda i: (i, 0)),
        ),
        compiler_params=pltpu.CompilerParams(dimension_semantics=("parallel",)),
    )(sp)
    return out[:M, :C].reshape(N, OH, OW, C)


# ------------------------------ conv plumbing ------------------------------

def im2col(x, kh, kw, stride, padding, dilation=1):
    """x NHWC -> patches (N*OH*OW, kh*kw*Cin), flattened in (kh, kw, cin) order."""
    N, H, W, C = x.shape
    xp = jnp.pad(x, ((0, 0), (padding, padding), (padding, padding), (0, 0)))
    OH = (H + 2 * padding - dilation * (kh - 1) - 1) // stride + 1
    OW = (W + 2 * padding - dilation * (kw - 1) - 1) // stride + 1
    cols = []
    for i in range(kh):
        for j in range(kw):
            di, dj = i * dilation, j * dilation
            cols.append(xp[:, di:di + (OH - 1) * stride + 1:stride,
                           dj:dj + (OW - 1) * stride + 1:stride, :])
    cols = jnp.concatenate(cols, axis=-1)
    return cols.reshape(N * OH * OW, kh * kw * C), OH, OW


def conv_bn_act(x, p, stride, padding, dilation=1, relu=True, residual=None):
    """Conv2d (no bias) + folded BatchNorm + optional (residual add +) ReLU."""
    A, OH, OW = im2col(x, p["kh"], p["kw"], stride, padding, dilation)
    M = A.shape[0]
    cout = p["cout"]
    res2d = None if residual is None else residual.reshape(M, cout)
    out = matmul_bn(A, p["W"], p["scale"], p["bias"], relu=relu, residual=res2d)
    return out[:M, :cout].reshape(x.shape[0], OH, OW, cout)


def basic_block(x, blk, dilation=1):
    out = conv_bn_act(x, blk["conv1"], stride=blk["stride"], padding=dilation,
                      dilation=dilation, relu=True)
    if "downsample" in blk:
        identity = conv_bn_act(x, blk["downsample"], stride=blk["stride"],
                               padding=0, relu=False)
    else:
        identity = x
    # conv2 + bn2 + residual-add + relu in a single Pallas kernel.
    return conv_bn_act(out, blk["conv2"], stride=1, padding=dilation,
                       dilation=dilation, relu=False, residual=identity)


# --------------------------- parameter construction ---------------------------

def _init_conv_bn(key, kh, kw, cin, cout):
    k1, k2, k3, k4, k5 = jax.random.split(key, 5)
    fan_in = kh * kw * cin
    W = jax.random.normal(k1, (fan_in, cout), jnp.float32) / jnp.sqrt(fan_in)
    gamma = 1.0 + 0.1 * jax.random.normal(k2, (cout,), jnp.float32)
    beta = 0.1 * jax.random.normal(k3, (cout,), jnp.float32)
    mean = 0.1 * jax.random.normal(k4, (cout,), jnp.float32)
    var = 1.0 + 0.1 * jnp.abs(jax.random.normal(k5, (cout,), jnp.float32))
    scale = gamma / jnp.sqrt(var + 1e-5)
    bias = beta - mean * scale
    return {"kh": kh, "kw": kw, "W": W, "scale": scale, "bias": bias}


def _fold_normalize(p, mean, std):
    """Fold the Normalize((x-mean)/std) preprocessing into the first conv."""
    kh, kw = p["kh"], p["kw"]
    std_t = jnp.tile(std, kh * kw)[:, None]
    mean_t = jnp.tile(mean, kh * kw)[:, None]
    b0 = -jnp.sum(p["W"] * (mean_t / std_t), axis=0)
    out = dict(p)
    out["W"] = p["W"] / std_t
    out["bias"] = p["bias"] + p["scale"] * b0
    return out


def _pack_conv(p):
    """Pre-pad weights to MXU-friendly (Kp, 128) bf16, scale/bias to (1, 128)."""
    fan_in, cout = p["W"].shape
    Kp = round_up(fan_in, 128)
    Np = round_up(cout, 128)
    return {
        "kh": p["kh"], "kw": p["kw"], "cout": cout,
        "W": jnp.pad(p["W"], ((0, Kp - fan_in), (0, Np - cout))).astype(jnp.bfloat16),
        "scale": jnp.pad(p["scale"].reshape(1, -1), ((0, 0), (0, Np - cout))),
        "bias": jnp.pad(p["bias"].reshape(1, -1), ((0, 0), (0, Np - cout))),
    }


def init_resnet_encoder(key, num_input_images=1, widths=(8, 8, 16, 32, 64),
                        blocks_per_layer=2):
    cin = 3 * num_input_images
    mean = jnp.tile(jnp.array([0.485, 0.456, 0.406], jnp.float32),
                    num_input_images)
    std = jnp.tile(jnp.array([0.229, 0.224, 0.225], jnp.float32),
                   num_input_images)
    keys = jax.random.split(key, 64)
    ki = iter(range(64))

    conv1 = _init_conv_bn(keys[next(ki)], 7, 7, cin, widths[0])
    conv1 = _pack_conv(_fold_normalize(conv1, mean, std))

    layers = []
    in_ch = widths[0]
    for li in range(1, 5):
        out_ch = widths[li]
        stride0 = 1 if li == 1 else 2
        blocks = []
        for bi in range(blocks_per_layer):
            stride = stride0 if bi == 0 else 1
            c_in = in_ch if bi == 0 else out_ch
            blk = {
                "stride": stride,
                "conv1": _pack_conv(_init_conv_bn(keys[next(ki)], 3, 3, c_in, out_ch)),
                "conv2": _pack_conv(_init_conv_bn(keys[next(ki)], 3, 3, out_ch, out_ch)),
            }
            if bi == 0 and (stride != 1 or in_ch != out_ch):
                blk["downsample"] = _pack_conv(
                    _init_conv_bn(keys[next(ki)], 1, 1, in_ch, out_ch))
            blocks.append(blk)
        layers.append(blocks)
        in_ch = out_ch
    return {"conv1": conv1, "layers": layers, "out_channels": list(widths)}


# --------------------------------- forward ---------------------------------

def resnet_encoder_forward(params, x_nchw):
    """Returns [f0, f1, f2, f3, f4] in NCHW, matching ResnetEncoder.forward."""
    # TODO(synk): the remove_downsampling / dilation path (downsampling[i]=False
    # for i>1) is supported by im2col's dilation arg but not wired here, since
    # the module's default downsampling=[True]*5 never triggers it.
    x = jnp.transpose(x_nchw.astype(jnp.float32), (0, 2, 3, 1))  # NCHW -> NHWC

    # layer0 = Normalize (folded) + conv1(7x7, s2, p3) + bn1 + relu
    f0 = conv_bn_act(x, params["conv1"], stride=2, padding=3, relu=True)

    # layer1 = maxpool(3x3, s2, p1) + 2 BasicBlocks; layer2..4 = 2 BasicBlocks each
    h = maxpool2d_3x3_s2(f0)
    feats = [f0]
    for blocks in params["layers"]:
        for blk in blocks:
            h = basic_block(h, blk)
        feats.append(h)

    return [jnp.transpose(f, (0, 3, 1, 2)) for f in feats]  # back to NCHW


if __name__ == "__main__":
    key = jax.random.PRNGKey(0)
    pkey, xkey = jax.random.split(key)

    params = init_resnet_encoder(pkey)
    x = jax.random.normal(xkey, (2, 3, 64, 64), jnp.float32)

    # jit the whole forward with the (pre-padded, bf16) weights closed over as
    # constants: all im2col / pad / slice glue fuses into a handful of XLA ops
    # around the Pallas matmul calls.
    forward = jax.jit(functools.partial(resnet_encoder_forward, params))

    feats = forward(x)
    feats = jax.block_until_ready(feats)

    expected = [(2, 8, 32, 32), (2, 8, 16, 16), (2, 16, 8, 8),
                (2, 32, 4, 4), (2, 64, 2, 2)]
    got = [tuple(int(d) for d in f.shape) for f in feats]
    assert got == expected, (got, expected)
    assert all(bool(jnp.all(jnp.isfinite(f))) for f in feats)

    print("KERNEL_OK")
</pallas_src>

<mosaic_0001>
module attributes {stable_mosaic.version = 11 : i64} {
  func.func @_matmul_bn_kernel(%arg0: i32, %arg1: i32, %arg2: memref<512x256xbf16, #tpu.memory_space<vmem>>, %arg3: memref<256x128xbf16, #tpu.memory_space<vmem>>, %arg4: memref<1x128xf32, #tpu.memory_space<vmem>>, %arg5: memref<1x128xf32, #tpu.memory_space<vmem>>, %arg6: memref<512x128xf32, #tpu.memory_space<vmem>>) attributes {dimension_semantics = [#tpu.dimension_semantics<parallel>, #tpu.dimension_semantics<parallel>], iteration_bounds = array<i64: 4, 1>, scalar_prefetch = 0 : i64, scratch_operands = 0 : i64, tpu.core_type = #tpu.core_type<tc>, window_params = [{transform_indices = @transform_0, window_bounds = array<i64: 512, 256>}, {transform_indices = @transform_1, window_bounds = array<i64: 256, 128>}, {transform_indices = @transform_2, window_bounds = array<i64: 1, 128>}, {transform_indices = @transform_3, window_bounds = array<i64: 1, 128>}, {transform_indices = @transform_4, window_bounds = array<i64: 512, 128>}]} {
    %c0 = arith.constant 0 : index
    %c0_0 = arith.constant 0 : index
    %0 = vector.load %arg2[%c0, %c0_0] : memref<512x256xbf16, #tpu.memory_space<vmem>>, vector<512x256xbf16>
    %c0_1 = arith.constant 0 : index
    %c0_2 = arith.constant 0 : index
    %1 = vector.load %arg3[%c0_1, %c0_2] : memref<256x128xbf16, #tpu.memory_space<vmem>>, vector<256x128xbf16>
    %cst = arith.constant dense<0.000000e+00> : vector<512x128xf32>
    %2 = tpu.matmul %0, %1, %cst {dimension_numbers = #tpu.dot_dimension_numbers<[1], [0], [0], [1], [0, 0, 1, 1], [], []>} : vector<512x256xbf16>, vector<256x128xbf16>, vector<512x128xf32> -> vector<512x128xf32>
    %c0_3 = arith.constant 0 : index
    %c0_4 = arith.constant 0 : index
    %3 = vector.load %arg4[%c0_3, %c0_4] : memref<1x128xf32, #tpu.memory_space<vmem>>, vector<1x128xf32>
    %4 = vector.broadcast %3 : vector<1x128xf32> to vector<512x128xf32>
    %5 = arith.mulf %2, %4 : vector<512x128xf32>
    %c0_5 = arith.constant 0 : index
    %c0_6 = arith.constant 0 : index
    %6 = vector.load %arg5[%c0_5, %c0_6] : memref<1x128xf32, #tpu.memory_space<vmem>>, vector<1x128xf32>
    %7 = vector.broadcast %6 : vector<1x128xf32> to vector<512x128xf32>
    %8 = arith.addf %5, %7 : vector<512x128xf32>
    %cst_7 = arith.constant 0.000000e+00 : f32
    %9 = vector.broadcast %cst_7 : f32 to vector<512x128xf32>
    %10 = arith.maximumf %8, %9 : vector<512x128xf32>
    %c0_8 = arith.constant 0 : index
    %c0_9 = arith.constant 0 : index
    %11 = vector.load %arg6[%c0_8, %c0_9] : memref<512x128xf32, #tpu.memory_space<vmem>>, vector<512x128xf32>
    tpu.vector_store %arg6[%c0_8, %c0_9], %10 {strides = array<i32>} : memref<512x128xf32, #tpu.memory_space<vmem>>, vector<512x128xf32>,
    return
  }
  func.func @transform_0(%arg0: i32, %arg1: i32) -> (i32, i32) {
    %c0_i32 = arith.constant 0 : i32
    %c0_i32_0 = arith.constant 0 : i32
    return %arg0, %c0_i32 : i32, i32
  }
  func.func @transform_1(%arg0: i32, %arg1: i32) -> (i32, i32) {
    %c0_i32 = arith.constant 0 : i32
    %c0_i32_0 = arith.constant 0 : i32
    return %c0_i32, %arg1 : i32, i32
  }
  func.func @transform_2(%arg0: i32, %arg1: i32) -> (i32, i32) {
    %c0_i32 = arith.constant 0 : i32
    %c0_i32_0 = arith.constant 0 : i32
    return %c0_i32, %arg1 : i32, i32
  }
  func.func @transform_3(%arg0: i32, %arg1: i32) -> (i32, i32) {
    %c0_i32 = arith.constant 0 : i32
    %c0_i32_0 = arith.constant 0 : i32
    return %c0_i32, %arg1 : i32, i32
  }
  func.func @transform_4(%arg0: i32, %arg1: i32) -> (i32, i32) {
    %c0_i32 = arith.constant 0 : i32
    return %arg0, %arg1 : i32, i32
  }
}

module attributes {stable_mosaic.version = 11 : i64} {
  func.func @_maxpool_kernel(%arg0: i32, %arg1: memref<9x512x128xf32, #tpu.memory_space<vmem>>, %arg2: memref<512x128xf32, #tpu.memory_space<vmem>>) attributes {dimension_semantics = [#tpu.dimension_semantics<parallel>], iteration_bounds = array<i64: 1>, scalar_prefetch = 0 : i64, scratch_operands = 0 : i64, tpu.core_type = #tpu.core_type<tc>, window_params = [{transform_indices = @transform_0, window_bounds = array<i64: 9, 512, 128>}, {transform_indices = @transform_1, window_bounds = array<i64: 512, 128>}]} {
    %c0 = arith.constant 0 : index
    %c0_0 = arith.constant 0 : index
    %c0_1 = arith.constant 0 : index
    %0 = vector.load %arg1[%c0, %c0_0, %c0_1] : memref<9x512x128xf32, #tpu.memory_space<vmem>>, vector<9x512x128xf32>
    %cst = arith.constant dense<0xFF800000> : vector<512x128xf32>
    %1 = vector.multi_reduction <maximumf>, %0, %cst [0] : vector<9x512x128xf32> to vector<512x128xf32>
    %c0_2 = arith.constant 0 : index
    %c0_3 = arith.constant 0 : index
    %2 = vector.load %arg2[%c0_2, %c0_3] : memref<512x128xf32, #tpu.memory_space<vmem>>, vector<512x128xf32>
    tpu.vector_store %arg2[%c0_2, %c0_3], %1 {strides = array<i32>} : memref<512x128xf32, #tpu.memory_space<vmem>>, vector<512x128xf32>,
    return
  }
  func.func @transform_0(%arg0: i32) -> (i32, i32, i32) {
    %c0_i32 = arith.constant 0 : i32
    %c0_i32_0 = arith.constant 0 : i32
    %c0_i32_1 = arith.constant 0 : i32
    return %c0_i32, %arg0, %c0_i32_0 : i32, i32, i32
  }
  func.func @transform_1(%arg0: i32) -> (i32, i32) {
    %c0_i32 = arith.constant 0 : i32
    %c0_i32_0 = arith.constant 0 : i32
    return %arg0, %c0_i32 : i32, i32
  }
}

module attributes {stable_mosaic.version = 11 : i64} {
  func.func @_matmul_bn_kernel(%arg0: i32, %arg1: i32, %arg2: memref<512x128xbf16, #tpu.memory_space<vmem>>, %arg3: memref<128x128xbf16, #tpu.memory_space<vmem>>, %arg4: memref<1x128xf32, #tpu.memory_space<vmem>>, %arg5: memref<1x128xf32, #tpu.memory_space<vmem>>, %arg6: memref<512x128xf32, #tpu.memory_space<vmem>>) attributes {dimension_semantics = [#tpu.dimension_semantics<parallel>, #tpu.dimension_semantics<parallel>], iteration_bounds = array<i64: 1, 1>, scalar_prefetch = 0 : i64, scratch_operands = 0 : i64, tpu.core_type = #tpu.core_type<tc>, window_params = [{transform_indices = @transform_0, window_bounds = array<i64: 512, 128>}, {transform_indices = @transform_1, window_bounds = array<i64: 128, 128>}, {transform_indices = @transform_2, window_bounds = array<i64: 1, 128>}, {transform_indices = @transform_3, window_bounds = array<i64: 1, 128>}, {transform_indices = @transform_4, window_bounds = array<i64: 512, 128>}]} {
    %c0 = arith.constant 0 : index
    %c0_0 = arith.constant 0 : index
    %0 = vector.load %arg2[%c0, %c0_0] : memref<512x128xbf16, #tpu.memory_space<vmem>>, vector<512x128xbf16>
    %c0_1 = arith.constant 0 : index
    %c0_2 = arith.constant 0 : index
    %1 = vector.load %arg3[%c0_1, %c0_2] : memref<128x128xbf16, #tpu.memory_space<vmem>>, vector<128x128xbf16>
    %cst = arith.constant dense<0.000000e+00> : vector<512x128xf32>
    %2 = tpu.matmul %0, %1, %cst {dimension_numbers = #tpu.dot_dimension_numbers<[1], [0], [0], [1], [0, 0, 1, 1], [], []>} : vector<512x128xbf16>, vector<128x128xbf16>, vector<512x128xf32> -> vector<512x128xf32>
    %c0_3 = arith.constant 0 : index
    %c0_4 = arith.constant 0 : index
    %3 = vector.load %arg4[%c0_3, %c0_4] : memref<1x128xf32, #tpu.memory_space<vmem>>, vector<1x128xf32>
    %4 = vector.broadcast %3 : vector<1x128xf32> to vector<512x128xf32>
    %5 = arith.mulf %2, %4 : vector<512x128xf32>
    %c0_5 = arith.constant 0 : index
    %c0_6 = arith.constant 0 : index
    %6 = vector.load %arg5[%c0_5, %c0_6] : memref<1x128xf32, #tpu.memory_space<vmem>>, vector<1x128xf32>
    %7 = vector.broadcast %6 : vector<1x128xf32> to vector<512x128xf32>
    %8 = arith.addf %5, %7 : vector<512x128xf32>
    %cst_7 = arith.constant 0.000000e+00 : f32
    %9 = vector.broadcast %cst_7 : f32 to vector<512x128xf32>
    %10 = arith.maximumf %8, %9 : vector<512x128xf32>
    %c0_8 = arith.constant 0 : index
    %c0_9 = arith.constant 0 : index
    %11 = vector.load %arg6[%c0_8, %c0_9] : memref<512x128xf32, #tpu.memory_space<vmem>>, vector<512x128xf32>
    tpu.vector_store %arg6[%c0_8, %c0_9], %10 {strides = array<i32>} : memref<512x128xf32, #tpu.memory_space<vmem>>, vector<512x128xf32>,
    return
  }
  func.func @transform_0(%arg0: i32, %arg1: i32) -> (i32, i32) {
    %c0_i32 = arith.constant 0 : i32
    %c0_i32_0 = arith.constant 0 : i32
    return %arg0, %c0_i32 : i32, i32
  }
  func.func @transform_1(%arg0: i32, %arg1: i32) -> (i32, i32) {
    %c0_i32 = arith.constant 0 : i32
    %c0_i32_0 = arith.constant 0 : i32
    return %c0_i32, %arg1 : i32, i32
  }
  func.func @transform_2(%arg0: i32, %arg1: i32) -> (i32, i32) {
    %c0_i32 = arith.constant 0 : i32
    %c0_i32_0 = arith.constant 0 : i32
    return %c0_i32, %arg1 : i32, i32
  }
  func.func @transform_3(%arg0: i32, %arg1: i32) -> (i32, i32) {
    %c0_i32 = arith.constant 0 : i32
    %c0_i32_0 = arith.constant 0 : i32
    return %c0_i32, %arg1 : i32, i32
  }
  func.func @transform_4(%arg0: i32, %arg1: i32) -> (i32, i32) {
    %c0_i32 = arith.constant 0 : i32
    return %arg0, %arg1 : i32, i32
  }
}

module attributes {stable_mosaic.version = 11 : i64} {
  func.func @_matmul_bn_add_relu_kernel(%arg0: i32, %arg1: i32, %arg2: memref<512x128xbf16, #tpu.memory_space<vmem>>, %arg3: memref<128x128xbf16, #tpu.memory_space<vmem>>, %arg4: memref<1x128xf32, #tpu.memory_space<vmem>>, %arg5: memref<1x128xf32, #tpu.memory_space<vmem>>, %arg6: memref<512x128xf32, #tpu.memory_space<vmem>>, %arg7: memref<512x128xf32, #tpu.memory_space<vmem>>) attributes {dimension_semantics = [#tpu.dimension_semantics<parallel>, #tpu.dimension_semantics<parallel>], iteration_bounds = array<i64: 1, 1>, scalar_prefetch = 0 : i64, scratch_operands = 0 : i64, tpu.core_type = #tpu.core_type<tc>, window_params = [{transform_indices = @transform_0, window_bounds = array<i64: 512, 128>}, {transform_indices = @transform_1, window_bounds = array<i64: 128, 128>}, {transform_indices = @transform_2, window_bounds = array<i64: 1, 128>}, {transform_indices = @transform_3, window_bounds = array<i64: 1, 128>}, {transform_indices = @transform_4, window_bounds = array<i64: 512, 128>}, {transform_indices = @transform_5, window_bounds = array<i64: 512, 128>}]} {
    %c0 = arith.constant 0 : index
    %c0_0 = arith.constant 0 : index
    %0 = vector.load %arg2[%c0, %c0_0] : memref<512x128xbf16, #tpu.memory_space<vmem>>, vector<512x128xbf16>
    %c0_1 = arith.constant 0 : index
    %c0_2 = arith.constant 0 : index
    %1 = vector.load %arg3[%c0_1, %c0_2] : memref<128x128xbf16, #tpu.memory_space<vmem>>, vector<128x128xbf16>
    %cst = arith.constant dense<0.000000e+00> : vector<512x128xf32>
    %2 = tpu.matmul %0, %1, %cst {dimension_numbers = #tpu.dot_dimension_numbers<[1], [0], [0], [1], [0, 0, 1, 1], [], []>} : vector<512x128xbf16>, vector<128x128xbf16>, vector<512x128xf32> -> vector<512x128xf32>
    %c0_3 = arith.constant 0 : index
    %c0_4 = arith.constant 0 : index
    %3 = vector.load %arg4[%c0_3, %c0_4] : memref<1x128xf32, #tpu.memory_space<vmem>>, vector<1x128xf32>
    %4 = vector.broadcast %3 : vector<1x128xf32> to vector<512x128xf32>
    %5 = arith.mulf %2, %4 : vector<512x128xf32>
    %c0_5 = arith.constant 0 : index
    %c0_6 = arith.constant 0 : index
    %6 = vector.load %arg5[%c0_5, %c0_6] : memref<1x128xf32, #tpu.memory_space<vmem>>, vector<1x128xf32>
    %7 = vector.broadcast %6 : vector<1x128xf32> to vector<512x128xf32>
    %8 = arith.addf %5, %7 : vector<512x128xf32>
    %c0_7 = arith.constant 0 : index
    %c0_8 = arith.constant 0 : index
    %9 = vector.load %arg6[%c0_7, %c0_8] : memref<512x128xf32, #tpu.memory_space<vmem>>, vector<512x128xf32>
    %10 = arith.addf %8, %9 : vector<512x128xf32>
    %cst_9 = arith.constant 0.000000e+00 : f32
    %11 = vector.broadcast %cst_9 : f32 to vector<512x128xf32>
    %12 = arith.maximumf %10, %11 : vector<512x128xf32>
    %c0_10 = arith.constant 0 : index
    %c0_11 = arith.constant 0 : index
    %13 = vector.load %arg7[%c0_10, %c0_11] : memref<512x128xf32, #tpu.memory_space<vmem>>, vector<512x128xf32>
    tpu.vector_store %arg7[%c0_10, %c0_11], %12 {strides = array<i32>} : memref<512x128xf32, #tpu.memory_space<vmem>>, vector<512x128xf32>,
    return
  }
  func.func @transform_0(%arg0: i32, %arg1: i32) -> (i32, i32) {
    %c0_i32 = arith.constant 0 : i32
    %c0_i32_0 = arith.constant 0 : i32
    return %arg0, %c0_i32 : i32, i32
  }
  func.func @transform_1(%arg0: i32, %arg1: i32) -> (i32, i32) {
    %c0_i32 = arith.constant 0 : i32
    %c0_i32_0 = arith.constant 0 : i32
    return %c0_i32, %arg1 : i32, i32
  }
  func.func @transform_2(%arg0: i32, %arg1: i32) -> (i32, i32) {
    %c0_i32 = arith.constant 0 : i32
    %c0_i32_0 = arith.constant 0 : i32
    return %c0_i32, %arg1 : i32, i32
  }
  func.func @transform_3(%arg0: i32, %arg1: i32) -> (i32, i32) {
    %c0_i32 = arith.constant 0 : i32
    %c0_i32_0 = arith.constant 0 : i32
    return %c0_i32, %arg1 : i32, i32
  }
  func.func @transform_4(%arg0: i32, %arg1: i32) -> (i32, i32) {
    %c0_i32 = arith.constant 0 : i32
    return %arg0, %arg1 : i32, i32
  }
  func.func @transform_5(%arg0: i32, %arg1: i32) -> (i32, i32) {
    %c0_i32 = arith.constant 0 : i32
    return %arg0, %arg1 : i32, i32
  }
}

module attributes {stable_mosaic.version = 11 : i64} {
  func.func @_matmul_bn_kernel(%arg0: i32, %arg1: i32, %arg2: memref<128x128xbf16, #tpu.memory_space<vmem>>, %arg3: memref<128x128xbf16, #tpu.memory_space<vmem>>, %arg4: memref<1x128xf32, #tpu.memory_space<vmem>>, %arg5: memref<1x128xf32, #tpu.memory_space<vmem>>, %arg6: memref<128x128xf32, #tpu.memory_space<vmem>>) attributes {dimension_semantics = [#tpu.dimension_semantics<parallel>, #tpu.dimension_semantics<parallel>], iteration_bounds = array<i64: 1, 1>, scalar_prefetch = 0 : i64, scratch_operands = 0 : i64, tpu.core_type = #tpu.core_type<tc>, window_params = [{transform_indices = @transform_0, window_bounds = array<i64: 128, 128>}, {transform_indices = @transform_1, window_bounds = array<i64: 128, 128>}, {transform_indices = @transform_2, window_bounds = array<i64: 1, 128>}, {transform_indices = @transform_3, window_bounds = array<i64: 1, 128>}, {transform_indices = @transform_4, window_bounds = array<i64: 128, 128>}]} {
    %c0 = arith.constant 0 : index
    %c0_0 = arith.constant 0 : index
    %0 = vector.load %arg2[%c0, %c0_0] : memref<128x128xbf16, #tpu.memory_space<vmem>>, vector<128x128xbf16>
    %c0_1 = arith.constant 0 : index
    %c0_2 = arith.constant 0 : index
    %1 = vector.load %arg3[%c0_1, %c0_2] : memref<128x128xbf16, #tpu.memory_space<vmem>>, vector<128x128xbf16>
    %cst = arith.constant dense<0.000000e+00> : vector<128x128xf32>
    %2 = tpu.matmul %0, %1, %cst {dimension_numbers = #tpu.dot_dimension_numbers<[1], [0], [0], [1], [0, 0, 1, 1], [], []>} : vector<128x128xbf16>, vector<128x128xbf16>, vector<128x128xf32> -> vector<128x128xf32>
    %c0_3 = arith.constant 0 : index
    %c0_4 = arith.constant 0 : index
    %3 = vector.load %arg4[%c0_3, %c0_4] : memref<1x128xf32, #tpu.memory_space<vmem>>, vector<1x128xf32>
    %4 = vector.broadcast %3 : vector<1x128xf32> to vector<128x128xf32>
    %5 = arith.mulf %2, %4 : vector<128x128xf32>
    %c0_5 = arith.constant 0 : index
    %c0_6 = arith.constant 0 : index
    %6 = vector.load %arg5[%c0_5, %c0_6] : memref<1x128xf32, #tpu.memory_space<vmem>>, vector<1x128xf32>
    %7 = vector.broadcast %6 : vector<1x128xf32> to vector<128x128xf32>
    %8 = arith.addf %5, %7 : vector<128x128xf32>
    %c0_7 = arith.constant 0 : index
    %c0_8 = arith.constant 0 : index
    %9 = vector.load %arg6[%c0_7, %c0_8] : memref<128x128xf32, #tpu.memory_space<vmem>>, vector<128x128xf32>
    tpu.vector_store %arg6[%c0_7, %c0_8], %8 {strides = array<i32>} : memref<128x128xf32, #tpu.memory_space<vmem>>, vector<128x128xf32>,
    return
  }
  func.func @transform_0(%arg0: i32, %arg1: i32) -> (i32, i32) {
    %c0_i32 = arith.constant 0 : i32
    %c0_i32_0 = arith.constant 0 : i32
    return %arg0, %c0_i32 : i32, i32
  }
  func.func @transform_1(%arg0: i32, %arg1: i32) -> (i32, i32) {
    %c0_i32 = arith.constant 0 : i32
    %c0_i32_0 = arith.constant 0 : i32
    return %c0_i32, %arg1 : i32, i32
  }
  func.func @transform_2(%arg0: i32, %arg1: i32) -> (i32, i32) {
    %c0_i32 = arith.constant 0 : i32
    %c0_i32_0 = arith.constant 0 : i32
    return %c0_i32, %arg1 : i32, i32
  }
  func.func @transform_3(%arg0: i32, %arg1: i32) -> (i32, i32) {
    %c0_i32 = arith.constant 0 : i32
    %c0_i32_0 = arith.constant 0 : i32
    return %c0_i32, %arg1 : i32, i32
  }
  func.func @transform_4(%arg0: i32, %arg1: i32) -> (i32, i32) {
    %c0_i32 = arith.constant 0 : i32
    return %arg0, %arg1 : i32, i32
  }
}

module attributes {stable_mosaic.version = 11 : i64} {
  func.func @_matmul_bn_kernel(%arg0: i32, %arg1: i32, %arg2: memref<128x128xbf16, #tpu.memory_space<vmem>>, %arg3: memref<128x128xbf16, #tpu.memory_space<vmem>>, %arg4: memref<1x128xf32, #tpu.memory_space<vmem>>, %arg5: memref<1x128xf32, #tpu.memory_space<vmem>>, %arg6: memref<128x128xf32, #tpu.memory_space<vmem>>) attributes {dimension_semantics = [#tpu.dimension_semantics<parallel>, #tpu.dimension_semantics<parallel>], iteration_bounds = array<i64: 1, 1>, scalar_prefetch = 0 : i64, scratch_operands = 0 : i64, tpu.core_type = #tpu.core_type<tc>, window_params = [{transform_indices = @transform_0, window_bounds = array<i64: 128, 128>}, {transform_indices = @transform_1, window_bounds = array<i64: 128, 128>}, {transform_indices = @transform_2, window_bounds = array<i64: 1, 128>}, {transform_indices = @transform_3, window_bounds = array<i64: 1, 128>}, {transform_indices = @transform_4, window_bounds = array<i64: 128, 128>}]} {
    %c0 = arith.constant 0 : index
    %c0_0 = arith.constant 0 : index
    %0 = vector.load %arg2[%c0, %c0_0] : memref<128x128xbf16, #tpu.memory_space<vmem>>, vector<128x128xbf16>
    %c0_1 = arith.constant 0 : index
    %c0_2 = arith.constant 0 : index
    %1 = vector.load %arg3[%c0_1, %c0_2] : memref<128x128xbf16, #tpu.memory_space<vmem>>, vector<128x128xbf16>
    %cst = arith.constant dense<0.000000e+00> : vector<128x128xf32>
    %2 = tpu.matmul %0, %1, %cst {dimension_numbers = #tpu.dot_dimension_numbers<[1], [0], [0], [1], [0, 0, 1, 1], [], []>} : vector<128x128xbf16>, vector<128x128xbf16>, vector<128x128xf32> -> vector<128x128xf32>
    %c0_3 = arith.constant 0 : index
    %c0_4 = arith.constant 0 : index
    %3 = vector.load %arg4[%c0_3, %c0_4] : memref<1x128xf32, #tpu.memory_space<vmem>>, vector<1x128xf32>
    %4 = vector.broadcast %3 : vector<1x128xf32> to vector<128x128xf32>
    %5 = arith.mulf %2, %4 : vector<128x128xf32>
    %c0_5 = arith.constant 0 : index
    %c0_6 = arith.constant 0 : index
    %6 = vector.load %arg5[%c0_5, %c0_6] : memref<1x128xf32, #tpu.memory_space<vmem>>, vector<1x128xf32>
    %7 = vector.broadcast %6 : vector<1x128xf32> to vector<128x128xf32>
    %8 = arith.addf %5, %7 : vector<128x128xf32>
    %cst_7 = arith.constant 0.000000e+00 : f32
    %9 = vector.broadcast %cst_7 : f32 to vector<128x128xf32>
    %10 = arith.maximumf %8, %9 : vector<128x128xf32>
    %c0_8 = arith.constant 0 : index
    %c0_9 = arith.constant 0 : index
    %11 = vector.load %arg6[%c0_8, %c0_9] : memref<128x128xf32, #tpu.memory_space<vmem>>, vector<128x128xf32>
    tpu.vector_store %arg6[%c0_8, %c0_9], %10 {strides = array<i32>} : memref<128x128xf32, #tpu.memory_space<vmem>>, vector<128x128xf32>,
    return
  }
  func.func @transform_0(%arg0: i32, %arg1: i32) -> (i32, i32) {
    %c0_i32 = arith.constant 0 : i32
    %c0_i32_0 = arith.constant 0 : i32
    return %arg0, %c0_i32 : i32, i32
  }
  func.func @transform_1(%arg0: i32, %arg1: i32) -> (i32, i32) {
    %c0_i32 = arith.constant 0 : i32
    %c0_i32_0 = arith.constant 0 : i32
    return %c0_i32, %arg1 : i32, i32
  }
  func.func @transform_2(%arg0: i32, %arg1: i32) -> (i32, i32) {
    %c0_i32 = arith.constant 0 : i32
    %c0_i32_0 = arith.constant 0 : i32
    return %c0_i32, %arg1 : i32, i32
  }
  func.func @transform_3(%arg0: i32, %arg1: i32) -> (i32, i32) {
    %c0_i32 = arith.constant 0 : i32
    %c0_i32_0 = arith.constant 0 : i32
    return %c0_i32, %arg1 : i32, i32
  }
  func.func @transform_4(%arg0: i32, %arg1: i32) -> (i32, i32) {
    %c0_i32 = arith.constant 0 : i32
    return %arg0, %arg1 : i32, i32
  }
}

module attributes {stable_mosaic.version = 11 : i64} {
  func.func @_matmul_bn_add_relu_kernel(%arg0: i32, %arg1: i32, %arg2: memref<128x256xbf16, #tpu.memory_space<vmem>>, %arg3: memref<256x128xbf16, #tpu.memory_space<vmem>>, %arg4: memref<1x128xf32, #tpu.memory_space<vmem>>, %arg5: memref<1x128xf32, #tpu.memory_space<vmem>>, %arg6: memref<128x128xf32, #tpu.memory_space<vmem>>, %arg7: memref<128x128xf32, #tpu.memory_space<vmem>>) attributes {dimension_semantics = [#tpu.dimension_semantics<parallel>, #tpu.dimension_semantics<parallel>], iteration_bounds = array<i64: 1, 1>, scalar_prefetch = 0 : i64, scratch_operands = 0 : i64, tpu.core_type = #tpu.core_type<tc>, window_params = [{transform_indices = @transform_0, window_bounds = array<i64: 128, 256>}, {transform_indices = @transform_1, window_bounds = array<i64: 256, 128>}, {transform_indices = @transform_2, window_bounds = array<i64: 1, 128>}, {transform_indices = @transform_3, window_bounds = array<i64: 1, 128>}, {transform_indices = @transform_4, window_bounds = array<i64: 128, 128>}, {transform_indices = @transform_5, window_bounds = array<i64: 128, 128>}]} {
    %c0 = arith.constant 0 : index
    %c0_0 = arith.constant 0 : index
    %0 = vector.load %arg2[%c0, %c0_0] : memref<128x256xbf16, #tpu.memory_space<vmem>>, vector<128x256xbf16>
    %c0_1 = arith.constant 0 : index
    %c0_2 = arith.constant 0 : index
    %1 = vector.load %arg3[%c0_1, %c0_2] : memref<256x128xbf16, #tpu.memory_space<vmem>>, vector<256x128xbf16>
    %cst = arith.constant dense<0.000000e+00> : vector<128x128xf32>
    %2 = tpu.matmul %0, %1, %cst {dimension_numbers = #tpu.dot_dimension_numbers<[1], [0], [0], [1], [0, 0, 1, 1], [], []>} : vector<128x256xbf16>, vector<256x128xbf16>, vector<128x128xf32> -> vector<128x128xf32>
    %c0_3 = arith.constant 0 : index
    %c0_4 = arith.constant 0 : index
    %3 = vector.load %arg4[%c0_3, %c0_4] : memref<1x128xf32, #tpu.memory_space<vmem>>, vector<1x128xf32>
    %4 = vector.broadcast %3 : vector<1x128xf32> to vector<128x128xf32>
    %5 = arith.mulf %2, %4 : vector<128x128xf32>
    %c0_5 = arith.constant 0 : index
    %c0_6 = arith.constant 0 : index
    %6 = vector.load %arg5[%c0_5, %c0_6] : memref<1x128xf32, #tpu.memory_space<vmem>>, vector<1x128xf32>
    %7 = vector.broadcast %6 : vector<1x128xf32> to vector<128x128xf32>
    %8 = arith.addf %5, %7 : vector<128x128xf32>
    %c0_7 = arith.constant 0 : index
    %c0_8 = arith.constant 0 : index
    %9 = vector.load %arg6[%c0_7, %c0_8] : memref<128x128xf32, #tpu.memory_space<vmem>>, vector<128x128xf32>
    %10 = arith.addf %8, %9 : vector<128x128xf32>
    %cst_9 = arith.constant 0.000000e+00 : f32
    %11 = vector.broadcast %cst_9 : f32 to vector<128x128xf32>
    %12 = arith.maximumf %10, %11 : vector<128x128xf32>
    %c0_10 = arith.constant 0 : index
    %c0_11 = arith.constant 0 : index
    %13 = vector.load %arg7[%c0_10, %c0_11] : memref<128x128xf32, #tpu.memory_space<vmem>>, vector<128x128xf32>
    tpu.vector_store %arg7[%c0_10, %c0_11], %12 {strides = array<i32>} : memref<128x128xf32, #tpu.memory_space<vmem>>, vector<128x128xf32>,
    return
  }
  func.func @transform_0(%arg0: i32, %arg1: i32) -> (i32, i32) {
    %c0_i32 = arith.constant 0 : i32
    %c0_i32_0 = arith.constant 0 : i32
    return %arg0, %c0_i32 : i32, i32
  }
  func.func @transform_1(%arg0: i32, %arg1: i32) -> (i32, i32) {
    %c0_i32 = arith.constant 0 : i32
    %c0_i32_0 = arith.constant 0 : i32
    return %c0_i32, %arg1 : i32, i32
  }
  func.func @transform_2(%arg0: i32, %arg1: i32) -> (i32, i32) {
    %c0_i32 = arith.constant 0 : i32
    %c0_i32_0 = arith.constant 0 : i32
    return %c0_i32, %arg1 : i32, i32
  }
  func.func @transform_3(%arg0: i32, %arg1: i32) -> (i32, i32) {
    %c0_i32 = arith.constant 0 : i32
    %c0_i32_0 = arith.constant 0 : i32
    return %c0_i32, %arg1 : i32, i32
  }
  func.func @transform_4(%arg0: i32, %arg1: i32) -> (i32, i32) {
    %c0_i32 = arith.constant 0 : i32
    return %arg0, %arg1 : i32, i32
  }
  func.func @transform_5(%arg0: i32, %arg1: i32) -> (i32, i32) {
    %c0_i32 = arith.constant 0 : i32
    return %arg0, %arg1 : i32, i32
  }
}

module attributes {stable_mosaic.version = 11 : i64} {
  func.func @_matmul_bn_kernel(%arg0: i32, %arg1: i32, %arg2: memref<128x256xbf16, #tpu.memory_space<vmem>>, %arg3: memref<256x128xbf16, #tpu.memory_space<vmem>>, %arg4: memref<1x128xf32, #tpu.memory_space<vmem>>, %arg5: memref<1x128xf32, #tpu.memory_space<vmem>>, %arg6: memref<128x128xf32, #tpu.memory_space<vmem>>) attributes {dimension_semantics = [#tpu.dimension_semantics<parallel>, #tpu.dimension_semantics<parallel>], iteration_bounds = array<i64: 1, 1>, scalar_prefetch = 0 : i64, scratch_operands = 0 : i64, tpu.core_type = #tpu.core_type<tc>, window_params = [{transform_indices = @transform_0, window_bounds = array<i64: 128, 256>}, {transform_indices = @transform_1, window_bounds = array<i64: 256, 128>}, {transform_indices = @transform_2, window_bounds = array<i64: 1, 128>}, {transform_indices = @transform_3, window_bounds = array<i64: 1, 128>}, {transform_indices = @transform_4, window_bounds = array<i64: 128, 128>}]} {
    %c0 = arith.constant 0 : index
    %c0_0 = arith.constant 0 : index
    %0 = vector.load %arg2[%c0, %c0_0] : memref<128x256xbf16, #tpu.memory_space<vmem>>, vector<128x256xbf16>
    %c0_1 = arith.constant 0 : index
    %c0_2 = arith.constant 0 : index
    %1 = vector.load %arg3[%c0_1, %c0_2] : memref<256x128xbf16, #tpu.memory_space<vmem>>, vector<256x128xbf16>
    %cst = arith.constant dense<0.000000e+00> : vector<128x128xf32>
    %2 = tpu.matmul %0, %1, %cst {dimension_numbers = #tpu.dot_dimension_numbers<[1], [0], [0], [1], [0, 0, 1, 1], [], []>} : vector<128x256xbf16>, vector<256x128xbf16>, vector<128x128xf32> -> vector<128x128xf32>
    %c0_3 = arith.constant 0 : index
    %c0_4 = arith.constant 0 : index
    %3 = vector.load %arg4[%c0_3, %c0_4] : memref<1x128xf32, #tpu.memory_space<vmem>>, vector<1x128xf32>
    %4 = vector.broadcast %3 : vector<1x128xf32> to vector<128x128xf32>
    %5 = arith.mulf %2, %4 : vector<128x128xf32>
    %c0_5 = arith.constant 0 : index
    %c0_6 = arith.constant 0 : index
    %6 = vector.load %arg5[%c0_5, %c0_6] : memref<1x128xf32, #tpu.memory_space<vmem>>, vector<1x128xf32>
    %7 = vector.broadcast %6 : vector<1x128xf32> to vector<128x128xf32>
    %8 = arith.addf %5, %7 : vector<128x128xf32>
    %cst_7 = arith.constant 0.000000e+00 : f32
    %9 = vector.broadcast %cst_7 : f32 to vector<128x128xf32>
    %10 = arith.maximumf %8, %9 : vector<128x128xf32>
    %c0_8 = arith.constant 0 : index
    %c0_9 = arith.constant 0 : index
    %11 = vector.load %arg6[%c0_8, %c0_9] : memref<128x128xf32, #tpu.memory_space<vmem>>, vector<128x128xf32>
    tpu.vector_store %arg6[%c0_8, %c0_9], %10 {strides = array<i32>} : memref<128x128xf32, #tpu.memory_space<vmem>>, vector<128x128xf32>,
    return
  }
  func.func @transform_0(%arg0: i32, %arg1: i32) -> (i32, i32) {
    %c0_i32 = arith.constant 0 : i32
    %c0_i32_0 = arith.constant 0 : i32
    return %arg0, %c0_i32 : i32, i32
  }
  func.func @transform_1(%arg0: i32, %arg1: i32) -> (i32, i32) {
    %c0_i32 = arith.constant 0 : i32
    %c0_i32_0 = arith.constant 0 : i32
    return %c0_i32, %arg1 : i32, i32
  }
  func.func @transform_2(%arg0: i32, %arg1: i32) -> (i32, i32) {
    %c0_i32 = arith.constant 0 : i32
    %c0_i32_0 = arith.constant 0 : i32
    return %c0_i32, %arg1 : i32, i32
  }
  func.func @transform_3(%arg0: i32, %arg1: i32) -> (i32, i32) {
    %c0_i32 = arith.constant 0 : i32
    %c0_i32_0 = arith.constant 0 : i32
    return %c0_i32, %arg1 : i32, i32
  }
  func.func @transform_4(%arg0: i32, %arg1: i32) -> (i32, i32) {
    %c0_i32 = arith.constant 0 : i32
    return %arg0, %arg1 : i32, i32
  }
}

module attributes {stable_mosaic.version = 11 : i64} {
  func.func @_matmul_bn_kernel(%arg0: i32, %arg1: i32, %arg2: memref<32x128xbf16, #tpu.memory_space<vmem>>, %arg3: memref<128x128xbf16, #tpu.memory_space<vmem>>, %arg4: memref<1x128xf32, #tpu.memory_space<vmem>>, %arg5: memref<1x128xf32, #tpu.memory_space<vmem>>, %arg6: memref<32x128xf32, #tpu.memory_space<vmem>>) attributes {dimension_semantics = [#tpu.dimension_semantics<parallel>, #tpu.dimension_semantics<parallel>], iteration_bounds = array<i64: 1, 1>, scalar_prefetch = 0 : i64, scratch_operands = 0 : i64, tpu.core_type = #tpu.core_type<tc>, window_params = [{transform_indices = @transform_0, window_bounds = array<i64: 32, 128>}, {transform_indices = @transform_1, window_bounds = array<i64: 128, 128>}, {transform_indices = @transform_2, window_bounds = array<i64: 1, 128>}, {transform_indices = @transform_3, window_bounds = array<i64: 1, 128>}, {transform_indices = @transform_4, window_bounds = array<i64: 32, 128>}]} {
    %c0 = arith.constant 0 : index
    %c0_0 = arith.constant 0 : index
    %0 = vector.load %arg2[%c0, %c0_0] : memref<32x128xbf16, #tpu.memory_space<vmem>>, vector<32x128xbf16>
    %c0_1 = arith.constant 0 : index
    %c0_2 = arith.constant 0 : index
    %1 = vector.load %arg3[%c0_1, %c0_2] : memref<128x128xbf16, #tpu.memory_space<vmem>>, vector<128x128xbf16>
    %cst = arith.constant dense<0.000000e+00> : vector<32x128xf32>
    %2 = tpu.matmul %0, %1, %cst {dimension_numbers = #tpu.dot_dimension_numbers<[1], [0], [0], [1], [0, 0, 1, 1], [], []>} : vector<32x128xbf16>, vector<128x128xbf16>, vector<32x128xf32> -> vector<32x128xf32>
    %c0_3 = arith.constant 0 : index
    %c0_4 = arith.constant 0 : index
    %3 = vector.load %arg4[%c0_3, %c0_4] : memref<1x128xf32, #tpu.memory_space<vmem>>, vector<1x128xf32>
    %4 = vector.broadcast %3 : vector<1x128xf32> to vector<32x128xf32>
    %5 = arith.mulf %2, %4 : vector<32x128xf32>
    %c0_5 = arith.constant 0 : index
    %c0_6 = arith.constant 0 : index
    %6 = vector.load %arg5[%c0_5, %c0_6] : memref<1x128xf32, #tpu.memory_space<vmem>>, vector<1x128xf32>
    %7 = vector.broadcast %6 : vector<1x128xf32> to vector<32x128xf32>
    %8 = arith.addf %5, %7 : vector<32x128xf32>
    %c0_7 = arith.constant 0 : index
    %c0_8 = arith.constant 0 : index
    %9 = vector.load %arg6[%c0_7, %c0_8] : memref<32x128xf32, #tpu.memory_space<vmem>>, vector<32x128xf32>
    tpu.vector_store %arg6[%c0_7, %c0_8], %8 {strides = array<i32>} : memref<32x128xf32, #tpu.memory_space<vmem>>, vector<32x128xf32>,
    return
  }
  func.func @transform_0(%arg0: i32, %arg1: i32) -> (i32, i32) {
    %c0_i32 = arith.constant 0 : i32
    %c0_i32_0 = arith.constant 0 : i32
    return %arg0, %c0_i32 : i32, i32
  }
  func.func @transform_1(%arg0: i32, %arg1: i32) -> (i32, i32) {
    %c0_i32 = arith.constant 0 : i32
    %c0_i32_0 = arith.constant 0 : i32
    return %c0_i32, %arg1 : i32, i32
  }
  func.func @transform_2(%arg0: i32, %arg1: i32) -> (i32, i32) {
    %c0_i32 = arith.constant 0 : i32
    %c0_i32_0 = arith.constant 0 : i32
    return %c0_i32, %arg1 : i32, i32
  }
  func.func @transform_3(%arg0: i32, %arg1: i32) -> (i32, i32) {
    %c0_i32 = arith.constant 0 : i32
    %c0_i32_0 = arith.constant 0 : i32
    return %c0_i32, %arg1 : i32, i32
  }
  func.func @transform_4(%arg0: i32, %arg1: i32) -> (i32, i32) {
    %c0_i32 = arith.constant 0 : i32
    return %arg0, %arg1 : i32, i32
  }
}

module attributes {stable_mosaic.version = 11 : i64} {
  func.func @_matmul_bn_kernel(%arg0: i32, %arg1: i32, %arg2: memref<32x256xbf16, #tpu.memory_space<vmem>>, %arg3: memref<256x128xbf16, #tpu.memory_space<vmem>>, %arg4: memref<1x128xf32, #tpu.memory_space<vmem>>, %arg5: memref<1x128xf32, #tpu.memory_space<vmem>>, %arg6: memref<32x128xf32, #tpu.memory_space<vmem>>) attributes {dimension_semantics = [#tpu.dimension_semantics<parallel>, #tpu.dimension_semantics<parallel>], iteration_bounds = array<i64: 1, 1>, scalar_prefetch = 0 : i64, scratch_operands = 0 : i64, tpu.core_type = #tpu.core_type<tc>, window_params = [{transform_indices = @transform_0, window_bounds = array<i64: 32, 256>}, {transform_indices = @transform_1, window_bounds = array<i64: 256, 128>}, {transform_indices = @transform_2, window_bounds = array<i64: 1, 128>}, {transform_indices = @transform_3, window_bounds = array<i64: 1, 128>}, {transform_indices = @transform_4, window_bounds = array<i64: 32, 128>}]} {
    %c0 = arith.constant 0 : index
    %c0_0 = arith.constant 0 : index
    %0 = vector.load %arg2[%c0, %c0_0] : memref<32x256xbf16, #tpu.memory_space<vmem>>, vector<32x256xbf16>
    %c0_1 = arith.constant 0 : index
    %c0_2 = arith.constant 0 : index
    %1 = vector.load %arg3[%c0_1, %c0_2] : memref<256x128xbf16, #tpu.memory_space<vmem>>, vector<256x128xbf16>
    %cst = arith.constant dense<0.000000e+00> : vector<32x128xf32>
    %2 = tpu.matmul %0, %1, %cst {dimension_numbers = #tpu.dot_dimension_numbers<[1], [0], [0], [1], [0, 0, 1, 1], [], []>} : vector<32x256xbf16>, vector<256x128xbf16>, vector<32x128xf32> -> vector<32x128xf32>
    %c0_3 = arith.constant 0 : index
    %c0_4 = arith.constant 0 : index
    %3 = vector.load %arg4[%c0_3, %c0_4] : memref<1x128xf32, #tpu.memory_space<vmem>>, vector<1x128xf32>
    %4 = vector.broadcast %3 : vector<1x128xf32> to vector<32x128xf32>
    %5 = arith.mulf %2, %4 : vector<32x128xf32>
    %c0_5 = arith.constant 0 : index
    %c0_6 = arith.constant 0 : index
    %6 = vector.load %arg5[%c0_5, %c0_6] : memref<1x128xf32, #tpu.memory_space<vmem>>, vector<1x128xf32>
    %7 = vector.broadcast %6 : vector<1x128xf32> to vector<32x128xf32>
    %8 = arith.addf %5, %7 : vector<32x128xf32>
    %cst_7 = arith.constant 0.000000e+00 : f32
    %9 = vector.broadcast %cst_7 : f32 to vector<32x128xf32>
    %10 = arith.maximumf %8, %9 : vector<32x128xf32>
    %c0_8 = arith.constant 0 : index
    %c0_9 = arith.constant 0 : index
    %11 = vector.load %arg6[%c0_8, %c0_9] : memref<32x128xf32, #tpu.memory_space<vmem>>, vector<32x128xf32>
    tpu.vector_store %arg6[%c0_8, %c0_9], %10 {strides = array<i32>} : memref<32x128xf32, #tpu.memory_space<vmem>>, vector<32x128xf32>,
    return
  }
  func.func @transform_0(%arg0: i32, %arg1: i32) -> (i32, i32) {
    %c0_i32 = arith.constant 0 : i32
    %c0_i32_0 = arith.constant 0 : i32
    return %arg0, %c0_i32 : i32, i32
  }
  func.func @transform_1(%arg0: i32, %arg1: i32) -> (i32, i32) {
    %c0_i32 = arith.constant 0 : i32
    %c0_i32_0 = arith.constant 0 : i32
    return %c0_i32, %arg1 : i32, i32
  }
  func.func @transform_2(%arg0: i32, %arg1: i32) -> (i32, i32) {
    %c0_i32 = arith.constant 0 : i32
    %c0_i32_0 = arith.constant 0 : i32
    return %c0_i32, %arg1 : i32, i32
  }
  func.func @transform_3(%arg0: i32, %arg1: i32) -> (i32, i32) {
    %c0_i32 = arith.constant 0 : i32
    %c0_i32_0 = arith.constant 0 : i32
    return %c0_i32, %arg1 : i32, i32
  }
  func.func @transform_4(%arg0: i32, %arg1: i32) -> (i32, i32) {
    %c0_i32 = arith.constant 0 : i32
    return %arg0, %arg1 : i32, i32
  }
}

module attributes {stable_mosaic.version = 11 : i64} {
  func.func @_matmul_bn_add_relu_kernel(%arg0: i32, %arg1: i32, %arg2: memref<32x384xbf16, #tpu.memory_space<vmem>>, %arg3: memref<384x128xbf16, #tpu.memory_space<vmem>>, %arg4: memref<1x128xf32, #tpu.memory_space<vmem>>, %arg5: memref<1x128xf32, #tpu.memory_space<vmem>>, %arg6: memref<32x128xf32, #tpu.memory_space<vmem>>, %arg7: memref<32x128xf32, #tpu.memory_space<vmem>>) attributes {dimension_semantics = [#tpu.dimension_semantics<parallel>, #tpu.dimension_semantics<parallel>], iteration_bounds = array<i64: 1, 1>, scalar_prefetch = 0 : i64, scratch_operands = 0 : i64, tpu.core_type = #tpu.core_type<tc>, window_params = [{transform_indices = @transform_0, window_bounds = array<i64: 32, 384>}, {transform_indices = @transform_1, window_bounds = array<i64: 384, 128>}, {transform_indices = @transform_2, window_bounds = array<i64: 1, 128>}, {transform_indices = @transform_3, window_bounds = array<i64: 1, 128>}, {transform_indices = @transform_4, window_bounds = array<i64: 32, 128>}, {transform_indices = @transform_5, window_bounds = array<i64: 32, 128>}]} {
    %c0 = arith.constant 0 : index
    %c0_0 = arith.constant 0 : index
    %0 = vector.load %arg2[%c0, %c0_0] : memref<32x384xbf16, #tpu.memory_space<vmem>>, vector<32x384xbf16>
    %c0_1 = arith.constant 0 : index
    %c0_2 = arith.constant 0 : index
    %1 = vector.load %arg3[%c0_1, %c0_2] : memref<384x128xbf16, #tpu.memory_space<vmem>>, vector<384x128xbf16>
    %cst = arith.constant dense<0.000000e+00> : vector<32x128xf32>
    %2 = tpu.matmul %0, %1, %cst {dimension_numbers = #tpu.dot_dimension_numbers<[1], [0], [0], [1], [0, 0, 1, 1], [], []>} : vector<32x384xbf16>, vector<384x128xbf16>, vector<32x128xf32> -> vector<32x128xf32>
    %c0_3 = arith.constant 0 : index
    %c0_4 = arith.constant 0 : index
    %3 = vector.load %arg4[%c0_3, %c0_4] : memref<1x128xf32, #tpu.memory_space<vmem>>, vector<1x128xf32>
    %4 = vector.broadcast %3 : vector<1x128xf32> to vector<32x128xf32>
    %5 = arith.mulf %2, %4 : vector<32x128xf32>
    %c0_5 = arith.constant 0 : index
    %c0_6 = arith.constant 0 : index
    %6 = vector.load %arg5[%c0_5, %c0_6] : memref<1x128xf32, #tpu.memory_space<vmem>>, vector<1x128xf32>
    %7 = vector.broadcast %6 : vector<1x128xf32> to vector<32x128xf32>
    %8 = arith.addf %5, %7 : vector<32x128xf32>
    %c0_7 = arith.constant 0 : index
    %c0_8 = arith.constant 0 : index
    %9 = vector.load %arg6[%c0_7, %c0_8] : memref<32x128xf32, #tpu.memory_space<vmem>>, vector<32x128xf32>
    %10 = arith.addf %8, %9 : vector<32x128xf32>
    %cst_9 = arith.constant 0.000000e+00 : f32
    %11 = vector.broadcast %cst_9 : f32 to vector<32x128xf32>
    %12 = arith.maximumf %10, %11 : vector<32x128xf32>
    %c0_10 = arith.constant 0 : index
    %c0_11 = arith.constant 0 : index
    %13 = vector.load %arg7[%c0_10, %c0_11] : memref<32x128xf32, #tpu.memory_space<vmem>>, vector<32x128xf32>
    tpu.vector_store %arg7[%c0_10, %c0_11], %12 {strides = array<i32>} : memref<32x128xf32, #tpu.memory_space<vmem>>, vector<32x128xf32>,
    return
  }
  func.func @transform_0(%arg0: i32, %arg1: i32) -> (i32, i32) {
    %c0_i32 = arith.constant 0 : i32
    %c0_i32_0 = arith.constant 0 : i32
    return %arg0, %c0_i32 : i32, i32
  }
  func.func @transform_1(%arg0: i32, %arg1: i32) -> (i32, i32) {
    %c0_i32 = arith.constant 0 : i32
    %c0_i32_0 = arith.constant 0 : i32
    return %c0_i32, %arg1 : i32, i32
  }
  func.func @transform_2(%arg0: i32, %arg1: i32) -> (i32, i32) {
    %c0_i32 = arith.constant 0 : i32
    %c0_i32_0 = arith.constant 0 : i32
    return %c0_i32, %arg1 : i32, i32
  }
  func.func @transform_3(%arg0: i32, %arg1: i32) -> (i32, i32) {
    %c0_i32 = arith.constant 0 : i32
    %c0_i32_0 = arith.constant 0 : i32
    return %c0_i32, %arg1 : i32, i32
  }
  func.func @transform_4(%arg0: i32, %arg1: i32) -> (i32, i32) {
    %c0_i32 = arith.constant 0 : i32
    return %arg0, %arg1 : i32, i32
  }
  func.func @transform_5(%arg0: i32, %arg1: i32) -> (i32, i32) {
    %c0_i32 = arith.constant 0 : i32
    return %arg0, %arg1 : i32, i32
  }
}

module attributes {stable_mosaic.version = 11 : i64} {
  func.func @_matmul_bn_kernel(%arg0: i32, %arg1: i32, %arg2: memref<32x384xbf16, #tpu.memory_space<vmem>>, %arg3: memref<384x128xbf16, #tpu.memory_space<vmem>>, %arg4: memref<1x128xf32, #tpu.memory_space<vmem>>, %arg5: memref<1x128xf32, #tpu.memory_space<vmem>>, %arg6: memref<32x128xf32, #tpu.memory_space<vmem>>) attributes {dimension_semantics = [#tpu.dimension_semantics<parallel>, #tpu.dimension_semantics<parallel>], iteration_bounds = array<i64: 1, 1>, scalar_prefetch = 0 : i64, scratch_operands = 0 : i64, tpu.core_type = #tpu.core_type<tc>, window_params = [{transform_indices = @transform_0, window_bounds = array<i64: 32, 384>}, {transform_indices = @transform_1, window_bounds = array<i64: 384, 128>}, {transform_indices = @transform_2, window_bounds = array<i64: 1, 128>}, {transform_indices = @transform_3, window_bounds = array<i64: 1, 128>}, {transform_indices = @transform_4, window_bounds = array<i64: 32, 128>}]} {
    %c0 = arith.constant 0 : index
    %c0_0 = arith.constant 0 : index
    %0 = vector.load %arg2[%c0, %c0_0] : memref<32x384xbf16, #tpu.memory_space<vmem>>, vector<32x384xbf16>
    %c0_1 = arith.constant 0 : index
    %c0_2 = arith.constant 0 : index
    %1 = vector.load %arg3[%c0_1, %c0_2] : memref<384x128xbf16, #tpu.memory_space<vmem>>, vector<384x128xbf16>
    %cst = arith.constant dense<0.000000e+00> : vector<32x128xf32>
    %2 = tpu.matmul %0, %1, %cst {dimension_numbers = #tpu.dot_dimension_numbers<[1], [0], [0], [1], [0, 0, 1, 1], [], []>} : vector<32x384xbf16>, vector<384x128xbf16>, vector<32x128xf32> -> vector<32x128xf32>
    %c0_3 = arith.constant 0 : index
    %c0_4 = arith.constant 0 : index
    %3 = vector.load %arg4[%c0_3, %c0_4] : memref<1x128xf32, #tpu.memory_space<vmem>>, vector<1x128xf32>
    %4 = vector.broadcast %3 : vector<1x128xf32> to vector<32x128xf32>
    %5 = arith.mulf %2, %4 : vector<32x128xf32>
    %c0_5 = arith.constant 0 : index
    %c0_6 = arith.constant 0 : index
    %6 = vector.load %arg5[%c0_5, %c0_6] : memref<1x128xf32, #tpu.memory_space<vmem>>, vector<1x128xf32>
    %7 = vector.broadcast %6 : vector<1x128xf32> to vector<32x128xf32>
    %8 = arith.addf %5, %7 : vector<32x128xf32>
    %cst_7 = arith.constant 0.000000e+00 : f32
    %9 = vector.broadcast %cst_7 : f32 to vector<32x128xf32>
    %10 = arith.maximumf %8, %9 : vector<32x128xf32>
    %c0_8 = arith.constant 0 : index
    %c0_9 = arith.constant 0 : index
    %11 = vector.load %arg6[%c0_8, %c0_9] : memref<32x128xf32, #tpu.memory_space<vmem>>, vector<32x128xf32>
    tpu.vector_store %arg6[%c0_8, %c0_9], %10 {strides = array<i32>} : memref<32x128xf32, #tpu.memory_space<vmem>>, vector<32x128xf32>,
    return
  }
  func.func @transform_0(%arg0: i32, %arg1: i32) -> (i32, i32) {
    %c0_i32 = arith.constant 0 : i32
    %c0_i32_0 = arith.constant 0 : i32
    return %arg0, %c0_i32 : i32, i32
  }
  func.func @transform_1(%arg0: i32, %arg1: i32) -> (i32, i32) {
    %c0_i32 = arith.constant 0 : i32
    %c0_i32_0 = arith.constant 0 : i32
    return %c0_i32, %arg1 : i32, i32
  }
  func.func @transform_2(%arg0: i32, %arg1: i32) -> (i32, i32) {
    %c0_i32 = arith.constant 0 : i32
    %c0_i32_0 = arith.constant 0 : i32
    return %c0_i32, %arg1 : i32, i32
  }
  func.func @transform_3(%arg0: i32, %arg1: i32) -> (i32, i32) {
    %c0_i32 = arith.constant 0 : i32
    %c0_i32_0 = arith.constant 0 : i32
    return %c0_i32, %arg1 : i32, i32
  }
  func.func @transform_4(%arg0: i32, %arg1: i32) -> (i32, i32) {
    %c0_i32 = arith.constant 0 : i32
    return %arg0, %arg1 : i32, i32
  }
}

module attributes {stable_mosaic.version = 11 : i64} {
  func.func @_matmul_bn_kernel(%arg0: i32, %arg1: i32, %arg2: memref<16x128xbf16, #tpu.memory_space<vmem>>, %arg3: memref<128x128xbf16, #tpu.memory_space<vmem>>, %arg4: memref<1x128xf32, #tpu.memory_space<vmem>>, %arg5: memref<1x128xf32, #tpu.memory_space<vmem>>, %arg6: memref<16x128xf32, #tpu.memory_space<vmem>>) attributes {dimension_semantics = [#tpu.dimension_semantics<parallel>, #tpu.dimension_semantics<parallel>], iteration_bounds = array<i64: 1, 1>, scalar_prefetch = 0 : i64, scratch_operands = 0 : i64, tpu.core_type = #tpu.core_type<tc>, window_params = [{transform_indices = @transform_0, window_bounds = array<i64: 16, 128>}, {transform_indices = @transform_1, window_bounds = array<i64: 128, 128>}, {transform_indices = @transform_2, window_bounds = array<i64: 1, 128>}, {transform_indices = @transform_3, window_bounds = array<i64: 1, 128>}, {transform_indices = @transform_4, window_bounds = array<i64: 16, 128>}]} {
    %c0 = arith.constant 0 : index
    %c0_0 = arith.constant 0 : index
    %0 = vector.load %arg2[%c0, %c0_0] : memref<16x128xbf16, #tpu.memory_space<vmem>>, vector<16x128xbf16>
    %c0_1 = arith.constant 0 : index
    %c0_2 = arith.constant 0 : index
    %1 = vector.load %arg3[%c0_1, %c0_2] : memref<128x128xbf16, #tpu.memory_space<vmem>>, vector<128x128xbf16>
    %cst = arith.constant dense<0.000000e+00> : vector<16x128xf32>
    %2 = tpu.matmul %0, %1, %cst {dimension_numbers = #tpu.dot_dimension_numbers<[1], [0], [0], [1], [0, 0, 1, 1], [], []>} : vector<16x128xbf16>, vector<128x128xbf16>, vector<16x128xf32> -> vector<16x128xf32>
    %c0_3 = arith.constant 0 : index
    %c0_4 = arith.constant 0 : index
    %3 = vector.load %arg4[%c0_3, %c0_4] : memref<1x128xf32, #tpu.memory_space<vmem>>, vector<1x128xf32>
    %4 = vector.broadcast %3 : vector<1x128xf32> to vector<16x128xf32>
    %5 = arith.mulf %2, %4 : vector<16x128xf32>
    %c0_5 = arith.constant 0 : index
    %c0_6 = arith.constant 0 : index
    %6 = vector.load %arg5[%c0_5, %c0_6] : memref<1x128xf32, #tpu.memory_space<vmem>>, vector<1x128xf32>
    %7 = vector.broadcast %6 : vector<1x128xf32> to vector<16x128xf32>
    %8 = arith.addf %5, %7 : vector<16x128xf32>
    %c0_7 = arith.constant 0 : index
    %c0_8 = arith.constant 0 : index
    %9 = vector.load %arg6[%c0_7, %c0_8] : memref<16x128xf32, #tpu.memory_space<vmem>>, vector<16x128xf32>
    tpu.vector_store %arg6[%c0_7, %c0_8], %8 {strides = array<i32>} : memref<16x128xf32, #tpu.memory_space<vmem>>, vector<16x128xf32>,
    return
  }
  func.func @transform_0(%arg0: i32, %arg1: i32) -> (i32, i32) {
    %c0_i32 = arith.constant 0 : i32
    %c0_i32_0 = arith.constant 0 : i32
    return %arg0, %c0_i32 : i32, i32
  }
  func.func @transform_1(%arg0: i32, %arg1: i32) -> (i32, i32) {
    %c0_i32 = arith.constant 0 : i32
    %c0_i32_0 = arith.constant 0 : i32
    return %c0_i32, %arg1 : i32, i32
  }
  func.func @transform_2(%arg0: i32, %arg1: i32) -> (i32, i32) {
    %c0_i32 = arith.constant 0 : i32
    %c0_i32_0 = arith.constant 0 : i32
    return %c0_i32, %arg1 : i32, i32
  }
  func.func @transform_3(%arg0: i32, %arg1: i32) -> (i32, i32) {
    %c0_i32 = arith.constant 0 : i32
    %c0_i32_0 = arith.constant 0 : i32
    return %c0_i32, %arg1 : i32, i32
  }
  func.func @transform_4(%arg0: i32, %arg1: i32) -> (i32, i32) {
    %c0_i32 = arith.constant 0 : i32
    return %arg0, %arg1 : i32, i32
  }
}

module attributes {stable_mosaic.version = 11 : i64} {
  func.func @_matmul_bn_kernel(%arg0: i32, %arg1: i32, %arg2: memref<16x384xbf16, #tpu.memory_space<vmem>>, %arg3: memref<384x128xbf16, #tpu.memory_space<vmem>>, %arg4: memref<1x128xf32, #tpu.memory_space<vmem>>, %arg5: memref<1x128xf32, #tpu.memory_space<vmem>>, %arg6: memref<16x128xf32, #tpu.memory_space<vmem>>) attributes {dimension_semantics = [#tpu.dimension_semantics<parallel>, #tpu.dimension_semantics<parallel>], iteration_bounds = array<i64: 1, 1>, scalar_prefetch = 0 : i64, scratch_operands = 0 : i64, tpu.core_type = #tpu.core_type<tc>, window_params = [{transform_indices = @transform_0, window_bounds = array<i64: 16, 384>}, {transform_indices = @transform_1, window_bounds = array<i64: 384, 128>}, {transform_indices = @transform_2, window_bounds = array<i64: 1, 128>}, {transform_indices = @transform_3, window_bounds = array<i64: 1, 128>}, {transform_indices = @transform_4, window_bounds = array<i64: 16, 128>}]} {
    %c0 = arith.constant 0 : index
    %c0_0 = arith.constant 0 : index
    %0 = vector.load %arg2[%c0, %c0_0] : memref<16x384xbf16, #tpu.memory_space<vmem>>, vector<16x384xbf16>
    %c0_1 = arith.constant 0 : index
    %c0_2 = arith.constant 0 : index
    %1 = vector.load %arg3[%c0_1, %c0_2] : memref<384x128xbf16, #tpu.memory_space<vmem>>, vector<384x128xbf16>
    %cst = arith.constant dense<0.000000e+00> : vector<16x128xf32>
    %2 = tpu.matmul %0, %1, %cst {dimension_numbers = #tpu.dot_dimension_numbers<[1], [0], [0], [1], [0, 0, 1, 1], [], []>} : vector<16x384xbf16>, vector<384x128xbf16>, vector<16x128xf32> -> vector<16x128xf32>
    %c0_3 = arith.constant 0 : index
    %c0_4 = arith.constant 0 : index
    %3 = vector.load %arg4[%c0_3, %c0_4] : memref<1x128xf32, #tpu.memory_space<vmem>>, vector<1x128xf32>
    %4 = vector.broadcast %3 : vector<1x128xf32> to vector<16x128xf32>
    %5 = arith.mulf %2, %4 : vector<16x128xf32>
    %c0_5 = arith.constant 0 : index
    %c0_6 = arith.constant 0 : index
    %6 = vector.load %arg5[%c0_5, %c0_6] : memref<1x128xf32, #tpu.memory_space<vmem>>, vector<1x128xf32>
    %7 = vector.broadcast %6 : vector<1x128xf32> to vector<16x128xf32>
    %8 = arith.addf %5, %7 : vector<16x128xf32>
    %cst_7 = arith.constant 0.000000e+00 : f32
    %9 = vector.broadcast %cst_7 : f32 to vector<16x128xf32>
    %10 = arith.maximumf %8, %9 : vector<16x128xf32>
    %c0_8 = arith.constant 0 : index
    %c0_9 = arith.constant 0 : index
    %11 = vector.load %arg6[%c0_8, %c0_9] : memref<16x128xf32, #tpu.memory_space<vmem>>, vector<16x128xf32>
    tpu.vector_store %arg6[%c0_8, %c0_9], %10 {strides = array<i32>} : memref<16x128xf32, #tpu.memory_space<vmem>>, vector<16x128xf32>,
    return
  }
  func.func @transform_0(%arg0: i32, %arg1: i32) -> (i32, i32) {
    %c0_i32 = arith.constant 0 : i32
    %c0_i32_0 = arith.constant 0 : i32
    return %arg0, %c0_i32 : i32, i32
  }
  func.func @transform_1(%arg0: i32, %arg1: i32) -> (i32, i32) {
    %c0_i32 = arith.constant 0 : i32
    %c0_i32_0 = arith.constant 0 : i32
    return %c0_i32, %arg1 : i32, i32
  }
  func.func @transform_2(%arg0: i32, %arg1: i32) -> (i32, i32) {
    %c0_i32 = arith.constant 0 : i32
    %c0_i32_0 = arith.constant 0 : i32
    return %c0_i32, %arg1 : i32, i32
  }
  func.func @transform_3(%arg0: i32, %arg1: i32) -> (i32, i32) {
    %c0_i32 = arith.constant 0 : i32
    %c0_i32_0 = arith.constant 0 : i32
    return %c0_i32, %arg1 : i32, i32
  }
  func.func @transform_4(%arg0: i32, %arg1: i32) -> (i32, i32) {
    %c0_i32 = arith.constant 0 : i32
    return %arg0, %arg1 : i32, i32
  }
}

module attributes {stable_mosaic.version = 11 : i64} {
  func.func @_matmul_bn_kernel(%arg0: i32, %arg1: i32, %arg2: memref<16x640xbf16, #tpu.memory_space<vmem>>, %arg3: memref<640x128xbf16, #tpu.memory_space<vmem>>, %arg4: memref<1x128xf32, #tpu.memory_space<vmem>>, %arg5: memref<1x128xf32, #tpu.memory_space<vmem>>, %arg6: memref<16x128xf32, #tpu.memory_space<vmem>>) attributes {dimension_semantics = [#tpu.dimension_semantics<parallel>, #tpu.dimension_semantics<parallel>], iteration_bounds = array<i64: 1, 1>, scalar_prefetch = 0 : i64, scratch_operands = 0 : i64, tpu.core_type = #tpu.core_type<tc>, window_params = [{transform_indices = @transform_0, window_bounds = array<i64: 16, 640>}, {transform_indices = @transform_1, window_bounds = array<i64: 640, 128>}, {transform_indices = @transform_2, window_bounds = array<i64: 1, 128>}, {transform_indices = @transform_3, window_bounds = array<i64: 1, 128>}, {transform_indices = @transform_4, window_bounds = array<i64: 16, 128>}]} {
    %c0 = arith.constant 0 : index
    %c0_0 = arith.constant 0 : index
    %0 = vector.load %arg2[%c0, %c0_0] : memref<16x640xbf16, #tpu.memory_space<vmem>>, vector<16x640xbf16>
    %c0_1 = arith.constant 0 : index
    %c0_2 = arith.constant 0 : index
    %1 = vector.load %arg3[%c0_1, %c0_2] : memref<640x128xbf16, #tpu.memory_space<vmem>>, vector<640x128xbf16>
    %cst = arith.constant dense<0.000000e+00> : vector<16x128xf32>
    %2 = tpu.matmul %0, %1, %cst {dimension_numbers = #tpu.dot_dimension_numbers<[1], [0], [0], [1], [0, 0, 1, 1], [], []>} : vector<16x640xbf16>, vector<640x128xbf16>, vector<16x128xf32> -> vector<16x128xf32>
    %c0_3 = arith.constant 0 : index
    %c0_4 = arith.constant 0 : index
    %3 = vector.load %arg4[%c0_3, %c0_4] : memref<1x128xf32, #tpu.memory_space<vmem>>, vector<1x128xf32>
    %4 = vector.broadcast %3 : vector<1x128xf32> to vector<16x128xf32>
    %5 = arith.mulf %2, %4 : vector<16x128xf32>
    %c0_5 = arith.constant 0 : index
    %c0_6 = arith.constant 0 : index
    %6 = vector.load %arg5[%c0_5, %c0_6] : memref<1x128xf32, #tpu.memory_space<vmem>>, vector<1x128xf32>
    %7 = vector.broadcast %6 : vector<1x128xf32> to vector<16x128xf32>
    %8 = arith.addf %5, %7 : vector<16x128xf32>
    %cst_7 = arith.constant 0.000000e+00 : f32
    %9 = vector.broadcast %cst_7 : f32 to vector<16x128xf32>
    %10 = arith.maximumf %8, %9 : vector<16x128xf32>
    %c0_8 = arith.constant 0 : index
    %c0_9 = arith.constant 0 : index
    %11 = vector.load %arg6[%c0_8, %c0_9] : memref<16x128xf32, #tpu.memory_space<vmem>>, vector<16x128xf32>
    tpu.vector_store %arg6[%c0_8, %c0_9], %10 {strides = array<i32>} : memref<16x128xf32, #tpu.memory_space<vmem>>, vector<16x128xf32>,
    return
  }
  func.func @transform_0(%arg0: i32, %arg1: i32) -> (i32, i32) {
    %c0_i32 = arith.constant 0 : i32
    %c0_i32_0 = arith.constant 0 : i32
    return %arg0, %c0_i32 : i32, i32
  }
  func.func @transform_1(%arg0: i32, %arg1: i32) -> (i32, i32) {
    %c0_i32 = arith.constant 0 : i32
    %c0_i32_0 = arith.constant 0 : i32
    return %c0_i32, %arg1 : i32, i32
  }
  func.func @transform_2(%arg0: i32, %arg1: i32) -> (i32, i32) {
    %c0_i32 = arith.constant 0 : i32
    %c0_i32_0 = arith.constant 0 : i32
    return %c0_i32, %arg1 : i32, i32
  }
  func.func @transform_3(%arg0: i32, %arg1: i32) -> (i32, i32) {
    %c0_i32 = arith.constant 0 : i32
    %c0_i32_0 = arith.constant 0 : i32
    return %c0_i32, %arg1 : i32, i32
  }
  func.func @transform_4(%arg0: i32, %arg1: i32) -> (i32, i32) {
    %c0_i32 = arith.constant 0 : i32
    return %arg0, %arg1 : i32, i32
  }
}

module attributes {stable_mosaic.version = 11 : i64} {
  func.func @_matmul_bn_add_relu_kernel(%arg0: i32, %arg1: i32, %arg2: memref<16x640xbf16, #tpu.memory_space<vmem>>, %arg3: memref<640x128xbf16, #tpu.memory_space<vmem>>, %arg4: memref<1x128xf32, #tpu.memory_space<vmem>>, %arg5: memref<1x128xf32, #tpu.memory_space<vmem>>, %arg6: memref<16x128xf32, #tpu.memory_space<vmem>>, %arg7: memref<16x128xf32, #tpu.memory_space<vmem>>) attributes {dimension_semantics = [#tpu.dimension_semantics<parallel>, #tpu.dimension_semantics<parallel>], iteration_bounds = array<i64: 1, 1>, scalar_prefetch = 0 : i64, scratch_operands = 0 : i64, tpu.core_type = #tpu.core_type<tc>, window_params = [{transform_indices = @transform_0, window_bounds = array<i64: 16, 640>}, {transform_indices = @transform_1, window_bounds = array<i64: 640, 128>}, {transform_indices = @transform_2, window_bounds = array<i64: 1, 128>}, {transform_indices = @transform_3, window_bounds = array<i64: 1, 128>}, {transform_indices = @transform_4, window_bounds = array<i64: 16, 128>}, {transform_indices = @transform_5, window_bounds = array<i64: 16, 128>}]} {
    %c0 = arith.constant 0 : index
    %c0_0 = arith.constant 0 : index
    %0 = vector.load %arg2[%c0, %c0_0] : memref<16x640xbf16, #tpu.memory_space<vmem>>, vector<16x640xbf16>
    %c0_1 = arith.constant 0 : index
    %c0_2 = arith.constant 0 : index
    %1 = vector.load %arg3[%c0_1, %c0_2] : memref<640x128xbf16, #tpu.memory_space<vmem>>, vector<640x128xbf16>
    %cst = arith.constant dense<0.000000e+00> : vector<16x128xf32>
    %2 = tpu.matmul %0, %1, %cst {dimension_numbers = #tpu.dot_dimension_numbers<[1], [0], [0], [1], [0, 0, 1, 1], [], []>} : vector<16x640xbf16>, vector<640x128xbf16>, vector<16x128xf32> -> vector<16x128xf32>
    %c0_3 = arith.constant 0 : index
    %c0_4 = arith.constant 0 : index
    %3 = vector.load %arg4[%c0_3, %c0_4] : memref<1x128xf32, #tpu.memory_space<vmem>>, vector<1x128xf32>
    %4 = vector.broadcast %3 : vector<1x128xf32> to vector<16x128xf32>
    %5 = arith.mulf %2, %4 : vector<16x128xf32>
    %c0_5 = arith.constant 0 : index
    %c0_6 = arith.constant 0 : index
    %6 = vector.load %arg5[%c0_5, %c0_6] : memref<1x128xf32, #tpu.memory_space<vmem>>, vector<1x128xf32>
    %7 = vector.broadcast %6 : vector<1x128xf32> to vector<16x128xf32>
    %8 = arith.addf %5, %7 : vector<16x128xf32>
    %c0_7 = arith.constant 0 : index
    %c0_8 = arith.constant 0 : index
    %9 = vector.load %arg6[%c0_7, %c0_8] : memref<16x128xf32, #tpu.memory_space<vmem>>, vector<16x128xf32>
    %10 = arith.addf %8, %9 : vector<16x128xf32>
    %cst_9 = arith.constant 0.000000e+00 : f32
    %11 = vector.broadcast %cst_9 : f32 to vector<16x128xf32>
    %12 = arith.maximumf %10, %11 : vector<16x128xf32>
    %c0_10 = arith.constant 0 : index
    %c0_11 = arith.constant 0 : index
    %13 = vector.load %arg7[%c0_10, %c0_11] : memref<16x128xf32, #tpu.memory_space<vmem>>, vector<16x128xf32>
    tpu.vector_store %arg7[%c0_10, %c0_11], %12 {strides = array<i32>} : memref<16x128xf32, #tpu.memory_space<vmem>>, vector<16x128xf32>,
    return
  }
  func.func @transform_0(%arg0: i32, %arg1: i32) -> (i32, i32) {
    %c0_i32 = arith.constant 0 : i32
    %c0_i32_0 = arith.constant 0 : i32
    return %arg0, %c0_i32 : i32, i32
  }
  func.func @transform_1(%arg0: i32, %arg1: i32) -> (i32, i32) {
    %c0_i32 = arith.constant 0 : i32
    %c0_i32_0 = arith.constant 0 : i32
    return %c0_i32, %arg1 : i32, i32
  }
  func.func @transform_2(%arg0: i32, %arg1: i32) -> (i32, i32) {
    %c0_i32 = arith.constant 0 : i32
    %c0_i32_0 = arith.constant 0 : i32
    return %c0_i32, %arg1 : i32, i32
  }
  func.func @transform_3(%arg0: i32, %arg1: i32) -> (i32, i32) {
    %c0_i32 = arith.constant 0 : i32
    %c0_i32_0 = arith.constant 0 : i32
    return %c0_i32, %arg1 : i32, i32
  }
  func.func @transform_4(%arg0: i32, %arg1: i32) -> (i32, i32) {
    %c0_i32 = arith.constant 0 : i32
    return %arg0, %arg1 : i32, i32
  }
  func.func @transform_5(%arg0: i32, %arg1: i32) -> (i32, i32) {
    %c0_i32 = arith.constant 0 : i32
    return %arg0, %arg1 : i32, i32
  }
}

</mosaic_0001>

<bundles_post_ra>
// kernel: resnet_encoder_forward.21
= control target key start
LH: loop header
LB: loop body
LE: loop exit
PB: predicated region body
PF: predicated region fallthrough
CT: control target
= control target key end

     0   :  { %s1772_s15 = smov 0   ;;  %s1774_s16 = smov 0   ;;  %s2162_s0 = inlined_call_operand.vmem [shape: bf16[2048,256], index: 0, kind: input, shape index: {}]   ;;  %s2163_s1 = inlined_call_operand.vmem [shape: bf16[256,128], index: 1, kind: input, shape index: {}]   ;;  %s2164_s2 = inlined_call_operand.vmem [shape: f32[1,128], index: 2, kind: input, shape index: {}]   ;;  %s2165_s3 = inlined_call_operand.vmem [shape: f32[1,128], index: 3, kind: input, shape index: {}]   ;;  %s2166_s4 = inlined_call_operand.vmem [shape: f32[2048,128], index: 4, kind: output, shape index: {}]  }
   0x1   :  { %s1776_s17 = smov 0  }
   0x2 LB: > { %s26_s18 = sadd.s32 1, %s1740_s16  ;;  %p1462_p0 = scmp.ge.s32.totalorder %s1744_s17, 1  ;;  %s1744_s17 = sphi %s1776_s17, %s14_s17   ;;  %s1740_s16 = sphi %s1774_s16, %s2168_s16   ;;  %s1736_s15 = sphi %s1772_s15, %s2167_s15  }
   0x3   : > { %p28_p1 = scmp.ge.s32.totalorder %s26_s18, 4  ;;  %p203_p2 = scmp.lt.s32.totalorder %s1744_s17, 5 }
   0x5   : > { %s2170_s18 = smov (%p28_p1, %s26_s18), 0  ;;  %p204_p3 = pnand %p1462_p0, %p203_p2 }
   0x6   : > { %v1610_v0 = vld [vmem:[%s2163_s1] sm:$0xff] (!%p204_p3)   ;;  %v1746_v1 = vmov (!%p204_p3), 0   ;;  %s1463_s21 = sshll.u32 (!%p204_p3), %s1736_s15, 6  ;;  %v1611_v2 = vld [vmem:[%s2163_s1 + $0x8] sm:$0xff] (!%p204_p3)   ;;  %v1612_v3 = vld [vmem:[%s2163_s1 + $0x10] sm:$0xff] (!%p204_p3)  }
   0x7   : > { %207 = sbr.rel (%p204_p3) target bundleno = 412 (0x19c), region = 36  ;;  %782 = vmatprep.subr.bf16.mxu0 (!%p204_p3), %v1746_v1  ;;  %1553 = vmatprep.subr.bf16.mxu1 (!%p204_p3), %v1746_v1  ;;  %p244_p4 = scmp.lt.s32.totalorder (!%p204_p3), %s1463_s21, 255  ;;  %v1613_v4 = vld [vmem:[%s2163_s1 + $0x18] sm:$0xff] (!%p204_p3)   ;;  %v1614_v5 = vld [vmem:[%s2163_s1 + $0x20] sm:$0xff] (!%p204_p3)   ;;  %v1615_v7 = vld [vmem:[%s2163_s1 + $0x28] sm:$0xff] (!%p204_p3)  }
   0x8   : > { %783 = vmatpush1.bf16.msra.mxu0 (!%p204_p3), %v1610_v0  ;;  %1569 = vmatpush1.bf16.msra.mxu1 (!%p204_p3), %v1610_v0  ;;  %v1616_v9 = vld [vmem:[%s2163_s1 + $0x30] sm:$0xff] (!%p204_p3)   ;;  %v1617_v10 = vld [vmem:[%s2163_s1 + $0x38] sm:$0xff] (!%p204_p3)   ;;  %v1618_v11 = vld [vmem:[%s2163_s1 + $0x40] sm:$0xff] (!%p204_p3)  }
   0x9   : > { %784 = vmatprep.subr.bf16.mxu0 (!%p204_p3), %v1746_v1  ;;  %1554 = vmatprep.subr.bf16.mxu1 (!%p204_p3), %v1746_v1  ;;  %v1619_v12 = vld [vmem:[%s2163_s1 + $0x48] sm:$0xff] (!%p204_p3)   ;;  %v1620_v13 = vld [vmem:[%s2163_s1 + $0x50] sm:$0xff] (!%p204_p3)   ;;  %v1621_v14 = vld [vmem:[%s2163_s1 + $0x58] sm:$0xff] (!%p204_p3)  }
   0xa   : > { %v1622_v15 = vld [vmem:[%s2163_s1 + $0x60] sm:$0xff] (!%p204_p3)   ;;  %v1623_v16 = vld [vmem:[%s2163_s1 + $0x68] sm:$0xff] (!%p204_p3)   ;;  %v1624_v17 = vld [vmem:[%s2163_s1 + $0x70] sm:$0xff] (!%p204_p3)  }
   0xb   : > { %v1625_v18 = vld [vmem:[%s2163_s1 + $0x78] sm:$0xff] (!%p204_p3)  }
   0xc   : > { %785 = vmatpush1.bf16.msra.mxu0 (!%p204_p3), %v1611_v2  ;;  %1570 = vmatpush1.bf16.msra.mxu1 (!%p204_p3), %v1611_v2 }
   0xd   : > { %786 = vmatprep.subr.bf16.mxu0 (!%p204_p3), %v1746_v1  ;;  %1555 = vmatprep.subr.bf16.mxu1 (!%p204_p3), %v1746_v1 }
   0xe   : > { %s2172_s21 = smov (!%p244_p4, %s1463_s21), 255 }
   0xf   : > { %s1552_s28 = sshll.u32 %s2172_s21, 3 }
  0x10   : > { %787 = vmatpush1.bf16.msra.mxu0 %v1612_v3  ;;  %1571 = vmatpush1.bf16.msra.mxu1 %v1612_v3  ;;  %s1821_s7 = scalar_lea.vmem %s2162_s0, %s1552_s28  ;;  %s1965_s15 = scalar_lea.vmem %s2166_s4, %s1552_s28 }
  0x11   : > { %788 = vmatprep.subr.bf16.mxu0 %v1746_v1  ;;  %1556 = vmatprep.subr.bf16.mxu1 %v1746_v1  ;;  %v1628_v6 = vld [vmem:[%s1821_s7 + $0x4] ss:$8 sps:$4 sm:$0xff]   ;;  %v1626_v19 = vld [vmem:[%s1821_s7] ss:$8 sps:$4 sm:$0xff]   ;;  %v1632_v21 = vld [vmem:[%s1821_s7 + $0x14] ss:$8 sps:$4 sm:$0xff]  }
  0x12   : > { %v1631_v8 = vld [vmem:[%s1821_s7 + $0x104] ss:$8 sps:$4 sm:$0xff]   ;;  %814 = vmatprep.mubr.bf16.mxu0 %v1628_v6  ;;  %v1629_v20 = vld [vmem:[%s1821_s7 + $0x100] ss:$8 sps:$4 sm:$0xff]   ;;  %v1634_v22 = vld [vmem:[%s1821_s7 + $0x114] ss:$8 sps:$4 sm:$0xff]  }
  0x13   : > { %942 = vmatprep.mubr.bf16.mxu1 %v1631_v8  ;;  %v1636_v23 = vld [vmem:[%s1821_s7 + $0x10] ss:$8 sps:$4 sm:$0xff]   ;;  %v1638_v25 = vld [vmem:[%s1821_s7 + $0x24] ss:$8 sps:$4 sm:$0xff]   ;;  %v1642_v27 = vld [vmem:[%s1821_s7 + $0x20] ss:$8 sps:$4 sm:$0xff]  }
  0x14   : > { %789 = vmatpush1.bf16.msra.mxu0 %v1613_v4  ;;  %1572 = vmatpush1.bf16.msra.mxu1 %v1613_v4  ;;  %v1637_v24 = vld [vmem:[%s1821_s7 + $0x110] ss:$8 sps:$4 sm:$0xff]   ;;  %v1640_v26 = vld [vmem:[%s1821_s7 + $0x124] ss:$8 sps:$4 sm:$0xff]   ;;  %v1643_v28 = vld [vmem:[%s1821_s7 + $0x120] ss:$8 sps:$4 sm:$0xff]  }
  0x15   : > { %790 = vmatprep.subr.bf16.mxu0 %v1746_v1  ;;  %1557 = vmatprep.subr.bf16.mxu1 %v1746_v1  ;;  %v1644_v29 = vld [vmem:[%s1821_s7 + $0x34] ss:$8 sps:$4 sm:$0xff]   ;;  %v1648_v31 = vld [vmem:[%s1821_s7 + $0x30] ss:$8 sps:$4 sm:$0xff]   ;;  %v1650_v33 = vld [vmem:[%s1821_s7 + $0x44] ss:$8 sps:$4 sm:$0xff]  }
  0x16   : > { %v1646_v30 = vld [vmem:[%s1821_s7 + $0x134] ss:$8 sps:$4 sm:$0xff]   ;;  %v1649_v32 = vld [vmem:[%s1821_s7 + $0x130] ss:$8 sps:$4 sm:$0xff]   ;;  %v1652_v34 = vld [vmem:[%s1821_s7 + $0x144] ss:$8 sps:$4 sm:$0xff]  }
  0x17   : > { %v1654_v35 = vld [vmem:[%s1821_s7 + $0x40] ss:$8 sps:$4 sm:$0xff]   ;;  %v1656_v37 = vld [vmem:[%s1821_s7 + $0x54] ss:$8 sps:$4 sm:$0xff]   ;;  %v1660_v39 = vld [vmem:[%s1821_s7 + $0x50] ss:$8 sps:$4 sm:$0xff]  }
  0x18   : > { %791 = vmatpush1.bf16.msra.mxu0 %v1614_v5  ;;  %1573 = vmatpush1.bf16.msra.mxu1 %v1614_v5  ;;  %v1655_v36 = vld [vmem:[%s1821_s7 + $0x140] ss:$8 sps:$4 sm:$0xff]   ;;  %v1658_v38 = vld [vmem:[%s1821_s7 + $0x154] ss:$8 sps:$4 sm:$0xff]   ;;  %v1661_v40 = vld [vmem:[%s1821_s7 + $0x150] ss:$8 sps:$4 sm:$0xff]  }
  0x19   : > { %792 = vmatprep.subr.bf16.mxu0 %v1746_v1  ;;  %1558 = vmatprep.subr.bf16.mxu1 %v1746_v1  ;;  %v1662_v41 = vld [vmem:[%s1821_s7 + $0x64] ss:$8 sps:$4 sm:$0xff]   ;;  %v1666_v43 = vld [vmem:[%s1821_s7 + $0x60] ss:$8 sps:$4 sm:$0xff]   ;;  %v1668_v45 = vld [vmem:[%s1821_s7 + $0x74] ss:$8 sps:$4 sm:$0xff]  }
  0x1a   : > { %v1664_v42 = vld [vmem:[%s1821_s7 + $0x164] ss:$8 sps:$4 sm:$0xff]   ;;  %v1667_v44 = vld [vmem:[%s1821_s7 + $0x160] ss:$8 sps:$4 sm:$0xff]   ;;  %v1670_v46 = vld [vmem:[%s1821_s7 + $0x174] ss:$8 sps:$4 sm:$0xff]  }
  0x1b   : > { %v1672_v47 = vld [vmem:[%s1821_s7 + $0x70] ss:$8 sps:$4 sm:$0xff]   ;;  %v1674_v49 = vld [vmem:[%s1821_s7 + $0x84] ss:$8 sps:$4 sm:$0xff]   ;;  %v1678_v51 = vld [vmem:[%s1821_s7 + $0x80] ss:$8 sps:$4 sm:$0xff]  }
  0x1c   : > { %793 = vmatpush1.bf16.msra.mxu0 %v1615_v7  ;;  %1574 = vmatpush1.bf16.msra.mxu1 %v1615_v7  ;;  %v1673_v48 = vld [vmem:[%s1821_s7 + $0x170] ss:$8 sps:$4 sm:$0xff]   ;;  %v1676_v50 = vld [vmem:[%s1821_s7 + $0x184] ss:$8 sps:$4 sm:$0xff]   ;;  %v1679_v52 = vld [vmem:[%s1821_s7 + $0x180] ss:$8 sps:$4 sm:$0xff]  }
  0x1d   : > { %794 = vmatprep.subr.bf16.mxu0 %v1746_v1  ;;  %1559 = vmatprep.subr.bf16.mxu1 %v1746_v1  ;;  %v1680_v53 = vld [vmem:[%s1821_s7 + $0x94] ss:$8 sps:$4 sm:$0xff]   ;;  %v1684_v55 = vld [vmem:[%s1821_s7 + $0x90] ss:$8 sps:$4 sm:$0xff]   ;;  %v1686_v57 = vld [vmem:[%s1821_s7 + $0xa4] ss:$8 sps:$4 sm:$0xff]  }
  0x1e   : > { %v1682_v54 = vld [vmem:[%s1821_s7 + $0x194] ss:$8 sps:$4 sm:$0xff]   ;;  %v1685_v56 = vld [vmem:[%s1821_s7 + $0x190] ss:$8 sps:$4 sm:$0xff]   ;;  %v1688_v58 = vld [vmem:[%s1821_s7 + $0x1a4] ss:$8 sps:$4 sm:$0xff]  }
  0x1f   : > { %v1690_v59 = vld [vmem:[%s1821_s7 + $0xa0] ss:$8 sps:$4 sm:$0xff]   ;;  %v1692_v61 = vld [vmem:[%s1821_s7 + $0xb4] ss:$8 sps:$4 sm:$0xff]   ;;  %v1696_v63 = vld [vmem:[%s1821_s7 + $0xb0] ss:$8 sps:$4 sm:$0xff]  }
  0x20   : > { %795 = vmatpush1.bf16.msra.mxu0 %v1616_v9  ;;  %1575 = vmatpush1.bf16.msra.mxu1 %v1616_v9  ;;  %v1691_v60 = vld [vmem:[%s1821_s7 + $0x1a0] ss:$8 sps:$4 sm:$0xff]   ;;  %v1694_v62 = vld [vmem:[%s1821_s7 + $0x1b4] ss:$8 sps:$4 sm:$0xff]   ;;  %v1697_v0 = vld [vmem:[%s1821_s7 + $0x1b0] ss:$8 sps:$4 sm:$0xff]  }
  0x21   : > { %796 = vmatprep.subr.bf16.mxu0 %v1746_v1  ;;  %1560 = vmatprep.subr.bf16.mxu1 %v1746_v1  ;;  %v1700_v2 = vld [vmem:[%s1821_s7 + $0x1c4] ss:$8 sps:$4 sm:$0xff]   ;;  %v1702_v3 = vld [vmem:[%s1821_s7 + $0xc0] ss:$8 sps:$4 sm:$0xff]   ;;  %v1704_v5 = vld [vmem:[%s1821_s7 + $0xd4] ss:$8 sps:$4 sm:$0xff]  }
  0x22   : > { %v1703_v4 = vld [vmem:[%s1821_s7 + $0x1c0] ss:$8 sps:$4 sm:$0xff]   ;;  %v1706_v6 = vld [vmem:[%s1821_s7 + $0x1d4] ss:$8 sps:$4 sm:$0xff]   ;;  %v1708_v7 = vld [vmem:[%s1821_s7 + $0xd0] ss:$8 sps:$4 sm:$0xff]  }
  0x23   : > { %v1709_v8 = vld [vmem:[%s1821_s7 + $0x1d0] ss:$8 sps:$4 sm:$0xff]   ;;  %v1710_v9 = vld [vmem:[%s1821_s7 + $0xe4] ss:$8 sps:$4 sm:$0xff]  }
  0x24   : > { %797 = vmatpush1.bf16.msra.mxu0 %v1617_v10  ;;  %1576 = vmatpush1.bf16.msra.mxu1 %v1617_v10  ;;  %v1712_v10 = vld [vmem:[%s1821_s7 + $0x1e4] ss:$8 sps:$4 sm:$0xff]  }
  0x25   : > { %798 = vmatprep.subr.bf16.mxu0 %v1746_v1  ;;  %1561 = vmatprep.subr.bf16.mxu1 %v1746_v1 }
  0x28   : > { %799 = vmatpush1.bf16.msra.mxu0 %v1618_v11  ;;  %1577 = vmatpush1.bf16.msra.mxu1 %v1618_v11  ;;  %v1714_v11 = vld [vmem:[%s1821_s7 + $0xe0] ss:$8 sps:$4 sm:$0xff]  }
  0x29   : > { %800 = vmatprep.subr.bf16.mxu0 %v1746_v1  ;;  %1562 = vmatprep.subr.bf16.mxu1 %v1746_v1 }
  0x2c   : > { %801 = vmatpush1.bf16.msra.mxu0 %v1619_v12  ;;  %1578 = vmatpush1.bf16.msra.mxu1 %v1619_v12  ;;  %v1715_v12 = vld [vmem:[%s1821_s7 + $0x1e0] ss:$8 sps:$4 sm:$0xff]  }
  0x2d   : > { %802 = vmatprep.subr.bf16.mxu0 %v1746_v1  ;;  %1563 = vmatprep.subr.bf16.mxu1 %v1746_v1 }
  0x30   : > { %803 = vmatpush1.bf16.msra.mxu0 %v1620_v13  ;;  %1579 = vmatpush1.bf16.msra.mxu1 %v1620_v13  ;;  %v1716_v13 = vld [vmem:[%s1821_s7 + $0xf4] ss:$8 sps:$4 sm:$0xff]  }
  0x31   : > { %804 = vmatprep.subr.bf16.mxu0 %v1746_v1  ;;  %1564 = vmatprep.subr.bf16.mxu1 %v1746_v1 }
  0x34   : > { %805 = vmatpush1.bf16.msra.mxu0 %v1621_v14  ;;  %1580 = vmatpush1.bf16.msra.mxu1 %v1621_v14  ;;  %v1718_v14 = vld [vmem:[%s1821_s7 + $0x1f4] ss:$8 sps:$4 sm:$0xff]  }
  0x35   : > { %806 = vmatprep.subr.bf16.mxu0 %v1746_v1  ;;  %1565 = vmatprep.subr.bf16.mxu1 %v1746_v1 }
  0x38   : > { %807 = vmatpush1.bf16.msra.mxu0 %v1622_v15  ;;  %1581 = vmatpush1.bf16.msra.mxu1 %v1622_v15  ;;  %v1720_v15 = vld [vmem:[%s1821_s7 + $0xf0] ss:$8 sps:$4 sm:$0xff]  }
  0x39   : > { %808 = vmatprep.subr.bf16.mxu0 %v1746_v1  ;;  %1566 = vmatprep.subr.bf16.mxu1 %v1746_v1 }
  0x3c   : > { %809 = vmatpush1.bf16.msra.mxu0 %v1623_v16  ;;  %1582 = vmatpush1.bf16.msra.mxu1 %v1623_v16  ;;  %v1721_v16 = vld [vmem:[%s1821_s7 + $0x1f0] ss:$8 sps:$4 sm:$0xff]  }
  0x3d   : > { %810 = vmatprep.subr.bf16.mxu0 %v1746_v1  ;;  %1567 = vmatprep.subr.bf16.mxu1 %v1746_v1 }
  0x40   : > { %811 = vmatpush1.bf16.msra.mxu0 %v1624_v17  ;;  %1583 = vmatpush1.bf16.msra.mxu1 %v1624_v17  ;;  %v1947_v17 = vld [vmem:[%s2164_s2] ss:$0 sm:$0xff] }
  0x41   : > { %812 = vmatprep.subr.bf16.mxu0 %v1746_v1  ;;  %1568 = vmatprep.subr.bf16.mxu1 %v1746_v1  ;;  %v1698_v1 = vld [vmem:[%s1821_s7 + $0xc4] ss:$8 sps:$4 sm:$0xff]  }
  0x44   : > { %813 = vmatpush1.bf16.msra.mxu0 %v1625_v18  ;;  %1584 = vmatpush1.bf16.msra.mxu1 %v1625_v18 }
  0x47   : > { %815 = vmatmul.mubr.bf16.vlgmr.msra.gmra.mrb[0].mxu0 %v1626_v19  ;;  %943 = vmatmul.mubr.bf16.vlgmr.msra.gmra.mrb[0].mxu1 %v1629_v20  ;;  %v1952_v19 = vld [vmem:[%s2165_s3] ss:$0 sm:$0xff] }
  0x48   : > { %822 = vmatprep.mubr.bf16.mxu0 %v1632_v21  ;;  %950 = vmatprep.mubr.bf16.mxu1 %v1634_v22 }
  0x4f   : > { %823 = vmatmul.mubr.bf16.gmra.mrb[4].mxu0 %v1636_v23  ;;  %951 = vmatmul.mubr.bf16.gmra.mrb[4].mxu1 %v1637_v24 }
  0x50   : > { %830 = vmatprep.mubr.bf16.mxu0 %v1638_v25  ;;  %958 = vmatprep.mubr.bf16.mxu1 %v1640_v26 }
  0x57   : > { %831 = vmatmul.mubr.bf16.gmra.mrb[8].mxu0 %v1642_v27  ;;  %959 = vmatmul.mubr.bf16.gmra.mrb[8].mxu1 %v1643_v28 }
  0x58   : > { %838 = vmatprep.mubr.bf16.mxu0 %v1644_v29  ;;  %966 = vmatprep.mubr.bf16.mxu1 %v1646_v30 }
  0x5f   : > { %839 = vmatmul.mubr.bf16.gmra.mrb[12].mxu0 %v1648_v31  ;;  %967 = vmatmul.mubr.bf16.gmra.mrb[12].mxu1 %v1649_v32 }
  0x60   : > { %846 = vmatprep.mubr.bf16.mxu0 %v1650_v33  ;;  %974 = vmatprep.mubr.bf16.mxu1 %v1652_v34 }
  0x67   : > { %847 = vmatmul.mubr.bf16.gmra.mrb[16].mxu0 %v1654_v35  ;;  %975 = vmatmul.mubr.bf16.gmra.mrb[16].mxu1 %v1655_v36 }
  0x68   : > { %854 = vmatprep.mubr.bf16.mxu0 %v1656_v37  ;;  %982 = vmatprep.mubr.bf16.mxu1 %v1658_v38 }
  0x6f   : > { %855 = vmatmul.mubr.bf16.gmra.mrb[20].mxu0 %v1660_v39  ;;  %983 = vmatmul.mubr.bf16.gmra.mrb[20].mxu1 %v1661_v40 }
  0x70   : > { %862 = vmatprep.mubr.bf16.mxu0 %v1662_v41  ;;  %990 = vmatprep.mubr.bf16.mxu1 %v1664_v42 }
  0x77   : > { %863 = vmatmul.mubr.bf16.gmra.mrb[24].mxu0 %v1666_v43  ;;  %991 = vmatmul.mubr.bf16.gmra.mrb[24].mxu1 %v1667_v44 }
  0x78   : > { %870 = vmatprep.mubr.bf16.mxu0 %v1668_v45  ;;  %998 = vmatprep.mubr.bf16.mxu1 %v1670_v46 }
  0x7f   : > { %871 = vmatmul.mubr.bf16.gmra.mrb[28].mxu0 %v1672_v47  ;;  %999 = vmatmul.mubr.bf16.gmra.mrb[28].mxu1 %v1673_v48 }
  0x80   : > { %878 = vmatprep.mubr.bf16.mxu0 %v1674_v49  ;;  %1006 = vmatprep.mubr.bf16.mxu1 %v1676_v50 }
  0x87   : > { %879 = vmatmul.mubr.bf16.gmra.mrb[32].mxu0 %v1678_v51  ;;  %1007 = vmatmul.mubr.bf16.gmra.mrb[32].mxu1 %v1679_v52 }
  0x88   : > { %886 = vmatprep.mubr.bf16.mxu0 %v1680_v53  ;;  %1014 = vmatprep.mubr.bf16.mxu1 %v1682_v54 }
  0x8f   : > { %887 = vmatmul.mubr.bf16.gmra.mrb[36].mxu0 %v1684_v55  ;;  %1015 = vmatmul.mubr.bf16.gmra.mrb[36].mxu1 %v1685_v56 }
  0x90   : > { %894 = vmatprep.mubr.bf16.mxu0 %v1686_v57  ;;  %1022 = vmatprep.mubr.bf16.mxu1 %v1688_v58 }
  0x97   : > { %895 = vmatmul.mubr.bf16.gmra.mrb[40].mxu0 %v1690_v59  ;;  %1023 = vmatmul.mubr.bf16.gmra.mrb[40].mxu1 %v1691_v60 }
  0x98   : > { %902 = vmatprep.mubr.bf16.mxu0 %v1692_v61  ;;  %1030 = vmatprep.mubr.bf16.mxu1 %v1694_v62 }
  0x9f   : > { %903 = vmatmul.mubr.bf16.gmra.mrb[44].mxu0 %v1696_v63  ;;  %1031 = vmatmul.mubr.bf16.gmra.mrb[44].mxu1 %v1697_v0 }
  0xa0   : > { %910 = vmatprep.mubr.bf16.mxu0 %v1698_v1  ;;  %1038 = vmatprep.mubr.bf16.mxu1 %v1700_v2 }
  0xa7   : > { %911 = vmatmul.mubr.bf16.gmra.mrb[48].mxu0 %v1702_v3  ;;  %1039 = vmatmul.mubr.bf16.gmra.mrb[48].mxu1 %v1703_v4 }
  0xa8   : > { %918 = vmatprep.mubr.bf16.mxu0 %v1704_v5  ;;  %1046 = vmatprep.mubr.bf16.mxu1 %v1706_v6 }
  0xaf   : > { %919 = vmatmul.mubr.bf16.gmra.mrb[52].mxu0 %v1708_v7  ;;  %1047 = vmatmul.mubr.bf16.gmra.mrb[52].mxu1 %v1709_v8 }
  0xb0   : > { %926 = vmatprep.mubr.bf16.mxu0 %v1710_v9  ;;  %1054 = vmatprep.mubr.bf16.mxu1 %v1712_v10 }
  0xb7   : > { %927 = vmatmul.mubr.bf16.gmra.mrb[56].mxu0 %v1714_v11  ;;  %1055 = vmatmul.mubr.bf16.gmra.mrb[56].mxu1 %v1715_v12 }
  0xb8   : > { %934 = vmatprep.mubr.bf16.mxu0 %v1716_v13  ;;  %1062 = vmatprep.mubr.bf16.mxu1 %v1718_v14 }
  0xbf   : > { %935 = vmatmul.mubr.bf16.gmra.mrb[60].mxu0 %v1720_v15  ;;  %1063 = vmatmul.mubr.bf16.gmra.mrb[60].mxu1 %v1721_v16 }
 0x11a   : > { %v816_v18 = vpop.f32.mrb[0].mxu0  ;;  %v944_v20 = vpop.f32.mrb[0].mxu1 }
 0x11b   : > { %v1078_v21 = vmul.f32 %v1947_v17, %v816_v18  ;;  %v1110_v22 = vmul.f32 %v1947_v17, %v944_v20  ;;  %v818_v23 = vpop.f32.mrb[1].mxu0  ;;  %v946_v24 = vpop.f32.mrb[1].mxu1 }
 0x11c   : > { %v819_v25 = vpop.f32.mrb[2].mxu0  ;;  %v947_v26 = vpop.f32.mrb[2].mxu1 }
 0x11d   : > { %v1149_v27 = vadd.f32 %v1952_v19, %v1078_v21  ;;  %v1181_v28 = vadd.f32 %v1952_v19, %v1110_v22  ;;  %v1079_v29 = vmul.f32 %v1947_v17, %v819_v25  ;;  %v1111_v30 = vmul.f32 %v1947_v17, %v947_v26  ;;  %v821_v31 = vpop.f32.mrb[3].mxu0  ;;  %v949_v32 = vpop.f32.mrb[3].mxu1 }
 0x11f   : > { %v1213_v33 = vmax.f32 %v1149_v27, 0.0  ;;  %v1245_v34 = vmax.f32 %v1181_v28, 0.0  ;;  %v1150_v35 = vadd.f32 %v1952_v19, %v1079_v29  ;;  %v1182_v36 = vadd.f32 %v1952_v19, %v1111_v30 }
 0x121   : > { %1277 = vst [vmem:[%s1965_s15] sm:$0xff] %v1213_v33  ;;  %1309 = vst [vmem:[%s1965_s15 + $0x100] sm:$0xff] %v1245_v34  ;;  %v1214_v37 = vmax.f32 %v1150_v35, 0.0  ;;  %v1246_v38 = vmax.f32 %v1182_v36, 0.0 }
 0x122   : > { %v824_v39 = vpop.f32.mrb[4].mxu0  ;;  %v952_v40 = vpop.f32.mrb[4].mxu1 }
 0x123   : > { %1278 = vst [vmem:[%s1965_s15 + $0x8] sm:$0xff] %v1214_v37  ;;  %1310 = vst [vmem:[%s1965_s15 + $0x108] sm:$0xff] %v1246_v38  ;;  %v1080_v41 = vmul.f32 %v1947_v17, %v824_v39  ;;  %v1112_v42 = vmul.f32 %v1947_v17, %v952_v40  ;;  %v826_v43 = vpop.f32.mrb[5].mxu0  ;;  %v954_v44 = vpop.f32.mrb[5].mxu1 }
 0x124   : > { %v827_v45 = vpop.f32.mrb[6].mxu0  ;;  %v955_v46 = vpop.f32.mrb[6].mxu1 }
 0x125   : > { %v1151_v47 = vadd.f32 %v1952_v19, %v1080_v41  ;;  %v1183_v48 = vadd.f32 %v1952_v19, %v1112_v42  ;;  %v1081_v49 = vmul.f32 %v1947_v17, %v827_v45  ;;  %v1113_v50 = vmul.f32 %v1947_v17, %v955_v46  ;;  %v829_v51 = vpop.f32.mrb[7].mxu0  ;;  %v957_v52 = vpop.f32.mrb[7].mxu1 }
 0x127   : > { %v1215_v53 = vmax.f32 %v1151_v47, 0.0  ;;  %v1247_v54 = vmax.f32 %v1183_v48, 0.0  ;;  %v1152_v55 = vadd.f32 %v1952_v19, %v1081_v49  ;;  %v1184_v56 = vadd.f32 %v1952_v19, %v1113_v50 }
 0x129   : > { %1279 = vst [vmem:[%s1965_s15 + $0x10] sm:$0xff] %v1215_v53  ;;  %1311 = vst [vmem:[%s1965_s15 + $0x110] sm:$0xff] %v1247_v54  ;;  %v1216_v57 = vmax.f32 %v1152_v55, 0.0  ;;  %v1248_v58 = vmax.f32 %v1184_v56, 0.0 }
 0x12a   : > { %v832_v59 = vpop.f32.mrb[8].mxu0  ;;  %v960_v60 = vpop.f32.mrb[8].mxu1 }
 0x12b   : > { %1280 = vst [vmem:[%s1965_s15 + $0x18] sm:$0xff] %v1216_v57  ;;  %1312 = vst [vmem:[%s1965_s15 + $0x118] sm:$0xff] %v1248_v58  ;;  %v1082_v61 = vmul.f32 %v1947_v17, %v832_v59  ;;  %v1114_v62 = vmul.f32 %v1947_v17, %v960_v60  ;;  %v834_v63 = vpop.f32.mrb[9].mxu0  ;;  %v962_v0 = vpop.f32.mrb[9].mxu1 }
 0x12c   : > { %v835_v1 = vpop.f32.mrb[10].mxu0  ;;  %v963_v2 = vpop.f32.mrb[10].mxu1 }
 0x12d   : > { %v1153_v3 = vadd.f32 %v1952_v19, %v1082_v61  ;;  %v1185_v4 = vadd.f32 %v1952_v19, %v1114_v62  ;;  %v1083_v5 = vmul.f32 %v1947_v17, %v835_v1  ;;  %v1115_v6 = vmul.f32 %v1947_v17, %v963_v2  ;;  %v837_v7 = vpop.f32.mrb[11].mxu0  ;;  %v965_v8 = vpop.f32.mrb[11].mxu1 }
 0x12f   : > { %v1217_v9 = vmax.f32 %v1153_v3, 0.0  ;;  %v1249_v10 = vmax.f32 %v1185_v4, 0.0  ;;  %v1154_v11 = vadd.f32 %v1952_v19, %v1083_v5  ;;  %v1186_v12 = vadd.f32 %v1952_v19, %v1115_v6 }
 0x131   : > { %1281 = vst [vmem:[%s1965_s15 + $0x20] sm:$0xff] %v1217_v9  ;;  %1313 = vst [vmem:[%s1965_s15 + $0x120] sm:$0xff] %v1249_v10  ;;  %v1218_v13 = vmax.f32 %v1154_v11, 0.0  ;;  %v1250_v14 = vmax.f32 %v1186_v12, 0.0 }
 0x132   : > { %v840_v15 = vpop.f32.mrb[12].mxu0  ;;  %v968_v16 = vpop.f32.mrb[12].mxu1 }
 0x133   : > { %1282 = vst [vmem:[%s1965_s15 + $0x28] sm:$0xff] %v1218_v13  ;;  %1314 = vst [vmem:[%s1965_s15 + $0x128] sm:$0xff] %v1250_v14  ;;  %v1084_v18 = vmul.f32 %v1947_v17, %v840_v15  ;;  %v1116_v20 = vmul.f32 %v1947_v17, %v968_v16  ;;  %v842_v21 = vpop.f32.mrb[13].mxu0  ;;  %v970_v22 = vpop.f32.mrb[13].mxu1 }
 0x134   : > { %v843_v23 = vpop.f32.mrb[14].mxu0  ;;  %v971_v24 = vpop.f32.mrb[14].mxu1 }
 0x135   : > { %v1155_v25 = vadd.f32 %v1952_v19, %v1084_v18  ;;  %v1187_v26 = vadd.f32 %v1952_v19, %v1116_v20  ;;  %v1085_v27 = vmul.f32 %v1947_v17, %v843_v23  ;;  %v1117_v28 = vmul.f32 %v1947_v17, %v971_v24  ;;  %v845_v29 = vpop.f32.mrb[15].mxu0  ;;  %v973_v30 = vpop.f32.mrb[15].mxu1 }
 0x137   : > { %v1219_v31 = vmax.f32 %v1155_v25, 0.0  ;;  %v1251_v32 = vmax.f32 %v1187_v26, 0.0  ;;  %v1156_v33 = vadd.f32 %v1952_v19, %v1085_v27  ;;  %v1188_v34 = vadd.f32 %v1952_v19, %v1117_v28 }
 0x139   : > { %1283 = vst [vmem:[%s1965_s15 + $0x30] sm:$0xff] %v1219_v31  ;;  %1315 = vst [vmem:[%s1965_s15 + $0x130] sm:$0xff] %v1251_v32  ;;  %v1220_v35 = vmax.f32 %v1156_v33, 0.0  ;;  %v1252_v36 = vmax.f32 %v1188_v34, 0.0 }
 0x13a   : > { %v848_v37 = vpop.f32.mrb[16].mxu0  ;;  %v976_v38 = vpop.f32.mrb[16].mxu1 }
 0x13b   : > { %1284 = vst [vmem:[%s1965_s15 + $0x38] sm:$0xff] %v1220_v35  ;;  %1316 = vst [vmem:[%s1965_s15 + $0x138] sm:$0xff] %v1252_v36  ;;  %v1086_v39 = vmul.f32 %v1947_v17, %v848_v37  ;;  %v1118_v40 = vmul.f32 %v1947_v17, %v976_v38  ;;  %v850_v41 = vpop.f32.mrb[17].mxu0  ;;  %v978_v42 = vpop.f32.mrb[17].mxu1 }
 0x13c   : > { %v851_v43 = vpop.f32.mrb[18].mxu0  ;;  %v979_v44 = vpop.f32.mrb[18].mxu1 }
 0x13d   : > { %v1157_v45 = vadd.f32 %v1952_v19, %v1086_v39  ;;  %v1189_v46 = vadd.f32 %v1952_v19, %v1118_v40  ;;  %v1087_v47 = vmul.f32 %v1947_v17, %v851_v43  ;;  %v1119_v48 = vmul.f32 %v1947_v17, %v979_v44  ;;  %v853_v49 = vpop.f32.mrb[19].mxu0  ;;  %v981_v50 = vpop.f32.mrb[19].mxu1 }
 0x13f   : > { %v1221_v51 = vmax.f32 %v1157_v45, 0.0  ;;  %v1253_v52 = vmax.f32 %v1189_v46, 0.0  ;;  %v1158_v53 = vadd.f32 %v1952_v19, %v1087_v47  ;;  %v1190_v54 = vadd.f32 %v1952_v19, %v1119_v48 }
 0x141   : > { %1285 = vst [vmem:[%s1965_s15 + $0x40] sm:$0xff] %v1221_v51  ;;  %1317 = vst [vmem:[%s1965_s15 + $0x140] sm:$0xff] %v1253_v52  ;;  %v1222_v55 = vmax.f32 %v1158_v53, 0.0  ;;  %v1254_v56 = vmax.f32 %v1190_v54, 0.0 }
 0x142   : > { %v856_v57 = vpop.f32.mrb[20].mxu0  ;;  %v984_v58 = vpop.f32.mrb[20].mxu1 }
 0x143   : > { %1286 = vst [vmem:[%s1965_s15 + $0x48] sm:$0xff] %v1222_v55  ;;  %1318 = vst [vmem:[%s1965_s15 + $0x148] sm:$0xff] %v1254_v56  ;;  %v1088_v59 = vmul.f32 %v1947_v17, %v856_v57  ;;  %v1120_v60 = vmul.f32 %v1947_v17, %v984_v58  ;;  %v858_v61 = vpop.f32.mrb[21].mxu0  ;;  %v986_v62 = vpop.f32.mrb[21].mxu1 }
 0x144   : > { %v859_v63 = vpop.f32.mrb[22].mxu0  ;;  %v987_v0 = vpop.f32.mrb[22].mxu1 }
 0x145   : > { %v1159_v1 = vadd.f32 %v1952_v19, %v1088_v59  ;;  %v1191_v2 = vadd.f32 %v1952_v19, %v1120_v60  ;;  %v1089_v3 = vmul.f32 %v1947_v17, %v859_v63  ;;  %v1121_v4 = vmul.f32 %v1947_v17, %v987_v0  ;;  %v861_v5 = vpop.f32.mrb[23].mxu0  ;;  %v989_v6 = vpop.f32.mrb[23].mxu1 }
 0x147   : > { %v1223_v7 = vmax.f32 %v1159_v1, 0.0  ;;  %v1255_v8 = vmax.f32 %v1191_v2, 0.0  ;;  %v1160_v9 = vadd.f32 %v1952_v19, %v1089_v3  ;;  %v1192_v10 = vadd.f32 %v1952_v19, %v1121_v4 }
 0x149   : > { %1287 = vst [vmem:[%s1965_s15 + $0x50] sm:$0xff] %v1223_v7  ;;  %1319 = vst [vmem:[%s1965_s15 + $0x150] sm:$0xff] %v1255_v8  ;;  %v1224_v11 = vmax.f32 %v1160_v9, 0.0  ;;  %v1256_v12 = vmax.f32 %v1192_v10, 0.0 }
 0x14a   : > { %v864_v13 = vpop.f32.mrb[24].mxu0  ;;  %v992_v14 = vpop.f32.mrb[24].mxu1 }
 0x14b   : > { %1288 = vst [vmem:[%s1965_s15 + $0x58] sm:$0xff] %v1224_v11  ;;  %1320 = vst [vmem:[%s1965_s15 + $0x158] sm:$0xff] %v1256_v12  ;;  %v1090_v15 = vmul.f32 %v1947_v17, %v864_v13  ;;  %v1122_v16 = vmul.f32 %v1947_v17, %v992_v14  ;;  %v866_v18 = vpop.f32.mrb[25].mxu0  ;;  %v994_v20 = vpop.f32.mrb[25].mxu1 }
 0x14c   : > { %v867_v21 = vpop.f32.mrb[26].mxu0  ;;  %v995_v22 = vpop.f32.mrb[26].mxu1 }
 0x14d   : > { %v1161_v23 = vadd.f32 %v1952_v19, %v1090_v15  ;;  %v1193_v24 = vadd.f32 %v1952_v19, %v1122_v16  ;;  %v1091_v25 = vmul.f32 %v1947_v17, %v867_v21  ;;  %v1123_v26 = vmul.f32 %v1947_v17, %v995_v22  ;;  %v869_v27 = vpop.f32.mrb[27].mxu0  ;;  %v997_v28 = vpop.f32.mrb[27].mxu1 }
 0x14f   : > { %v1225_v29 = vmax.f32 %v1161_v23, 0.0  ;;  %v1257_v30 = vmax.f32 %v1193_v24, 0.0  ;;  %v1162_v31 = vadd.f32 %v1952_v19, %v1091_v25  ;;  %v1194_v32 = vadd.f32 %v1952_v19, %v1123_v26 }
 0x151   : > { %1289 = vst [vmem:[%s1965_s15 + $0x60] sm:$0xff] %v1225_v29  ;;  %1321 = vst [vmem:[%s1965_s15 + $0x160] sm:$0xff] %v1257_v30  ;;  %v1226_v33 = vmax.f32 %v1162_v31, 0.0  ;;  %v1258_v34 = vmax.f32 %v1194_v32, 0.0 }
 0x152   : > { %v872_v35 = vpop.f32.mrb[28].mxu0  ;;  %v1000_v36 = vpop.f32.mrb[28].mxu1 }
 0x153   : > { %1290 = vst [vmem:[%s1965_s15 + $0x68] sm:$0xff] %v1226_v33  ;;  %1322 = vst [vmem:[%s1965_s15 + $0x168] sm:$0xff] %v1258_v34  ;;  %v1092_v37 = vmul.f32 %v1947_v17, %v872_v35  ;;  %v1124_v38 = vmul.f32 %v1947_v17, %v1000_v36  ;;  %v874_v39 = vpop.f32.mrb[29].mxu0  ;;  %v1002_v40 = vpop.f32.mrb[29].mxu1 }
 0x154   : > { %v875_v41 = vpop.f32.mrb[30].mxu0  ;;  %v1003_v42 = vpop.f32.mrb[30].mxu1 }
 0x155   : > { %v1163_v43 = vadd.f32 %v1952_v19, %v1092_v37  ;;  %v1195_v44 = vadd.f32 %v1952_v19, %v1124_v38  ;;  %v1093_v45 = vmul.f32 %v1947_v17, %v875_v41  ;;  %v1125_v46 = vmul.f32 %v1947_v17, %v1003_v42  ;;  %v877_v47 = vpop.f32.mrb[31].mxu0  ;;  %v1005_v48 = vpop.f32.mrb[31].mxu1 }
 0x157   : > { %v1227_v49 = vmax.f32 %v1163_v43, 0.0  ;;  %v1259_v50 = vmax.f32 %v1195_v44, 0.0  ;;  %v1164_v51 = vadd.f32 %v1952_v19, %v1093_v45  ;;  %v1196_v52 = vadd.f32 %v1952_v19, %v1125_v46 }
 0x159   : > { %1291 = vst [vmem:[%s1965_s15 + $0x70] sm:$0xff] %v1227_v49  ;;  %1323 = vst [vmem:[%s1965_s15 + $0x170] sm:$0xff] %v1259_v50  ;;  %v1228_v53 = vmax.f32 %v1164_v51, 0.0  ;;  %v1260_v54 = vmax.f32 %v1196_v52, 0.0 }
 0x15a   : > { %v880_v55 = vpop.f32.mrb[32].mxu0  ;;  %v1008_v56 = vpop.f32.mrb[32].mxu1 }
 0x15b   : > { %1292 = vst [vmem:[%s1965_s15 + $0x78] sm:$0xff] %v1228_v53  ;;  %1324 = vst [vmem:[%s1965_s15 + $0x178] sm:$0xff] %v1260_v54  ;;  %v1094_v57 = vmul.f32 %v1947_v17, %v880_v55  ;;  %v1126_v58 = vmul.f32 %v1947_v17, %v1008_v56  ;;  %v882_v59 = vpop.f32.mrb[33].mxu0  ;;  %v1010_v60 = vpop.f32.mrb[33].mxu1 }
 0x15c   : > { %v883_v61 = vpop.f32.mrb[34].mxu0  ;;  %v1011_v62 = vpop.f32.mrb[34].mxu1 }
 0x15d   : > { %v1165_v63 = vadd.f32 %v1952_v19, %v1094_v57  ;;  %v1197_v0 = vadd.f32 %v1952_v19, %v1126_v58  ;;  %v1095_v1 = vmul.f32 %v1947_v17, %v883_v61  ;;  %v1127_v2 = vmul.f32 %v1947_v17, %v1011_v62  ;;  %v885_v3 = vpop.f32.mrb[35].mxu0  ;;  %v1013_v4 = vpop.f32.mrb[35].mxu1 }
 0x15f   : > { %v1229_v5 = vmax.f32 %v1165_v63, 0.0  ;;  %v1261_v6 = vmax.f32 %v1197_v0, 0.0  ;;  %v1166_v7 = vadd.f32 %v1952_v19, %v1095_v1  ;;  %v1198_v8 = vadd.f32 %v1952_v19, %v1127_v2 }
 0x161   : > { %1293 = vst [vmem:[%s1965_s15 + $0x80] sm:$0xff] %v1229_v5  ;;  %1325 = vst [vmem:[%s1965_s15 + $0x180] sm:$0xff] %v1261_v6  ;;  %v1230_v9 = vmax.f32 %v1166_v7, 0.0  ;;  %v1262_v10 = vmax.f32 %v1198_v8, 0.0 }
 0x162   : > { %v888_v11 = vpop.f32.mrb[36].mxu0  ;;  %v1016_v12 = vpop.f32.mrb[36].mxu1 }
 0x163   : > { %1294 = vst [vmem:[%s1965_s15 + $0x88] sm:$0xff] %v1230_v9  ;;  %1326 = vst [vmem:[%s1965_s15 + $0x188] sm:$0xff] %v1262_v10  ;;  %v1096_v13 = vmul.f32 %v1947_v17, %v888_v11  ;;  %v1128_v14 = vmul.f32 %v1947_v17, %v1016_v12  ;;  %v890_v15 = vpop.f32.mrb[37].mxu0  ;;  %v1018_v16 = vpop.f32.mrb[37].mxu1 }
 0x164   : > { %v891_v18 = vpop.f32.mrb[38].mxu0  ;;  %v1019_v20 = vpop.f32.mrb[38].mxu1 }
 0x165   : > { %v1167_v21 = vadd.f32 %v1952_v19, %v1096_v13  ;;  %v1199_v22 = vadd.f32 %v1952_v19, %v1128_v14  ;;  %v1097_v23 = vmul.f32 %v1947_v17, %v891_v18  ;;  %v1129_v24 = vmul.f32 %v1947_v17, %v1019_v20  ;;  %v893_v25 = vpop.f32.mrb[39].mxu0  ;;  %v1021_v26 = vpop.f32.mrb[39].mxu1 }
 0x167   : > { %v1231_v27 = vmax.f32 %v1167_v21, 0.0  ;;  %v1263_v28 = vmax.f32 %v1199_v22, 0.0  ;;  %v1168_v29 = vadd.f32 %v1952_v19, %v1097_v23  ;;  %v1200_v30 = vadd.f32 %v1952_v19, %v1129_v24 }
 0x169   : > { %1295 = vst [vmem:[%s1965_s15 + $0x90] sm:$0xff] %v1231_v27  ;;  %1327 = vst [vmem:[%s1965_s15 + $0x190] sm:$0xff] %v1263_v28  ;;  %v1232_v31 = vmax.f32 %v1168_v29, 0.0  ;;  %v1264_v32 = vmax.f32 %v1200_v30, 0.0 }
 0x16a   : > { %v896_v33 = vpop.f32.mrb[40].mxu0  ;;  %v1024_v34 = vpop.f32.mrb[40].mxu1 }
 0x16b   : > { %1296 = vst [vmem:[%s1965_s15 + $0x98] sm:$0xff] %v1232_v31  ;;  %1328 = vst [vmem:[%s1965_s15 + $0x198] sm:$0xff] %v1264_v32  ;;  %v1098_v35 = vmul.f32 %v1947_v17, %v896_v33  ;;  %v1130_v36 = vmul.f32 %v1947_v17, %v1024_v34  ;;  %v898_v37 = vpop.f32.mrb[41].mxu0  ;;  %v1026_v38 = vpop.f32.mrb[41].mxu1 }
 0x16c   : > { %v899_v39 = vpop.f32.mrb[42].mxu0  ;;  %v1027_v40 = vpop.f32.mrb[42].mxu1 }
 0x16d   : > { %v1169_v41 = vadd.f32 %v1952_v19, %v1098_v35  ;;  %v1201_v42 = vadd.f32 %v1952_v19, %v1130_v36  ;;  %v1099_v43 = vmul.f32 %v1947_v17, %v899_v39  ;;  %v1131_v44 = vmul.f32 %v1947_v17, %v1027_v40  ;;  %v901_v45 = vpop.f32.mrb[43].mxu0  ;;  %v1029_v46 = vpop.f32.mrb[43].mxu1 }
 0x16f   : > { %v1233_v47 = vmax.f32 %v1169_v41, 0.0  ;;  %v1265_v48 = vmax.f32 %v1201_v42, 0.0  ;;  %v1170_v49 = vadd.f32 %v1952_v19, %v1099_v43  ;;  %v1202_v50 = vadd.f32 %v1952_v19, %v1131_v44 }
 0x171   : > { %1297 = vst [vmem:[%s1965_s15 + $0xa0] sm:$0xff] %v1233_v47  ;;  %1329 = vst [vmem:[%s1965_s15 + $0x1a0] sm:$0xff] %v1265_v48  ;;  %v1234_v51 = vmax.f32 %v1170_v49, 0.0  ;;  %v1266_v52 = vmax.f32 %v1202_v50, 0.0 }
 0x172   : > { %v904_v53 = vpop.f32.mrb[44].mxu0  ;;  %v1032_v54 = vpop.f32.mrb[44].mxu1 }
 0x173   : > { %1298 = vst [vmem:[%s1965_s15 + $0xa8] sm:$0xff] %v1234_v51  ;;  %1330 = vst [vmem:[%s1965_s15 + $0x1a8] sm:$0xff] %v1266_v52  ;;  %v1100_v55 = vmul.f32 %v1947_v17, %v904_v53  ;;  %v1132_v56 = vmul.f32 %v1947_v17, %v1032_v54  ;;  %v906_v57 = vpop.f32.mrb[45].mxu0  ;;  %v1034_v58 = vpop.f32.mrb[45].mxu1 }
 0x174   : > { %v907_v59 = vpop.f32.mrb[46].mxu0  ;;  %v1035_v60 = vpop.f32.mrb[46].mxu1 }
 0x175   : > { %v1171_v61 = vadd.f32 %v1952_v19, %v1100_v55  ;;  %v1203_v62 = vadd.f32 %v1952_v19, %v1132_v56  ;;  %v1101_v63 = vmul.f32 %v1947_v17, %v907_v59  ;;  %v1133_v0 = vmul.f32 %v1947_v17, %v1035_v60  ;;  %v909_v1 = vpop.f32.mrb[47].mxu0  ;;  %v1037_v2 = vpop.f32.mrb[47].mxu1 }
 0x177   : > { %v1235_v3 = vmax.f32 %v1171_v61, 0.0  ;;  %v1267_v4 = vmax.f32 %v1203_v62, 0.0  ;;  %v1172_v5 = vadd.f32 %v1952_v19, %v1101_v63  ;;  %v1204_v6 = vadd.f32 %v1952_v19, %v1133_v0 }
 0x179   : > { %1299 = vst [vmem:[%s1965_s15 + $0xb0] sm:$0xff] %v1235_v3  ;;  %1331 = vst [vmem:[%s1965_s15 + $0x1b0] sm:$0xff] %v1267_v4  ;;  %v1236_v7 = vmax.f32 %v1172_v5, 0.0  ;;  %v1268_v8 = vmax.f32 %v1204_v6, 0.0 }
 0x17a   : > { %v912_v9 = vpop.f32.mrb[48].mxu0  ;;  %v1040_v10 = vpop.f32.mrb[48].mxu1 }
 0x17b   : > { %1300 = vst [vmem:[%s1965_s15 + $0xb8] sm:$0xff] %v1236_v7  ;;  %1332 = vst [vmem:[%s1965_s15 + $0x1b8] sm:$0xff] %v1268_v8  ;;  %v1102_v11 = vmul.f32 %v1947_v17, %v912_v9  ;;  %v1134_v12 = vmul.f32 %v1947_v17, %v1040_v10  ;;  %v914_v13 = vpop.f32.mrb[49].mxu0  ;;  %v1042_v14 = vpop.f32.mrb[49].mxu1 }
 0x17c   : > { %v915_v15 = vpop.f32.mrb[50].mxu0  ;;  %v1043_v16 = vpop.f32.mrb[50].mxu1 }
 0x17d   : > { %v1173_v18 = vadd.f32 %v1952_v19, %v1102_v11  ;;  %v1205_v20 = vadd.f32 %v1952_v19, %v1134_v12  ;;  %v1103_v21 = vmul.f32 %v1947_v17, %v915_v15  ;;  %v1135_v22 = vmul.f32 %v1947_v17, %v1043_v16  ;;  %v917_v23 = vpop.f32.mrb[51].mxu0  ;;  %v1045_v24 = vpop.f32.mrb[51].mxu1 }
 0x17f   : > { %v1237_v25 = vmax.f32 %v1173_v18, 0.0  ;;  %v1269_v26 = vmax.f32 %v1205_v20, 0.0  ;;  %v1174_v27 = vadd.f32 %v1952_v19, %v1103_v21  ;;  %v1206_v28 = vadd.f32 %v1952_v19, %v1135_v22 }
 0x181   : > { %1301 = vst [vmem:[%s1965_s15 + $0xc0] sm:$0xff] %v1237_v25  ;;  %1333 = vst [vmem:[%s1965_s15 + $0x1c0] sm:$0xff] %v1269_v26  ;;  %v1238_v29 = vmax.f32 %v1174_v27, 0.0  ;;  %v1270_v30 = vmax.f32 %v1206_v28, 0.0 }
 0x182   : > { %v920_v31 = vpop.f32.mrb[52].mxu0  ;;  %v1048_v32 = vpop.f32.mrb[52].mxu1 }
 0x183   : > { %1302 = vst [vmem:[%s1965_s15 + $0xc8] sm:$0xff] %v1238_v29  ;;  %1334 = vst [vmem:[%s1965_s15 + $0x1c8] sm:$0xff] %v1270_v30  ;;  %v1104_v33 = vmul.f32 %v1947_v17, %v920_v31  ;;  %v1136_v34 = vmul.f32 %v1947_v17, %v1048_v32  ;;  %v922_v35 = vpop.f32.mrb[53].mxu0  ;;  %v1050_v36 = vpop.f32.mrb[53].mxu1 }
 0x184   : > { %v923_v37 = vpop.f32.mrb[54].mxu0  ;;  %v1051_v38 = vpop.f32.mrb[54].mxu1 }
 0x185   : > { %v1175_v39 = vadd.f32 %v1952_v19, %v1104_v33  ;;  %v1207_v40 = vadd.f32 %v1952_v19, %v1136_v34  ;;  %v1105_v41 = vmul.f32 %v1947_v17, %v923_v37  ;;  %v1137_v42 = vmul.f32 %v1947_v17, %v1051_v38  ;;  %v925_v43 = vpop.f32.mrb[55].mxu0  ;;  %v1053_v44 = vpop.f32.mrb[55].mxu1 }
 0x187   : > { %v1239_v45 = vmax.f32 %v1175_v39, 0.0  ;;  %v1271_v46 = vmax.f32 %v1207_v40, 0.0  ;;  %v1176_v47 = vadd.f32 %v1952_v19, %v1105_v41  ;;  %v1208_v48 = vadd.f32 %v1952_v19, %v1137_v42 }
 0x189   : > { %1303 = vst [vmem:[%s1965_s15 + $0xd0] sm:$0xff] %v1239_v45  ;;  %1335 = vst [vmem:[%s1965_s15 + $0x1d0] sm:$0xff] %v1271_v46  ;;  %v1240_v49 = vmax.f32 %v1176_v47, 0.0  ;;  %v1272_v50 = vmax.f32 %v1208_v48, 0.0 }
 0x18a   : > { %v928_v51 = vpop.f32.mrb[56].mxu0  ;;  %v1056_v52 = vpop.f32.mrb[56].mxu1 }
 0x18b   : > { %1304 = vst [vmem:[%s1965_s15 + $0xd8] sm:$0xff] %v1240_v49  ;;  %1336 = vst [vmem:[%s1965_s15 + $0x1d8] sm:$0xff] %v1272_v50  ;;  %v1106_v53 = vmul.f32 %v1947_v17, %v928_v51  ;;  %v1138_v54 = vmul.f32 %v1947_v17, %v1056_v52  ;;  %v930_v55 = vpop.f32.mrb[57].mxu0  ;;  %v1058_v56 = vpop.f32.mrb[57].mxu1 }
 0x18c   : > { %v931_v57 = vpop.f32.mrb[58].mxu0  ;;  %v1059_v58 = vpop.f32.mrb[58].mxu1 }
 0x18d   : > { %v1177_v59 = vadd.f32 %v1952_v19, %v1106_v53  ;;  %v1209_v60 = vadd.f32 %v1952_v19, %v1138_v54  ;;  %v1107_v61 = vmul.f32 %v1947_v17, %v931_v57  ;;  %v1139_v62 = vmul.f32 %v1947_v17, %v1059_v58  ;;  %v933_v63 = vpop.f32.mrb[59].mxu0  ;;  %v1061_v0 = vpop.f32.mrb[59].mxu1 }
 0x18f   : > { %v1241_v1 = vmax.f32 %v1177_v59, 0.0  ;;  %v1273_v2 = vmax.f32 %v1209_v60, 0.0  ;;  %v1178_v3 = vadd.f32 %v1952_v19, %v1107_v61  ;;  %v1210_v4 = vadd.f32 %v1952_v19, %v1139_v62 }
 0x191   : > { %1305 = vst [vmem:[%s1965_s15 + $0xe0] sm:$0xff] %v1241_v1  ;;  %1337 = vst [vmem:[%s1965_s15 + $0x1e0] sm:$0xff] %v1273_v2  ;;  %v1242_v5 = vmax.f32 %v1178_v3, 0.0  ;;  %v1274_v6 = vmax.f32 %v1210_v4, 0.0 }
 0x192   : > { %v936_v7 = vpop.f32.mrb[60].mxu0  ;;  %v1064_v8 = vpop.f32.mrb[60].mxu1 }
 0x193   : > { %1306 = vst [vmem:[%s1965_s15 + $0xe8] sm:$0xff] %v1242_v5  ;;  %1338 = vst [vmem:[%s1965_s15 + $0x1e8] sm:$0xff] %v1274_v6  ;;  %v1108_v9 = vmul.f32 %v1947_v17, %v936_v7  ;;  %v1140_v10 = vmul.f32 %v1947_v17, %v1064_v8  ;;  %v938_v11 = vpop.f32.mrb[61].mxu0  ;;  %v1066_v12 = vpop.f32.mrb[61].mxu1 }
 0x194   : > { %v939_v13 = vpop.f32.mrb[62].mxu0  ;;  %v1067_v14 = vpop.f32.mrb[62].mxu1 }
 0x195   : > { %v1179_v15 = vadd.f32 %v1952_v19, %v1108_v9  ;;  %v1211_v16 = vadd.f32 %v1952_v19, %v1140_v10  ;;  %v1109_v18 = vmul.f32 %v1947_v17, %v939_v13  ;;  %v1141_v20 = vmul.f32 %v1947_v17, %v1067_v14  ;;  %v941_v21 = vpop.f32.mrb[63].mxu0  ;;  %v1069_v22 = vpop.f32.mrb[63].mxu1 }
 0x197   : > { %v1243_v23 = vmax.f32 %v1179_v15, 0.0  ;;  %v1275_v24 = vmax.f32 %v1211_v16, 0.0  ;;  %v1180_v25 = vadd.f32 %v1952_v19, %v1109_v18  ;;  %v1212_v26 = vadd.f32 %v1952_v19, %v1141_v20 }
 0x199   : > { %1307 = vst [vmem:[%s1965_s15 + $0xf0] sm:$0xff] %v1243_v23  ;;  %1339 = vst [vmem:[%s1965_s15 + $0x1f0] sm:$0xff] %v1275_v24  ;;  %v1244_v27 = vmax.f32 %v1180_v25, 0.0  ;;  %v1276_v28 = vmax.f32 %v1212_v26, 0.0 }
 0x19b   : > { %1308 = vst [vmem:[%s1965_s15 + $0xf8] sm:$0xff] %v1244_v27  ;;  %1340 = vst [vmem:[%s1965_s15 + $0x1f8] sm:$0xff] %v1276_v28 }
 0x19c PF: > { %s14_s17 = sadd.s32 1, %s1744_s17   ;;  %s2167_s15 = smov %s1740_s16 }
 0x19d   : > { %p11_p5 = scmp.ge.s32.totalorder %s14_s17, 6   ;;  %s2168_s16 = smov %s2170_s18 }
 0x19f   :  { %13 = sbr.rel (!%p11_p5) target bundleno = 2 (0x2), region = 75 }

// kernel: resnet_encoder_forward.22
= control target key start
LH: loop header
LB: loop body
LE: loop exit
PB: predicated region body
PF: predicated region fallthrough
CT: control target
= control target key end

     0   :  { %s3094_s0 = inlined_call_operand.vmem [shape: f32[9,512,128], index: 0, kind: input, shape index: {}]   ;;  %s3095_s1 = inlined_call_operand.vmem [shape: f32[512,128], index: 1, kind: output, shape index: {}]  }
   0x1   :  { %v8_v0 = vld [vmem:[%s3094_s0] sm:$0xff]  ;;  %v9_v6 = vld [vmem:[%s3094_s0 + $0x8] sm:$0xff]  ;;  %v10_v15 = vld [vmem:[%s3094_s0 + $0x10] sm:$0xff] }
   0x2   :  { %v72_v1 = vld [vmem:[%s3094_s0 + $0x200] sm:$0xff]  ;;  %v73_v7 = vld [vmem:[%s3094_s0 + $0x208] sm:$0xff]  ;;  %v74_v16 = vld [vmem:[%s3094_s0 + $0x210] sm:$0xff] }
   0x3   :  { %v136_v2 = vld [vmem:[%s3094_s0 + $0x400] sm:$0xff]  ;;  %v584_v3 = vmax.f32 %v8_v0, %v72_v1  ;;  %v137_v8 = vld [vmem:[%s3094_s0 + $0x408] sm:$0xff]  ;;  %v592_v10 = vmax.f32 %v9_v6, %v73_v7  ;;  %v138_v17 = vld [vmem:[%s3094_s0 + $0x410] sm:$0xff]  ;;  %v600_v20 = vmax.f32 %v10_v15, %v74_v16 }
   0x4   :  { %v200_v4 = vld [vmem:[%s3094_s0 + $0x600] sm:$0xff]  ;;  %v201_v13 = vld [vmem:[%s3094_s0 + $0x608] sm:$0xff]  ;;  %v202_v24 = vld [vmem:[%s3094_s0 + $0x610] sm:$0xff] }
   0x5   :  { %v585_v5 = vmax.f32 %v584_v3, %v136_v2  ;;  %v264_v9 = vld [vmem:[%s3094_s0 + $0x800] sm:$0xff]  ;;  %v593_v14 = vmax.f32 %v592_v10, %v137_v8  ;;  %v265_v19 = vld [vmem:[%s3094_s0 + $0x808] sm:$0xff]  ;;  %v601_v26 = vmax.f32 %v600_v20, %v138_v17  ;;  %v11_v27 = vld [vmem:[%s3094_s0 + $0x18] sm:$0xff] }
   0x6   :  { %v328_v11 = vld [vmem:[%s3094_s0 + $0xa00] sm:$0xff]  ;;  %v329_v22 = vld [vmem:[%s3094_s0 + $0xa08] sm:$0xff]  ;;  %v75_v28 = vld [vmem:[%s3094_s0 + $0x218] sm:$0xff] }
   0x7   :  { %v586_v12 = vmax.f32 %v585_v5, %v200_v4  ;;  %v392_v21 = vld [vmem:[%s3094_s0 + $0xc00] sm:$0xff]  ;;  %v594_v23 = vmax.f32 %v593_v14, %v201_v13  ;;  %v139_v29 = vld [vmem:[%s3094_s0 + $0x418] sm:$0xff]  ;;  %v266_v33 = vld [vmem:[%s3094_s0 + $0x810] sm:$0xff]  ;;  %v608_v34 = vmax.f32 %v11_v27, %v75_v28  ;;  %v602_v38 = vmax.f32 %v601_v26, %v202_v24 }
   0x8   :  { %v456_v30 = vld [vmem:[%s3094_s0 + $0xe00] sm:$0xff]  ;;  %v393_v36 = vld [vmem:[%s3094_s0 + $0xc08] sm:$0xff]  ;;  %v330_v37 = vld [vmem:[%s3094_s0 + $0xa10] sm:$0xff] }
   0x9   :  { %v587_v18 = vmax.f32 %v586_v12, %v264_v9  ;;  %v520_v31 = vld [vmem:[%s3094_s0 + $0x1000] sm:$0xff]  ;;  %v595_v32 = vmax.f32 %v594_v23, %v265_v19  ;;  %v203_v39 = vld [vmem:[%s3094_s0 + $0x618] sm:$0xff]  ;;  %v609_v41 = vmax.f32 %v608_v34, %v139_v29  ;;  %v457_v46 = vld [vmem:[%s3094_s0 + $0xe08] sm:$0xff]  ;;  %v603_v48 = vmax.f32 %v602_v38, %v266_v33 }
   0xa   :  { %v12_v42 = vld [vmem:[%s3094_s0 + $0x20] sm:$0xff]  ;;  %v521_v47 = vld [vmem:[%s3094_s0 + $0x1008] sm:$0xff]  ;;  %v267_v49 = vld [vmem:[%s3094_s0 + $0x818] sm:$0xff] }
   0xb   :  { %v588_v25 = vmax.f32 %v587_v18, %v328_v11  ;;  %v596_v40 = vmax.f32 %v595_v32, %v329_v22  ;;  %v76_v43 = vld [vmem:[%s3094_s0 + $0x220] sm:$0xff]  ;;  %v394_v52 = vld [vmem:[%s3094_s0 + $0xc10] sm:$0xff]  ;;  %v331_v53 = vld [vmem:[%s3094_s0 + $0xa18] sm:$0xff]  ;;  %v610_v54 = vmax.f32 %v609_v41, %v203_v39  ;;  %v604_v57 = vmax.f32 %v603_v48, %v330_v37 }
   0xc   :  { %v140_v44 = vld [vmem:[%s3094_s0 + $0x420] sm:$0xff]  ;;  %v616_v50 = vmax.f32 %v12_v42, %v76_v43  ;;  %v13_v59 = vld [vmem:[%s3094_s0 + $0x28] sm:$0xff]  ;;  %v458_v63 = vld [vmem:[%s3094_s0 + $0xe10] sm:$0xff] }
   0xd   :  { %v589_v35 = vmax.f32 %v588_v25, %v392_v21  ;;  %v597_v51 = vmax.f32 %v596_v40, %v393_v36  ;;  %v204_v55 = vld [vmem:[%s3094_s0 + $0x620] sm:$0xff]  ;;  %v77_v60 = vld [vmem:[%s3094_s0 + $0x228] sm:$0xff]  ;;  %v522_v0 = vld [vmem:[%s3094_s0 + $0x1010] sm:$0xff]  ;;  %v611_v1 = vmax.f32 %v610_v54, %v267_v49  ;;  %v605_v4 = vmax.f32 %v604_v57, %v394_v52 }
   0xe   :  { %v617_v58 = vmax.f32 %v616_v50, %v140_v44  ;;  %v141_v61 = vld [vmem:[%s3094_s0 + $0x428] sm:$0xff]  ;;  %v268_v2 = vld [vmem:[%s3094_s0 + $0x820] sm:$0xff]  ;;  %v624_v3 = vmax.f32 %v13_v59, %v77_v60  ;;  %v395_v5 = vld [vmem:[%s3094_s0 + $0xc18] sm:$0xff] }
   0xf   :  { %v590_v45 = vmax.f32 %v589_v35, %v456_v30  ;;  %v598_v62 = vmax.f32 %v597_v51, %v457_v46  ;;  %v332_v6 = vld [vmem:[%s3094_s0 + $0xa20] sm:$0xff]  ;;  %v205_v8 = vld [vmem:[%s3094_s0 + $0x628] sm:$0xff]  ;;  %v612_v10 = vmax.f32 %v611_v1, %v331_v53  ;;  %v14_v12 = vld [vmem:[%s3094_s0 + $0x30] sm:$0xff]  ;;  %v606_v15 = vmax.f32 %v605_v4, %v458_v63 }
  0x10   :  { %v618_v7 = vmax.f32 %v617_v58, %v204_v55  ;;  %v625_v11 = vmax.f32 %v624_v3, %v141_v61  ;;  %v78_v13 = vld [vmem:[%s3094_s0 + $0x230] sm:$0xff]  ;;  %v459_v16 = vld [vmem:[%s3094_s0 + $0xe18] sm:$0xff]  ;;  %v269_v19 = vld [vmem:[%s3094_s0 + $0x828] sm:$0xff] }
  0x11   :  { %v591_v56 = vmax.f32 %v590_v45, %v520_v31  ;;  %v599_v9 = vmax.f32 %v598_v62, %v521_v47  ;;  %v142_v14 = vld [vmem:[%s3094_s0 + $0x430] sm:$0xff]  ;;  %v523_v17 = vld [vmem:[%s3094_s0 + $0x1018] sm:$0xff]  ;;  %v632_v20 = vmax.f32 %v14_v12, %v78_v13  ;;  %v613_v21 = vmax.f32 %v612_v10, %v395_v5  ;;  %v396_v22 = vld [vmem:[%s3094_s0 + $0xc20] sm:$0xff] }
  0x12   :  { %v619_v18 = vmax.f32 %v618_v7, %v268_v2  ;;  %v333_v23 = vld [vmem:[%s3094_s0 + $0xa28] sm:$0xff]  ;;  %v626_v24 = vmax.f32 %v625_v11, %v205_v8  ;;  %v206_v25 = vld [vmem:[%s3094_s0 + $0x630] sm:$0xff]  ;;  %v607_v26 = vmax.f32 %v606_v15, %v522_v0  ;;  %v15_v29 = vld [vmem:[%s3094_s0 + $0x38] sm:$0xff] }
  0x13   :  { %1096 = vst [vmem:[%s3095_s1] sm:$0xff] %v591_v56  ;;  %1097 = vst [vmem:[%s3095_s1 + $0x8] sm:$0xff] %v599_v9  ;;  %v633_v28 = vmax.f32 %v632_v20, %v142_v14  ;;  %v79_v30 = vld [vmem:[%s3094_s0 + $0x238] sm:$0xff]  ;;  %v614_v32 = vmax.f32 %v613_v21, %v459_v16  ;;  %v460_v33 = vld [vmem:[%s3094_s0 + $0xe20] sm:$0xff] }
  0x14   :  { %v620_v27 = vmax.f32 %v619_v18, %v332_v6  ;;  %v143_v31 = vld [vmem:[%s3094_s0 + $0x438] sm:$0xff]  ;;  %v524_v34 = vld [vmem:[%s3094_s0 + $0x1020] sm:$0xff]  ;;  %v627_v35 = vmax.f32 %v626_v24, %v269_v19  ;;  %v270_v36 = vld [vmem:[%s3094_s0 + $0x830] sm:$0xff]  ;;  %v640_v37 = vmax.f32 %v15_v29, %v79_v30  ;;  %1098 = vst [vmem:[%s3095_s1 + $0x10] sm:$0xff] %v607_v26 }
  0x15   :  { %v397_v39 = vld [vmem:[%s3094_s0 + $0xc28] sm:$0xff]  ;;  %v334_v40 = vld [vmem:[%s3094_s0 + $0xa30] sm:$0xff]  ;;  %v634_v41 = vmax.f32 %v633_v28, %v206_v25  ;;  %v207_v42 = vld [vmem:[%s3094_s0 + $0x638] sm:$0xff]  ;;  %v615_v43 = vmax.f32 %v614_v32, %v523_v17 }
  0x16   :  { %v621_v38 = vmax.f32 %v620_v27, %v396_v22  ;;  %v628_v44 = vmax.f32 %v627_v35, %v333_v23  ;;  %v641_v45 = vmax.f32 %v640_v37, %v143_v31  ;;  %v16_v46 = vld [vmem:[%s3094_s0 + $0x40] sm:$0xff]  ;;  %v461_v50 = vld [vmem:[%s3094_s0 + $0xe28] sm:$0xff]  ;;  %v271_v53 = vld [vmem:[%s3094_s0 + $0x838] sm:$0xff] }
  0x17   :  { %v80_v47 = vld [vmem:[%s3094_s0 + $0x240] sm:$0xff]  ;;  %v525_v51 = vld [vmem:[%s3094_s0 + $0x1028] sm:$0xff]  ;;  %v635_v52 = vmax.f32 %v634_v41, %v270_v36  ;;  %1099 = vst [vmem:[%s3095_s1 + $0x18] sm:$0xff] %v615_v43  ;;  %v398_v56 = vld [vmem:[%s3094_s0 + $0xc30] sm:$0xff] }
  0x18   :  { %v144_v48 = vld [vmem:[%s3094_s0 + $0x440] sm:$0xff]  ;;  %v622_v49 = vmax.f32 %v621_v38, %v460_v33  ;;  %v648_v54 = vmax.f32 %v16_v46, %v80_v47  ;;  %v629_v55 = vmax.f32 %v628_v44, %v397_v39  ;;  %v335_v57 = vld [vmem:[%s3094_s0 + $0xa38] sm:$0xff]  ;;  %v642_v58 = vmax.f32 %v641_v45, %v207_v42  ;;  %v17_v63 = vld [vmem:[%s3094_s0 + $0x48] sm:$0xff] }
  0x19   :  { %v208_v59 = vld [vmem:[%s3094_s0 + $0x640] sm:$0xff]  ;;  %v636_v61 = vmax.f32 %v635_v52, %v334_v40  ;;  %v81_v0 = vld [vmem:[%s3094_s0 + $0x248] sm:$0xff]  ;;  %v462_v3 = vld [vmem:[%s3094_s0 + $0xe30] sm:$0xff] }
  0x1a   :  { %v623_v60 = vmax.f32 %v622_v49, %v524_v34  ;;  %v649_v62 = vmax.f32 %v648_v54, %v144_v48  ;;  %v145_v1 = vld [vmem:[%s3094_s0 + $0x448] sm:$0xff]  ;;  %v630_v2 = vmax.f32 %v629_v55, %v461_v50  ;;  %v526_v4 = vld [vmem:[%s3094_s0 + $0x1030] sm:$0xff]  ;;  %v643_v5 = vmax.f32 %v642_v58, %v271_v53  ;;  %v272_v6 = vld [vmem:[%s3094_s0 + $0x840] sm:$0xff] }
  0x1b   :  { %v656_v7 = vmax.f32 %v17_v63, %v81_v0  ;;  %v637_v8 = vmax.f32 %v636_v61, %v398_v56  ;;  %v399_v9 = vld [vmem:[%s3094_s0 + $0xc38] sm:$0xff]  ;;  %v336_v10 = vld [vmem:[%s3094_s0 + $0xa40] sm:$0xff]  ;;  %v209_v12 = vld [vmem:[%s3094_s0 + $0x648] sm:$0xff] }
  0x1c   :  { %1100 = vst [vmem:[%s3095_s1 + $0x20] sm:$0xff] %v623_v60  ;;  %v650_v11 = vmax.f32 %v649_v62, %v208_v59  ;;  %v631_v13 = vmax.f32 %v630_v2, %v525_v51  ;;  %v644_v14 = vmax.f32 %v643_v5, %v335_v57  ;;  %v18_v16 = vld [vmem:[%s3094_s0 + $0x50] sm:$0xff]  ;;  %v463_v20 = vld [vmem:[%s3094_s0 + $0xe38] sm:$0xff]  ;;  %v273_v23 = vld [vmem:[%s3094_s0 + $0x848] sm:$0xff] }
  0x1d   :  { %v657_v15 = vmax.f32 %v656_v7, %v145_v1  ;;  %v82_v17 = vld [vmem:[%s3094_s0 + $0x250] sm:$0xff]  ;;  %v638_v19 = vmax.f32 %v637_v8, %v462_v3  ;;  %v527_v21 = vld [vmem:[%s3094_s0 + $0x1038] sm:$0xff]  ;;  %v400_v26 = vld [vmem:[%s3094_s0 + $0xc40] sm:$0xff] }
  0x1e   :  { %v146_v18 = vld [vmem:[%s3094_s0 + $0x450] sm:$0xff]  ;;  %v651_v22 = vmax.f32 %v650_v11, %v272_v6  ;;  %v664_v24 = vmax.f32 %v18_v16, %v82_v17  ;;  %1101 = vst [vmem:[%s3095_s1 + $0x28] sm:$0xff] %v631_v13  ;;  %v645_v25 = vmax.f32 %v644_v14, %v399_v9  ;;  %v337_v27 = vld [vmem:[%s3094_s0 + $0xa48] sm:$0xff]  ;;  %v19_v33 = vld [vmem:[%s3094_s0 + $0x58] sm:$0xff] }
  0x1f   :  { %v658_v28 = vmax.f32 %v657_v15, %v209_v12  ;;  %v210_v29 = vld [vmem:[%s3094_s0 + $0x650] sm:$0xff]  ;;  %v639_v30 = vmax.f32 %v638_v19, %v526_v4  ;;  %v83_v34 = vld [vmem:[%s3094_s0 + $0x258] sm:$0xff]  ;;  %v464_v37 = vld [vmem:[%s3094_s0 + $0xe40] sm:$0xff] }
  0x20   :  { %v652_v31 = vmax.f32 %v651_v22, %v336_v10  ;;  %v665_v32 = vmax.f32 %v664_v24, %v146_v18  ;;  %v147_v35 = vld [vmem:[%s3094_s0 + $0x458] sm:$0xff]  ;;  %v646_v36 = vmax.f32 %v645_v25, %v463_v20  ;;  %v528_v38 = vld [vmem:[%s3094_s0 + $0x1040] sm:$0xff]  ;;  %v274_v40 = vld [vmem:[%s3094_s0 + $0x850] sm:$0xff]  ;;  %v672_v41 = vmax.f32 %v19_v33, %v83_v34 }
  0x21   :  { %v659_v39 = vmax.f32 %v658_v28, %v273_v23  ;;  %1102 = vst [vmem:[%s3095_s1 + $0x30] sm:$0xff] %v639_v30  ;;  %v401_v43 = vld [vmem:[%s3094_s0 + $0xc48] sm:$0xff]  ;;  %v338_v44 = vld [vmem:[%s3094_s0 + $0xa50] sm:$0xff]  ;;  %v211_v46 = vld [vmem:[%s3094_s0 + $0x658] sm:$0xff] }
  0x22   :  { %v653_v42 = vmax.f32 %v652_v31, %v400_v26  ;;  %v666_v45 = vmax.f32 %v665_v32, %v210_v29  ;;  %v647_v47 = vmax.f32 %v646_v36, %v527_v21  ;;  %v673_v49 = vmax.f32 %v672_v41, %v147_v35  ;;  %v20_v50 = vld [vmem:[%s3094_s0 + $0x60] sm:$0xff]  ;;  %v465_v54 = vld [vmem:[%s3094_s0 + $0xe48] sm:$0xff]  ;;  %v275_v57 = vld [vmem:[%s3094_s0 + $0x858] sm:$0xff] }
  0x23   :  { %v660_v48 = vmax.f32 %v659_v39, %v337_v27  ;;  %v84_v51 = vld [vmem:[%s3094_s0 + $0x260] sm:$0xff]  ;;  %v529_v55 = vld [vmem:[%s3094_s0 + $0x1048] sm:$0xff]  ;;  %v402_v60 = vld [vmem:[%s3094_s0 + $0xc50] sm:$0xff] }
  0x24   :  { %v148_v52 = vld [vmem:[%s3094_s0 + $0x460] sm:$0xff]  ;;  %v654_v53 = vmax.f32 %v653_v42, %v464_v37  ;;  %v667_v56 = vmax.f32 %v666_v45, %v274_v40  ;;  %v680_v58 = vmax.f32 %v20_v50, %v84_v51  ;;  %1103 = vst [vmem:[%s3095_s1 + $0x38] sm:$0xff] %v647_v47  ;;  %v339_v61 = vld [vmem:[%s3094_s0 + $0xa58] sm:$0xff]  ;;  %v674_v62 = vmax.f32 %v673_v49, %v211_v46  ;;  %v21_v3 = vld [vmem:[%s3094_s0 + $0x68] sm:$0xff] }
  0x25   :  { %v661_v59 = vmax.f32 %v660_v48, %v401_v43  ;;  %v212_v63 = vld [vmem:[%s3094_s0 + $0x660] sm:$0xff]  ;;  %v85_v4 = vld [vmem:[%s3094_s0 + $0x268] sm:$0xff]  ;;  %v466_v7 = vld [vmem:[%s3094_s0 + $0xe50] sm:$0xff] }
  0x26   :  { %v655_v0 = vmax.f32 %v654_v53, %v528_v38  ;;  %v668_v1 = vmax.f32 %v667_v56, %v338_v44  ;;  %v681_v2 = vmax.f32 %v680_v58, %v148_v52  ;;  %v149_v5 = vld [vmem:[%s3094_s0 + $0x468] sm:$0xff]  ;;  %v530_v8 = vld [vmem:[%s3094_s0 + $0x1050] sm:$0xff]  ;;  %v675_v9 = vmax.f32 %v674_v62, %v275_v57  ;;  %v276_v10 = vld [vmem:[%s3094_s0 + $0x860] sm:$0xff] }
  0x27   :  { %v662_v6 = vmax.f32 %v661_v59, %v465_v54  ;;  %v688_v11 = vmax.f32 %v21_v3, %v85_v4  ;;  %v403_v13 = vld [vmem:[%s3094_s0 + $0xc58] sm:$0xff]  ;;  %v340_v14 = vld [vmem:[%s3094_s0 + $0xa60] sm:$0xff]  ;;  %v213_v16 = vld [vmem:[%s3094_s0 + $0x668] sm:$0xff] }
  0x28   :  { %1104 = vst [vmem:[%s3095_s1 + $0x40] sm:$0xff] %v655_v0  ;;  %v669_v12 = vmax.f32 %v668_v1, %v402_v60  ;;  %v682_v15 = vmax.f32 %v681_v2, %v212_v63  ;;  %v676_v18 = vmax.f32 %v675_v9, %v339_v61  ;;  %v22_v20 = vld [vmem:[%s3094_s0 + $0x70] sm:$0xff]  ;;  %v467_v24 = vld [vmem:[%s3094_s0 + $0xe58] sm:$0xff]  ;;  %v277_v27 = vld [vmem:[%s3094_s0 + $0x868] sm:$0xff] }
  0x29   :  { %v663_v17 = vmax.f32 %v662_v6, %v529_v55  ;;  %v689_v19 = vmax.f32 %v688_v11, %v149_v5  ;;  %v86_v21 = vld [vmem:[%s3094_s0 + $0x270] sm:$0xff]  ;;  %v531_v25 = vld [vmem:[%s3094_s0 + $0x1058] sm:$0xff]  ;;  %v404_v30 = vld [vmem:[%s3094_s0 + $0xc60] sm:$0xff] }
  0x2a   :  { %v150_v22 = vld [vmem:[%s3094_s0 + $0x470] sm:$0xff]  ;;  %v670_v23 = vmax.f32 %v669_v12, %v466_v7  ;;  %v683_v26 = vmax.f32 %v682_v15, %v276_v10  ;;  %v696_v28 = vmax.f32 %v22_v20, %v86_v21  ;;  %v677_v29 = vmax.f32 %v676_v18, %v403_v13  ;;  %v341_v31 = vld [vmem:[%s3094_s0 + $0xa68] sm:$0xff]  ;;  %v23_v37 = vld [vmem:[%s3094_s0 + $0x78] sm:$0xff] }
  0x2b   :  { %1105 = vst [vmem:[%s3095_s1 + $0x48] sm:$0xff] %v663_v17  ;;  %v690_v32 = vmax.f32 %v689_v19, %v213_v16  ;;  %v214_v33 = vld [vmem:[%s3094_s0 + $0x670] sm:$0xff]  ;;  %v87_v38 = vld [vmem:[%s3094_s0 + $0x278] sm:$0xff]  ;;  %v468_v41 = vld [vmem:[%s3094_s0 + $0xe60] sm:$0xff] }
  0x2c   :  { %v671_v34 = vmax.f32 %v670_v23, %v530_v8  ;;  %v684_v35 = vmax.f32 %v683_v26, %v340_v14  ;;  %v697_v36 = vmax.f32 %v696_v28, %v150_v22  ;;  %v151_v39 = vld [vmem:[%s3094_s0 + $0x478] sm:$0xff]  ;;  %v678_v40 = vmax.f32 %v677_v29, %v467_v24  ;;  %v532_v42 = vld [vmem:[%s3094_s0 + $0x1060] sm:$0xff]  ;;  %v278_v44 = vld [vmem:[%s3094_s0 + $0x870] sm:$0xff] }
  0x2d   :  { %v691_v43 = vmax.f32 %v690_v32, %v277_v27  ;;  %v704_v45 = vmax.f32 %v23_v37, %v87_v38  ;;  %v405_v47 = vld [vmem:[%s3094_s0 + $0xc68] sm:$0xff]  ;;  %v342_v48 = vld [vmem:[%s3094_s0 + $0xa70] sm:$0xff]  ;;  %v215_v50 = vld [vmem:[%s3094_s0 + $0x678] sm:$0xff] }
  0x2e   :  { %1106 = vst [vmem:[%s3095_s1 + $0x50] sm:$0xff] %v671_v34  ;;  %v685_v46 = vmax.f32 %v684_v35, %v404_v30  ;;  %v698_v49 = vmax.f32 %v697_v36, %v214_v33  ;;  %v679_v51 = vmax.f32 %v678_v40, %v531_v25  ;;  %v24_v54 = vld [vmem:[%s3094_s0 + $0x80] sm:$0xff]  ;;  %v469_v58 = vld [vmem:[%s3094_s0 + $0xe68] sm:$0xff]  ;;  %v279_v61 = vld [vmem:[%s3094_s0 + $0x878] sm:$0xff] }
  0x2f   :  { %v692_v52 = vmax.f32 %v691_v43, %v341_v31  ;;  %v705_v53 = vmax.f32 %v704_v45, %v151_v39  ;;  %v88_v55 = vld [vmem:[%s3094_s0 + $0x280] sm:$0xff]  ;;  %v533_v59 = vld [vmem:[%s3094_s0 + $0x1068] sm:$0xff]  ;;  %v406_v0 = vld [vmem:[%s3094_s0 + $0xc70] sm:$0xff] }
  0x30   :  { %v152_v56 = vld [vmem:[%s3094_s0 + $0x480] sm:$0xff]  ;;  %v686_v57 = vmax.f32 %v685_v46, %v468_v41  ;;  %v699_v60 = vmax.f32 %v698_v49, %v278_v44  ;;  %v712_v62 = vmax.f32 %v24_v54, %v88_v55  ;;  %1107 = vst [vmem:[%s3095_s1 + $0x58] sm:$0xff] %v679_v51  ;;  %v343_v1 = vld [vmem:[%s3094_s0 + $0xa78] sm:$0xff]  ;;  %v25_v7 = vld [vmem:[%s3094_s0 + $0x88] sm:$0xff] }
  0x31   :  { %v693_v63 = vmax.f32 %v692_v52, %v405_v47  ;;  %v706_v2 = vmax.f32 %v705_v53, %v215_v50  ;;  %v216_v3 = vld [vmem:[%s3094_s0 + $0x680] sm:$0xff]  ;;  %v89_v8 = vld [vmem:[%s3094_s0 + $0x288] sm:$0xff]  ;;  %v470_v11 = vld [vmem:[%s3094_s0 + $0xe70] sm:$0xff] }
  0x32   :  { %v687_v4 = vmax.f32 %v686_v57, %v532_v42  ;;  %v700_v5 = vmax.f32 %v699_v60, %v342_v48  ;;  %v713_v6 = vmax.f32 %v712_v62, %v152_v56  ;;  %v153_v9 = vld [vmem:[%s3094_s0 + $0x488] sm:$0xff]  ;;  %v534_v12 = vld [vmem:[%s3094_s0 + $0x1070] sm:$0xff]  ;;  %v280_v14 = vld [vmem:[%s3094_s0 + $0x880] sm:$0xff]  ;;  %v720_v15 = vmax.f32 %v25_v7, %v89_v8 }
  0x33   :  { %v694_v10 = vmax.f32 %v693_v63, %v469_v58  ;;  %v707_v13 = vmax.f32 %v706_v2, %v279_v61  ;;  %v407_v17 = vld [vmem:[%s3094_s0 + $0xc78] sm:$0xff]  ;;  %v344_v18 = vld [vmem:[%s3094_s0 + $0xa80] sm:$0xff]  ;;  %v217_v20 = vld [vmem:[%s3094_s0 + $0x688] sm:$0xff] }
  0x34   :  { %1108 = vst [vmem:[%s3095_s1 + $0x60] sm:$0xff] %v687_v4  ;;  %v701_v16 = vmax.f32 %v700_v5, %v406_v0  ;;  %v714_v19 = vmax.f32 %v713_v6, %v216_v3  ;;  %v721_v23 = vmax.f32 %v720_v15, %v153_v9  ;;  %v26_v24 = vld [vmem:[%s3094_s0 + $0x90] sm:$0xff]  ;;  %v471_v28 = vld [vmem:[%s3094_s0 + $0xe78] sm:$0xff]  ;;  %v281_v31 = vld [vmem:[%s3094_s0 + $0x888] sm:$0xff] }
  0x35   :  { %v695_v21 = vmax.f32 %v694_v10, %v533_v59  ;;  %v708_v22 = vmax.f32 %v707_v13, %v343_v1  ;;  %v90_v25 = vld [vmem:[%s3094_s0 + $0x290] sm:$0xff]  ;;  %v535_v29 = vld [vmem:[%s3094_s0 + $0x1078] sm:$0xff]  ;;  %v408_v34 = vld [vmem:[%s3094_s0 + $0xc80] sm:$0xff] }
  0x36   :  { %v154_v26 = vld [vmem:[%s3094_s0 + $0x490] sm:$0xff]  ;;  %v702_v27 = vmax.f32 %v701_v16, %v470_v11  ;;  %v715_v30 = vmax.f32 %v714_v19, %v280_v14  ;;  %v728_v32 = vmax.f32 %v26_v24, %v90_v25  ;;  %v345_v35 = vld [vmem:[%s3094_s0 + $0xa88] sm:$0xff]  ;;  %v722_v36 = vmax.f32 %v721_v23, %v217_v20  ;;  %v27_v41 = vld [vmem:[%s3094_s0 + $0x98] sm:$0xff] }
  0x37   :  { %1109 = vst [vmem:[%s3095_s1 + $0x68] sm:$0xff] %v695_v21  ;;  %v709_v33 = vmax.f32 %v708_v22, %v407_v17  ;;  %v218_v37 = vld [vmem:[%s3094_s0 + $0x690] sm:$0xff]  ;;  %v91_v42 = vld [vmem:[%s3094_s0 + $0x298] sm:$0xff]  ;;  %v472_v45 = vld [vmem:[%s3094_s0 + $0xe80] sm:$0xff] }
  0x38   :  { %v703_v38 = vmax.f32 %v702_v27, %v534_v12  ;;  %v716_v39 = vmax.f32 %v715_v30, %v344_v18  ;;  %v729_v40 = vmax.f32 %v728_v32, %v154_v26  ;;  %v155_v43 = vld [vmem:[%s3094_s0 + $0x498] sm:$0xff]  ;;  %v536_v46 = vld [vmem:[%s3094_s0 + $0x1080] sm:$0xff]  ;;  %v723_v47 = vmax.f32 %v722_v36, %v281_v31  ;;  %v282_v48 = vld [vmem:[%s3094_s0 + $0x890] sm:$0xff] }
  0x39   :  { %v710_v44 = vmax.f32 %v709_v33, %v471_v28  ;;  %v736_v49 = vmax.f32 %v27_v41, %v91_v42  ;;  %v409_v51 = vld [vmem:[%s3094_s0 + $0xc88] sm:$0xff]  ;;  %v346_v52 = vld [vmem:[%s3094_s0 + $0xa90] sm:$0xff]  ;;  %v219_v54 = vld [vmem:[%s3094_s0 + $0x698] sm:$0xff] }
  0x3a   :  { %1110 = vst [vmem:[%s3095_s1 + $0x70] sm:$0xff] %v703_v38  ;;  %v717_v50 = vmax.f32 %v716_v39, %v408_v34  ;;  %v730_v53 = vmax.f32 %v729_v40, %v218_v37  ;;  %v724_v56 = vmax.f32 %v723_v47, %v345_v35  ;;  %v28_v58 = vld [vmem:[%s3094_s0 + $0xa0] sm:$0xff]  ;;  %v473_v62 = vld [vmem:[%s3094_s0 + $0xe88] sm:$0xff]  ;;  %v283_v1 = vld [vmem:[%s3094_s0 + $0x898] sm:$0xff] }
  0x3b   :  { %v711_v55 = vmax.f32 %v710_v44, %v535_v29  ;;  %v737_v57 = vmax.f32 %v736_v49, %v155_v43  ;;  %v92_v59 = vld [vmem:[%s3094_s0 + $0x2a0] sm:$0xff]  ;;  %v537_v63 = vld [vmem:[%s3094_s0 + $0x1088] sm:$0xff]  ;;  %v410_v4 = vld [vmem:[%s3094_s0 + $0xc90] sm:$0xff] }
  0x3c   :  { %v156_v60 = vld [vmem:[%s3094_s0 + $0x4a0] sm:$0xff]  ;;  %v718_v61 = vmax.f32 %v717_v50, %v472_v45  ;;  %v731_v0 = vmax.f32 %v730_v53, %v282_v48  ;;  %v744_v2 = vmax.f32 %v28_v58, %v92_v59  ;;  %v725_v3 = vmax.f32 %v724_v56, %v409_v51  ;;  %v347_v5 = vld [vmem:[%s3094_s0 + $0xa98] sm:$0xff]  ;;  %v29_v11 = vld [vmem:[%s3094_s0 + $0xa8] sm:$0xff] }
  0x3d   :  { %1111 = vst [vmem:[%s3095_s1 + $0x78] sm:$0xff] %v711_v55  ;;  %v738_v6 = vmax.f32 %v737_v57, %v219_v54  ;;  %v220_v7 = vld [vmem:[%s3094_s0 + $0x6a0] sm:$0xff]  ;;  %v93_v12 = vld [vmem:[%s3094_s0 + $0x2a8] sm:$0xff]  ;;  %v474_v15 = vld [vmem:[%s3094_s0 + $0xe90] sm:$0xff] }
  0x3e   :  { %v719_v8 = vmax.f32 %v718_v61, %v536_v46  ;;  %v732_v9 = vmax.f32 %v731_v0, %v346_v52  ;;  %v745_v10 = vmax.f32 %v744_v2, %v156_v60  ;;  %v157_v13 = vld [vmem:[%s3094_s0 + $0x4a8] sm:$0xff]  ;;  %v726_v14 = vmax.f32 %v725_v3, %v473_v62  ;;  %v538_v16 = vld [vmem:[%s3094_s0 + $0x1090] sm:$0xff]  ;;  %v284_v18 = vld [vmem:[%s3094_s0 + $0x8a0] sm:$0xff] }
  0x3f   :  { %v739_v17 = vmax.f32 %v738_v6, %v283_v1  ;;  %v752_v19 = vmax.f32 %v29_v11, %v93_v12  ;;  %v411_v21 = vld [vmem:[%s3094_s0 + $0xc98] sm:$0xff]  ;;  %v348_v22 = vld [vmem:[%s3094_s0 + $0xaa0] sm:$0xff]  ;;  %v221_v24 = vld [vmem:[%s3094_s0 + $0x6a8] sm:$0xff] }
  0x40   :  { %1112 = vst [vmem:[%s3095_s1 + $0x80] sm:$0xff] %v719_v8  ;;  %v733_v20 = vmax.f32 %v732_v9, %v410_v4  ;;  %v746_v23 = vmax.f32 %v745_v10, %v220_v7  ;;  %v727_v25 = vmax.f32 %v726_v14, %v537_v63  ;;  %v30_v28 = vld [vmem:[%s3094_s0 + $0xb0] sm:$0xff]  ;;  %v475_v32 = vld [vmem:[%s3094_s0 + $0xe98] sm:$0xff]  ;;  %v285_v35 = vld [vmem:[%s3094_s0 + $0x8a8] sm:$0xff] }
  0x41   :  { %v740_v26 = vmax.f32 %v739_v17, %v347_v5  ;;  %v753_v27 = vmax.f32 %v752_v19, %v157_v13  ;;  %v94_v29 = vld [vmem:[%s3094_s0 + $0x2b0] sm:$0xff]  ;;  %v539_v33 = vld [vmem:[%s3094_s0 + $0x1098] sm:$0xff]  ;;  %v412_v38 = vld [vmem:[%s3094_s0 + $0xca0] sm:$0xff] }
  0x42   :  { %v158_v30 = vld [vmem:[%s3094_s0 + $0x4b0] sm:$0xff]  ;;  %v734_v31 = vmax.f32 %v733_v20, %v474_v15  ;;  %v747_v34 = vmax.f32 %v746_v23, %v284_v18  ;;  %v760_v36 = vmax.f32 %v30_v28, %v94_v29  ;;  %1113 = vst [vmem:[%s3095_s1 + $0x88] sm:$0xff] %v727_v25  ;;  %v349_v39 = vld [vmem:[%s3094_s0 + $0xaa8] sm:$0xff]  ;;  %v31_v45 = vld [vmem:[%s3094_s0 + $0xb8] sm:$0xff] }
  0x43   :  { %v741_v37 = vmax.f32 %v740_v26, %v411_v21  ;;  %v754_v40 = vmax.f32 %v753_v27, %v221_v24  ;;  %v222_v41 = vld [vmem:[%s3094_s0 + $0x6b0] sm:$0xff]  ;;  %v95_v46 = vld [vmem:[%s3094_s0 + $0x2b8] sm:$0xff]  ;;  %v476_v49 = vld [vmem:[%s3094_s0 + $0xea0] sm:$0xff] }
  0x44   :  { %v735_v42 = vmax.f32 %v734_v31, %v538_v16  ;;  %v748_v43 = vmax.f32 %v747_v34, %v348_v22  ;;  %v761_v44 = vmax.f32 %v760_v36, %v158_v30  ;;  %v159_v47 = vld [vmem:[%s3094_s0 + $0x4b8] sm:$0xff]  ;;  %v540_v50 = vld [vmem:[%s3094_s0 + $0x10a0] sm:$0xff]  ;;  %v286_v52 = vld [vmem:[%s3094_s0 + $0x8b0] sm:$0xff]  ;;  %v768_v53 = vmax.f32 %v31_v45, %v95_v46 }
  0x45   :  { %v742_v48 = vmax.f32 %v741_v37, %v475_v32  ;;  %v755_v51 = vmax.f32 %v754_v40, %v285_v35  ;;  %v413_v55 = vld [vmem:[%s3094_s0 + $0xca8] sm:$0xff]  ;;  %v350_v56 = vld [vmem:[%s3094_s0 + $0xab0] sm:$0xff]  ;;  %v223_v58 = vld [vmem:[%s3094_s0 + $0x6b8] sm:$0xff] }
  0x46   :  { %1114 = vst [vmem:[%s3095_s1 + $0x90] sm:$0xff] %v735_v42  ;;  %v749_v54 = vmax.f32 %v748_v43, %v412_v38  ;;  %v762_v57 = vmax.f32 %v761_v44, %v222_v41  ;;  %v769_v61 = vmax.f32 %v768_v53, %v159_v47  ;;  %v32_v62 = vld [vmem:[%s3094_s0 + $0xc0] sm:$0xff]  ;;  %v477_v2 = vld [vmem:[%s3094_s0 + $0xea8] sm:$0xff]  ;;  %v287_v5 = vld [vmem:[%s3094_s0 + $0x8b8] sm:$0xff] }
  0x47   :  { %v743_v59 = vmax.f32 %v742_v48, %v539_v33  ;;  %v756_v60 = vmax.f32 %v755_v51, %v349_v39  ;;  %v96_v63 = vld [vmem:[%s3094_s0 + $0x2c0] sm:$0xff]  ;;  %v541_v3 = vld [vmem:[%s3094_s0 + $0x10a8] sm:$0xff]  ;;  %v414_v8 = vld [vmem:[%s3094_s0 + $0xcb0] sm:$0xff] }
  0x48   :  { %v160_v0 = vld [vmem:[%s3094_s0 + $0x4c0] sm:$0xff]  ;;  %v750_v1 = vmax.f32 %v749_v54, %v476_v49  ;;  %v763_v4 = vmax.f32 %v762_v57, %v286_v52  ;;  %v776_v6 = vmax.f32 %v32_v62, %v96_v63  ;;  %v351_v9 = vld [vmem:[%s3094_s0 + $0xab8] sm:$0xff]  ;;  %v770_v10 = vmax.f32 %v769_v61, %v223_v58  ;;  %v33_v15 = vld [vmem:[%s3094_s0 + $0xc8] sm:$0xff] }
  0x49   :  { %1115 = vst [vmem:[%s3095_s1 + $0x98] sm:$0xff] %v743_v59  ;;  %v757_v7 = vmax.f32 %v756_v60, %v413_v55  ;;  %v224_v11 = vld [vmem:[%s3094_s0 + $0x6c0] sm:$0xff]  ;;  %v97_v16 = vld [vmem:[%s3094_s0 + $0x2c8] sm:$0xff]  ;;  %v478_v19 = vld [vmem:[%s3094_s0 + $0xeb0] sm:$0xff] }
  0x4a   :  { %v751_v12 = vmax.f32 %v750_v1, %v540_v50  ;;  %v764_v13 = vmax.f32 %v763_v4, %v350_v56  ;;  %v777_v14 = vmax.f32 %v776_v6, %v160_v0  ;;  %v161_v17 = vld [vmem:[%s3094_s0 + $0x4c8] sm:$0xff]  ;;  %v542_v20 = vld [vmem:[%s3094_s0 + $0x10b0] sm:$0xff]  ;;  %v771_v21 = vmax.f32 %v770_v10, %v287_v5  ;;  %v288_v22 = vld [vmem:[%s3094_s0 + $0x8c0] sm:$0xff] }
  0x4b   :  { %v758_v18 = vmax.f32 %v757_v7, %v477_v2  ;;  %v784_v23 = vmax.f32 %v33_v15, %v97_v16  ;;  %v415_v25 = vld [vmem:[%s3094_s0 + $0xcb8] sm:$0xff]  ;;  %v352_v26 = vld [vmem:[%s3094_s0 + $0xac0] sm:$0xff]  ;;  %v225_v28 = vld [vmem:[%s3094_s0 + $0x6c8] sm:$0xff] }
  0x4c   :  { %1116 = vst [vmem:[%s3095_s1 + $0xa0] sm:$0xff] %v751_v12  ;;  %v765_v24 = vmax.f32 %v764_v13, %v414_v8  ;;  %v778_v27 = vmax.f32 %v777_v14, %v224_v11  ;;  %v772_v30 = vmax.f32 %v771_v21, %v351_v9  ;;  %v34_v32 = vld [vmem:[%s3094_s0 + $0xd0] sm:$0xff]  ;;  %v479_v36 = vld [vmem:[%s3094_s0 + $0xeb8] sm:$0xff]  ;;  %v289_v39 = vld [vmem:[%s3094_s0 + $0x8c8] sm:$0xff] }
  0x4d   :  { %v759_v29 = vmax.f32 %v758_v18, %v541_v3  ;;  %v785_v31 = vmax.f32 %v784_v23, %v161_v17  ;;  %v98_v33 = vld [vmem:[%s3094_s0 + $0x2d0] sm:$0xff]  ;;  %v543_v37 = vld [vmem:[%s3094_s0 + $0x10b8] sm:$0xff]  ;;  %v416_v42 = vld [vmem:[%s3094_s0 + $0xcc0] sm:$0xff] }
  0x4e   :  { %v162_v34 = vld [vmem:[%s3094_s0 + $0x4d0] sm:$0xff]  ;;  %v766_v35 = vmax.f32 %v765_v24, %v478_v19  ;;  %v779_v38 = vmax.f32 %v778_v27, %v288_v22  ;;  %v792_v40 = vmax.f32 %v34_v32, %v98_v33  ;;  %v773_v41 = vmax.f32 %v772_v30, %v415_v25  ;;  %v353_v43 = vld [vmem:[%s3094_s0 + $0xac8] sm:$0xff]  ;;  %v35_v49 = vld [vmem:[%s3094_s0 + $0xd8] sm:$0xff] }
  0x4f   :  { %1117 = vst [vmem:[%s3095_s1 + $0xa8] sm:$0xff] %v759_v29  ;;  %v786_v44 = vmax.f32 %v785_v31, %v225_v28  ;;  %v226_v45 = vld [vmem:[%s3094_s0 + $0x6d0] sm:$0xff]  ;;  %v99_v50 = vld [vmem:[%s3094_s0 + $0x2d8] sm:$0xff]  ;;  %v480_v53 = vld [vmem:[%s3094_s0 + $0xec0] sm:$0xff] }
  0x50   :  { %v767_v46 = vmax.f32 %v766_v35, %v542_v20  ;;  %v780_v47 = vmax.f32 %v779_v38, %v352_v26  ;;  %v793_v48 = vmax.f32 %v792_v40, %v162_v34  ;;  %v163_v51 = vld [vmem:[%s3094_s0 + $0x4d8] sm:$0xff]  ;;  %v774_v52 = vmax.f32 %v773_v41, %v479_v36  ;;  %v544_v54 = vld [vmem:[%s3094_s0 + $0x10c0] sm:$0xff]  ;;  %v290_v56 = vld [vmem:[%s3094_s0 + $0x8d0] sm:$0xff] }
  0x51   :  { %v787_v55 = vmax.f32 %v786_v44, %v289_v39  ;;  %v800_v57 = vmax.f32 %v35_v49, %v99_v50  ;;  %v417_v59 = vld [vmem:[%s3094_s0 + $0xcc8] sm:$0xff]  ;;  %v354_v60 = vld [vmem:[%s3094_s0 + $0xad0] sm:$0xff]  ;;  %v227_v62 = vld [vmem:[%s3094_s0 + $0x6d8] sm:$0xff] }
  0x52   :  { %1118 = vst [vmem:[%s3095_s1 + $0xb0] sm:$0xff] %v767_v46  ;;  %v781_v58 = vmax.f32 %v780_v47, %v416_v42  ;;  %v794_v61 = vmax.f32 %v793_v48, %v226_v45  ;;  %v775_v63 = vmax.f32 %v774_v52, %v543_v37  ;;  %v36_v2 = vld [vmem:[%s3094_s0 + $0xe0] sm:$0xff]  ;;  %v481_v6 = vld [vmem:[%s3094_s0 + $0xec8] sm:$0xff]  ;;  %v291_v9 = vld [vmem:[%s3094_s0 + $0x8d8] sm:$0xff] }
  0x53   :  { %v788_v0 = vmax.f32 %v787_v55, %v353_v43  ;;  %v801_v1 = vmax.f32 %v800_v57, %v163_v51  ;;  %v100_v3 = vld [vmem:[%s3094_s0 + $0x2e0] sm:$0xff]  ;;  %v545_v7 = vld [vmem:[%s3094_s0 + $0x10c8] sm:$0xff]  ;;  %v418_v12 = vld [vmem:[%s3094_s0 + $0xcd0] sm:$0xff] }
  0x54   :  { %v164_v4 = vld [vmem:[%s3094_s0 + $0x4e0] sm:$0xff]  ;;  %v782_v5 = vmax.f32 %v781_v58, %v480_v53  ;;  %v795_v8 = vmax.f32 %v794_v61, %v290_v56  ;;  %v808_v10 = vmax.f32 %v36_v2, %v100_v3  ;;  %1119 = vst [vmem:[%s3095_s1 + $0xb8] sm:$0xff] %v775_v63  ;;  %v355_v13 = vld [vmem:[%s3094_s0 + $0xad8] sm:$0xff]  ;;  %v37_v19 = vld [vmem:[%s3094_s0 + $0xe8] sm:$0xff] }
  0x55   :  { %v789_v11 = vmax.f32 %v788_v0, %v417_v59  ;;  %v802_v14 = vmax.f32 %v801_v1, %v227_v62  ;;  %v228_v15 = vld [vmem:[%s3094_s0 + $0x6e0] sm:$0xff]  ;;  %v101_v20 = vld [vmem:[%s3094_s0 + $0x2e8] sm:$0xff]  ;;  %v482_v23 = vld [vmem:[%s3094_s0 + $0xed0] sm:$0xff] }
  0x56   :  { %v783_v16 = vmax.f32 %v782_v5, %v544_v54  ;;  %v796_v17 = vmax.f32 %v795_v8, %v354_v60  ;;  %v809_v18 = vmax.f32 %v808_v10, %v164_v4  ;;  %v165_v21 = vld [vmem:[%s3094_s0 + $0x4e8] sm:$0xff]  ;;  %v546_v24 = vld [vmem:[%s3094_s0 + $0x10d0] sm:$0xff]  ;;  %v292_v26 = vld [vmem:[%s3094_s0 + $0x8e0] sm:$0xff]  ;;  %v816_v27 = vmax.f32 %v37_v19, %v101_v20 }
  0x57   :  { %v790_v22 = vmax.f32 %v789_v11, %v481_v6  ;;  %v803_v25 = vmax.f32 %v802_v14, %v291_v9  ;;  %v419_v29 = vld [vmem:[%s3094_s0 + $0xcd8] sm:$0xff]  ;;  %v356_v30 = vld [vmem:[%s3094_s0 + $0xae0] sm:$0xff]  ;;  %v229_v32 = vld [vmem:[%s3094_s0 + $0x6e8] sm:$0xff] }
  0x58   :  { %1120 = vst [vmem:[%s3095_s1 + $0xc0] sm:$0xff] %v783_v16  ;;  %v797_v28 = vmax.f32 %v796_v17, %v418_v12  ;;  %v810_v31 = vmax.f32 %v809_v18, %v228_v15  ;;  %v817_v35 = vmax.f32 %v816_v27, %v165_v21  ;;  %v38_v36 = vld [vmem:[%s3094_s0 + $0xf0] sm:$0xff]  ;;  %v483_v40 = vld [vmem:[%s3094_s0 + $0xed8] sm:$0xff]  ;;  %v293_v43 = vld [vmem:[%s3094_s0 + $0x8e8] sm:$0xff] }
  0x59   :  { %v791_v33 = vmax.f32 %v790_v22, %v545_v7  ;;  %v804_v34 = vmax.f32 %v803_v25, %v355_v13  ;;  %v102_v37 = vld [vmem:[%s3094_s0 + $0x2f0] sm:$0xff]  ;;  %v547_v41 = vld [vmem:[%s3094_s0 + $0x10d8] sm:$0xff]  ;;  %v420_v46 = vld [vmem:[%s3094_s0 + $0xce0] sm:$0xff] }
  0x5a   :  { %v166_v38 = vld [vmem:[%s3094_s0 + $0x4f0] sm:$0xff]  ;;  %v798_v39 = vmax.f32 %v797_v28, %v482_v23  ;;  %v811_v42 = vmax.f32 %v810_v31, %v292_v26  ;;  %v824_v44 = vmax.f32 %v38_v36, %v102_v37  ;;  %v357_v47 = vld [vmem:[%s3094_s0 + $0xae8] sm:$0xff]  ;;  %v818_v48 = vmax.f32 %v817_v35, %v229_v32  ;;  %v39_v53 = vld [vmem:[%s3094_s0 + $0xf8] sm:$0xff] }
  0x5b   :  { %1121 = vst [vmem:[%s3095_s1 + $0xc8] sm:$0xff] %v791_v33  ;;  %v805_v45 = vmax.f32 %v804_v34, %v419_v29  ;;  %v230_v49 = vld [vmem:[%s3094_s0 + $0x6f0] sm:$0xff]  ;;  %v103_v54 = vld [vmem:[%s3094_s0 + $0x2f8] sm:$0xff]  ;;  %v484_v57 = vld [vmem:[%s3094_s0 + $0xee0] sm:$0xff] }
  0x5c   :  { %v799_v50 = vmax.f32 %v798_v39, %v546_v24  ;;  %v812_v51 = vmax.f32 %v811_v42, %v356_v30  ;;  %v825_v52 = vmax.f32 %v824_v44, %v166_v38  ;;  %v167_v55 = vld [vmem:[%s3094_s0 + $0x4f8] sm:$0xff]  ;;  %v548_v58 = vld [vmem:[%s3094_s0 + $0x10e0] sm:$0xff]  ;;  %v819_v59 = vmax.f32 %v818_v48, %v293_v43  ;;  %v294_v60 = vld [vmem:[%s3094_s0 + $0x8f0] sm:$0xff] }
  0x5d   :  { %v806_v56 = vmax.f32 %v805_v45, %v483_v40  ;;  %v832_v61 = vmax.f32 %v39_v53, %v103_v54  ;;  %v421_v63 = vld [vmem:[%s3094_s0 + $0xce8] sm:$0xff]  ;;  %v358_v0 = vld [vmem:[%s3094_s0 + $0xaf0] sm:$0xff]  ;;  %v231_v2 = vld [vmem:[%s3094_s0 + $0x6f8] sm:$0xff] }
  0x5e   :  { %1122 = vst [vmem:[%s3095_s1 + $0xd0] sm:$0xff] %v799_v50  ;;  %v813_v62 = vmax.f32 %v812_v51, %v420_v46  ;;  %v826_v1 = vmax.f32 %v825_v52, %v230_v49  ;;  %v820_v4 = vmax.f32 %v819_v59, %v357_v47  ;;  %v40_v6 = vld [vmem:[%s3094_s0 + $0x100] sm:$0xff]  ;;  %v485_v10 = vld [vmem:[%s3094_s0 + $0xee8] sm:$0xff]  ;;  %v295_v13 = vld [vmem:[%s3094_s0 + $0x8f8] sm:$0xff] }
  0x5f   :  { %v807_v3 = vmax.f32 %v806_v56, %v547_v41  ;;  %v833_v5 = vmax.f32 %v832_v61, %v167_v55  ;;  %v104_v7 = vld [vmem:[%s3094_s0 + $0x300] sm:$0xff]  ;;  %v549_v11 = vld [vmem:[%s3094_s0 + $0x10e8] sm:$0xff]  ;;  %v422_v16 = vld [vmem:[%s3094_s0 + $0xcf0] sm:$0xff] }
  0x60   :  { %v168_v8 = vld [vmem:[%s3094_s0 + $0x500] sm:$0xff]  ;;  %v814_v9 = vmax.f32 %v813_v62, %v484_v57  ;;  %v827_v12 = vmax.f32 %v826_v1, %v294_v60  ;;  %v840_v14 = vmax.f32 %v40_v6, %v104_v7  ;;  %v821_v15 = vmax.f32 %v820_v4, %v421_v63  ;;  %v359_v17 = vld [vmem:[%s3094_s0 + $0xaf8] sm:$0xff]  ;;  %v41_v23 = vld [vmem:[%s3094_s0 + $0x108] sm:$0xff] }
  0x61   :  { %1123 = vst [vmem:[%s3095_s1 + $0xd8] sm:$0xff] %v807_v3  ;;  %v834_v18 = vmax.f32 %v833_v5, %v231_v2  ;;  %v232_v19 = vld [vmem:[%s3094_s0 + $0x700] sm:$0xff]  ;;  %v105_v24 = vld [vmem:[%s3094_s0 + $0x308] sm:$0xff]  ;;  %v486_v27 = vld [vmem:[%s3094_s0 + $0xef0] sm:$0xff] }
  0x62   :  { %v815_v20 = vmax.f32 %v814_v9, %v548_v58  ;;  %v828_v21 = vmax.f32 %v827_v12, %v358_v0  ;;  %v841_v22 = vmax.f32 %v840_v14, %v168_v8  ;;  %v169_v25 = vld [vmem:[%s3094_s0 + $0x508] sm:$0xff]  ;;  %v822_v26 = vmax.f32 %v821_v15, %v485_v10  ;;  %v550_v28 = vld [vmem:[%s3094_s0 + $0x10f0] sm:$0xff]  ;;  %v296_v30 = vld [vmem:[%s3094_s0 + $0x900] sm:$0xff] }
  0x63   :  { %v835_v29 = vmax.f32 %v834_v18, %v295_v13  ;;  %v848_v31 = vmax.f32 %v41_v23, %v105_v24  ;;  %v423_v33 = vld [vmem:[%s3094_s0 + $0xcf8] sm:$0xff]  ;;  %v360_v34 = vld [vmem:[%s3094_s0 + $0xb00] sm:$0xff]  ;;  %v233_v36 = vld [vmem:[%s3094_s0 + $0x708] sm:$0xff] }
  0x64   :  { %1124 = vst [vmem:[%s3095_s1 + $0xe0] sm:$0xff] %v815_v20  ;;  %v829_v32 = vmax.f32 %v828_v21, %v422_v16  ;;  %v842_v35 = vmax.f32 %v841_v22, %v232_v19  ;;  %v823_v37 = vmax.f32 %v822_v26, %v549_v11  ;;  %v42_v40 = vld [vmem:[%s3094_s0 + $0x110] sm:$0xff]  ;;  %v487_v44 = vld [vmem:[%s3094_s0 + $0xef8] sm:$0xff]  ;;  %v297_v47 = vld [vmem:[%s3094_s0 + $0x908] sm:$0xff] }
  0x65   :  { %v836_v38 = vmax.f32 %v835_v29, %v359_v17  ;;  %v849_v39 = vmax.f32 %v848_v31, %v169_v25  ;;  %v106_v41 = vld [vmem:[%s3094_s0 + $0x310] sm:$0xff]  ;;  %v551_v45 = vld [vmem:[%s3094_s0 + $0x10f8] sm:$0xff]  ;;  %v424_v50 = vld [vmem:[%s3094_s0 + $0xd00] sm:$0xff] }
  0x66   :  { %v170_v42 = vld [vmem:[%s3094_s0 + $0x510] sm:$0xff]  ;;  %v830_v43 = vmax.f32 %v829_v32, %v486_v27  ;;  %v843_v46 = vmax.f32 %v842_v35, %v296_v30  ;;  %v856_v48 = vmax.f32 %v42_v40, %v106_v41  ;;  %1125 = vst [vmem:[%s3095_s1 + $0xe8] sm:$0xff] %v823_v37  ;;  %v361_v51 = vld [vmem:[%s3094_s0 + $0xb08] sm:$0xff]  ;;  %v43_v57 = vld [vmem:[%s3094_s0 + $0x118] sm:$0xff] }
  0x67   :  { %v837_v49 = vmax.f32 %v836_v38, %v423_v33  ;;  %v850_v52 = vmax.f32 %v849_v39, %v233_v36  ;;  %v234_v53 = vld [vmem:[%s3094_s0 + $0x710] sm:$0xff]  ;;  %v107_v58 = vld [vmem:[%s3094_s0 + $0x318] sm:$0xff]  ;;  %v488_v61 = vld [vmem:[%s3094_s0 + $0xf00] sm:$0xff] }
  0x68   :  { %v831_v54 = vmax.f32 %v830_v43, %v550_v28  ;;  %v844_v55 = vmax.f32 %v843_v46, %v360_v34  ;;  %v857_v56 = vmax.f32 %v856_v48, %v170_v42  ;;  %v171_v59 = vld [vmem:[%s3094_s0 + $0x518] sm:$0xff]  ;;  %v552_v62 = vld [vmem:[%s3094_s0 + $0x1100] sm:$0xff]  ;;  %v298_v0 = vld [vmem:[%s3094_s0 + $0x910] sm:$0xff]  ;;  %v864_v1 = vmax.f32 %v43_v57, %v107_v58 }
  0x69   :  { %v838_v60 = vmax.f32 %v837_v49, %v487_v44  ;;  %v851_v63 = vmax.f32 %v850_v52, %v297_v47  ;;  %v425_v3 = vld [vmem:[%s3094_s0 + $0xd08] sm:$0xff]  ;;  %v362_v4 = vld [vmem:[%s3094_s0 + $0xb10] sm:$0xff]  ;;  %v235_v6 = vld [vmem:[%s3094_s0 + $0x718] sm:$0xff] }
  0x6a   :  { %1126 = vst [vmem:[%s3095_s1 + $0xf0] sm:$0xff] %v831_v54  ;;  %v845_v2 = vmax.f32 %v844_v55, %v424_v50  ;;  %v858_v5 = vmax.f32 %v857_v56, %v234_v53  ;;  %v865_v9 = vmax.f32 %v864_v1, %v171_v59  ;;  %v44_v10 = vld [vmem:[%s3094_s0 + $0x120] sm:$0xff]  ;;  %v489_v14 = vld [vmem:[%s3094_s0 + $0xf08] sm:$0xff]  ;;  %v299_v17 = vld [vmem:[%s3094_s0 + $0x918] sm:$0xff] }
  0x6b   :  { %v839_v7 = vmax.f32 %v838_v60, %v551_v45  ;;  %v852_v8 = vmax.f32 %v851_v63, %v361_v51  ;;  %v108_v11 = vld [vmem:[%s3094_s0 + $0x320] sm:$0xff]  ;;  %v553_v15 = vld [vmem:[%s3094_s0 + $0x1108] sm:$0xff]  ;;  %v426_v20 = vld [vmem:[%s3094_s0 + $0xd10] sm:$0xff] }
  0x6c   :  { %v172_v12 = vld [vmem:[%s3094_s0 + $0x520] sm:$0xff]  ;;  %v846_v13 = vmax.f32 %v845_v2, %v488_v61  ;;  %v859_v16 = vmax.f32 %v858_v5, %v298_v0  ;;  %v872_v18 = vmax.f32 %v44_v10, %v108_v11  ;;  %v363_v21 = vld [vmem:[%s3094_s0 + $0xb18] sm:$0xff]  ;;  %v866_v22 = vmax.f32 %v865_v9, %v235_v6  ;;  %v45_v27 = vld [vmem:[%s3094_s0 + $0x128] sm:$0xff] }
  0x6d   :  { %1127 = vst [vmem:[%s3095_s1 + $0xf8] sm:$0xff] %v839_v7  ;;  %v853_v19 = vmax.f32 %v852_v8, %v425_v3  ;;  %v236_v23 = vld [vmem:[%s3094_s0 + $0x720] sm:$0xff]  ;;  %v109_v28 = vld [vmem:[%s3094_s0 + $0x328] sm:$0xff]  ;;  %v490_v31 = vld [vmem:[%s3094_s0 + $0xf10] sm:$0xff] }
  0x6e   :  { %v847_v24 = vmax.f32 %v846_v13, %v552_v62  ;;  %v860_v25 = vmax.f32 %v859_v16, %v362_v4  ;;  %v873_v26 = vmax.f32 %v872_v18, %v172_v12  ;;  %v173_v29 = vld [vmem:[%s3094_s0 + $0x528] sm:$0xff]  ;;  %v554_v32 = vld [vmem:[%s3094_s0 + $0x1110] sm:$0xff]  ;;  %v867_v33 = vmax.f32 %v866_v22, %v299_v17  ;;  %v300_v34 = vld [vmem:[%s3094_s0 + $0x920] sm:$0xff] }
  0x6f   :  { %v854_v30 = vmax.f32 %v853_v19, %v489_v14  ;;  %v880_v35 = vmax.f32 %v45_v27, %v109_v28  ;;  %v427_v37 = vld [vmem:[%s3094_s0 + $0xd18] sm:$0xff]  ;;  %v364_v38 = vld [vmem:[%s3094_s0 + $0xb20] sm:$0xff]  ;;  %v237_v40 = vld [vmem:[%s3094_s0 + $0x728] sm:$0xff] }
  0x70   :  { %1128 = vst [vmem:[%s3095_s1 + $0x100] sm:$0xff] %v847_v24  ;;  %v861_v36 = vmax.f32 %v860_v25, %v426_v20  ;;  %v874_v39 = vmax.f32 %v873_v26, %v236_v23  ;;  %v868_v42 = vmax.f32 %v867_v33, %v363_v21  ;;  %v46_v44 = vld [vmem:[%s3094_s0 + $0x130] sm:$0xff]  ;;  %v491_v48 = vld [vmem:[%s3094_s0 + $0xf18] sm:$0xff]  ;;  %v301_v51 = vld [vmem:[%s3094_s0 + $0x928] sm:$0xff] }
  0x71   :  { %v855_v41 = vmax.f32 %v854_v30, %v553_v15  ;;  %v881_v43 = vmax.f32 %v880_v35, %v173_v29  ;;  %v110_v45 = vld [vmem:[%s3094_s0 + $0x330] sm:$0xff]  ;;  %v555_v49 = vld [vmem:[%s3094_s0 + $0x1118] sm:$0xff]  ;;  %v428_v54 = vld [vmem:[%s3094_s0 + $0xd20] sm:$0xff] }
  0x72   :  { %v174_v46 = vld [vmem:[%s3094_s0 + $0x530] sm:$0xff]  ;;  %v862_v47 = vmax.f32 %v861_v36, %v490_v31  ;;  %v875_v50 = vmax.f32 %v874_v39, %v300_v34  ;;  %v888_v52 = vmax.f32 %v46_v44, %v110_v45  ;;  %v869_v53 = vmax.f32 %v868_v42, %v427_v37  ;;  %v365_v55 = vld [vmem:[%s3094_s0 + $0xb28] sm:$0xff]  ;;  %v47_v61 = vld [vmem:[%s3094_s0 + $0x138] sm:$0xff] }
  0x73   :  { %1129 = vst [vmem:[%s3095_s1 + $0x108] sm:$0xff] %v855_v41  ;;  %v882_v56 = vmax.f32 %v881_v43, %v237_v40  ;;  %v238_v57 = vld [vmem:[%s3094_s0 + $0x730] sm:$0xff]  ;;  %v111_v62 = vld [vmem:[%s3094_s0 + $0x338] sm:$0xff]  ;;  %v492_v1 = vld [vmem:[%s3094_s0 + $0xf20] sm:$0xff] }
  0x74   :  { %v863_v58 = vmax.f32 %v862_v47, %v554_v32  ;;  %v876_v59 = vmax.f32 %v875_v50, %v364_v38  ;;  %v889_v60 = vmax.f32 %v888_v52, %v174_v46  ;;  %v175_v63 = vld [vmem:[%s3094_s0 + $0x538] sm:$0xff]  ;;  %v870_v0 = vmax.f32 %v869_v53, %v491_v48  ;;  %v556_v2 = vld [vmem:[%s3094_s0 + $0x1120] sm:$0xff]  ;;  %v302_v4 = vld [vmem:[%s3094_s0 + $0x930] sm:$0xff] }
  0x75   :  { %v883_v3 = vmax.f32 %v882_v56, %v301_v51  ;;  %v896_v5 = vmax.f32 %v47_v61, %v111_v62  ;;  %v429_v7 = vld [vmem:[%s3094_s0 + $0xd28] sm:$0xff]  ;;  %v366_v8 = vld [vmem:[%s3094_s0 + $0xb30] sm:$0xff]  ;;  %v239_v10 = vld [vmem:[%s3094_s0 + $0x738] sm:$0xff] }
  0x76   :  { %1130 = vst [vmem:[%s3095_s1 + $0x110] sm:$0xff] %v863_v58  ;;  %v877_v6 = vmax.f32 %v876_v59, %v428_v54  ;;  %v890_v9 = vmax.f32 %v889_v60, %v238_v57  ;;  %v871_v11 = vmax.f32 %v870_v0, %v555_v49  ;;  %v48_v14 = vld [vmem:[%s3094_s0 + $0x140] sm:$0xff]  ;;  %v493_v18 = vld [vmem:[%s3094_s0 + $0xf28] sm:$0xff]  ;;  %v303_v21 = vld [vmem:[%s3094_s0 + $0x938] sm:$0xff] }
  0x77   :  { %v884_v12 = vmax.f32 %v883_v3, %v365_v55  ;;  %v897_v13 = vmax.f32 %v896_v5, %v175_v63  ;;  %v112_v15 = vld [vmem:[%s3094_s0 + $0x340] sm:$0xff]  ;;  %v557_v19 = vld [vmem:[%s3094_s0 + $0x1128] sm:$0xff]  ;;  %v430_v24 = vld [vmem:[%s3094_s0 + $0xd30] sm:$0xff] }
  0x78   :  { %v176_v16 = vld [vmem:[%s3094_s0 + $0x540] sm:$0xff]  ;;  %v878_v17 = vmax.f32 %v877_v6, %v492_v1  ;;  %v891_v20 = vmax.f32 %v890_v9, %v302_v4  ;;  %v904_v22 = vmax.f32 %v48_v14, %v112_v15  ;;  %1131 = vst [vmem:[%s3095_s1 + $0x118] sm:$0xff] %v871_v11  ;;  %v367_v25 = vld [vmem:[%s3094_s0 + $0xb38] sm:$0xff]  ;;  %v49_v31 = vld [vmem:[%s3094_s0 + $0x148] sm:$0xff] }
  0x79   :  { %v885_v23 = vmax.f32 %v884_v12, %v429_v7  ;;  %v898_v26 = vmax.f32 %v897_v13, %v239_v10  ;;  %v240_v27 = vld [vmem:[%s3094_s0 + $0x740] sm:$0xff]  ;;  %v113_v32 = vld [vmem:[%s3094_s0 + $0x348] sm:$0xff]  ;;  %v494_v35 = vld [vmem:[%s3094_s0 + $0xf30] sm:$0xff] }
  0x7a   :  { %v879_v28 = vmax.f32 %v878_v17, %v556_v2  ;;  %v892_v29 = vmax.f32 %v891_v20, %v366_v8  ;;  %v905_v30 = vmax.f32 %v904_v22, %v176_v16  ;;  %v177_v33 = vld [vmem:[%s3094_s0 + $0x548] sm:$0xff]  ;;  %v558_v36 = vld [vmem:[%s3094_s0 + $0x1130] sm:$0xff]  ;;  %v304_v38 = vld [vmem:[%s3094_s0 + $0x940] sm:$0xff]  ;;  %v912_v39 = vmax.f32 %v49_v31, %v113_v32 }
  0x7b   :  { %v886_v34 = vmax.f32 %v885_v23, %v493_v18  ;;  %v899_v37 = vmax.f32 %v898_v26, %v303_v21  ;;  %v431_v41 = vld [vmem:[%s3094_s0 + $0xd38] sm:$0xff]  ;;  %v368_v42 = vld [vmem:[%s3094_s0 + $0xb40] sm:$0xff]  ;;  %v241_v44 = vld [vmem:[%s3094_s0 + $0x748] sm:$0xff] }
  0x7c   :  { %1132 = vst [vmem:[%s3095_s1 + $0x120] sm:$0xff] %v879_v28  ;;  %v893_v40 = vmax.f32 %v892_v29, %v430_v24  ;;  %v906_v43 = vmax.f32 %v905_v30, %v240_v27  ;;  %v913_v47 = vmax.f32 %v912_v39, %v177_v33  ;;  %v50_v48 = vld [vmem:[%s3094_s0 + $0x150] sm:$0xff]  ;;  %v495_v52 = vld [vmem:[%s3094_s0 + $0xf38] sm:$0xff]  ;;  %v305_v55 = vld [vmem:[%s3094_s0 + $0x948] sm:$0xff] }
  0x7d   :  { %v887_v45 = vmax.f32 %v886_v34, %v557_v19  ;;  %v900_v46 = vmax.f32 %v899_v37, %v367_v25  ;;  %v114_v49 = vld [vmem:[%s3094_s0 + $0x350] sm:$0xff]  ;;  %v559_v53 = vld [vmem:[%s3094_s0 + $0x1138] sm:$0xff]  ;;  %v432_v58 = vld [vmem:[%s3094_s0 + $0xd40] sm:$0xff] }
  0x7e   :  { %v178_v50 = vld [vmem:[%s3094_s0 + $0x550] sm:$0xff]  ;;  %v894_v51 = vmax.f32 %v893_v40, %v494_v35  ;;  %v907_v54 = vmax.f32 %v906_v43, %v304_v38  ;;  %v920_v56 = vmax.f32 %v50_v48, %v114_v49  ;;  %v369_v59 = vld [vmem:[%s3094_s0 + $0xb48] sm:$0xff]  ;;  %v914_v60 = vmax.f32 %v913_v47, %v241_v44  ;;  %v51_v1 = vld [vmem:[%s3094_s0 + $0x158] sm:$0xff] }
  0x7f   :  { %1133 = vst [vmem:[%s3095_s1 + $0x128] sm:$0xff] %v887_v45  ;;  %v901_v57 = vmax.f32 %v900_v46, %v431_v41  ;;  %v242_v61 = vld [vmem:[%s3094_s0 + $0x750] sm:$0xff]  ;;  %v115_v2 = vld [vmem:[%s3094_s0 + $0x358] sm:$0xff]  ;;  %v496_v5 = vld [vmem:[%s3094_s0 + $0xf40] sm:$0xff] }
  0x80   :  { %v895_v62 = vmax.f32 %v894_v51, %v558_v36  ;;  %v908_v63 = vmax.f32 %v907_v54, %v368_v42  ;;  %v921_v0 = vmax.f32 %v920_v56, %v178_v50  ;;  %v179_v3 = vld [vmem:[%s3094_s0 + $0x558] sm:$0xff]  ;;  %v560_v6 = vld [vmem:[%s3094_s0 + $0x1140] sm:$0xff]  ;;  %v915_v7 = vmax.f32 %v914_v60, %v305_v55  ;;  %v306_v8 = vld [vmem:[%s3094_s0 + $0x950] sm:$0xff] }
  0x81   :  { %v902_v4 = vmax.f32 %v901_v57, %v495_v52  ;;  %v928_v9 = vmax.f32 %v51_v1, %v115_v2  ;;  %v433_v11 = vld [vmem:[%s3094_s0 + $0xd48] sm:$0xff]  ;;  %v370_v12 = vld [vmem:[%s3094_s0 + $0xb50] sm:$0xff]  ;;  %v243_v14 = vld [vmem:[%s3094_s0 + $0x758] sm:$0xff] }
  0x82   :  { %1134 = vst [vmem:[%s3095_s1 + $0x130] sm:$0xff] %v895_v62  ;;  %v909_v10 = vmax.f32 %v908_v63, %v432_v58  ;;  %v922_v13 = vmax.f32 %v921_v0, %v242_v61  ;;  %v916_v16 = vmax.f32 %v915_v7, %v369_v59  ;;  %v52_v18 = vld [vmem:[%s3094_s0 + $0x160] sm:$0xff]  ;;  %v497_v22 = vld [vmem:[%s3094_s0 + $0xf48] sm:$0xff]  ;;  %v307_v25 = vld [vmem:[%s3094_s0 + $0x958] sm:$0xff] }
  0x83   :  { %v903_v15 = vmax.f32 %v902_v4, %v559_v53  ;;  %v929_v17 = vmax.f32 %v928_v9, %v179_v3  ;;  %v116_v19 = vld [vmem:[%s3094_s0 + $0x360] sm:$0xff]  ;;  %v561_v23 = vld [vmem:[%s3094_s0 + $0x1148] sm:$0xff]  ;;  %v434_v28 = vld [vmem:[%s3094_s0 + $0xd50] sm:$0xff] }
  0x84   :  { %v180_v20 = vld [vmem:[%s3094_s0 + $0x560] sm:$0xff]  ;;  %v910_v21 = vmax.f32 %v909_v10, %v496_v5  ;;  %v923_v24 = vmax.f32 %v922_v13, %v306_v8  ;;  %v936_v26 = vmax.f32 %v52_v18, %v116_v19  ;;  %v917_v27 = vmax.f32 %v916_v16, %v433_v11  ;;  %v371_v29 = vld [vmem:[%s3094_s0 + $0xb58] sm:$0xff]  ;;  %v53_v35 = vld [vmem:[%s3094_s0 + $0x168] sm:$0xff] }
  0x85   :  { %1135 = vst [vmem:[%s3095_s1 + $0x138] sm:$0xff] %v903_v15  ;;  %v930_v30 = vmax.f32 %v929_v17, %v243_v14  ;;  %v244_v31 = vld [vmem:[%s3094_s0 + $0x760] sm:$0xff]  ;;  %v117_v36 = vld [vmem:[%s3094_s0 + $0x368] sm:$0xff]  ;;  %v498_v39 = vld [vmem:[%s3094_s0 + $0xf50] sm:$0xff] }
  0x86   :  { %v911_v32 = vmax.f32 %v910_v21, %v560_v6  ;;  %v924_v33 = vmax.f32 %v923_v24, %v370_v12  ;;  %v937_v34 = vmax.f32 %v936_v26, %v180_v20  ;;  %v181_v37 = vld [vmem:[%s3094_s0 + $0x568] sm:$0xff]  ;;  %v918_v38 = vmax.f32 %v917_v27, %v497_v22  ;;  %v562_v40 = vld [vmem:[%s3094_s0 + $0x1150] sm:$0xff]  ;;  %v308_v42 = vld [vmem:[%s3094_s0 + $0x960] sm:$0xff] }
  0x87   :  { %v931_v41 = vmax.f32 %v930_v30, %v307_v25  ;;  %v944_v43 = vmax.f32 %v53_v35, %v117_v36  ;;  %v435_v45 = vld [vmem:[%s3094_s0 + $0xd58] sm:$0xff]  ;;  %v372_v46 = vld [vmem:[%s3094_s0 + $0xb60] sm:$0xff]  ;;  %v245_v48 = vld [vmem:[%s3094_s0 + $0x768] sm:$0xff] }
  0x88   :  { %1136 = vst [vmem:[%s3095_s1 + $0x140] sm:$0xff] %v911_v32  ;;  %v925_v44 = vmax.f32 %v924_v33, %v434_v28  ;;  %v938_v47 = vmax.f32 %v937_v34, %v244_v31  ;;  %v919_v49 = vmax.f32 %v918_v38, %v561_v23  ;;  %v54_v52 = vld [vmem:[%s3094_s0 + $0x170] sm:$0xff]  ;;  %v499_v56 = vld [vmem:[%s3094_s0 + $0xf58] sm:$0xff]  ;;  %v309_v59 = vld [vmem:[%s3094_s0 + $0x968] sm:$0xff] }
  0x89   :  { %v932_v50 = vmax.f32 %v931_v41, %v371_v29  ;;  %v945_v51 = vmax.f32 %v944_v43, %v181_v37  ;;  %v118_v53 = vld [vmem:[%s3094_s0 + $0x370] sm:$0xff]  ;;  %v563_v57 = vld [vmem:[%s3094_s0 + $0x1158] sm:$0xff]  ;;  %v436_v62 = vld [vmem:[%s3094_s0 + $0xd60] sm:$0xff] }
  0x8a   :  { %v182_v54 = vld [vmem:[%s3094_s0 + $0x570] sm:$0xff]  ;;  %v926_v55 = vmax.f32 %v925_v44, %v498_v39  ;;  %v939_v58 = vmax.f32 %v938_v47, %v308_v42  ;;  %v952_v60 = vmax.f32 %v54_v52, %v118_v53  ;;  %1137 = vst [vmem:[%s3095_s1 + $0x148] sm:$0xff] %v919_v49  ;;  %v373_v63 = vld [vmem:[%s3094_s0 + $0xb68] sm:$0xff]  ;;  %v55_v5 = vld [vmem:[%s3094_s0 + $0x178] sm:$0xff] }
  0x8b   :  { %v933_v61 = vmax.f32 %v932_v50, %v435_v45  ;;  %v946_v0 = vmax.f32 %v945_v51, %v245_v48  ;;  %v246_v1 = vld [vmem:[%s3094_s0 + $0x770] sm:$0xff]  ;;  %v119_v6 = vld [vmem:[%s3094_s0 + $0x378] sm:$0xff]  ;;  %v500_v9 = vld [vmem:[%s3094_s0 + $0xf60] sm:$0xff] }
  0x8c   :  { %v927_v2 = vmax.f32 %v926_v55, %v562_v40  ;;  %v940_v3 = vmax.f32 %v939_v58, %v372_v46  ;;  %v953_v4 = vmax.f32 %v952_v60, %v182_v54  ;;  %v183_v7 = vld [vmem:[%s3094_s0 + $0x578] sm:$0xff]  ;;  %v564_v10 = vld [vmem:[%s3094_s0 + $0x1160] sm:$0xff]  ;;  %v310_v12 = vld [vmem:[%s3094_s0 + $0x970] sm:$0xff]  ;;  %v960_v13 = vmax.f32 %v55_v5, %v119_v6 }
  0x8d   :  { %v934_v8 = vmax.f32 %v933_v61, %v499_v56  ;;  %v947_v11 = vmax.f32 %v946_v0, %v309_v59  ;;  %v437_v15 = vld [vmem:[%s3094_s0 + $0xd68] sm:$0xff]  ;;  %v374_v16 = vld [vmem:[%s3094_s0 + $0xb70] sm:$0xff]  ;;  %v247_v18 = vld [vmem:[%s3094_s0 + $0x778] sm:$0xff] }
  0x8e   :  { %1138 = vst [vmem:[%s3095_s1 + $0x150] sm:$0xff] %v927_v2  ;;  %v941_v14 = vmax.f32 %v940_v3, %v436_v62  ;;  %v954_v17 = vmax.f32 %v953_v4, %v246_v1  ;;  %v961_v21 = vmax.f32 %v960_v13, %v183_v7  ;;  %v56_v22 = vld [vmem:[%s3094_s0 + $0x180] sm:$0xff]  ;;  %v501_v26 = vld [vmem:[%s3094_s0 + $0xf68] sm:$0xff]  ;;  %v311_v29 = vld [vmem:[%s3094_s0 + $0x978] sm:$0xff] }
  0x8f   :  { %v935_v19 = vmax.f32 %v934_v8, %v563_v57  ;;  %v948_v20 = vmax.f32 %v947_v11, %v373_v63  ;;  %v120_v23 = vld [vmem:[%s3094_s0 + $0x380] sm:$0xff]  ;;  %v565_v27 = vld [vmem:[%s3094_s0 + $0x1168] sm:$0xff]  ;;  %v438_v32 = vld [vmem:[%s3094_s0 + $0xd70] sm:$0xff] }
  0x90   :  { %v184_v24 = vld [vmem:[%s3094_s0 + $0x580] sm:$0xff]  ;;  %v942_v25 = vmax.f32 %v941_v14, %v500_v9  ;;  %v955_v28 = vmax.f32 %v954_v17, %v310_v12  ;;  %v968_v30 = vmax.f32 %v56_v22, %v120_v23  ;;  %v375_v33 = vld [vmem:[%s3094_s0 + $0xb78] sm:$0xff]  ;;  %v962_v34 = vmax.f32 %v961_v21, %v247_v18  ;;  %v57_v39 = vld [vmem:[%s3094_s0 + $0x188] sm:$0xff] }
  0x91   :  { %1139 = vst [vmem:[%s3095_s1 + $0x158] sm:$0xff] %v935_v19  ;;  %v949_v31 = vmax.f32 %v948_v20, %v437_v15  ;;  %v248_v35 = vld [vmem:[%s3094_s0 + $0x780] sm:$0xff]  ;;  %v121_v40 = vld [vmem:[%s3094_s0 + $0x388] sm:$0xff]  ;;  %v502_v43 = vld [vmem:[%s3094_s0 + $0xf70] sm:$0xff] }
  0x92   :  { %v943_v36 = vmax.f32 %v942_v25, %v564_v10  ;;  %v956_v37 = vmax.f32 %v955_v28, %v374_v16  ;;  %v969_v38 = vmax.f32 %v968_v30, %v184_v24  ;;  %v185_v41 = vld [vmem:[%s3094_s0 + $0x588] sm:$0xff]  ;;  %v566_v44 = vld [vmem:[%s3094_s0 + $0x1170] sm:$0xff]  ;;  %v963_v45 = vmax.f32 %v962_v34, %v311_v29  ;;  %v312_v46 = vld [vmem:[%s3094_s0 + $0x980] sm:$0xff] }
  0x93   :  { %v950_v42 = vmax.f32 %v949_v31, %v501_v26  ;;  %v976_v47 = vmax.f32 %v57_v39, %v121_v40  ;;  %v439_v49 = vld [vmem:[%s3094_s0 + $0xd78] sm:$0xff]  ;;  %v376_v50 = vld [vmem:[%s3094_s0 + $0xb80] sm:$0xff]  ;;  %v249_v52 = vld [vmem:[%s3094_s0 + $0x788] sm:$0xff] }
  0x94   :  { %1140 = vst [vmem:[%s3095_s1 + $0x160] sm:$0xff] %v943_v36  ;;  %v957_v48 = vmax.f32 %v956_v37, %v438_v32  ;;  %v970_v51 = vmax.f32 %v969_v38, %v248_v35  ;;  %v964_v54 = vmax.f32 %v963_v45, %v375_v33  ;;  %v58_v56 = vld [vmem:[%s3094_s0 + $0x190] sm:$0xff]  ;;  %v503_v60 = vld [vmem:[%s3094_s0 + $0xf78] sm:$0xff]  ;;  %v313_v63 = vld [vmem:[%s3094_s0 + $0x988] sm:$0xff] }
  0x95   :  { %v951_v53 = vmax.f32 %v950_v42, %v565_v27  ;;  %v977_v55 = vmax.f32 %v976_v47, %v185_v41  ;;  %v122_v57 = vld [vmem:[%s3094_s0 + $0x390] sm:$0xff]  ;;  %v567_v61 = vld [vmem:[%s3094_s0 + $0x1178] sm:$0xff]  ;;  %v440_v2 = vld [vmem:[%s3094_s0 + $0xd80] sm:$0xff] }
  0x96   :  { %v186_v58 = vld [vmem:[%s3094_s0 + $0x590] sm:$0xff]  ;;  %v958_v59 = vmax.f32 %v957_v48, %v502_v43  ;;  %v971_v62 = vmax.f32 %v970_v51, %v312_v46  ;;  %v984_v0 = vmax.f32 %v58_v56, %v122_v57  ;;  %v965_v1 = vmax.f32 %v964_v54, %v439_v49  ;;  %v377_v3 = vld [vmem:[%s3094_s0 + $0xb88] sm:$0xff]  ;;  %v59_v9 = vld [vmem:[%s3094_s0 + $0x198] sm:$0xff] }
  0x97   :  { %1141 = vst [vmem:[%s3095_s1 + $0x168] sm:$0xff] %v951_v53  ;;  %v978_v4 = vmax.f32 %v977_v55, %v249_v52  ;;  %v250_v5 = vld [vmem:[%s3094_s0 + $0x790] sm:$0xff]  ;;  %v123_v10 = vld [vmem:[%s3094_s0 + $0x398] sm:$0xff]  ;;  %v504_v13 = vld [vmem:[%s3094_s0 + $0xf80] sm:$0xff] }
  0x98   :  { %v959_v6 = vmax.f32 %v958_v59, %v566_v44  ;;  %v972_v7 = vmax.f32 %v971_v62, %v376_v50  ;;  %v985_v8 = vmax.f32 %v984_v0, %v186_v58  ;;  %v187_v11 = vld [vmem:[%s3094_s0 + $0x598] sm:$0xff]  ;;  %v966_v12 = vmax.f32 %v965_v1, %v503_v60  ;;  %v568_v14 = vld [vmem:[%s3094_s0 + $0x1180] sm:$0xff]  ;;  %v314_v16 = vld [vmem:[%s3094_s0 + $0x990] sm:$0xff] }
  0x99   :  { %v979_v15 = vmax.f32 %v978_v4, %v313_v63  ;;  %v992_v17 = vmax.f32 %v59_v9, %v123_v10  ;;  %v441_v19 = vld [vmem:[%s3094_s0 + $0xd88] sm:$0xff]  ;;  %v378_v20 = vld [vmem:[%s3094_s0 + $0xb90] sm:$0xff]  ;;  %v251_v22 = vld [vmem:[%s3094_s0 + $0x798] sm:$0xff] }
  0x9a   :  { %1142 = vst [vmem:[%s3095_s1 + $0x170] sm:$0xff] %v959_v6  ;;  %v973_v18 = vmax.f32 %v972_v7, %v440_v2  ;;  %v986_v21 = vmax.f32 %v985_v8, %v250_v5  ;;  %v967_v23 = vmax.f32 %v966_v12, %v567_v61  ;;  %v60_v26 = vld [vmem:[%s3094_s0 + $0x1a0] sm:$0xff]  ;;  %v505_v30 = vld [vmem:[%s3094_s0 + $0xf88] sm:$0xff]  ;;  %v315_v33 = vld [vmem:[%s3094_s0 + $0x998] sm:$0xff] }
  0x9b   :  { %v980_v24 = vmax.f32 %v979_v15, %v377_v3  ;;  %v993_v25 = vmax.f32 %v992_v17, %v187_v11  ;;  %v124_v27 = vld [vmem:[%s3094_s0 + $0x3a0] sm:$0xff]  ;;  %v569_v31 = vld [vmem:[%s3094_s0 + $0x1188] sm:$0xff]  ;;  %v442_v36 = vld [vmem:[%s3094_s0 + $0xd90] sm:$0xff] }
  0x9c   :  { %v188_v28 = vld [vmem:[%s3094_s0 + $0x5a0] sm:$0xff]  ;;  %v974_v29 = vmax.f32 %v973_v18, %v504_v13  ;;  %v987_v32 = vmax.f32 %v986_v21, %v314_v16  ;;  %v1000_v34 = vmax.f32 %v60_v26, %v124_v27  ;;  %1143 = vst [vmem:[%s3095_s1 + $0x178] sm:$0xff] %v967_v23  ;;  %v379_v37 = vld [vmem:[%s3094_s0 + $0xb98] sm:$0xff]  ;;  %v61_v43 = vld [vmem:[%s3094_s0 + $0x1a8] sm:$0xff] }
  0x9d   :  { %v981_v35 = vmax.f32 %v980_v24, %v441_v19  ;;  %v994_v38 = vmax.f32 %v993_v25, %v251_v22  ;;  %v252_v39 = vld [vmem:[%s3094_s0 + $0x7a0] sm:$0xff]  ;;  %v125_v44 = vld [vmem:[%s3094_s0 + $0x3a8] sm:$0xff]  ;;  %v506_v47 = vld [vmem:[%s3094_s0 + $0xf90] sm:$0xff] }
  0x9e   :  { %v975_v40 = vmax.f32 %v974_v29, %v568_v14  ;;  %v988_v41 = vmax.f32 %v987_v32, %v378_v20  ;;  %v1001_v42 = vmax.f32 %v1000_v34, %v188_v28  ;;  %v189_v45 = vld [vmem:[%s3094_s0 + $0x5a8] sm:$0xff]  ;;  %v570_v48 = vld [vmem:[%s3094_s0 + $0x1190] sm:$0xff]  ;;  %v316_v50 = vld [vmem:[%s3094_s0 + $0x9a0] sm:$0xff]  ;;  %v1008_v51 = vmax.f32 %v61_v43, %v125_v44 }
  0x9f   :  { %v982_v46 = vmax.f32 %v981_v35, %v505_v30  ;;  %v995_v49 = vmax.f32 %v994_v38, %v315_v33  ;;  %v443_v53 = vld [vmem:[%s3094_s0 + $0xd98] sm:$0xff]  ;;  %v380_v54 = vld [vmem:[%s3094_s0 + $0xba0] sm:$0xff]  ;;  %v253_v56 = vld [vmem:[%s3094_s0 + $0x7a8] sm:$0xff] }
  0xa0   :  { %1144 = vst [vmem:[%s3095_s1 + $0x180] sm:$0xff] %v975_v40  ;;  %v989_v52 = vmax.f32 %v988_v41, %v442_v36  ;;  %v1002_v55 = vmax.f32 %v1001_v42, %v252_v39  ;;  %v1009_v59 = vmax.f32 %v1008_v51, %v189_v45  ;;  %v62_v60 = vld [vmem:[%s3094_s0 + $0x1b0] sm:$0xff]  ;;  %v507_v0 = vld [vmem:[%s3094_s0 + $0xf98] sm:$0xff]  ;;  %v317_v3 = vld [vmem:[%s3094_s0 + $0x9a8] sm:$0xff] }
  0xa1   :  { %v983_v57 = vmax.f32 %v982_v46, %v569_v31  ;;  %v996_v58 = vmax.f32 %v995_v49, %v379_v37  ;;  %v126_v61 = vld [vmem:[%s3094_s0 + $0x3b0] sm:$0xff]  ;;  %v571_v1 = vld [vmem:[%s3094_s0 + $0x1198] sm:$0xff]  ;;  %v444_v6 = vld [vmem:[%s3094_s0 + $0xda0] sm:$0xff] }
  0xa2   :  { %v190_v62 = vld [vmem:[%s3094_s0 + $0x5b0] sm:$0xff]  ;;  %v990_v63 = vmax.f32 %v989_v52, %v506_v47  ;;  %v1003_v2 = vmax.f32 %v1002_v55, %v316_v50  ;;  %v1016_v4 = vmax.f32 %v62_v60, %v126_v61  ;;  %v381_v7 = vld [vmem:[%s3094_s0 + $0xba8] sm:$0xff]  ;;  %v1010_v8 = vmax.f32 %v1009_v59, %v253_v56  ;;  %v63_v13 = vld [vmem:[%s3094_s0 + $0x1b8] sm:$0xff] }
  0xa3   :  { %1145 = vst [vmem:[%s3095_s1 + $0x188] sm:$0xff] %v983_v57  ;;  %v997_v5 = vmax.f32 %v996_v58, %v443_v53  ;;  %v254_v9 = vld [vmem:[%s3094_s0 + $0x7b0] sm:$0xff]  ;;  %v127_v14 = vld [vmem:[%s3094_s0 + $0x3b8] sm:$0xff]  ;;  %v508_v17 = vld [vmem:[%s3094_s0 + $0xfa0] sm:$0xff] }
  0xa4   :  { %v991_v10 = vmax.f32 %v990_v63, %v570_v48  ;;  %v1004_v11 = vmax.f32 %v1003_v2, %v380_v54  ;;  %v1017_v12 = vmax.f32 %v1016_v4, %v190_v62  ;;  %v191_v15 = vld [vmem:[%s3094_s0 + $0x5b8] sm:$0xff]  ;;  %v572_v18 = vld [vmem:[%s3094_s0 + $0x11a0] sm:$0xff]  ;;  %v1011_v19 = vmax.f32 %v1010_v8, %v317_v3  ;;  %v318_v20 = vld [vmem:[%s3094_s0 + $0x9b0] sm:$0xff] }
  0xa5   :  { %v998_v16 = vmax.f32 %v997_v5, %v507_v0  ;;  %v1024_v21 = vmax.f32 %v63_v13, %v127_v14  ;;  %v445_v23 = vld [vmem:[%s3094_s0 + $0xda8] sm:$0xff]  ;;  %v382_v24 = vld [vmem:[%s3094_s0 + $0xbb0] sm:$0xff]  ;;  %v255_v26 = vld [vmem:[%s3094_s0 + $0x7b8] sm:$0xff] }
  0xa6   :  { %1146 = vst [vmem:[%s3095_s1 + $0x190] sm:$0xff] %v991_v10  ;;  %v1005_v22 = vmax.f32 %v1004_v11, %v444_v6  ;;  %v1018_v25 = vmax.f32 %v1017_v12, %v254_v9  ;;  %v1012_v28 = vmax.f32 %v1011_v19, %v381_v7  ;;  %v64_v30 = vld [vmem:[%s3094_s0 + $0x1c0] sm:$0xff]  ;;  %v509_v34 = vld [vmem:[%s3094_s0 + $0xfa8] sm:$0xff]  ;;  %v319_v37 = vld [vmem:[%s3094_s0 + $0x9b8] sm:$0xff] }
  0xa7   :  { %v999_v27 = vmax.f32 %v998_v16, %v571_v1  ;;  %v1025_v29 = vmax.f32 %v1024_v21, %v191_v15  ;;  %v128_v31 = vld [vmem:[%s3094_s0 + $0x3c0] sm:$0xff]  ;;  %v573_v35 = vld [vmem:[%s3094_s0 + $0x11a8] sm:$0xff]  ;;  %v446_v40 = vld [vmem:[%s3094_s0 + $0xdb0] sm:$0xff] }
  0xa8   :  { %v192_v32 = vld [vmem:[%s3094_s0 + $0x5c0] sm:$0xff]  ;;  %v1006_v33 = vmax.f32 %v1005_v22, %v508_v17  ;;  %v1019_v36 = vmax.f32 %v1018_v25, %v318_v20  ;;  %v1032_v38 = vmax.f32 %v64_v30, %v128_v31  ;;  %v1013_v39 = vmax.f32 %v1012_v28, %v445_v23  ;;  %v383_v41 = vld [vmem:[%s3094_s0 + $0xbb8] sm:$0xff]  ;;  %v65_v47 = vld [vmem:[%s3094_s0 + $0x1c8] sm:$0xff] }
  0xa9   :  { %1147 = vst [vmem:[%s3095_s1 + $0x198] sm:$0xff] %v999_v27  ;;  %v1026_v42 = vmax.f32 %v1025_v29, %v255_v26  ;;  %v256_v43 = vld [vmem:[%s3094_s0 + $0x7c0] sm:$0xff]  ;;  %v129_v48 = vld [vmem:[%s3094_s0 + $0x3c8] sm:$0xff]  ;;  %v510_v51 = vld [vmem:[%s3094_s0 + $0xfb0] sm:$0xff] }
  0xaa   :  { %v1007_v44 = vmax.f32 %v1006_v33, %v572_v18  ;;  %v1020_v45 = vmax.f32 %v1019_v36, %v382_v24  ;;  %v1033_v46 = vmax.f32 %v1032_v38, %v192_v32  ;;  %v193_v49 = vld [vmem:[%s3094_s0 + $0x5c8] sm:$0xff]  ;;  %v1014_v50 = vmax.f32 %v1013_v39, %v509_v34  ;;  %v574_v52 = vld [vmem:[%s3094_s0 + $0x11b0] sm:$0xff]  ;;  %v320_v54 = vld [vmem:[%s3094_s0 + $0x9c0] sm:$0xff] }
  0xab   :  { %v1027_v53 = vmax.f32 %v1026_v42, %v319_v37  ;;  %v1040_v55 = vmax.f32 %v65_v47, %v129_v48  ;;  %v447_v57 = vld [vmem:[%s3094_s0 + $0xdb8] sm:$0xff]  ;;  %v384_v58 = vld [vmem:[%s3094_s0 + $0xbc0] sm:$0xff]  ;;  %v257_v60 = vld [vmem:[%s3094_s0 + $0x7c8] sm:$0xff] }
  0xac   :  { %1148 = vst [vmem:[%s3095_s1 + $0x1a0] sm:$0xff] %v1007_v44  ;;  %v1021_v56 = vmax.f32 %v1020_v45, %v446_v40  ;;  %v1034_v59 = vmax.f32 %v1033_v46, %v256_v43  ;;  %v1015_v61 = vmax.f32 %v1014_v50, %v573_v35  ;;  %v66_v0 = vld [vmem:[%s3094_s0 + $0x1d0] sm:$0xff]  ;;  %v511_v4 = vld [vmem:[%s3094_s0 + $0xfb8] sm:$0xff]  ;;  %v321_v7 = vld [vmem:[%s3094_s0 + $0x9c8] sm:$0xff] }
  0xad   :  { %v1028_v62 = vmax.f32 %v1027_v53, %v383_v41  ;;  %v1041_v63 = vmax.f32 %v1040_v55, %v193_v49  ;;  %v130_v1 = vld [vmem:[%s3094_s0 + $0x3d0] sm:$0xff]  ;;  %v575_v5 = vld [vmem:[%s3094_s0 + $0x11b8] sm:$0xff]  ;;  %v448_v10 = vld [vmem:[%s3094_s0 + $0xdc0] sm:$0xff] }
  0xae   :  { %v194_v2 = vld [vmem:[%s3094_s0 + $0x5d0] sm:$0xff]  ;;  %v1022_v3 = vmax.f32 %v1021_v56, %v510_v51  ;;  %v1035_v6 = vmax.f32 %v1034_v59, %v320_v54  ;;  %v1048_v8 = vmax.f32 %v66_v0, %v130_v1  ;;  %1149 = vst [vmem:[%s3095_s1 + $0x1a8] sm:$0xff] %v1015_v61  ;;  %v385_v11 = vld [vmem:[%s3094_s0 + $0xbc8] sm:$0xff]  ;;  %v67_v17 = vld [vmem:[%s3094_s0 + $0x1d8] sm:$0xff] }
  0xaf   :  { %v1029_v9 = vmax.f32 %v1028_v62, %v447_v57  ;;  %v1042_v12 = vmax.f32 %v1041_v63, %v257_v60  ;;  %v258_v13 = vld [vmem:[%s3094_s0 + $0x7d0] sm:$0xff]  ;;  %v131_v18 = vld [vmem:[%s3094_s0 + $0x3d8] sm:$0xff]  ;;  %v512_v21 = vld [vmem:[%s3094_s0 + $0xfc0] sm:$0xff] }
  0xb0   :  { %v1023_v14 = vmax.f32 %v1022_v3, %v574_v52  ;;  %v1036_v15 = vmax.f32 %v1035_v6, %v384_v58  ;;  %v1049_v16 = vmax.f32 %v1048_v8, %v194_v2  ;;  %v195_v19 = vld [vmem:[%s3094_s0 + $0x5d8] sm:$0xff]  ;;  %v576_v22 = vld [vmem:[%s3094_s0 + $0x11c0] sm:$0xff]  ;;  %v322_v24 = vld [vmem:[%s3094_s0 + $0x9d0] sm:$0xff]  ;;  %v1056_v25 = vmax.f32 %v67_v17, %v131_v18 }
  0xb1   :  { %v1030_v20 = vmax.f32 %v1029_v9, %v511_v4  ;;  %v1043_v23 = vmax.f32 %v1042_v12, %v321_v7  ;;  %v449_v27 = vld [vmem:[%s3094_s0 + $0xdc8] sm:$0xff]  ;;  %v386_v28 = vld [vmem:[%s3094_s0 + $0xbd0] sm:$0xff]  ;;  %v259_v30 = vld [vmem:[%s3094_s0 + $0x7d8] sm:$0xff] }
  0xb2   :  { %1150 = vst [vmem:[%s3095_s1 + $0x1b0] sm:$0xff] %v1023_v14  ;;  %v1037_v26 = vmax.f32 %v1036_v15, %v448_v10  ;;  %v1050_v29 = vmax.f32 %v1049_v16, %v258_v13  ;;  %v1057_v33 = vmax.f32 %v1056_v25, %v195_v19  ;;  %v68_v34 = vld [vmem:[%s3094_s0 + $0x1e0] sm:$0xff]  ;;  %v513_v38 = vld [vmem:[%s3094_s0 + $0xfc8] sm:$0xff]  ;;  %v323_v41 = vld [vmem:[%s3094_s0 + $0x9d8] sm:$0xff] }
  0xb3   :  { %v1031_v31 = vmax.f32 %v1030_v20, %v575_v5  ;;  %v1044_v32 = vmax.f32 %v1043_v23, %v385_v11  ;;  %v132_v35 = vld [vmem:[%s3094_s0 + $0x3e0] sm:$0xff]  ;;  %v577_v39 = vld [vmem:[%s3094_s0 + $0x11c8] sm:$0xff]  ;;  %v450_v44 = vld [vmem:[%s3094_s0 + $0xdd0] sm:$0xff] }
  0xb4   :  { %v196_v36 = vld [vmem:[%s3094_s0 + $0x5e0] sm:$0xff]  ;;  %v1038_v37 = vmax.f32 %v1037_v26, %v512_v21  ;;  %v1051_v40 = vmax.f32 %v1050_v29, %v322_v24  ;;  %v1064_v42 = vmax.f32 %v68_v34, %v132_v35  ;;  %v387_v45 = vld [vmem:[%s3094_s0 + $0xbd8] sm:$0xff]  ;;  %v1058_v46 = vmax.f32 %v1057_v33, %v259_v30  ;;  %v69_v51 = vld [vmem:[%s3094_s0 + $0x1e8] sm:$0xff] }
  0xb5   :  { %1151 = vst [vmem:[%s3095_s1 + $0x1b8] sm:$0xff] %v1031_v31  ;;  %v1045_v43 = vmax.f32 %v1044_v32, %v449_v27  ;;  %v260_v47 = vld [vmem:[%s3094_s0 + $0x7e0] sm:$0xff]  ;;  %v133_v52 = vld [vmem:[%s3094_s0 + $0x3e8] sm:$0xff]  ;;  %v514_v55 = vld [vmem:[%s3094_s0 + $0xfd0] sm:$0xff] }
  0xb6   :  { %v1039_v48 = vmax.f32 %v1038_v37, %v576_v22  ;;  %v1052_v49 = vmax.f32 %v1051_v40, %v386_v28  ;;  %v1065_v50 = vmax.f32 %v1064_v42, %v196_v36  ;;  %v197_v53 = vld [vmem:[%s3094_s0 + $0x5e8] sm:$0xff]  ;;  %v578_v56 = vld [vmem:[%s3094_s0 + $0x11d0] sm:$0xff]  ;;  %v1059_v57 = vmax.f32 %v1058_v46, %v323_v41  ;;  %v324_v58 = vld [vmem:[%s3094_s0 + $0x9e0] sm:$0xff] }
  0xb7   :  { %v1046_v54 = vmax.f32 %v1045_v43, %v513_v38  ;;  %v1072_v59 = vmax.f32 %v69_v51, %v133_v52  ;;  %v451_v61 = vld [vmem:[%s3094_s0 + $0xdd8] sm:$0xff]  ;;  %v388_v62 = vld [vmem:[%s3094_s0 + $0xbe0] sm:$0xff]  ;;  %v261_v0 = vld [vmem:[%s3094_s0 + $0x7e8] sm:$0xff] }
  0xb8   :  { %1152 = vst [vmem:[%s3095_s1 + $0x1c0] sm:$0xff] %v1039_v48  ;;  %v1053_v60 = vmax.f32 %v1052_v49, %v450_v44  ;;  %v1066_v63 = vmax.f32 %v1065_v50, %v260_v47  ;;  %v1060_v2 = vmax.f32 %v1059_v57, %v387_v45  ;;  %v70_v4 = vld [vmem:[%s3094_s0 + $0x1f0] sm:$0xff]  ;;  %v515_v8 = vld [vmem:[%s3094_s0 + $0xfd8] sm:$0xff]  ;;  %v325_v11 = vld [vmem:[%s3094_s0 + $0x9e8] sm:$0xff] }
  0xb9   :  { %v1047_v1 = vmax.f32 %v1046_v54, %v577_v39  ;;  %v1073_v3 = vmax.f32 %v1072_v59, %v197_v53  ;;  %v134_v5 = vld [vmem:[%s3094_s0 + $0x3f0] sm:$0xff]  ;;  %v579_v9 = vld [vmem:[%s3094_s0 + $0x11d8] sm:$0xff]  ;;  %v452_v14 = vld [vmem:[%s3094_s0 + $0xde0] sm:$0xff] }
  0xba   :  { %v198_v6 = vld [vmem:[%s3094_s0 + $0x5f0] sm:$0xff]  ;;  %v1054_v7 = vmax.f32 %v1053_v60, %v514_v55  ;;  %v1067_v10 = vmax.f32 %v1066_v63, %v324_v58  ;;  %v1080_v12 = vmax.f32 %v70_v4, %v134_v5  ;;  %v1061_v13 = vmax.f32 %v1060_v2, %v451_v61  ;;  %v389_v15 = vld [vmem:[%s3094_s0 + $0xbe8] sm:$0xff]  ;;  %v71_v21 = vld [vmem:[%s3094_s0 + $0x1f8] sm:$0xff] }
  0xbb   :  { %1153 = vst [vmem:[%s3095_s1 + $0x1c8] sm:$0xff] %v1047_v1  ;;  %v1074_v16 = vmax.f32 %v1073_v3, %v261_v0  ;;  %v262_v17 = vld [vmem:[%s3094_s0 + $0x7f0] sm:$0xff]  ;;  %v135_v22 = vld [vmem:[%s3094_s0 + $0x3f8] sm:$0xff]  ;;  %v516_v25 = vld [vmem:[%s3094_s0 + $0xfe0] sm:$0xff] }
  0xbc   :  { %v1055_v18 = vmax.f32 %v1054_v7, %v578_v56  ;;  %v1068_v19 = vmax.f32 %v1067_v10, %v388_v62  ;;  %v1081_v20 = vmax.f32 %v1080_v12, %v198_v6  ;;  %v199_v23 = vld [vmem:[%s3094_s0 + $0x5f8] sm:$0xff]  ;;  %v1062_v24 = vmax.f32 %v1061_v13, %v515_v8  ;;  %v326_v27 = vld [vmem:[%s3094_s0 + $0x9f0] sm:$0xff]  ;;  %v453_v30 = vld [vmem:[%s3094_s0 + $0xde8] sm:$0xff] }
  0xbd   :  { %v1075_v26 = vmax.f32 %v1074_v16, %v325_v11  ;;  %v1088_v28 = vmax.f32 %v71_v21, %v135_v22  ;;  %v263_v32 = vld [vmem:[%s3094_s0 + $0x7f8] sm:$0xff]  ;;  %v580_v34 = vld [vmem:[%s3094_s0 + $0x11e0] sm:$0xff]  ;;  %v390_v36 = vld [vmem:[%s3094_s0 + $0xbf0] sm:$0xff] }
  0xbe   :  { %1154 = vst [vmem:[%s3095_s1 + $0x1d0] sm:$0xff] %v1055_v18  ;;  %v1069_v29 = vmax.f32 %v1068_v19, %v452_v14  ;;  %v1082_v31 = vmax.f32 %v1081_v20, %v262_v17  ;;  %v1063_v33 = vmax.f32 %v1062_v24, %v579_v9  ;;  %v517_v39 = vld [vmem:[%s3094_s0 + $0xfe8] sm:$0xff]  ;;  %v327_v41 = vld [vmem:[%s3094_s0 + $0x9f8] sm:$0xff]  ;;  %v454_v43 = vld [vmem:[%s3094_s0 + $0xdf0] sm:$0xff] }
  0xbf   :  { %v1076_v35 = vmax.f32 %v1075_v26, %v389_v15  ;;  %v1089_v37 = vmax.f32 %v1088_v28, %v199_v23  ;;  %v581_v46 = vld [vmem:[%s3094_s0 + $0x11e8] sm:$0xff]  ;;  %v391_v48 = vld [vmem:[%s3094_s0 + $0xbf8] sm:$0xff]  ;;  %v518_v50 = vld [vmem:[%s3094_s0 + $0xff0] sm:$0xff] }
  0xc0   :  { %v1070_v38 = vmax.f32 %v1069_v29, %v516_v25  ;;  %v1083_v40 = vmax.f32 %v1082_v31, %v326_v27  ;;  %1155 = vst [vmem:[%s3095_s1 + $0x1d8] sm:$0xff] %v1063_v33  ;;  %v455_v53 = vld [vmem:[%s3094_s0 + $0xdf8] sm:$0xff]  ;;  %v582_v55 = vld [vmem:[%s3094_s0 + $0x11f0] sm:$0xff] }
  0xc1   :  { %v1077_v42 = vmax.f32 %v1076_v35, %v453_v30  ;;  %v1090_v44 = vmax.f32 %v1089_v37, %v263_v32  ;;  %v519_v58 = vld [vmem:[%s3094_s0 + $0xff8] sm:$0xff] }
  0xc2   :  { %v1071_v45 = vmax.f32 %v1070_v38, %v580_v34  ;;  %v1084_v47 = vmax.f32 %v1083_v40, %v390_v36  ;;  %v583_v61 = vld [vmem:[%s3094_s0 + $0x11f8] sm:$0xff] }
  0xc3   :  { %v1078_v49 = vmax.f32 %v1077_v42, %v517_v39  ;;  %v1091_v51 = vmax.f32 %v1090_v44, %v327_v41 }
  0xc4   :  { %1156 = vst [vmem:[%s3095_s1 + $0x1e0] sm:$0xff] %v1071_v45  ;;  %v1085_v52 = vmax.f32 %v1084_v47, %v454_v43 }
  0xc5   :  { %v1079_v54 = vmax.f32 %v1078_v49, %v581_v46  ;;  %v1092_v56 = vmax.f32 %v1091_v51, %v391_v48 }
  0xc6   :  { %v1086_v57 = vmax.f32 %v1085_v52, %v518_v50 }
  0xc7   :  { %1157 = vst [vmem:[%s3095_s1 + $0x1e8] sm:$0xff] %v1079_v54  ;;  %v1093_v59 = vmax.f32 %v1092_v56, %v455_v53 }
  0xc8   :  { %v1087_v60 = vmax.f32 %v1086_v57, %v582_v55 }
  0xc9   :  { %v1094_v62 = vmax.f32 %v1093_v59, %v519_v58 }
  0xca   :  { %1158 = vst [vmem:[%s3095_s1 + $0x1f0] sm:$0xff] %v1087_v60 }
  0xcb   :  { %v1095_v63 = vmax.f32 %v1094_v62, %v583_v61 }
  0xcd   :  { %1159 = vst [vmem:[%s3095_s1 + $0x1f8] sm:$0xff] %v1095_v63 }

// kernel: resnet_encoder_forward.23
= control target key start
LH: loop header
LB: loop body
LE: loop exit
PB: predicated region body
PF: predicated region fallthrough
CT: control target
= control target key end

     0   :  { %s1594_s1 = inlined_call_operand.vmem [shape: bf16[128,128], index: 1, kind: input, shape index: {}]   ;;  %s1595_s0 = inlined_call_operand.vmem [shape: bf16[512,128], index: 0, kind: input, shape index: {}]   ;;  %s1596_s2 = inlined_call_operand.vmem [shape: f32[1,128], index: 2, kind: input, shape index: {}]   ;;  %s1597_s3 = inlined_call_operand.vmem [shape: f32[1,128], index: 3, kind: input, shape index: {}]   ;;  %s1598_s4 = inlined_call_operand.vmem [shape: f32[512,128], index: 4, kind: output, shape index: {}]  }
   0x1   :  { %v1079_v0 = vld [vmem:[%s1594_s1] sm:$0xff]   ;;  %v1080_v1 = vld [vmem:[%s1594_s1 + $0x8] sm:$0xff]   ;;  %v1081_v2 = vld [vmem:[%s1594_s1 + $0x10] sm:$0xff]  }
   0x2   :  { %983 = vmatprep.subr.bf16.mxu0 %v1079_v0  ;;  %1063 = vmatprep.subr.bf16.mxu1 %v1079_v0  ;;  %v1082_v3 = vld [vmem:[%s1594_s1 + $0x18] sm:$0xff]   ;;  %v1087_v4 = vld [vmem:[%s1595_s0] sm:$0xff]   ;;  %v1084_v7 = vld [vmem:[%s1594_s1 + $0x28] sm:$0xff]  }
   0x3   :  { %984 = vmatpush3.bf16.msra.mxu0 %v1079_v0  ;;  %1071 = vmatpush3.bf16.msra.mxu1 %v1079_v0  ;;  %v1088_v5 = vld [vmem:[%s1595_s0 + $0x80] sm:$0xff]   ;;  %v1085_v8 = vld [vmem:[%s1594_s1 + $0x30] sm:$0xff]   ;;  %v1086_v9 = vld [vmem:[%s1594_s1 + $0x38] sm:$0xff]  }
   0x4   :  { %985 = vmatprep.subr.bf16.mxu0 %v1080_v1  ;;  %1064 = vmatprep.subr.bf16.mxu1 %v1080_v1  ;;  %v1083_v6 = vld [vmem:[%s1594_s1 + $0x20] sm:$0xff]   ;;  %v1089_v10 = vld [vmem:[%s1595_s0 + $0x8] sm:$0xff]   ;;  %v1091_v12 = vld [vmem:[%s1595_s0 + $0x10] sm:$0xff]  }
   0x5   :  { %999 = vmatprep.mubr.bf16.mxu0 %v1087_v4  ;;  %1031 = vmatprep.mubr.bf16.mxu1 %v1088_v5  ;;  %v1090_v11 = vld [vmem:[%s1595_s0 + $0x88] sm:$0xff]   ;;  %v1092_v13 = vld [vmem:[%s1595_s0 + $0x90] sm:$0xff]   ;;  %v1093_v14 = vld [vmem:[%s1595_s0 + $0x18] sm:$0xff]  }
   0x6   :  { %v1094_v15 = vld [vmem:[%s1595_s0 + $0x98] sm:$0xff]   ;;  %v1095_v16 = vld [vmem:[%s1595_s0 + $0x20] sm:$0xff]   ;;  %v1097_v18 = vld [vmem:[%s1595_s0 + $0x28] sm:$0xff]  }
   0x7   :  { %986 = vmatpush3.bf16.msra.mxu0 %v1080_v1  ;;  %1072 = vmatpush3.bf16.msra.mxu1 %v1080_v1  ;;  %v1096_v17 = vld [vmem:[%s1595_s0 + $0xa0] sm:$0xff]   ;;  %v1098_v19 = vld [vmem:[%s1595_s0 + $0xa8] sm:$0xff]   ;;  %v1099_v20 = vld [vmem:[%s1595_s0 + $0x30] sm:$0xff]  }
   0x8   :  { %987 = vmatprep.subr.bf16.mxu0 %v1081_v2  ;;  %1065 = vmatprep.subr.bf16.mxu1 %v1081_v2  ;;  %v1100_v21 = vld [vmem:[%s1595_s0 + $0xb0] sm:$0xff]   ;;  %v1101_v22 = vld [vmem:[%s1595_s0 + $0x38] sm:$0xff]   ;;  %v1103_v24 = vld [vmem:[%s1595_s0 + $0x40] sm:$0xff]  }
   0x9   :  { %v1102_v23 = vld [vmem:[%s1595_s0 + $0xb8] sm:$0xff]   ;;  %v1104_v25 = vld [vmem:[%s1595_s0 + $0xc0] sm:$0xff]   ;;  %v1105_v26 = vld [vmem:[%s1595_s0 + $0x48] sm:$0xff]  }
   0xa   :  { %v1106_v27 = vld [vmem:[%s1595_s0 + $0xc8] sm:$0xff]   ;;  %v1107_v28 = vld [vmem:[%s1595_s0 + $0x50] sm:$0xff]   ;;  %v1109_v30 = vld [vmem:[%s1595_s0 + $0x58] sm:$0xff]  }
   0xb   :  { %988 = vmatpush3.bf16.msra.mxu0 %v1081_v2  ;;  %1073 = vmatpush3.bf16.msra.mxu1 %v1081_v2  ;;  %v1108_v29 = vld [vmem:[%s1595_s0 + $0xd0] sm:$0xff]   ;;  %v1110_v31 = vld [vmem:[%s1595_s0 + $0xd8] sm:$0xff]   ;;  %v1111_v32 = vld [vmem:[%s1595_s0 + $0x60] sm:$0xff]  }
   0xc   :  { %989 = vmatprep.subr.bf16.mxu0 %v1082_v3  ;;  %1066 = vmatprep.subr.bf16.mxu1 %v1082_v3  ;;  %v1112_v33 = vld [vmem:[%s1595_s0 + $0xe0] sm:$0xff]   ;;  %v1113_v34 = vld [vmem:[%s1595_s0 + $0x68] sm:$0xff]   ;;  %v1115_v36 = vld [vmem:[%s1595_s0 + $0x70] sm:$0xff]  }
   0xd   :  { %v1114_v35 = vld [vmem:[%s1595_s0 + $0xe8] sm:$0xff]   ;;  %v1116_v37 = vld [vmem:[%s1595_s0 + $0xf0] sm:$0xff]   ;;  %v1117_v38 = vld [vmem:[%s1595_s0 + $0x78] sm:$0xff]  }
   0xe   :  { %v1118_v39 = vld [vmem:[%s1595_s0 + $0xf8] sm:$0xff]   ;;  %v1267_v40 = vld [vmem:[%s1596_s2] ss:$0 sm:$0xff] }
   0xf   :  { %990 = vmatpush3.bf16.msra.mxu0 %v1082_v3  ;;  %1074 = vmatpush3.bf16.msra.mxu1 %v1082_v3  ;;  %v1272_v42 = vld [vmem:[%s1597_s3] ss:$0 sm:$0xff] }
  0x10   :  { %991 = vmatprep.subr.bf16.mxu0 %v1083_v6  ;;  %1067 = vmatprep.subr.bf16.mxu1 %v1083_v6 }
  0x13   :  { %992 = vmatpush3.bf16.msra.mxu0 %v1083_v6  ;;  %1075 = vmatpush3.bf16.msra.mxu1 %v1083_v6 }
  0x14   :  { %993 = vmatprep.subr.bf16.mxu0 %v1084_v7  ;;  %1068 = vmatprep.subr.bf16.mxu1 %v1084_v7 }
  0x17   :  { %994 = vmatpush3.bf16.msra.mxu0 %v1084_v7  ;;  %1076 = vmatpush3.bf16.msra.mxu1 %v1084_v7 }
  0x18   :  { %995 = vmatprep.subr.bf16.mxu0 %v1085_v8  ;;  %1069 = vmatprep.subr.bf16.mxu1 %v1085_v8 }
  0x1b   :  { %996 = vmatpush3.bf16.msra.mxu0 %v1085_v8  ;;  %1077 = vmatpush3.bf16.msra.mxu1 %v1085_v8 }
  0x1c   :  { %997 = vmatprep.subr.bf16.mxu0 %v1086_v9  ;;  %1070 = vmatprep.subr.bf16.mxu1 %v1086_v9 }
  0x1f   :  { %998 = vmatpush3.bf16.msra.mxu0 %v1086_v9  ;;  %1078 = vmatpush3.bf16.msra.mxu1 %v1086_v9 }
  0x22   :  { %1000 = vmatmul.mubr.bf16.vlgmr.msra.gmra.mrb[0].mxu0 %v1089_v10  ;;  %1032 = vmatmul.mubr.bf16.vlgmr.msra.gmra.mrb[0].mxu1 %v1090_v11 }
  0x23   :  { %1003 = vmatprep.mubr.bf16.mxu0 %v1091_v12  ;;  %1035 = vmatprep.mubr.bf16.mxu1 %v1092_v13 }
  0x2a   :  { %1004 = vmatmul.mubr.bf16.gmra.mrb[4].mxu0 %v1093_v14  ;;  %1036 = vmatmul.mubr.bf16.gmra.mrb[4].mxu1 %v1094_v15 }
  0x2b   :  { %1007 = vmatprep.mubr.bf16.mxu0 %v1095_v16  ;;  %1039 = vmatprep.mubr.bf16.mxu1 %v1096_v17 }
  0x32   :  { %1008 = vmatmul.mubr.bf16.gmra.mrb[8].mxu0 %v1097_v18  ;;  %1040 = vmatmul.mubr.bf16.gmra.mrb[8].mxu1 %v1098_v19 }
  0x33   :  { %1011 = vmatprep.mubr.bf16.mxu0 %v1099_v20  ;;  %1043 = vmatprep.mubr.bf16.mxu1 %v1100_v21 }
  0x3a   :  { %1012 = vmatmul.mubr.bf16.gmra.mrb[12].mxu0 %v1101_v22  ;;  %1044 = vmatmul.mubr.bf16.gmra.mrb[12].mxu1 %v1102_v23 }
  0x3b   :  { %1015 = vmatprep.mubr.bf16.mxu0 %v1103_v24  ;;  %1047 = vmatprep.mubr.bf16.mxu1 %v1104_v25 }
  0x42   :  { %1016 = vmatmul.mubr.bf16.gmra.mrb[16].mxu0 %v1105_v26  ;;  %1048 = vmatmul.mubr.bf16.gmra.mrb[16].mxu1 %v1106_v27 }
  0x43   :  { %1019 = vmatprep.mubr.bf16.mxu0 %v1107_v28  ;;  %1051 = vmatprep.mubr.bf16.mxu1 %v1108_v29 }
  0x4a   :  { %1020 = vmatmul.mubr.bf16.gmra.mrb[20].mxu0 %v1109_v30  ;;  %1052 = vmatmul.mubr.bf16.gmra.mrb[20].mxu1 %v1110_v31 }
  0x4b   :  { %1023 = vmatprep.mubr.bf16.mxu0 %v1111_v32  ;;  %1055 = vmatprep.mubr.bf16.mxu1 %v1112_v33 }
  0x52   :  { %1024 = vmatmul.mubr.bf16.gmra.mrb[24].mxu0 %v1113_v34  ;;  %1056 = vmatmul.mubr.bf16.gmra.mrb[24].mxu1 %v1114_v35 }
  0x53   :  { %1027 = vmatprep.mubr.bf16.mxu0 %v1115_v36  ;;  %1059 = vmatprep.mubr.bf16.mxu1 %v1116_v37 }
  0x5a   :  { %1028 = vmatmul.mubr.bf16.gmra.mrb[28].mxu0 %v1117_v38  ;;  %1060 = vmatmul.mubr.bf16.gmra.mrb[28].mxu1 %v1118_v39 }
  0xf5   :  { %v1001_v41 = vpop.f32.mrb[0].mxu0  ;;  %v1033_v43 = vpop.f32.mrb[0].mxu1 }
  0xf6   :  { %v636_v44 = vmul.f32 %v1001_v41, %v1267_v40  ;;  %v668_v45 = vmul.f32 %v1033_v43, %v1267_v40  ;;  %v372_v46 = vpop.f32.mrb[1].mxu0  ;;  %v500_v47 = vpop.f32.mrb[1].mxu1 }
  0xf7   :  { %v634_v48 = vmul.f32 %v1267_v40, %v372_v46  ;;  %v666_v49 = vmul.f32 %v1267_v40, %v500_v47  ;;  %v1002_v50 = vpop.f32.mrb[2].mxu0  ;;  %v1034_v51 = vpop.f32.mrb[2].mxu1 }
  0xf8   :  { %v707_v52 = vadd.f32 %v1272_v42, %v636_v44  ;;  %v739_v53 = vadd.f32 %v1272_v42, %v668_v45  ;;  %v637_v54 = vmul.f32 %v1002_v50, %v1267_v40  ;;  %v669_v55 = vmul.f32 %v1034_v51, %v1267_v40  ;;  %v375_v56 = vpop.f32.mrb[3].mxu0  ;;  %v503_v57 = vpop.f32.mrb[3].mxu1 }
  0xf9   :  { %v705_v58 = vadd.f32 %v1272_v42, %v634_v48  ;;  %v737_v59 = vadd.f32 %v1272_v42, %v666_v49  ;;  %v635_v60 = vmul.f32 %v1267_v40, %v375_v56  ;;  %v667_v61 = vmul.f32 %v1267_v40, %v503_v57 }
  0xfa   :  { %v771_v62 = vmax.f32 %v707_v52, 0.0  ;;  %v803_v63 = vmax.f32 %v739_v53, 0.0  ;;  %v708_v0 = vadd.f32 %v1272_v42, %v637_v54  ;;  %v740_v1 = vadd.f32 %v1272_v42, %v669_v55 }
  0xfb   :  { %v769_v2 = vmax.f32 %v705_v58, 0.0  ;;  %v801_v3 = vmax.f32 %v737_v59, 0.0  ;;  %v706_v4 = vadd.f32 %v1272_v42, %v635_v60  ;;  %v738_v5 = vadd.f32 %v1272_v42, %v667_v61 }
  0xfc   :  { %835 = vst [vmem:[%s1598_s4 + $0x10] sm:$0xff] %v771_v62  ;;  %867 = vst [vmem:[%s1598_s4 + $0x110] sm:$0xff] %v803_v63  ;;  %v772_v6 = vmax.f32 %v708_v0, 0.0  ;;  %v804_v7 = vmax.f32 %v740_v1, 0.0 }
  0xfd   :  { %833 = vst [vmem:[%s1598_s4] sm:$0xff] %v769_v2  ;;  %865 = vst [vmem:[%s1598_s4 + $0x100] sm:$0xff] %v801_v3  ;;  %v770_v8 = vmax.f32 %v706_v4, 0.0  ;;  %v802_v9 = vmax.f32 %v738_v5, 0.0  ;;  %v1005_v10 = vpop.f32.mrb[4].mxu0  ;;  %v1037_v11 = vpop.f32.mrb[4].mxu1 }
  0xfe   :  { %836 = vst [vmem:[%s1598_s4 + $0x18] sm:$0xff] %v772_v6  ;;  %868 = vst [vmem:[%s1598_s4 + $0x118] sm:$0xff] %v804_v7  ;;  %v640_v12 = vmul.f32 %v1005_v10, %v1267_v40  ;;  %v672_v13 = vmul.f32 %v1037_v11, %v1267_v40  ;;  %v388_v14 = vpop.f32.mrb[5].mxu0  ;;  %v516_v15 = vpop.f32.mrb[5].mxu1 }
  0xff   :  { %834 = vst [vmem:[%s1598_s4 + $0x8] sm:$0xff] %v770_v8  ;;  %866 = vst [vmem:[%s1598_s4 + $0x108] sm:$0xff] %v802_v9  ;;  %v638_v16 = vmul.f32 %v1267_v40, %v388_v14  ;;  %v670_v17 = vmul.f32 %v1267_v40, %v516_v15  ;;  %v1006_v18 = vpop.f32.mrb[6].mxu0  ;;  %v1038_v19 = vpop.f32.mrb[6].mxu1 }
 0x100   :  { %v711_v20 = vadd.f32 %v1272_v42, %v640_v12  ;;  %v743_v21 = vadd.f32 %v1272_v42, %v672_v13  ;;  %v641_v22 = vmul.f32 %v1006_v18, %v1267_v40  ;;  %v673_v23 = vmul.f32 %v1038_v19, %v1267_v40  ;;  %v391_v24 = vpop.f32.mrb[7].mxu0  ;;  %v519_v25 = vpop.f32.mrb[7].mxu1 }
 0x101   :  { %v709_v26 = vadd.f32 %v1272_v42, %v638_v16  ;;  %v741_v27 = vadd.f32 %v1272_v42, %v670_v17  ;;  %v639_v28 = vmul.f32 %v1267_v40, %v391_v24  ;;  %v671_v29 = vmul.f32 %v1267_v40, %v519_v25 }
 0x102   :  { %v775_v30 = vmax.f32 %v711_v20, 0.0  ;;  %v807_v31 = vmax.f32 %v743_v21, 0.0  ;;  %v712_v32 = vadd.f32 %v1272_v42, %v641_v22  ;;  %v744_v33 = vadd.f32 %v1272_v42, %v673_v23 }
 0x103   :  { %v773_v34 = vmax.f32 %v709_v26, 0.0  ;;  %v805_v35 = vmax.f32 %v741_v27, 0.0  ;;  %v710_v36 = vadd.f32 %v1272_v42, %v639_v28  ;;  %v742_v37 = vadd.f32 %v1272_v42, %v671_v29 }
 0x104   :  { %839 = vst [vmem:[%s1598_s4 + $0x30] sm:$0xff] %v775_v30  ;;  %871 = vst [vmem:[%s1598_s4 + $0x130] sm:$0xff] %v807_v31  ;;  %v776_v38 = vmax.f32 %v712_v32, 0.0  ;;  %v808_v39 = vmax.f32 %v744_v33, 0.0 }
 0x105   :  { %837 = vst [vmem:[%s1598_s4 + $0x20] sm:$0xff] %v773_v34  ;;  %869 = vst [vmem:[%s1598_s4 + $0x120] sm:$0xff] %v805_v35  ;;  %v774_v41 = vmax.f32 %v710_v36, 0.0  ;;  %v806_v43 = vmax.f32 %v742_v37, 0.0  ;;  %v1009_v44 = vpop.f32.mrb[8].mxu0  ;;  %v1041_v45 = vpop.f32.mrb[8].mxu1 }
 0x106   :  { %840 = vst [vmem:[%s1598_s4 + $0x38] sm:$0xff] %v776_v38  ;;  %872 = vst [vmem:[%s1598_s4 + $0x138] sm:$0xff] %v808_v39  ;;  %v644_v46 = vmul.f32 %v1009_v44, %v1267_v40  ;;  %v676_v47 = vmul.f32 %v1041_v45, %v1267_v40  ;;  %v404_v48 = vpop.f32.mrb[9].mxu0  ;;  %v532_v49 = vpop.f32.mrb[9].mxu1 }
 0x107   :  { %838 = vst [vmem:[%s1598_s4 + $0x28] sm:$0xff] %v774_v41  ;;  %870 = vst [vmem:[%s1598_s4 + $0x128] sm:$0xff] %v806_v43  ;;  %v642_v50 = vmul.f32 %v1267_v40, %v404_v48  ;;  %v674_v51 = vmul.f32 %v1267_v40, %v532_v49  ;;  %v1010_v52 = vpop.f32.mrb[10].mxu0  ;;  %v1042_v53 = vpop.f32.mrb[10].mxu1 }
 0x108   :  { %v715_v54 = vadd.f32 %v1272_v42, %v644_v46  ;;  %v747_v55 = vadd.f32 %v1272_v42, %v676_v47  ;;  %v645_v56 = vmul.f32 %v1010_v52, %v1267_v40  ;;  %v677_v57 = vmul.f32 %v1042_v53, %v1267_v40  ;;  %v407_v58 = vpop.f32.mrb[11].mxu0  ;;  %v535_v59 = vpop.f32.mrb[11].mxu1 }
 0x109   :  { %v713_v60 = vadd.f32 %v1272_v42, %v642_v50  ;;  %v745_v61 = vadd.f32 %v1272_v42, %v674_v51  ;;  %v643_v62 = vmul.f32 %v1267_v40, %v407_v58  ;;  %v675_v63 = vmul.f32 %v1267_v40, %v535_v59 }
 0x10a   :  { %v779_v0 = vmax.f32 %v715_v54, 0.0  ;;  %v811_v1 = vmax.f32 %v747_v55, 0.0  ;;  %v716_v2 = vadd.f32 %v1272_v42, %v645_v56  ;;  %v748_v3 = vadd.f32 %v1272_v42, %v677_v57 }
 0x10b   :  { %v777_v4 = vmax.f32 %v713_v60, 0.0  ;;  %v809_v5 = vmax.f32 %v745_v61, 0.0  ;;  %v714_v6 = vadd.f32 %v1272_v42, %v643_v62  ;;  %v746_v7 = vadd.f32 %v1272_v42, %v675_v63 }
 0x10c   :  { %843 = vst [vmem:[%s1598_s4 + $0x50] sm:$0xff] %v779_v0  ;;  %875 = vst [vmem:[%s1598_s4 + $0x150] sm:$0xff] %v811_v1  ;;  %v780_v8 = vmax.f32 %v716_v2, 0.0  ;;  %v812_v9 = vmax.f32 %v748_v3, 0.0 }
 0x10d   :  { %841 = vst [vmem:[%s1598_s4 + $0x40] sm:$0xff] %v777_v4  ;;  %873 = vst [vmem:[%s1598_s4 + $0x140] sm:$0xff] %v809_v5  ;;  %v778_v10 = vmax.f32 %v714_v6, 0.0  ;;  %v810_v11 = vmax.f32 %v746_v7, 0.0  ;;  %v1013_v12 = vpop.f32.mrb[12].mxu0  ;;  %v1045_v13 = vpop.f32.mrb[12].mxu1 }
 0x10e   :  { %844 = vst [vmem:[%s1598_s4 + $0x58] sm:$0xff] %v780_v8  ;;  %876 = vst [vmem:[%s1598_s4 + $0x158] sm:$0xff] %v812_v9  ;;  %v648_v14 = vmul.f32 %v1013_v12, %v1267_v40  ;;  %v680_v15 = vmul.f32 %v1045_v13, %v1267_v40  ;;  %v420_v16 = vpop.f32.mrb[13].mxu0  ;;  %v548_v17 = vpop.f32.mrb[13].mxu1 }
 0x10f   :  { %842 = vst [vmem:[%s1598_s4 + $0x48] sm:$0xff] %v778_v10  ;;  %874 = vst [vmem:[%s1598_s4 + $0x148] sm:$0xff] %v810_v11  ;;  %v646_v18 = vmul.f32 %v1267_v40, %v420_v16  ;;  %v678_v19 = vmul.f32 %v1267_v40, %v548_v17  ;;  %v1014_v20 = vpop.f32.mrb[14].mxu0  ;;  %v1046_v21 = vpop.f32.mrb[14].mxu1 }
 0x110   :  { %v719_v22 = vadd.f32 %v1272_v42, %v648_v14  ;;  %v751_v23 = vadd.f32 %v1272_v42, %v680_v15  ;;  %v649_v24 = vmul.f32 %v1014_v20, %v1267_v40  ;;  %v681_v25 = vmul.f32 %v1046_v21, %v1267_v40  ;;  %v423_v26 = vpop.f32.mrb[15].mxu0  ;;  %v551_v27 = vpop.f32.mrb[15].mxu1 }
 0x111   :  { %v717_v28 = vadd.f32 %v1272_v42, %v646_v18  ;;  %v749_v29 = vadd.f32 %v1272_v42, %v678_v19  ;;  %v647_v30 = vmul.f32 %v1267_v40, %v423_v26  ;;  %v679_v31 = vmul.f32 %v1267_v40, %v551_v27 }
 0x112   :  { %v783_v32 = vmax.f32 %v719_v22, 0.0  ;;  %v815_v33 = vmax.f32 %v751_v23, 0.0  ;;  %v720_v34 = vadd.f32 %v1272_v42, %v649_v24  ;;  %v752_v35 = vadd.f32 %v1272_v42, %v681_v25 }
 0x113   :  { %v781_v36 = vmax.f32 %v717_v28, 0.0  ;;  %v813_v37 = vmax.f32 %v749_v29, 0.0  ;;  %v718_v38 = vadd.f32 %v1272_v42, %v647_v30  ;;  %v750_v39 = vadd.f32 %v1272_v42, %v679_v31 }
 0x114   :  { %847 = vst [vmem:[%s1598_s4 + $0x70] sm:$0xff] %v783_v32  ;;  %879 = vst [vmem:[%s1598_s4 + $0x170] sm:$0xff] %v815_v33  ;;  %v784_v41 = vmax.f32 %v720_v34, 0.0  ;;  %v816_v43 = vmax.f32 %v752_v35, 0.0 }
 0x115   :  { %845 = vst [vmem:[%s1598_s4 + $0x60] sm:$0xff] %v781_v36  ;;  %877 = vst [vmem:[%s1598_s4 + $0x160] sm:$0xff] %v813_v37  ;;  %v782_v44 = vmax.f32 %v718_v38, 0.0  ;;  %v814_v45 = vmax.f32 %v750_v39, 0.0  ;;  %v1017_v46 = vpop.f32.mrb[16].mxu0  ;;  %v1049_v47 = vpop.f32.mrb[16].mxu1 }
 0x116   :  { %848 = vst [vmem:[%s1598_s4 + $0x78] sm:$0xff] %v784_v41  ;;  %880 = vst [vmem:[%s1598_s4 + $0x178] sm:$0xff] %v816_v43  ;;  %v652_v48 = vmul.f32 %v1017_v46, %v1267_v40  ;;  %v684_v49 = vmul.f32 %v1049_v47, %v1267_v40  ;;  %v436_v50 = vpop.f32.mrb[17].mxu0  ;;  %v564_v51 = vpop.f32.mrb[17].mxu1 }
 0x117   :  { %846 = vst [vmem:[%s1598_s4 + $0x68] sm:$0xff] %v782_v44  ;;  %878 = vst [vmem:[%s1598_s4 + $0x168] sm:$0xff] %v814_v45  ;;  %v650_v52 = vmul.f32 %v1267_v40, %v436_v50  ;;  %v682_v53 = vmul.f32 %v1267_v40, %v564_v51  ;;  %v1018_v54 = vpop.f32.mrb[18].mxu0  ;;  %v1050_v55 = vpop.f32.mrb[18].mxu1 }
 0x118   :  { %v723_v56 = vadd.f32 %v1272_v42, %v652_v48  ;;  %v755_v57 = vadd.f32 %v1272_v42, %v684_v49  ;;  %v653_v58 = vmul.f32 %v1018_v54, %v1267_v40  ;;  %v685_v59 = vmul.f32 %v1050_v55, %v1267_v40  ;;  %v439_v60 = vpop.f32.mrb[19].mxu0  ;;  %v567_v61 = vpop.f32.mrb[19].mxu1 }
 0x119   :  { %v721_v62 = vadd.f32 %v1272_v42, %v650_v52  ;;  %v753_v63 = vadd.f32 %v1272_v42, %v682_v53  ;;  %v651_v0 = vmul.f32 %v1267_v40, %v439_v60  ;;  %v683_v1 = vmul.f32 %v1267_v40, %v567_v61 }
 0x11a   :  { %v787_v2 = vmax.f32 %v723_v56, 0.0  ;;  %v819_v3 = vmax.f32 %v755_v57, 0.0  ;;  %v724_v4 = vadd.f32 %v1272_v42, %v653_v58  ;;  %v756_v5 = vadd.f32 %v1272_v42, %v685_v59 }
 0x11b   :  { %v785_v6 = vmax.f32 %v721_v62, 0.0  ;;  %v817_v7 = vmax.f32 %v753_v63, 0.0  ;;  %v722_v8 = vadd.f32 %v1272_v42, %v651_v0  ;;  %v754_v9 = vadd.f32 %v1272_v42, %v683_v1 }
 0x11c   :  { %851 = vst [vmem:[%s1598_s4 + $0x90] sm:$0xff] %v787_v2  ;;  %883 = vst [vmem:[%s1598_s4 + $0x190] sm:$0xff] %v819_v3  ;;  %v788_v10 = vmax.f32 %v724_v4, 0.0  ;;  %v820_v11 = vmax.f32 %v756_v5, 0.0 }
 0x11d   :  { %849 = vst [vmem:[%s1598_s4 + $0x80] sm:$0xff] %v785_v6  ;;  %881 = vst [vmem:[%s1598_s4 + $0x180] sm:$0xff] %v817_v7  ;;  %v786_v12 = vmax.f32 %v722_v8, 0.0  ;;  %v818_v13 = vmax.f32 %v754_v9, 0.0  ;;  %v1021_v14 = vpop.f32.mrb[20].mxu0  ;;  %v1053_v15 = vpop.f32.mrb[20].mxu1 }
 0x11e   :  { %852 = vst [vmem:[%s1598_s4 + $0x98] sm:$0xff] %v788_v10  ;;  %884 = vst [vmem:[%s1598_s4 + $0x198] sm:$0xff] %v820_v11  ;;  %v656_v16 = vmul.f32 %v1021_v14, %v1267_v40  ;;  %v688_v17 = vmul.f32 %v1053_v15, %v1267_v40  ;;  %v452_v18 = vpop.f32.mrb[21].mxu0  ;;  %v580_v19 = vpop.f32.mrb[21].mxu1 }
 0x11f   :  { %850 = vst [vmem:[%s1598_s4 + $0x88] sm:$0xff] %v786_v12  ;;  %882 = vst [vmem:[%s1598_s4 + $0x188] sm:$0xff] %v818_v13  ;;  %v654_v20 = vmul.f32 %v1267_v40, %v452_v18  ;;  %v686_v21 = vmul.f32 %v1267_v40, %v580_v19  ;;  %v1022_v22 = vpop.f32.mrb[22].mxu0  ;;  %v1054_v23 = vpop.f32.mrb[22].mxu1 }
 0x120   :  { %v727_v24 = vadd.f32 %v1272_v42, %v656_v16  ;;  %v759_v25 = vadd.f32 %v1272_v42, %v688_v17  ;;  %v657_v26 = vmul.f32 %v1022_v22, %v1267_v40  ;;  %v689_v27 = vmul.f32 %v1054_v23, %v1267_v40  ;;  %v455_v28 = vpop.f32.mrb[23].mxu0  ;;  %v583_v29 = vpop.f32.mrb[23].mxu1 }
 0x121   :  { %v725_v30 = vadd.f32 %v1272_v42, %v654_v20  ;;  %v757_v31 = vadd.f32 %v1272_v42, %v686_v21  ;;  %v655_v32 = vmul.f32 %v1267_v40, %v455_v28  ;;  %v687_v33 = vmul.f32 %v1267_v40, %v583_v29 }
 0x122   :  { %v791_v34 = vmax.f32 %v727_v24, 0.0  ;;  %v823_v35 = vmax.f32 %v759_v25, 0.0  ;;  %v728_v36 = vadd.f32 %v1272_v42, %v657_v26  ;;  %v760_v37 = vadd.f32 %v1272_v42, %v689_v27 }
 0x123   :  { %v789_v38 = vmax.f32 %v725_v30, 0.0  ;;  %v821_v39 = vmax.f32 %v757_v31, 0.0  ;;  %v726_v41 = vadd.f32 %v1272_v42, %v655_v32  ;;  %v758_v43 = vadd.f32 %v1272_v42, %v687_v33 }
 0x124   :  { %855 = vst [vmem:[%s1598_s4 + $0xb0] sm:$0xff] %v791_v34  ;;  %887 = vst [vmem:[%s1598_s4 + $0x1b0] sm:$0xff] %v823_v35  ;;  %v792_v44 = vmax.f32 %v728_v36, 0.0  ;;  %v824_v45 = vmax.f32 %v760_v37, 0.0 }
 0x125   :  { %853 = vst [vmem:[%s1598_s4 + $0xa0] sm:$0xff] %v789_v38  ;;  %885 = vst [vmem:[%s1598_s4 + $0x1a0] sm:$0xff] %v821_v39  ;;  %v790_v46 = vmax.f32 %v726_v41, 0.0  ;;  %v822_v47 = vmax.f32 %v758_v43, 0.0  ;;  %v1025_v48 = vpop.f32.mrb[24].mxu0  ;;  %v1057_v49 = vpop.f32.mrb[24].mxu1 }
 0x126   :  { %856 = vst [vmem:[%s1598_s4 + $0xb8] sm:$0xff] %v792_v44  ;;  %888 = vst [vmem:[%s1598_s4 + $0x1b8] sm:$0xff] %v824_v45  ;;  %v660_v50 = vmul.f32 %v1025_v48, %v1267_v40  ;;  %v692_v51 = vmul.f32 %v1057_v49, %v1267_v40  ;;  %v468_v52 = vpop.f32.mrb[25].mxu0  ;;  %v596_v53 = vpop.f32.mrb[25].mxu1 }
 0x127   :  { %854 = vst [vmem:[%s1598_s4 + $0xa8] sm:$0xff] %v790_v46  ;;  %886 = vst [vmem:[%s1598_s4 + $0x1a8] sm:$0xff] %v822_v47  ;;  %v658_v54 = vmul.f32 %v1267_v40, %v468_v52  ;;  %v690_v55 = vmul.f32 %v1267_v40, %v596_v53  ;;  %v1026_v56 = vpop.f32.mrb[26].mxu0  ;;  %v1058_v57 = vpop.f32.mrb[26].mxu1 }
 0x128   :  { %v731_v58 = vadd.f32 %v1272_v42, %v660_v50  ;;  %v763_v59 = vadd.f32 %v1272_v42, %v692_v51  ;;  %v661_v60 = vmul.f32 %v1026_v56, %v1267_v40  ;;  %v693_v61 = vmul.f32 %v1058_v57, %v1267_v40  ;;  %v471_v62 = vpop.f32.mrb[27].mxu0  ;;  %v599_v63 = vpop.f32.mrb[27].mxu1 }
 0x129   :  { %v729_v0 = vadd.f32 %v1272_v42, %v658_v54  ;;  %v761_v1 = vadd.f32 %v1272_v42, %v690_v55  ;;  %v659_v2 = vmul.f32 %v1267_v40, %v471_v62  ;;  %v691_v3 = vmul.f32 %v1267_v40, %v599_v63 }
 0x12a   :  { %v795_v4 = vmax.f32 %v731_v58, 0.0  ;;  %v827_v5 = vmax.f32 %v763_v59, 0.0  ;;  %v732_v6 = vadd.f32 %v1272_v42, %v661_v60  ;;  %v764_v7 = vadd.f32 %v1272_v42, %v693_v61 }
 0x12b   :  { %v793_v8 = vmax.f32 %v729_v0, 0.0  ;;  %v825_v9 = vmax.f32 %v761_v1, 0.0  ;;  %v730_v10 = vadd.f32 %v1272_v42, %v659_v2  ;;  %v762_v11 = vadd.f32 %v1272_v42, %v691_v3 }
 0x12c   :  { %859 = vst [vmem:[%s1598_s4 + $0xd0] sm:$0xff] %v795_v4  ;;  %891 = vst [vmem:[%s1598_s4 + $0x1d0] sm:$0xff] %v827_v5  ;;  %v796_v12 = vmax.f32 %v732_v6, 0.0  ;;  %v828_v13 = vmax.f32 %v764_v7, 0.0 }
 0x12d   :  { %857 = vst [vmem:[%s1598_s4 + $0xc0] sm:$0xff] %v793_v8  ;;  %889 = vst [vmem:[%s1598_s4 + $0x1c0] sm:$0xff] %v825_v9  ;;  %v794_v14 = vmax.f32 %v730_v10, 0.0  ;;  %v826_v15 = vmax.f32 %v762_v11, 0.0  ;;  %v1029_v16 = vpop.f32.mrb[28].mxu0  ;;  %v1061_v17 = vpop.f32.mrb[28].mxu1 }
 0x12e   :  { %860 = vst [vmem:[%s1598_s4 + $0xd8] sm:$0xff] %v796_v12  ;;  %892 = vst [vmem:[%s1598_s4 + $0x1d8] sm:$0xff] %v828_v13  ;;  %v664_v18 = vmul.f32 %v1029_v16, %v1267_v40  ;;  %v696_v19 = vmul.f32 %v1061_v17, %v1267_v40  ;;  %v484_v20 = vpop.f32.mrb[29].mxu0  ;;  %v612_v21 = vpop.f32.mrb[29].mxu1 }
 0x12f   :  { %858 = vst [vmem:[%s1598_s4 + $0xc8] sm:$0xff] %v794_v14  ;;  %890 = vst [vmem:[%s1598_s4 + $0x1c8] sm:$0xff] %v826_v15  ;;  %v662_v22 = vmul.f32 %v1267_v40, %v484_v20  ;;  %v694_v23 = vmul.f32 %v1267_v40, %v612_v21  ;;  %v1030_v24 = vpop.f32.mrb[30].mxu0  ;;  %v1062_v25 = vpop.f32.mrb[30].mxu1 }
 0x130   :  { %v735_v26 = vadd.f32 %v1272_v42, %v664_v18  ;;  %v767_v27 = vadd.f32 %v1272_v42, %v696_v19  ;;  %v665_v28 = vmul.f32 %v1030_v24, %v1267_v40  ;;  %v697_v29 = vmul.f32 %v1062_v25, %v1267_v40  ;;  %v487_v30 = vpop.f32.mrb[31].mxu0  ;;  %v615_v31 = vpop.f32.mrb[31].mxu1 }
 0x131   :  { %v733_v32 = vadd.f32 %v1272_v42, %v662_v22  ;;  %v765_v33 = vadd.f32 %v1272_v42, %v694_v23  ;;  %v663_v34 = vmul.f32 %v1267_v40, %v487_v30  ;;  %v695_v35 = vmul.f32 %v1267_v40, %v615_v31 }
 0x132   :  { %v799_v36 = vmax.f32 %v735_v26, 0.0  ;;  %v831_v37 = vmax.f32 %v767_v27, 0.0  ;;  %v736_v38 = vadd.f32 %v1272_v42, %v665_v28  ;;  %v768_v39 = vadd.f32 %v1272_v42, %v697_v29 }
 0x133   :  { %v797_v41 = vmax.f32 %v733_v32, 0.0  ;;  %v829_v43 = vmax.f32 %v765_v33, 0.0  ;;  %v734_v44 = vadd.f32 %v1272_v42, %v663_v34  ;;  %v766_v45 = vadd.f32 %v1272_v42, %v695_v35 }
 0x134   :  { %863 = vst [vmem:[%s1598_s4 + $0xf0] sm:$0xff] %v799_v36  ;;  %895 = vst [vmem:[%s1598_s4 + $0x1f0] sm:$0xff] %v831_v37  ;;  %v800_v40 = vmax.f32 %v736_v38, 0.0  ;;  %v832_v46 = vmax.f32 %v768_v39, 0.0 }
 0x135   :  { %861 = vst [vmem:[%s1598_s4 + $0xe0] sm:$0xff] %v797_v41  ;;  %893 = vst [vmem:[%s1598_s4 + $0x1e0] sm:$0xff] %v829_v43  ;;  %v798_v47 = vmax.f32 %v734_v44, 0.0  ;;  %v830_v42 = vmax.f32 %v766_v45, 0.0 }
 0x136   :  { %864 = vst [vmem:[%s1598_s4 + $0xf8] sm:$0xff] %v800_v40  ;;  %896 = vst [vmem:[%s1598_s4 + $0x1f8] sm:$0xff] %v832_v46 }
 0x137   :  { %862 = vst [vmem:[%s1598_s4 + $0xe8] sm:$0xff] %v798_v47  ;;  %894 = vst [vmem:[%s1598_s4 + $0x1e8] sm:$0xff] %v830_v42 }

// kernel: resnet_encoder_forward.24
= control target key start
LH: loop header
LB: loop body
LE: loop exit
PB: predicated region body
PF: predicated region fallthrough
CT: control target
= control target key end

     0   :  { %s1922_s1 = inlined_call_operand.vmem [shape: bf16[128,128], index: 1, kind: input, shape index: {}]   ;;  %s1923_s0 = inlined_call_operand.vmem [shape: bf16[512,128], index: 0, kind: input, shape index: {}]   ;;  %s1924_s2 = inlined_call_operand.vmem [shape: f32[1,128], index: 2, kind: input, shape index: {}]   ;;  %s1925_s3 = inlined_call_operand.vmem [shape: f32[1,128], index: 3, kind: input, shape index: {}]   ;;  %s1926_s4 = inlined_call_operand.vmem [shape: f32[512,128], index: 4, kind: input, shape index: {}]   ;;  %s1927_s5 = inlined_call_operand.vmem [shape: f32[512,128], index: 5, kind: output, shape index: {}]  }
   0x1   :  { %v1210_v0 = vld [vmem:[%s1922_s1] sm:$0xff]   ;;  %v1211_v1 = vld [vmem:[%s1922_s1 + $0x8] sm:$0xff]   ;;  %v1212_v2 = vld [vmem:[%s1922_s1 + $0x10] sm:$0xff]  }
   0x2   :  { %1114 = vmatprep.subr.bf16.mxu0 %v1210_v0  ;;  %1194 = vmatprep.subr.bf16.mxu1 %v1210_v0  ;;  %v1213_v3 = vld [vmem:[%s1922_s1 + $0x18] sm:$0xff]   ;;  %v1218_v4 = vld [vmem:[%s1923_s0] sm:$0xff]   ;;  %v1215_v7 = vld [vmem:[%s1922_s1 + $0x28] sm:$0xff]  }
   0x3   :  { %1115 = vmatpush3.bf16.msra.mxu0 %v1210_v0  ;;  %1202 = vmatpush3.bf16.msra.mxu1 %v1210_v0  ;;  %v1219_v5 = vld [vmem:[%s1923_s0 + $0x80] sm:$0xff]   ;;  %v1216_v8 = vld [vmem:[%s1922_s1 + $0x30] sm:$0xff]   ;;  %v1217_v9 = vld [vmem:[%s1922_s1 + $0x38] sm:$0xff]  }
   0x4   :  { %1116 = vmatprep.subr.bf16.mxu0 %v1211_v1  ;;  %1195 = vmatprep.subr.bf16.mxu1 %v1211_v1  ;;  %v1214_v6 = vld [vmem:[%s1922_s1 + $0x20] sm:$0xff]   ;;  %v1220_v10 = vld [vmem:[%s1923_s0 + $0x8] sm:$0xff]   ;;  %v1222_v12 = vld [vmem:[%s1923_s0 + $0x10] sm:$0xff]  }
   0x5   :  { %1130 = vmatprep.mubr.bf16.mxu0 %v1218_v4  ;;  %1162 = vmatprep.mubr.bf16.mxu1 %v1219_v5  ;;  %v1221_v11 = vld [vmem:[%s1923_s0 + $0x88] sm:$0xff]   ;;  %v1223_v13 = vld [vmem:[%s1923_s0 + $0x90] sm:$0xff]   ;;  %v1224_v14 = vld [vmem:[%s1923_s0 + $0x18] sm:$0xff]  }
   0x6   :  { %v1225_v15 = vld [vmem:[%s1923_s0 + $0x98] sm:$0xff]   ;;  %v1226_v16 = vld [vmem:[%s1923_s0 + $0x20] sm:$0xff]   ;;  %v1228_v18 = vld [vmem:[%s1923_s0 + $0x28] sm:$0xff]  }
   0x7   :  { %1117 = vmatpush3.bf16.msra.mxu0 %v1211_v1  ;;  %1203 = vmatpush3.bf16.msra.mxu1 %v1211_v1  ;;  %v1227_v17 = vld [vmem:[%s1923_s0 + $0xa0] sm:$0xff]   ;;  %v1229_v19 = vld [vmem:[%s1923_s0 + $0xa8] sm:$0xff]   ;;  %v1230_v20 = vld [vmem:[%s1923_s0 + $0x30] sm:$0xff]  }
   0x8   :  { %1118 = vmatprep.subr.bf16.mxu0 %v1212_v2  ;;  %1196 = vmatprep.subr.bf16.mxu1 %v1212_v2  ;;  %v1231_v21 = vld [vmem:[%s1923_s0 + $0xb0] sm:$0xff]   ;;  %v1232_v22 = vld [vmem:[%s1923_s0 + $0x38] sm:$0xff]   ;;  %v1234_v24 = vld [vmem:[%s1923_s0 + $0x40] sm:$0xff]  }
   0x9   :  { %v1233_v23 = vld [vmem:[%s1923_s0 + $0xb8] sm:$0xff]   ;;  %v1235_v25 = vld [vmem:[%s1923_s0 + $0xc0] sm:$0xff]   ;;  %v1236_v26 = vld [vmem:[%s1923_s0 + $0x48] sm:$0xff]  }
   0xa   :  { %v1237_v27 = vld [vmem:[%s1923_s0 + $0xc8] sm:$0xff]   ;;  %v1238_v28 = vld [vmem:[%s1923_s0 + $0x50] sm:$0xff]   ;;  %v1240_v30 = vld [vmem:[%s1923_s0 + $0x58] sm:$0xff]  }
   0xb   :  { %1119 = vmatpush3.bf16.msra.mxu0 %v1212_v2  ;;  %1204 = vmatpush3.bf16.msra.mxu1 %v1212_v2  ;;  %v1239_v29 = vld [vmem:[%s1923_s0 + $0xd0] sm:$0xff]   ;;  %v1241_v31 = vld [vmem:[%s1923_s0 + $0xd8] sm:$0xff]   ;;  %v1242_v32 = vld [vmem:[%s1923_s0 + $0x60] sm:$0xff]  }
   0xc   :  { %1120 = vmatprep.subr.bf16.mxu0 %v1213_v3  ;;  %1197 = vmatprep.subr.bf16.mxu1 %v1213_v3  ;;  %v1243_v33 = vld [vmem:[%s1923_s0 + $0xe0] sm:$0xff]   ;;  %v1244_v34 = vld [vmem:[%s1923_s0 + $0x68] sm:$0xff]   ;;  %v1246_v36 = vld [vmem:[%s1923_s0 + $0x70] sm:$0xff]  }
   0xd   :  { %v1245_v35 = vld [vmem:[%s1923_s0 + $0xe8] sm:$0xff]   ;;  %v1247_v37 = vld [vmem:[%s1923_s0 + $0xf0] sm:$0xff]   ;;  %v1248_v38 = vld [vmem:[%s1923_s0 + $0x78] sm:$0xff]  }
   0xe   :  { %v1249_v39 = vld [vmem:[%s1923_s0 + $0xf8] sm:$0xff]   ;;  %v1403_v40 = vld [vmem:[%s1924_s2] ss:$0 sm:$0xff]  ;;  %v774_v48 = vld [vmem:[%s1926_s4 + $0x10] sm:$0xff] }
   0xf   :  { %1121 = vmatpush3.bf16.msra.mxu0 %v1213_v3  ;;  %1205 = vmatpush3.bf16.msra.mxu1 %v1213_v3  ;;  %v1408_v42 = vld [vmem:[%s1925_s3] ss:$0 sm:$0xff]  ;;  %v806_v49 = vld [vmem:[%s1926_s4 + $0x110] sm:$0xff]  ;;  %v775_v0 = vld [vmem:[%s1926_s4 + $0x18] sm:$0xff] }
  0x10   :  { %1122 = vmatprep.subr.bf16.mxu0 %v1214_v6  ;;  %1198 = vmatprep.subr.bf16.mxu1 %v1214_v6  ;;  %v772_v56 = vld [vmem:[%s1926_s4] sm:$0xff]  ;;  %v807_v1 = vld [vmem:[%s1926_s4 + $0x118] sm:$0xff] }
  0x11   :  { %v804_v57 = vld [vmem:[%s1926_s4 + $0x100] sm:$0xff] }
  0x13   :  { %1123 = vmatpush3.bf16.msra.mxu0 %v1214_v6  ;;  %1206 = vmatpush3.bf16.msra.mxu1 %v1214_v6 }
  0x14   :  { %1124 = vmatprep.subr.bf16.mxu0 %v1215_v7  ;;  %1199 = vmatprep.subr.bf16.mxu1 %v1215_v7 }
  0x17   :  { %1125 = vmatpush3.bf16.msra.mxu0 %v1215_v7  ;;  %1207 = vmatpush3.bf16.msra.mxu1 %v1215_v7 }
  0x18   :  { %1126 = vmatprep.subr.bf16.mxu0 %v1216_v8  ;;  %1200 = vmatprep.subr.bf16.mxu1 %v1216_v8 }
  0x1b   :  { %1127 = vmatpush3.bf16.msra.mxu0 %v1216_v8  ;;  %1208 = vmatpush3.bf16.msra.mxu1 %v1216_v8  ;;  %v773_v8 = vld [vmem:[%s1926_s4 + $0x8] sm:$0xff] }
  0x1c   :  { %1128 = vmatprep.subr.bf16.mxu0 %v1217_v9  ;;  %1201 = vmatprep.subr.bf16.mxu1 %v1217_v9 }
  0x1f   :  { %1129 = vmatpush3.bf16.msra.mxu0 %v1217_v9  ;;  %1209 = vmatpush3.bf16.msra.mxu1 %v1217_v9  ;;  %v805_v9 = vld [vmem:[%s1926_s4 + $0x108] sm:$0xff] }
  0x22   :  { %1131 = vmatmul.mubr.bf16.vlgmr.msra.gmra.mrb[0].mxu0 %v1220_v10  ;;  %1163 = vmatmul.mubr.bf16.vlgmr.msra.gmra.mrb[0].mxu1 %v1221_v11 }
  0x23   :  { %1134 = vmatprep.mubr.bf16.mxu0 %v1222_v12  ;;  %1166 = vmatprep.mubr.bf16.mxu1 %v1223_v13 }
  0x2a   :  { %1135 = vmatmul.mubr.bf16.gmra.mrb[4].mxu0 %v1224_v14  ;;  %1167 = vmatmul.mubr.bf16.gmra.mrb[4].mxu1 %v1225_v15 }
  0x2b   :  { %1138 = vmatprep.mubr.bf16.mxu0 %v1226_v16  ;;  %1170 = vmatprep.mubr.bf16.mxu1 %v1227_v17 }
  0x32   :  { %1139 = vmatmul.mubr.bf16.gmra.mrb[8].mxu0 %v1228_v18  ;;  %1171 = vmatmul.mubr.bf16.gmra.mrb[8].mxu1 %v1229_v19 }
  0x33   :  { %1142 = vmatprep.mubr.bf16.mxu0 %v1230_v20  ;;  %1174 = vmatprep.mubr.bf16.mxu1 %v1231_v21 }
  0x3a   :  { %1143 = vmatmul.mubr.bf16.gmra.mrb[12].mxu0 %v1232_v22  ;;  %1175 = vmatmul.mubr.bf16.gmra.mrb[12].mxu1 %v1233_v23 }
  0x3b   :  { %1146 = vmatprep.mubr.bf16.mxu0 %v1234_v24  ;;  %1178 = vmatprep.mubr.bf16.mxu1 %v1235_v25 }
  0x42   :  { %1147 = vmatmul.mubr.bf16.gmra.mrb[16].mxu0 %v1236_v26  ;;  %1179 = vmatmul.mubr.bf16.gmra.mrb[16].mxu1 %v1237_v27 }
  0x43   :  { %1150 = vmatprep.mubr.bf16.mxu0 %v1238_v28  ;;  %1182 = vmatprep.mubr.bf16.mxu1 %v1239_v29 }
  0x4a   :  { %1151 = vmatmul.mubr.bf16.gmra.mrb[20].mxu0 %v1240_v30  ;;  %1183 = vmatmul.mubr.bf16.gmra.mrb[20].mxu1 %v1241_v31 }
  0x4b   :  { %1154 = vmatprep.mubr.bf16.mxu0 %v1242_v32  ;;  %1186 = vmatprep.mubr.bf16.mxu1 %v1243_v33  ;;  %v778_v32 = vld [vmem:[%s1926_s4 + $0x30] sm:$0xff] }
  0x4c   :  { %v810_v33 = vld [vmem:[%s1926_s4 + $0x130] sm:$0xff] }
  0x52   :  { %1155 = vmatmul.mubr.bf16.gmra.mrb[24].mxu0 %v1244_v34  ;;  %1187 = vmatmul.mubr.bf16.gmra.mrb[24].mxu1 %v1245_v35 }
  0x53   :  { %1158 = vmatprep.mubr.bf16.mxu0 %v1246_v36  ;;  %1190 = vmatprep.mubr.bf16.mxu1 %v1247_v37 }
  0x5a   :  { %1159 = vmatmul.mubr.bf16.gmra.mrb[28].mxu0 %v1248_v38  ;;  %1191 = vmatmul.mubr.bf16.gmra.mrb[28].mxu1 %v1249_v39 }
  0xf5   :  { %v1132_v41 = vpop.f32.mrb[0].mxu0  ;;  %v1164_v43 = vpop.f32.mrb[0].mxu1 }
  0xf6   :  { %v639_v44 = vmul.f32 %v1132_v41, %v1403_v40  ;;  %v671_v45 = vmul.f32 %v1164_v43, %v1403_v40  ;;  %v375_v46 = vpop.f32.mrb[1].mxu0  ;;  %v503_v47 = vpop.f32.mrb[1].mxu1  ;;  %v776_v41 = vld [vmem:[%s1926_s4 + $0x20] sm:$0xff] }
  0xf7   :  { %v637_v50 = vmul.f32 %v1403_v40, %v375_v46  ;;  %v669_v51 = vmul.f32 %v1403_v40, %v503_v47  ;;  %v1133_v52 = vpop.f32.mrb[2].mxu0  ;;  %v1165_v53 = vpop.f32.mrb[2].mxu1  ;;  %v808_v43 = vld [vmem:[%s1926_s4 + $0x120] sm:$0xff] }
  0xf8   :  { %v710_v54 = vadd.f32 %v1408_v42, %v639_v44  ;;  %v742_v55 = vadd.f32 %v1408_v42, %v671_v45  ;;  %v640_v58 = vmul.f32 %v1133_v52, %v1403_v40  ;;  %v672_v59 = vmul.f32 %v1165_v53, %v1403_v40  ;;  %v378_v60 = vpop.f32.mrb[3].mxu0  ;;  %v506_v61 = vpop.f32.mrb[3].mxu1 }
  0xf9   :  { %v708_v62 = vadd.f32 %v1408_v42, %v637_v50  ;;  %v740_v63 = vadd.f32 %v1408_v42, %v669_v51  ;;  %v638_v2 = vmul.f32 %v1403_v40, %v378_v60  ;;  %v670_v3 = vmul.f32 %v1403_v40, %v506_v61  ;;  %v779_v50 = vld [vmem:[%s1926_s4 + $0x38] sm:$0xff] }
  0xfa   :  { %v838_v4 = vadd.f32 %v774_v48, %v710_v54  ;;  %v870_v5 = vadd.f32 %v806_v49, %v742_v55  ;;  %v711_v6 = vadd.f32 %v1408_v42, %v640_v58  ;;  %v743_v7 = vadd.f32 %v1408_v42, %v672_v59  ;;  %v811_v51 = vld [vmem:[%s1926_s4 + $0x138] sm:$0xff]  ;;  %v777_v58 = vld [vmem:[%s1926_s4 + $0x28] sm:$0xff] }
  0xfb   :  { %v836_v10 = vadd.f32 %v772_v56, %v708_v62  ;;  %v868_v11 = vadd.f32 %v804_v57, %v740_v63  ;;  %v709_v12 = vadd.f32 %v1408_v42, %v638_v2  ;;  %v741_v13 = vadd.f32 %v1408_v42, %v670_v3  ;;  %v809_v59 = vld [vmem:[%s1926_s4 + $0x128] sm:$0xff] }
  0xfc   :  { %v902_v14 = vmax.f32 %v838_v4, 0.0  ;;  %v934_v15 = vmax.f32 %v870_v5, 0.0  ;;  %v839_v16 = vadd.f32 %v775_v0, %v711_v6  ;;  %v871_v17 = vadd.f32 %v807_v1, %v743_v7 }
  0xfd   :  { %v900_v18 = vmax.f32 %v836_v10, 0.0  ;;  %v932_v19 = vmax.f32 %v868_v11, 0.0  ;;  %v837_v20 = vadd.f32 %v773_v8, %v709_v12  ;;  %v869_v21 = vadd.f32 %v805_v9, %v741_v13  ;;  %v1136_v22 = vpop.f32.mrb[4].mxu0  ;;  %v1168_v23 = vpop.f32.mrb[4].mxu1 }
  0xfe   :  { %966 = vst [vmem:[%s1927_s5 + $0x10] sm:$0xff] %v902_v14  ;;  %998 = vst [vmem:[%s1927_s5 + $0x110] sm:$0xff] %v934_v15  ;;  %v903_v24 = vmax.f32 %v839_v16, 0.0  ;;  %v935_v25 = vmax.f32 %v871_v17, 0.0  ;;  %v643_v26 = vmul.f32 %v1136_v22, %v1403_v40  ;;  %v675_v27 = vmul.f32 %v1168_v23, %v1403_v40  ;;  %v391_v28 = vpop.f32.mrb[5].mxu0  ;;  %v519_v29 = vpop.f32.mrb[5].mxu1 }
  0xff   :  { %964 = vst [vmem:[%s1927_s5] sm:$0xff] %v900_v18  ;;  %996 = vst [vmem:[%s1927_s5 + $0x100] sm:$0xff] %v932_v19  ;;  %v901_v30 = vmax.f32 %v837_v20, 0.0  ;;  %v933_v31 = vmax.f32 %v869_v21, 0.0  ;;  %v641_v34 = vmul.f32 %v1403_v40, %v391_v28  ;;  %v673_v35 = vmul.f32 %v1403_v40, %v519_v29  ;;  %v1137_v36 = vpop.f32.mrb[6].mxu0  ;;  %v1169_v37 = vpop.f32.mrb[6].mxu1  ;;  %v782_v18 = vld [vmem:[%s1926_s4 + $0x50] sm:$0xff] }
 0x100   :  { %967 = vst [vmem:[%s1927_s5 + $0x18] sm:$0xff] %v903_v24  ;;  %999 = vst [vmem:[%s1927_s5 + $0x118] sm:$0xff] %v935_v25  ;;  %v714_v38 = vadd.f32 %v1408_v42, %v643_v26  ;;  %v746_v39 = vadd.f32 %v1408_v42, %v675_v27  ;;  %v644_v44 = vmul.f32 %v1137_v36, %v1403_v40  ;;  %v394_v46 = vpop.f32.mrb[7].mxu0  ;;  %v522_v47 = vpop.f32.mrb[7].mxu1  ;;  %v814_v19 = vld [vmem:[%s1926_s4 + $0x150] sm:$0xff]  ;;  %v780_v26 = vld [vmem:[%s1926_s4 + $0x40] sm:$0xff] }
 0x101   :  { %v676_v45 = vmul.f32 %v1169_v37, %v1403_v40  ;;  %965 = vst [vmem:[%s1927_s5 + $0x8] sm:$0xff] %v901_v30  ;;  %997 = vst [vmem:[%s1927_s5 + $0x108] sm:$0xff] %v933_v31  ;;  %v712_v48 = vadd.f32 %v1408_v42, %v641_v34  ;;  %v744_v49 = vadd.f32 %v1408_v42, %v673_v35  ;;  %v812_v27 = vld [vmem:[%s1926_s4 + $0x140] sm:$0xff]  ;;  %v783_v34 = vld [vmem:[%s1926_s4 + $0x58] sm:$0xff] }
 0x102   :  { %v642_v52 = vmul.f32 %v1403_v40, %v394_v46  ;;  %v674_v53 = vmul.f32 %v1403_v40, %v522_v47  ;;  %v842_v54 = vadd.f32 %v778_v32, %v714_v38  ;;  %v874_v55 = vadd.f32 %v810_v33, %v746_v39  ;;  %v815_v35 = vld [vmem:[%s1926_s4 + $0x158] sm:$0xff] }
 0x103   :  { %v715_v56 = vadd.f32 %v1408_v42, %v644_v44  ;;  %v747_v57 = vadd.f32 %v1408_v42, %v676_v45  ;;  %v840_v60 = vadd.f32 %v776_v41, %v712_v48  ;;  %v872_v61 = vadd.f32 %v808_v43, %v744_v49  ;;  %v781_v44 = vld [vmem:[%s1926_s4 + $0x48] sm:$0xff] }
 0x104   :  { %v713_v62 = vadd.f32 %v1408_v42, %v642_v52  ;;  %v745_v63 = vadd.f32 %v1408_v42, %v674_v53  ;;  %v906_v0 = vmax.f32 %v842_v54, 0.0  ;;  %v938_v1 = vmax.f32 %v874_v55, 0.0  ;;  %v813_v45 = vld [vmem:[%s1926_s4 + $0x148] sm:$0xff] }
 0x105   :  { %v843_v2 = vadd.f32 %v779_v50, %v715_v56  ;;  %v875_v3 = vadd.f32 %v811_v51, %v747_v57  ;;  %v904_v4 = vmax.f32 %v840_v60, 0.0  ;;  %v936_v5 = vmax.f32 %v872_v61, 0.0  ;;  %v1140_v8 = vpop.f32.mrb[8].mxu0  ;;  %v1172_v9 = vpop.f32.mrb[8].mxu1 }
 0x106   :  { %v841_v6 = vadd.f32 %v777_v58, %v713_v62  ;;  %v873_v7 = vadd.f32 %v809_v59, %v745_v63  ;;  %970 = vst [vmem:[%s1927_s5 + $0x30] sm:$0xff] %v906_v0  ;;  %1002 = vst [vmem:[%s1927_s5 + $0x130] sm:$0xff] %v938_v1  ;;  %v647_v12 = vmul.f32 %v1140_v8, %v1403_v40  ;;  %v407_v14 = vpop.f32.mrb[9].mxu0  ;;  %v535_v15 = vpop.f32.mrb[9].mxu1 }
 0x107   :  { %v907_v10 = vmax.f32 %v843_v2, 0.0  ;;  %v939_v11 = vmax.f32 %v875_v3, 0.0  ;;  %v679_v13 = vmul.f32 %v1172_v9, %v1403_v40  ;;  %968 = vst [vmem:[%s1927_s5 + $0x20] sm:$0xff] %v904_v4  ;;  %1000 = vst [vmem:[%s1927_s5 + $0x120] sm:$0xff] %v936_v5  ;;  %v645_v20 = vmul.f32 %v1403_v40, %v407_v14  ;;  %v1141_v22 = vpop.f32.mrb[10].mxu0  ;;  %v1173_v23 = vpop.f32.mrb[10].mxu1 }
 0x108   :  { %v905_v16 = vmax.f32 %v841_v6, 0.0  ;;  %v937_v17 = vmax.f32 %v873_v7, 0.0  ;;  %v677_v21 = vmul.f32 %v1403_v40, %v535_v15  ;;  %v718_v24 = vadd.f32 %v1408_v42, %v647_v12  ;;  %v410_v30 = vpop.f32.mrb[11].mxu0  ;;  %v538_v31 = vpop.f32.mrb[11].mxu1  ;;  %v786_v4 = vld [vmem:[%s1926_s4 + $0x70] sm:$0xff]  ;;  %v784_v12 = vld [vmem:[%s1926_s4 + $0x60] sm:$0xff] }
 0x109   :  { %971 = vst [vmem:[%s1927_s5 + $0x38] sm:$0xff] %v907_v10  ;;  %1003 = vst [vmem:[%s1927_s5 + $0x138] sm:$0xff] %v939_v11  ;;  %v750_v25 = vadd.f32 %v1408_v42, %v679_v13  ;;  %v648_v28 = vmul.f32 %v1141_v22, %v1403_v40  ;;  %v680_v29 = vmul.f32 %v1173_v23, %v1403_v40  ;;  %v818_v5 = vld [vmem:[%s1926_s4 + $0x170] sm:$0xff]  ;;  %v816_v13 = vld [vmem:[%s1926_s4 + $0x160] sm:$0xff] }
 0x10a   :  { %969 = vst [vmem:[%s1927_s5 + $0x28] sm:$0xff] %v905_v16  ;;  %1001 = vst [vmem:[%s1927_s5 + $0x128] sm:$0xff] %v937_v17  ;;  %v716_v32 = vadd.f32 %v1408_v42, %v645_v20  ;;  %v748_v33 = vadd.f32 %v1408_v42, %v677_v21  ;;  %v646_v36 = vmul.f32 %v1403_v40, %v410_v30  ;;  %v787_v20 = vld [vmem:[%s1926_s4 + $0x78] sm:$0xff] }
 0x10b   :  { %v678_v37 = vmul.f32 %v1403_v40, %v538_v31  ;;  %v846_v38 = vadd.f32 %v782_v18, %v718_v24  ;;  %v878_v39 = vadd.f32 %v814_v19, %v750_v25  ;;  %v719_v41 = vadd.f32 %v1408_v42, %v648_v28  ;;  %v819_v21 = vld [vmem:[%s1926_s4 + $0x178] sm:$0xff]  ;;  %v785_v28 = vld [vmem:[%s1926_s4 + $0x68] sm:$0xff] }
 0x10c   :  { %v751_v43 = vadd.f32 %v1408_v42, %v680_v29  ;;  %v844_v46 = vadd.f32 %v780_v26, %v716_v32  ;;  %v876_v47 = vadd.f32 %v812_v27, %v748_v33  ;;  %v717_v48 = vadd.f32 %v1408_v42, %v646_v36  ;;  %v817_v29 = vld [vmem:[%s1926_s4 + $0x168] sm:$0xff] }
 0x10d   :  { %v749_v49 = vadd.f32 %v1408_v42, %v678_v37  ;;  %v910_v50 = vmax.f32 %v846_v38, 0.0  ;;  %v942_v51 = vmax.f32 %v878_v39, 0.0  ;;  %v847_v52 = vadd.f32 %v783_v34, %v719_v41  ;;  %v1144_v58 = vpop.f32.mrb[12].mxu0  ;;  %v1176_v59 = vpop.f32.mrb[12].mxu1 }
 0x10e   :  { %v879_v53 = vadd.f32 %v815_v35, %v751_v43  ;;  %v908_v54 = vmax.f32 %v844_v46, 0.0  ;;  %v940_v55 = vmax.f32 %v876_v47, 0.0  ;;  %v845_v56 = vadd.f32 %v781_v44, %v717_v48  ;;  %v423_v0 = vpop.f32.mrb[13].mxu0  ;;  %v551_v1 = vpop.f32.mrb[13].mxu1 }
 0x10f   :  { %v877_v57 = vadd.f32 %v813_v45, %v749_v49  ;;  %974 = vst [vmem:[%s1927_s5 + $0x50] sm:$0xff] %v910_v50  ;;  %1006 = vst [vmem:[%s1927_s5 + $0x150] sm:$0xff] %v942_v51  ;;  %v911_v60 = vmax.f32 %v847_v52, 0.0  ;;  %v651_v62 = vmul.f32 %v1144_v58, %v1403_v40  ;;  %v683_v63 = vmul.f32 %v1176_v59, %v1403_v40  ;;  %v1145_v8 = vpop.f32.mrb[14].mxu0  ;;  %v1177_v9 = vpop.f32.mrb[14].mxu1 }
 0x110   :  { %v943_v61 = vmax.f32 %v879_v53, 0.0  ;;  %972 = vst [vmem:[%s1927_s5 + $0x40] sm:$0xff] %v908_v54  ;;  %1004 = vst [vmem:[%s1927_s5 + $0x140] sm:$0xff] %v940_v55  ;;  %v909_v2 = vmax.f32 %v845_v56, 0.0  ;;  %v649_v6 = vmul.f32 %v1403_v40, %v423_v0  ;;  %v681_v7 = vmul.f32 %v1403_v40, %v551_v1  ;;  %v426_v16 = vpop.f32.mrb[15].mxu0  ;;  %v554_v17 = vpop.f32.mrb[15].mxu1 }
 0x111   :  { %v941_v3 = vmax.f32 %v877_v57, 0.0  ;;  %975 = vst [vmem:[%s1927_s5 + $0x58] sm:$0xff] %v911_v60  ;;  %v722_v10 = vadd.f32 %v1408_v42, %v651_v62  ;;  %v754_v11 = vadd.f32 %v1408_v42, %v683_v63  ;;  %v652_v14 = vmul.f32 %v1145_v8, %v1403_v40  ;;  %v790_v54 = vld [vmem:[%s1926_s4 + $0x90] sm:$0xff]  ;;  %v788_v62 = vld [vmem:[%s1926_s4 + $0x80] sm:$0xff] }
 0x112   :  { %1007 = vst [vmem:[%s1927_s5 + $0x158] sm:$0xff] %v943_v61  ;;  %v684_v15 = vmul.f32 %v1177_v9, %v1403_v40  ;;  %973 = vst [vmem:[%s1927_s5 + $0x48] sm:$0xff] %v909_v2  ;;  %v720_v18 = vadd.f32 %v1408_v42, %v649_v6  ;;  %v752_v19 = vadd.f32 %v1408_v42, %v681_v7  ;;  %v822_v55 = vld [vmem:[%s1926_s4 + $0x190] sm:$0xff]  ;;  %v820_v63 = vld [vmem:[%s1926_s4 + $0x180] sm:$0xff] }
 0x113   :  { %1005 = vst [vmem:[%s1927_s5 + $0x148] sm:$0xff] %v941_v3  ;;  %v650_v22 = vmul.f32 %v1403_v40, %v426_v16  ;;  %v682_v23 = vmul.f32 %v1403_v40, %v554_v17  ;;  %v850_v24 = vadd.f32 %v786_v4, %v722_v10  ;;  %v882_v25 = vadd.f32 %v818_v5, %v754_v11  ;;  %v791_v6 = vld [vmem:[%s1926_s4 + $0x98] sm:$0xff] }
 0x114   :  { %v723_v26 = vadd.f32 %v1408_v42, %v652_v14  ;;  %v755_v27 = vadd.f32 %v1408_v42, %v684_v15  ;;  %v848_v30 = vadd.f32 %v784_v12, %v720_v18  ;;  %v880_v31 = vadd.f32 %v816_v13, %v752_v19  ;;  %v823_v7 = vld [vmem:[%s1926_s4 + $0x198] sm:$0xff]  ;;  %v789_v14 = vld [vmem:[%s1926_s4 + $0x88] sm:$0xff] }
 0x115   :  { %v721_v32 = vadd.f32 %v1408_v42, %v650_v22  ;;  %v753_v33 = vadd.f32 %v1408_v42, %v682_v23  ;;  %v914_v34 = vmax.f32 %v850_v24, 0.0  ;;  %v946_v35 = vmax.f32 %v882_v25, 0.0  ;;  %v1148_v44 = vpop.f32.mrb[16].mxu0  ;;  %v1180_v45 = vpop.f32.mrb[16].mxu1  ;;  %v821_v15 = vld [vmem:[%s1926_s4 + $0x188] sm:$0xff] }
 0x116   :  { %v851_v36 = vadd.f32 %v787_v20, %v723_v26  ;;  %v883_v37 = vadd.f32 %v819_v21, %v755_v27  ;;  %v912_v38 = vmax.f32 %v848_v30, 0.0  ;;  %v944_v39 = vmax.f32 %v880_v31, 0.0  ;;  %v439_v50 = vpop.f32.mrb[17].mxu0  ;;  %v567_v51 = vpop.f32.mrb[17].mxu1 }
 0x117   :  { %v849_v41 = vadd.f32 %v785_v28, %v721_v32  ;;  %v881_v43 = vadd.f32 %v817_v29, %v753_v33  ;;  %978 = vst [vmem:[%s1927_s5 + $0x70] sm:$0xff] %v914_v34  ;;  %1010 = vst [vmem:[%s1927_s5 + $0x170] sm:$0xff] %v946_v35  ;;  %v655_v48 = vmul.f32 %v1148_v44, %v1403_v40  ;;  %v1149_v58 = vpop.f32.mrb[18].mxu0  ;;  %v1181_v59 = vpop.f32.mrb[18].mxu1 }
 0x118   :  { %v915_v46 = vmax.f32 %v851_v36, 0.0  ;;  %v947_v47 = vmax.f32 %v883_v37, 0.0  ;;  %v687_v49 = vmul.f32 %v1180_v45, %v1403_v40  ;;  %976 = vst [vmem:[%s1927_s5 + $0x60] sm:$0xff] %v912_v38  ;;  %1008 = vst [vmem:[%s1927_s5 + $0x160] sm:$0xff] %v944_v39  ;;  %v653_v56 = vmul.f32 %v1403_v40, %v439_v50  ;;  %v442_v2 = vpop.f32.mrb[19].mxu0  ;;  %v570_v3 = vpop.f32.mrb[19].mxu1 }
 0x119   :  { %v913_v52 = vmax.f32 %v849_v41, 0.0  ;;  %v945_v53 = vmax.f32 %v881_v43, 0.0  ;;  %v685_v57 = vmul.f32 %v1403_v40, %v567_v51  ;;  %v726_v60 = vadd.f32 %v1408_v42, %v655_v48  ;;  %v794_v38 = vld [vmem:[%s1926_s4 + $0xb0] sm:$0xff]  ;;  %v792_v48 = vld [vmem:[%s1926_s4 + $0xa0] sm:$0xff] }
 0x11a   :  { %979 = vst [vmem:[%s1927_s5 + $0x78] sm:$0xff] %v915_v46  ;;  %1011 = vst [vmem:[%s1927_s5 + $0x178] sm:$0xff] %v947_v47  ;;  %v758_v61 = vadd.f32 %v1408_v42, %v687_v49  ;;  %v656_v0 = vmul.f32 %v1149_v58, %v1403_v40  ;;  %v688_v1 = vmul.f32 %v1181_v59, %v1403_v40  ;;  %v826_v39 = vld [vmem:[%s1926_s4 + $0x1b0] sm:$0xff]  ;;  %v824_v49 = vld [vmem:[%s1926_s4 + $0x1a0] sm:$0xff] }
 0x11b   :  { %977 = vst [vmem:[%s1927_s5 + $0x68] sm:$0xff] %v913_v52  ;;  %1009 = vst [vmem:[%s1927_s5 + $0x168] sm:$0xff] %v945_v53  ;;  %v724_v4 = vadd.f32 %v1408_v42, %v653_v56  ;;  %v756_v5 = vadd.f32 %v1408_v42, %v685_v57  ;;  %v654_v8 = vmul.f32 %v1403_v40, %v442_v2  ;;  %v795_v56 = vld [vmem:[%s1926_s4 + $0xb8] sm:$0xff] }
 0x11c   :  { %v686_v9 = vmul.f32 %v1403_v40, %v570_v3  ;;  %v854_v10 = vadd.f32 %v790_v54, %v726_v60  ;;  %v886_v11 = vadd.f32 %v822_v55, %v758_v61  ;;  %v727_v12 = vadd.f32 %v1408_v42, %v656_v0  ;;  %v827_v57 = vld [vmem:[%s1926_s4 + $0x1b8] sm:$0xff]  ;;  %v793_v0 = vld [vmem:[%s1926_s4 + $0xa8] sm:$0xff] }
 0x11d   :  { %v759_v13 = vadd.f32 %v1408_v42, %v688_v1  ;;  %v852_v16 = vadd.f32 %v788_v62, %v724_v4  ;;  %v884_v17 = vadd.f32 %v820_v63, %v756_v5  ;;  %v725_v18 = vadd.f32 %v1408_v42, %v654_v8  ;;  %v1152_v28 = vpop.f32.mrb[20].mxu0  ;;  %v1184_v29 = vpop.f32.mrb[20].mxu1  ;;  %v825_v1 = vld [vmem:[%s1926_s4 + $0x1a8] sm:$0xff] }
 0x11e   :  { %v757_v19 = vadd.f32 %v1408_v42, %v686_v9  ;;  %v918_v20 = vmax.f32 %v854_v10, 0.0  ;;  %v950_v21 = vmax.f32 %v886_v11, 0.0  ;;  %v855_v22 = vadd.f32 %v791_v6, %v727_v12  ;;  %v455_v34 = vpop.f32.mrb[21].mxu0  ;;  %v583_v35 = vpop.f32.mrb[21].mxu1 }
 0x11f   :  { %v887_v23 = vadd.f32 %v823_v7, %v759_v13  ;;  %v916_v24 = vmax.f32 %v852_v16, 0.0  ;;  %v948_v25 = vmax.f32 %v884_v17, 0.0  ;;  %v853_v26 = vadd.f32 %v789_v14, %v725_v18  ;;  %v1153_v44 = vpop.f32.mrb[22].mxu0  ;;  %v1185_v45 = vpop.f32.mrb[22].mxu1 }
 0x120   :  { %v885_v27 = vadd.f32 %v821_v15, %v757_v19  ;;  %982 = vst [vmem:[%s1927_s5 + $0x90] sm:$0xff] %v918_v20  ;;  %1014 = vst [vmem:[%s1927_s5 + $0x190] sm:$0xff] %v950_v21  ;;  %v919_v30 = vmax.f32 %v855_v22, 0.0  ;;  %v659_v32 = vmul.f32 %v1152_v28, %v1403_v40  ;;  %v691_v33 = vmul.f32 %v1184_v29, %v1403_v40  ;;  %v458_v52 = vpop.f32.mrb[23].mxu0  ;;  %v586_v53 = vpop.f32.mrb[23].mxu1 }
 0x121   :  { %v951_v31 = vmax.f32 %v887_v23, 0.0  ;;  %980 = vst [vmem:[%s1927_s5 + $0x80] sm:$0xff] %v916_v24  ;;  %1012 = vst [vmem:[%s1927_s5 + $0x180] sm:$0xff] %v948_v25  ;;  %v917_v36 = vmax.f32 %v853_v26, 0.0  ;;  %v657_v41 = vmul.f32 %v1403_v40, %v455_v34  ;;  %v689_v43 = vmul.f32 %v1403_v40, %v583_v35  ;;  %v798_v24 = vld [vmem:[%s1926_s4 + $0xd0] sm:$0xff] }
 0x122   :  { %v949_v37 = vmax.f32 %v885_v27, 0.0  ;;  %983 = vst [vmem:[%s1927_s5 + $0x98] sm:$0xff] %v919_v30  ;;  %v730_v46 = vadd.f32 %v1408_v42, %v659_v32  ;;  %v762_v47 = vadd.f32 %v1408_v42, %v691_v33  ;;  %v660_v50 = vmul.f32 %v1153_v44, %v1403_v40  ;;  %v830_v25 = vld [vmem:[%s1926_s4 + $0x1d0] sm:$0xff]  ;;  %v796_v32 = vld [vmem:[%s1926_s4 + $0xc0] sm:$0xff] }
 0x123   :  { %1015 = vst [vmem:[%s1927_s5 + $0x198] sm:$0xff] %v951_v31  ;;  %v692_v51 = vmul.f32 %v1185_v45, %v1403_v40  ;;  %981 = vst [vmem:[%s1927_s5 + $0x88] sm:$0xff] %v917_v36  ;;  %v728_v54 = vadd.f32 %v1408_v42, %v657_v41  ;;  %v760_v55 = vadd.f32 %v1408_v42, %v689_v43  ;;  %v828_v33 = vld [vmem:[%s1926_s4 + $0x1c0] sm:$0xff]  ;;  %v799_v41 = vld [vmem:[%s1926_s4 + $0xd8] sm:$0xff] }
 0x124   :  { %1013 = vst [vmem:[%s1927_s5 + $0x188] sm:$0xff] %v949_v37  ;;  %v658_v58 = vmul.f32 %v1403_v40, %v458_v52  ;;  %v690_v59 = vmul.f32 %v1403_v40, %v586_v53  ;;  %v858_v60 = vadd.f32 %v794_v38, %v730_v46  ;;  %v890_v61 = vadd.f32 %v826_v39, %v762_v47  ;;  %v831_v43 = vld [vmem:[%s1926_s4 + $0x1d8] sm:$0xff] }
 0x125   :  { %v731_v62 = vadd.f32 %v1408_v42, %v660_v50  ;;  %v763_v63 = vadd.f32 %v1408_v42, %v692_v51  ;;  %v856_v2 = vadd.f32 %v792_v48, %v728_v54  ;;  %v888_v3 = vadd.f32 %v824_v49, %v760_v55  ;;  %v1156_v14 = vpop.f32.mrb[24].mxu0  ;;  %v1188_v15 = vpop.f32.mrb[24].mxu1  ;;  %v797_v50 = vld [vmem:[%s1926_s4 + $0xc8] sm:$0xff] }
 0x126   :  { %v729_v4 = vadd.f32 %v1408_v42, %v658_v58  ;;  %v761_v5 = vadd.f32 %v1408_v42, %v690_v59  ;;  %v922_v6 = vmax.f32 %v858_v60, 0.0  ;;  %v954_v7 = vmax.f32 %v890_v61, 0.0  ;;  %v471_v20 = vpop.f32.mrb[25].mxu0  ;;  %v599_v21 = vpop.f32.mrb[25].mxu1  ;;  %v829_v51 = vld [vmem:[%s1926_s4 + $0x1c8] sm:$0xff] }
 0x127   :  { %v859_v8 = vadd.f32 %v795_v56, %v731_v62  ;;  %v891_v9 = vadd.f32 %v827_v57, %v763_v63  ;;  %v920_v10 = vmax.f32 %v856_v2, 0.0  ;;  %v952_v11 = vmax.f32 %v888_v3, 0.0  ;;  %v1157_v28 = vpop.f32.mrb[26].mxu0  ;;  %v1189_v29 = vpop.f32.mrb[26].mxu1 }
 0x128   :  { %v857_v12 = vadd.f32 %v793_v0, %v729_v4  ;;  %v889_v13 = vadd.f32 %v825_v1, %v761_v5  ;;  %986 = vst [vmem:[%s1927_s5 + $0xb0] sm:$0xff] %v922_v6  ;;  %1018 = vst [vmem:[%s1927_s5 + $0x1b0] sm:$0xff] %v954_v7  ;;  %v663_v18 = vmul.f32 %v1156_v14, %v1403_v40  ;;  %v474_v36 = vpop.f32.mrb[27].mxu0  ;;  %v602_v37 = vpop.f32.mrb[27].mxu1 }
 0x129   :  { %v923_v16 = vmax.f32 %v859_v8, 0.0  ;;  %v955_v17 = vmax.f32 %v891_v9, 0.0  ;;  %v695_v19 = vmul.f32 %v1188_v15, %v1403_v40  ;;  %984 = vst [vmem:[%s1927_s5 + $0xa0] sm:$0xff] %v920_v10  ;;  %1016 = vst [vmem:[%s1927_s5 + $0x1a0] sm:$0xff] %v952_v11  ;;  %v661_v26 = vmul.f32 %v1403_v40, %v471_v20  ;;  %v802_v10 = vld [vmem:[%s1926_s4 + $0xf0] sm:$0xff] }
 0x12a   :  { %v921_v22 = vmax.f32 %v857_v12, 0.0  ;;  %v953_v23 = vmax.f32 %v889_v13, 0.0  ;;  %v693_v27 = vmul.f32 %v1403_v40, %v599_v21  ;;  %v734_v30 = vadd.f32 %v1408_v42, %v663_v18  ;;  %v834_v11 = vld [vmem:[%s1926_s4 + $0x1f0] sm:$0xff]  ;;  %v800_v18 = vld [vmem:[%s1926_s4 + $0xe0] sm:$0xff] }
 0x12b   :  { %987 = vst [vmem:[%s1927_s5 + $0xb8] sm:$0xff] %v923_v16  ;;  %1019 = vst [vmem:[%s1927_s5 + $0x1b8] sm:$0xff] %v955_v17  ;;  %v766_v31 = vadd.f32 %v1408_v42, %v695_v19  ;;  %v664_v34 = vmul.f32 %v1157_v28, %v1403_v40  ;;  %v696_v35 = vmul.f32 %v1189_v29, %v1403_v40  ;;  %v832_v19 = vld [vmem:[%s1926_s4 + $0x1e0] sm:$0xff] }
 0x12c   :  { %985 = vst [vmem:[%s1927_s5 + $0xa8] sm:$0xff] %v921_v22  ;;  %1017 = vst [vmem:[%s1927_s5 + $0x1a8] sm:$0xff] %v953_v23  ;;  %v732_v38 = vadd.f32 %v1408_v42, %v661_v26  ;;  %v764_v39 = vadd.f32 %v1408_v42, %v693_v27  ;;  %v662_v44 = vmul.f32 %v1403_v40, %v474_v36  ;;  %v803_v26 = vld [vmem:[%s1926_s4 + $0xf8] sm:$0xff] }
 0x12d   :  { %v694_v45 = vmul.f32 %v1403_v40, %v602_v37  ;;  %v862_v46 = vadd.f32 %v798_v24, %v734_v30  ;;  %v894_v47 = vadd.f32 %v830_v25, %v766_v31  ;;  %v735_v48 = vadd.f32 %v1408_v42, %v664_v34  ;;  %v1160_v0 = vpop.f32.mrb[28].mxu0  ;;  %v1192_v1 = vpop.f32.mrb[28].mxu1  ;;  %v835_v27 = vld [vmem:[%s1926_s4 + $0x1f8] sm:$0xff]  ;;  %v801_v34 = vld [vmem:[%s1926_s4 + $0xe8] sm:$0xff] }
 0x12e   :  { %v767_v49 = vadd.f32 %v1408_v42, %v696_v35  ;;  %v860_v52 = vadd.f32 %v796_v32, %v732_v38  ;;  %v892_v53 = vadd.f32 %v828_v33, %v764_v39  ;;  %v733_v54 = vadd.f32 %v1408_v42, %v662_v44  ;;  %v487_v6 = vpop.f32.mrb[29].mxu0  ;;  %v615_v7 = vpop.f32.mrb[29].mxu1  ;;  %v833_v35 = vld [vmem:[%s1926_s4 + $0x1e8] sm:$0xff] }
 0x12f   :  { %v765_v55 = vadd.f32 %v1408_v42, %v694_v45  ;;  %v926_v56 = vmax.f32 %v862_v46, 0.0  ;;  %v958_v57 = vmax.f32 %v894_v47, 0.0  ;;  %v863_v58 = vadd.f32 %v799_v41, %v735_v48  ;;  %v1161_v14 = vpop.f32.mrb[30].mxu0  ;;  %v1193_v15 = vpop.f32.mrb[30].mxu1 }
 0x130   :  { %v895_v59 = vadd.f32 %v831_v43, %v767_v49  ;;  %v924_v60 = vmax.f32 %v860_v52, 0.0  ;;  %v956_v61 = vmax.f32 %v892_v53, 0.0  ;;  %v861_v62 = vadd.f32 %v797_v50, %v733_v54  ;;  %v490_v22 = vpop.f32.mrb[31].mxu0  ;;  %v618_v23 = vpop.f32.mrb[31].mxu1 }
 0x131   :  { %v893_v63 = vadd.f32 %v829_v51, %v765_v55  ;;  %990 = vst [vmem:[%s1927_s5 + $0xd0] sm:$0xff] %v926_v56  ;;  %1022 = vst [vmem:[%s1927_s5 + $0x1d0] sm:$0xff] %v958_v57  ;;  %v927_v2 = vmax.f32 %v863_v58, 0.0  ;;  %v667_v4 = vmul.f32 %v1160_v0, %v1403_v40  ;;  %v699_v5 = vmul.f32 %v1192_v1, %v1403_v40 }
 0x132   :  { %v959_v3 = vmax.f32 %v895_v59, 0.0  ;;  %988 = vst [vmem:[%s1927_s5 + $0xc0] sm:$0xff] %v924_v60  ;;  %1020 = vst [vmem:[%s1927_s5 + $0x1c0] sm:$0xff] %v956_v61  ;;  %v925_v8 = vmax.f32 %v861_v62, 0.0  ;;  %v665_v12 = vmul.f32 %v1403_v40, %v487_v6  ;;  %v697_v13 = vmul.f32 %v1403_v40, %v615_v7 }
 0x133   :  { %v957_v9 = vmax.f32 %v893_v63, 0.0  ;;  %991 = vst [vmem:[%s1927_s5 + $0xd8] sm:$0xff] %v927_v2  ;;  %v738_v16 = vadd.f32 %v1408_v42, %v667_v4  ;;  %v770_v17 = vadd.f32 %v1408_v42, %v699_v5  ;;  %v668_v20 = vmul.f32 %v1161_v14, %v1403_v40 }
 0x134   :  { %1023 = vst [vmem:[%s1927_s5 + $0x1d8] sm:$0xff] %v959_v3  ;;  %v700_v21 = vmul.f32 %v1193_v15, %v1403_v40  ;;  %989 = vst [vmem:[%s1927_s5 + $0xc8] sm:$0xff] %v925_v8  ;;  %v736_v24 = vadd.f32 %v1408_v42, %v665_v12  ;;  %v768_v25 = vadd.f32 %v1408_v42, %v697_v13 }
 0x135   :  { %1021 = vst [vmem:[%s1927_s5 + $0x1c8] sm:$0xff] %v957_v9  ;;  %v666_v28 = vmul.f32 %v1403_v40, %v490_v22  ;;  %v698_v29 = vmul.f32 %v1403_v40, %v618_v23  ;;  %v866_v30 = vadd.f32 %v802_v10, %v738_v16  ;;  %v898_v31 = vadd.f32 %v834_v11, %v770_v17 }
 0x136   :  { %v739_v32 = vadd.f32 %v1408_v42, %v668_v20  ;;  %v771_v33 = vadd.f32 %v1408_v42, %v700_v21  ;;  %v864_v36 = vadd.f32 %v800_v18, %v736_v24  ;;  %v896_v37 = vadd.f32 %v832_v19, %v768_v25 }
 0x137   :  { %v737_v38 = vadd.f32 %v1408_v42, %v666_v28  ;;  %v769_v40 = vadd.f32 %v1408_v42, %v698_v29  ;;  %v930_v39 = vmax.f32 %v866_v30, 0.0  ;;  %v962_v41 = vmax.f32 %v898_v31, 0.0 }
 0x138   :  { %v867_v43 = vadd.f32 %v803_v26, %v739_v32  ;;  %v899_v44 = vadd.f32 %v835_v27, %v771_v33  ;;  %v928_v45 = vmax.f32 %v864_v36, 0.0  ;;  %v960_v46 = vmax.f32 %v896_v37, 0.0 }
 0x139   :  { %v865_v47 = vadd.f32 %v801_v34, %v737_v38  ;;  %v897_v48 = vadd.f32 %v833_v35, %v769_v40  ;;  %994 = vst [vmem:[%s1927_s5 + $0xf0] sm:$0xff] %v930_v39  ;;  %1026 = vst [vmem:[%s1927_s5 + $0x1f0] sm:$0xff] %v962_v41 }
 0x13a   :  { %v931_v49 = vmax.f32 %v867_v43, 0.0  ;;  %v963_v50 = vmax.f32 %v899_v44, 0.0  ;;  %992 = vst [vmem:[%s1927_s5 + $0xe0] sm:$0xff] %v928_v45  ;;  %1024 = vst [vmem:[%s1927_s5 + $0x1e0] sm:$0xff] %v960_v46 }
 0x13b   :  { %v929_v42 = vmax.f32 %v865_v47, 0.0  ;;  %v961_v51 = vmax.f32 %v897_v48, 0.0 }
 0x13c   :  { %995 = vst [vmem:[%s1927_s5 + $0xf8] sm:$0xff] %v931_v49  ;;  %1027 = vst [vmem:[%s1927_s5 + $0x1f8] sm:$0xff] %v963_v50 }
 0x13d   :  { %993 = vst [vmem:[%s1927_s5 + $0xe8] sm:$0xff] %v929_v42  ;;  %1025 = vst [vmem:[%s1927_s5 + $0x1e8] sm:$0xff] %v961_v51 }

// kernel: resnet_encoder_forward.28
= control target key start
LH: loop header
LB: loop body
LE: loop exit
PB: predicated region body
PF: predicated region fallthrough
CT: control target
= control target key end

     0   :  { %s534_s1 = inlined_call_operand.vmem [shape: bf16[128,128], index: 1, kind: input, shape index: {}]   ;;  %s535_s0 = inlined_call_operand.vmem [shape: bf16[128,128], index: 0, kind: input, shape index: {}]   ;;  %s536_s2 = inlined_call_operand.vmem [shape: f32[1,128], index: 2, kind: input, shape index: {}]   ;;  %s537_s3 = inlined_call_operand.vmem [shape: f32[1,128], index: 3, kind: input, shape index: {}]   ;;  %s538_s4 = inlined_call_operand.vmem [shape: f32[128,128], index: 4, kind: output, shape index: {}]  }
   0x1   :  { %v391_v0 = vld [vmem:[%s534_s1] sm:$0xff]   ;;  %v392_v1 = vld [vmem:[%s534_s1 + $0x8] sm:$0xff]   ;;  %v393_v2 = vld [vmem:[%s534_s1 + $0x10] sm:$0xff]  }
   0x2   :  { %343 = vmatprep.subr.bf16.mxu0 %v391_v0  ;;  %375 = vmatprep.subr.bf16.mxu1 %v391_v0  ;;  %v394_v3 = vld [vmem:[%s534_s1 + $0x18] sm:$0xff]   ;;  %v399_v4 = vld [vmem:[%s535_s0] sm:$0xff]   ;;  %v396_v7 = vld [vmem:[%s534_s1 + $0x28] sm:$0xff]  }
   0x3   :  { %344 = vmatpush3.bf16.msra.mxu0 %v391_v0  ;;  %383 = vmatpush3.bf16.msra.mxu1 %v391_v0  ;;  %v400_v5 = vld [vmem:[%s535_s0 + $0x20] sm:$0xff]   ;;  %v397_v8 = vld [vmem:[%s534_s1 + $0x30] sm:$0xff]   ;;  %v398_v9 = vld [vmem:[%s534_s1 + $0x38] sm:$0xff]  }
   0x4   :  { %345 = vmatprep.subr.bf16.mxu0 %v392_v1  ;;  %376 = vmatprep.subr.bf16.mxu1 %v392_v1  ;;  %v395_v6 = vld [vmem:[%s534_s1 + $0x20] sm:$0xff]   ;;  %v401_v10 = vld [vmem:[%s535_s0 + $0x8] sm:$0xff]   ;;  %v403_v12 = vld [vmem:[%s535_s0 + $0x10] sm:$0xff]  }
   0x5   :  { %359 = vmatprep.mubr.bf16.mxu0 %v399_v4  ;;  %367 = vmatprep.mubr.bf16.mxu1 %v400_v5  ;;  %v402_v11 = vld [vmem:[%s535_s0 + $0x28] sm:$0xff]   ;;  %v404_v13 = vld [vmem:[%s535_s0 + $0x30] sm:$0xff]   ;;  %v405_v14 = vld [vmem:[%s535_s0 + $0x18] sm:$0xff]  }
   0x6   :  { %v406_v15 = vld [vmem:[%s535_s0 + $0x38] sm:$0xff]   ;;  %v325_v16 = vld [vmem:[%s536_s2] ss:$0 sm:$0xff] }
   0x7   :  { %346 = vmatpush3.bf16.msra.mxu0 %v392_v1  ;;  %384 = vmatpush3.bf16.msra.mxu1 %v392_v1  ;;  %v326_v18 = vld [vmem:[%s537_s3] ss:$0 sm:$0xff] }
   0x8   :  { %347 = vmatprep.subr.bf16.mxu0 %v393_v2  ;;  %377 = vmatprep.subr.bf16.mxu1 %v393_v2 }
   0xb   :  { %348 = vmatpush3.bf16.msra.mxu0 %v393_v2  ;;  %385 = vmatpush3.bf16.msra.mxu1 %v393_v2 }
   0xc   :  { %349 = vmatprep.subr.bf16.mxu0 %v394_v3  ;;  %378 = vmatprep.subr.bf16.mxu1 %v394_v3 }
   0xf   :  { %350 = vmatpush3.bf16.msra.mxu0 %v394_v3  ;;  %386 = vmatpush3.bf16.msra.mxu1 %v394_v3 }
  0x10   :  { %351 = vmatprep.subr.bf16.mxu0 %v395_v6  ;;  %379 = vmatprep.subr.bf16.mxu1 %v395_v6 }
  0x13   :  { %352 = vmatpush3.bf16.msra.mxu0 %v395_v6  ;;  %387 = vmatpush3.bf16.msra.mxu1 %v395_v6 }
  0x14   :  { %353 = vmatprep.subr.bf16.mxu0 %v396_v7  ;;  %380 = vmatprep.subr.bf16.mxu1 %v396_v7 }
  0x17   :  { %354 = vmatpush3.bf16.msra.mxu0 %v396_v7  ;;  %388 = vmatpush3.bf16.msra.mxu1 %v396_v7 }
  0x18   :  { %355 = vmatprep.subr.bf16.mxu0 %v397_v8  ;;  %381 = vmatprep.subr.bf16.mxu1 %v397_v8 }
  0x1b   :  { %356 = vmatpush3.bf16.msra.mxu0 %v397_v8  ;;  %389 = vmatpush3.bf16.msra.mxu1 %v397_v8 }
  0x1c   :  { %357 = vmatprep.subr.bf16.mxu0 %v398_v9  ;;  %382 = vmatprep.subr.bf16.mxu1 %v398_v9 }
  0x1f   :  { %358 = vmatpush3.bf16.msra.mxu0 %v398_v9  ;;  %390 = vmatpush3.bf16.msra.mxu1 %v398_v9 }
  0x22   :  { %360 = vmatmul.mubr.bf16.vlgmr.msra.gmra.mrb[0].mxu0 %v401_v10  ;;  %368 = vmatmul.mubr.bf16.vlgmr.msra.gmra.mrb[0].mxu1 %v402_v11 }
  0x23   :  { %363 = vmatprep.mubr.bf16.mxu0 %v403_v12  ;;  %371 = vmatprep.mubr.bf16.mxu1 %v404_v13 }
  0x2a   :  { %364 = vmatmul.mubr.bf16.gmra.mrb[4].mxu0 %v405_v14  ;;  %372 = vmatmul.mubr.bf16.gmra.mrb[4].mxu1 %v406_v15 }
  0xf5   :  { %v361_v17 = vpop.f32.mrb[0].mxu0  ;;  %v369_v19 = vpop.f32.mrb[0].mxu1 }
  0xf6   :  { %v252_v20 = vmul.f32 %v361_v17, %v325_v16  ;;  %v260_v21 = vmul.f32 %v369_v19, %v325_v16  ;;  %v180_v22 = vpop.f32.mrb[1].mxu0  ;;  %v212_v23 = vpop.f32.mrb[1].mxu1 }
  0xf7   :  { %v250_v24 = vmul.f32 %v325_v16, %v180_v22  ;;  %v258_v25 = vmul.f32 %v325_v16, %v212_v23  ;;  %v362_v26 = vpop.f32.mrb[2].mxu0  ;;  %v370_v27 = vpop.f32.mrb[2].mxu1 }
  0xf8   :  { %v275_v28 = vadd.f32 %v326_v18, %v252_v20  ;;  %v283_v29 = vadd.f32 %v326_v18, %v260_v21  ;;  %v253_v30 = vmul.f32 %v362_v26, %v325_v16  ;;  %v261_v31 = vmul.f32 %v370_v27, %v325_v16  ;;  %v183_v32 = vpop.f32.mrb[3].mxu0  ;;  %v215_v33 = vpop.f32.mrb[3].mxu1 }
  0xf9   :  { %v273_v34 = vadd.f32 %v326_v18, %v250_v24  ;;  %v281_v35 = vadd.f32 %v326_v18, %v258_v25  ;;  %v251_v36 = vmul.f32 %v325_v16, %v183_v32  ;;  %v259_v37 = vmul.f32 %v325_v16, %v215_v33 }
  0xfa   :  { %291 = vst [vmem:[%s538_s4 + $0x10] sm:$0xff] %v275_v28  ;;  %299 = vst [vmem:[%s538_s4 + $0x50] sm:$0xff] %v283_v29  ;;  %v276_v38 = vadd.f32 %v326_v18, %v253_v30  ;;  %v284_v39 = vadd.f32 %v326_v18, %v261_v31 }
  0xfb   :  { %289 = vst [vmem:[%s538_s4] sm:$0xff] %v273_v34  ;;  %297 = vst [vmem:[%s538_s4 + $0x40] sm:$0xff] %v281_v35  ;;  %v274_v40 = vadd.f32 %v326_v18, %v251_v36  ;;  %v282_v41 = vadd.f32 %v326_v18, %v259_v37 }
  0xfc   :  { %292 = vst [vmem:[%s538_s4 + $0x18] sm:$0xff] %v276_v38  ;;  %300 = vst [vmem:[%s538_s4 + $0x58] sm:$0xff] %v284_v39 }
  0xfd   :  { %290 = vst [vmem:[%s538_s4 + $0x8] sm:$0xff] %v274_v40  ;;  %298 = vst [vmem:[%s538_s4 + $0x48] sm:$0xff] %v282_v41  ;;  %v365_v42 = vpop.f32.mrb[4].mxu0  ;;  %v373_v43 = vpop.f32.mrb[4].mxu1 }
  0xfe   :  { %v256_v44 = vmul.f32 %v365_v42, %v325_v16  ;;  %v264_v45 = vmul.f32 %v373_v43, %v325_v16  ;;  %v196_v46 = vpop.f32.mrb[5].mxu0  ;;  %v228_v47 = vpop.f32.mrb[5].mxu1 }
  0xff   :  { %v254_v48 = vmul.f32 %v325_v16, %v196_v46  ;;  %v262_v49 = vmul.f32 %v325_v16, %v228_v47  ;;  %v366_v50 = vpop.f32.mrb[6].mxu0  ;;  %v374_v51 = vpop.f32.mrb[6].mxu1 }
 0x100   :  { %v279_v52 = vadd.f32 %v326_v18, %v256_v44  ;;  %v287_v53 = vadd.f32 %v326_v18, %v264_v45  ;;  %v257_v54 = vmul.f32 %v366_v50, %v325_v16  ;;  %v265_v55 = vmul.f32 %v374_v51, %v325_v16  ;;  %v199_v56 = vpop.f32.mrb[7].mxu0  ;;  %v231_v57 = vpop.f32.mrb[7].mxu1 }
 0x101   :  { %v277_v58 = vadd.f32 %v326_v18, %v254_v48  ;;  %v285_v59 = vadd.f32 %v326_v18, %v262_v49  ;;  %v255_v60 = vmul.f32 %v325_v16, %v199_v56  ;;  %v263_v61 = vmul.f32 %v325_v16, %v231_v57 }
 0x102   :  { %295 = vst [vmem:[%s538_s4 + $0x30] sm:$0xff] %v279_v52  ;;  %303 = vst [vmem:[%s538_s4 + $0x70] sm:$0xff] %v287_v53  ;;  %v280_v62 = vadd.f32 %v326_v18, %v257_v54  ;;  %v288_v63 = vadd.f32 %v326_v18, %v265_v55 }
 0x103   :  { %293 = vst [vmem:[%s538_s4 + $0x20] sm:$0xff] %v277_v58  ;;  %301 = vst [vmem:[%s538_s4 + $0x60] sm:$0xff] %v285_v59  ;;  %v278_v0 = vadd.f32 %v326_v18, %v255_v60  ;;  %v286_v1 = vadd.f32 %v326_v18, %v263_v61 }
 0x104   :  { %296 = vst [vmem:[%s538_s4 + $0x38] sm:$0xff] %v280_v62  ;;  %304 = vst [vmem:[%s538_s4 + $0x78] sm:$0xff] %v288_v63 }
 0x105   :  { %294 = vst [vmem:[%s538_s4 + $0x28] sm:$0xff] %v278_v0  ;;  %302 = vst [vmem:[%s538_s4 + $0x68] sm:$0xff] %v286_v1 }

// kernel: resnet_encoder_forward.27
= control target key start
LH: loop header
LB: loop body
LE: loop exit
PB: predicated region body
PF: predicated region fallthrough
CT: control target
= control target key end

     0   :  { %s568_s1 = inlined_call_operand.vmem [shape: bf16[128,128], index: 1, kind: input, shape index: {}]   ;;  %s569_s0 = inlined_call_operand.vmem [shape: bf16[128,128], index: 0, kind: input, shape index: {}]   ;;  %s570_s2 = inlined_call_operand.vmem [shape: f32[1,128], index: 2, kind: input, shape index: {}]   ;;  %s571_s3 = inlined_call_operand.vmem [shape: f32[1,128], index: 3, kind: input, shape index: {}]   ;;  %s572_s4 = inlined_call_operand.vmem [shape: f32[128,128], index: 4, kind: output, shape index: {}]  }
   0x1   :  { %v407_v0 = vld [vmem:[%s568_s1] sm:$0xff]   ;;  %v408_v1 = vld [vmem:[%s568_s1 + $0x8] sm:$0xff]   ;;  %v409_v2 = vld [vmem:[%s568_s1 + $0x10] sm:$0xff]  }
   0x2   :  { %359 = vmatprep.subr.bf16.mxu0 %v407_v0  ;;  %391 = vmatprep.subr.bf16.mxu1 %v407_v0  ;;  %v410_v3 = vld [vmem:[%s568_s1 + $0x18] sm:$0xff]   ;;  %v415_v4 = vld [vmem:[%s569_s0] sm:$0xff]   ;;  %v412_v7 = vld [vmem:[%s568_s1 + $0x28] sm:$0xff]  }
   0x3   :  { %360 = vmatpush3.bf16.msra.mxu0 %v407_v0  ;;  %399 = vmatpush3.bf16.msra.mxu1 %v407_v0  ;;  %v416_v5 = vld [vmem:[%s569_s0 + $0x20] sm:$0xff]   ;;  %v413_v8 = vld [vmem:[%s568_s1 + $0x30] sm:$0xff]   ;;  %v414_v9 = vld [vmem:[%s568_s1 + $0x38] sm:$0xff]  }
   0x4   :  { %361 = vmatprep.subr.bf16.mxu0 %v408_v1  ;;  %392 = vmatprep.subr.bf16.mxu1 %v408_v1  ;;  %v411_v6 = vld [vmem:[%s568_s1 + $0x20] sm:$0xff]   ;;  %v417_v10 = vld [vmem:[%s569_s0 + $0x8] sm:$0xff]   ;;  %v419_v12 = vld [vmem:[%s569_s0 + $0x10] sm:$0xff]  }
   0x5   :  { %375 = vmatprep.mubr.bf16.mxu0 %v415_v4  ;;  %383 = vmatprep.mubr.bf16.mxu1 %v416_v5  ;;  %v418_v11 = vld [vmem:[%s569_s0 + $0x28] sm:$0xff]   ;;  %v420_v13 = vld [vmem:[%s569_s0 + $0x30] sm:$0xff]   ;;  %v421_v14 = vld [vmem:[%s569_s0 + $0x18] sm:$0xff]  }
   0x6   :  { %v422_v15 = vld [vmem:[%s569_s0 + $0x38] sm:$0xff]   ;;  %v341_v16 = vld [vmem:[%s570_s2] ss:$0 sm:$0xff] }
   0x7   :  { %362 = vmatpush3.bf16.msra.mxu0 %v408_v1  ;;  %400 = vmatpush3.bf16.msra.mxu1 %v408_v1  ;;  %v502_v18 = vld [vmem:[%s571_s3] ss:$0 sm:$0xff] }
   0x8   :  { %363 = vmatprep.subr.bf16.mxu0 %v409_v2  ;;  %393 = vmatprep.subr.bf16.mxu1 %v409_v2 }
   0xb   :  { %364 = vmatpush3.bf16.msra.mxu0 %v409_v2  ;;  %401 = vmatpush3.bf16.msra.mxu1 %v409_v2 }
   0xc   :  { %365 = vmatprep.subr.bf16.mxu0 %v410_v3  ;;  %394 = vmatprep.subr.bf16.mxu1 %v410_v3 }
   0xf   :  { %366 = vmatpush3.bf16.msra.mxu0 %v410_v3  ;;  %402 = vmatpush3.bf16.msra.mxu1 %v410_v3 }
  0x10   :  { %367 = vmatprep.subr.bf16.mxu0 %v411_v6  ;;  %395 = vmatprep.subr.bf16.mxu1 %v411_v6 }
  0x13   :  { %368 = vmatpush3.bf16.msra.mxu0 %v411_v6  ;;  %403 = vmatpush3.bf16.msra.mxu1 %v411_v6 }
  0x14   :  { %369 = vmatprep.subr.bf16.mxu0 %v412_v7  ;;  %396 = vmatprep.subr.bf16.mxu1 %v412_v7 }
  0x17   :  { %370 = vmatpush3.bf16.msra.mxu0 %v412_v7  ;;  %404 = vmatpush3.bf16.msra.mxu1 %v412_v7 }
  0x18   :  { %371 = vmatprep.subr.bf16.mxu0 %v413_v8  ;;  %397 = vmatprep.subr.bf16.mxu1 %v413_v8 }
  0x1b   :  { %372 = vmatpush3.bf16.msra.mxu0 %v413_v8  ;;  %405 = vmatpush3.bf16.msra.mxu1 %v413_v8 }
  0x1c   :  { %373 = vmatprep.subr.bf16.mxu0 %v414_v9  ;;  %398 = vmatprep.subr.bf16.mxu1 %v414_v9 }
  0x1f   :  { %374 = vmatpush3.bf16.msra.mxu0 %v414_v9  ;;  %406 = vmatpush3.bf16.msra.mxu1 %v414_v9 }
  0x22   :  { %376 = vmatmul.mubr.bf16.vlgmr.msra.gmra.mrb[0].mxu0 %v417_v10  ;;  %384 = vmatmul.mubr.bf16.vlgmr.msra.gmra.mrb[0].mxu1 %v418_v11 }
  0x23   :  { %379 = vmatprep.mubr.bf16.mxu0 %v419_v12  ;;  %387 = vmatprep.mubr.bf16.mxu1 %v420_v13 }
  0x2a   :  { %380 = vmatmul.mubr.bf16.gmra.mrb[4].mxu0 %v421_v14  ;;  %388 = vmatmul.mubr.bf16.gmra.mrb[4].mxu1 %v422_v15 }
  0xf5   :  { %v377_v17 = vpop.f32.mrb[0].mxu0  ;;  %v385_v19 = vpop.f32.mrb[0].mxu1 }
  0xf6   :  { %v252_v20 = vmul.f32 %v377_v17, %v341_v16  ;;  %v260_v21 = vmul.f32 %v385_v19, %v341_v16  ;;  %v180_v22 = vpop.f32.mrb[1].mxu0  ;;  %v212_v23 = vpop.f32.mrb[1].mxu1 }
  0xf7   :  { %v250_v24 = vmul.f32 %v341_v16, %v180_v22  ;;  %v258_v25 = vmul.f32 %v341_v16, %v212_v23  ;;  %v378_v26 = vpop.f32.mrb[2].mxu0  ;;  %v386_v27 = vpop.f32.mrb[2].mxu1 }
  0xf8   :  { %v275_v28 = vadd.f32 %v502_v18, %v252_v20  ;;  %v283_v29 = vadd.f32 %v502_v18, %v260_v21  ;;  %v253_v30 = vmul.f32 %v378_v26, %v341_v16  ;;  %v261_v31 = vmul.f32 %v386_v27, %v341_v16  ;;  %v183_v32 = vpop.f32.mrb[3].mxu0  ;;  %v215_v33 = vpop.f32.mrb[3].mxu1 }
  0xf9   :  { %v273_v34 = vadd.f32 %v502_v18, %v250_v24  ;;  %v281_v35 = vadd.f32 %v502_v18, %v258_v25  ;;  %v251_v36 = vmul.f32 %v341_v16, %v183_v32  ;;  %v259_v37 = vmul.f32 %v341_v16, %v215_v33 }
  0xfa   :  { %v291_v38 = vmax.f32 %v275_v28, 0.0  ;;  %v299_v39 = vmax.f32 %v283_v29, 0.0  ;;  %v276_v40 = vadd.f32 %v502_v18, %v253_v30  ;;  %v284_v41 = vadd.f32 %v502_v18, %v261_v31 }
  0xfb   :  { %v289_v42 = vmax.f32 %v273_v34, 0.0  ;;  %v297_v43 = vmax.f32 %v281_v35, 0.0  ;;  %v274_v44 = vadd.f32 %v502_v18, %v251_v36  ;;  %v282_v45 = vadd.f32 %v502_v18, %v259_v37 }
  0xfc   :  { %307 = vst [vmem:[%s572_s4 + $0x10] sm:$0xff] %v291_v38  ;;  %315 = vst [vmem:[%s572_s4 + $0x50] sm:$0xff] %v299_v39  ;;  %v292_v46 = vmax.f32 %v276_v40, 0.0  ;;  %v300_v47 = vmax.f32 %v284_v41, 0.0 }
  0xfd   :  { %305 = vst [vmem:[%s572_s4] sm:$0xff] %v289_v42  ;;  %313 = vst [vmem:[%s572_s4 + $0x40] sm:$0xff] %v297_v43  ;;  %v290_v48 = vmax.f32 %v274_v44, 0.0  ;;  %v298_v49 = vmax.f32 %v282_v45, 0.0  ;;  %v381_v50 = vpop.f32.mrb[4].mxu0  ;;  %v389_v51 = vpop.f32.mrb[4].mxu1 }
  0xfe   :  { %308 = vst [vmem:[%s572_s4 + $0x18] sm:$0xff] %v292_v46  ;;  %316 = vst [vmem:[%s572_s4 + $0x58] sm:$0xff] %v300_v47  ;;  %v256_v52 = vmul.f32 %v381_v50, %v341_v16  ;;  %v264_v53 = vmul.f32 %v389_v51, %v341_v16  ;;  %v196_v54 = vpop.f32.mrb[5].mxu0  ;;  %v228_v55 = vpop.f32.mrb[5].mxu1 }
  0xff   :  { %306 = vst [vmem:[%s572_s4 + $0x8] sm:$0xff] %v290_v48  ;;  %314 = vst [vmem:[%s572_s4 + $0x48] sm:$0xff] %v298_v49  ;;  %v254_v56 = vmul.f32 %v341_v16, %v196_v54  ;;  %v262_v57 = vmul.f32 %v341_v16, %v228_v55  ;;  %v382_v58 = vpop.f32.mrb[6].mxu0  ;;  %v390_v59 = vpop.f32.mrb[6].mxu1 }
 0x100   :  { %v279_v60 = vadd.f32 %v502_v18, %v256_v52  ;;  %v287_v61 = vadd.f32 %v502_v18, %v264_v53  ;;  %v257_v62 = vmul.f32 %v382_v58, %v341_v16  ;;  %v265_v63 = vmul.f32 %v390_v59, %v341_v16  ;;  %v199_v0 = vpop.f32.mrb[7].mxu0  ;;  %v231_v1 = vpop.f32.mrb[7].mxu1 }
 0x101   :  { %v277_v2 = vadd.f32 %v502_v18, %v254_v56  ;;  %v285_v3 = vadd.f32 %v502_v18, %v262_v57  ;;  %v255_v4 = vmul.f32 %v341_v16, %v199_v0  ;;  %v263_v5 = vmul.f32 %v341_v16, %v231_v1 }
 0x102   :  { %v295_v6 = vmax.f32 %v279_v60, 0.0  ;;  %v303_v7 = vmax.f32 %v287_v61, 0.0  ;;  %v280_v8 = vadd.f32 %v502_v18, %v257_v62  ;;  %v288_v9 = vadd.f32 %v502_v18, %v265_v63 }
 0x103   :  { %v293_v10 = vmax.f32 %v277_v2, 0.0  ;;  %v301_v11 = vmax.f32 %v285_v3, 0.0  ;;  %v278_v12 = vadd.f32 %v502_v18, %v255_v4  ;;  %v286_v13 = vadd.f32 %v502_v18, %v263_v5 }
 0x104   :  { %311 = vst [vmem:[%s572_s4 + $0x30] sm:$0xff] %v295_v6  ;;  %319 = vst [vmem:[%s572_s4 + $0x70] sm:$0xff] %v303_v7  ;;  %v296_v14 = vmax.f32 %v280_v8, 0.0  ;;  %v304_v15 = vmax.f32 %v288_v9, 0.0 }
 0x105   :  { %309 = vst [vmem:[%s572_s4 + $0x20] sm:$0xff] %v293_v10  ;;  %317 = vst [vmem:[%s572_s4 + $0x60] sm:$0xff] %v301_v11  ;;  %v294_v16 = vmax.f32 %v278_v12, 0.0  ;;  %v302_v17 = vmax.f32 %v286_v13, 0.0 }
 0x106   :  { %312 = vst [vmem:[%s572_s4 + $0x38] sm:$0xff] %v296_v14  ;;  %320 = vst [vmem:[%s572_s4 + $0x78] sm:$0xff] %v304_v15 }
 0x107   :  { %310 = vst [vmem:[%s572_s4 + $0x28] sm:$0xff] %v294_v16  ;;  %318 = vst [vmem:[%s572_s4 + $0x68] sm:$0xff] %v302_v17 }

// kernel: resnet_encoder_forward.29
= control target key start
LH: loop header
LB: loop body
LE: loop exit
PB: predicated region body
PF: predicated region fallthrough
CT: control target
= control target key end

     0   :  { %s874_s1 = inlined_call_operand.vmem [shape: bf16[256,128], index: 1, kind: input, shape index: {}]   ;;  %s875_s0 = inlined_call_operand.vmem [shape: bf16[128,256], index: 0, kind: input, shape index: {}]   ;;  %s876_s2 = inlined_call_operand.vmem [shape: f32[1,128], index: 2, kind: input, shape index: {}]   ;;  %s877_s3 = inlined_call_operand.vmem [shape: f32[1,128], index: 3, kind: input, shape index: {}]   ;;  %s878_s4 = inlined_call_operand.vmem [shape: f32[128,128], index: 4, kind: input, shape index: {}]   ;;  %s879_s5 = inlined_call_operand.vmem [shape: f32[128,128], index: 5, kind: output, shape index: {}]  }
   0x1   :  { %v570_v0 = vld [vmem:[%s874_s1 + $0x40] sm:$0xff]   ;;  %v572_v2 = vld [vmem:[%s874_s1 + $0x48] sm:$0xff]   ;;  %v574_v4 = vld [vmem:[%s874_s1 + $0x50] sm:$0xff]  }
   0x2   :  { %v571_v1 = vld [vmem:[%s874_s1] sm:$0xff]   ;;  %490 = vmatprep.subr.bf16.mxu0 %v570_v0  ;;  %554 = vmatprep.subr.bf16.mxu1 %v570_v0  ;;  %v573_v3 = vld [vmem:[%s874_s1 + $0x8] sm:$0xff]   ;;  %v575_v5 = vld [vmem:[%s874_s1 + $0x10] sm:$0xff]  }
   0x3   :  { %491 = vmatpush3.bf16.msra.mxu0 %v571_v1  ;;  %562 = vmatpush3.bf16.msra.mxu1 %v571_v1  ;;  %v576_v6 = vld [vmem:[%s874_s1 + $0x58] sm:$0xff]   ;;  %v578_v8 = vld [vmem:[%s874_s1 + $0x60] sm:$0xff]   ;;  %v580_v10 = vld [vmem:[%s874_s1 + $0x68] sm:$0xff]  }
   0x4   :  { %492 = vmatprep.subr.bf16.mxu0 %v572_v2  ;;  %555 = vmatprep.subr.bf16.mxu1 %v572_v2  ;;  %v577_v7 = vld [vmem:[%s874_s1 + $0x18] sm:$0xff]   ;;  %v579_v9 = vld [vmem:[%s874_s1 + $0x20] sm:$0xff]   ;;  %v581_v13 = vld [vmem:[%s874_s1 + $0x28] sm:$0xff]  }
   0x5   :  { %v588_v11 = vld [vmem:[%s875_s0 + $0x4] ss:$8 sps:$4 sm:$0xff]   ;;  %v582_v14 = vld [vmem:[%s874_s1 + $0x70] sm:$0xff]   ;;  %v584_v16 = vld [vmem:[%s874_s1 + $0x78] sm:$0xff]  }
   0x6   :  { %v591_v12 = vld [vmem:[%s875_s0 + $0x44] ss:$8 sps:$4 sm:$0xff]   ;;  %277 = vmatprep.mubr.bf16.mxu0 %v588_v11  ;;  %v583_v15 = vld [vmem:[%s874_s1 + $0x30] sm:$0xff]   ;;  %v585_v17 = vld [vmem:[%s874_s1 + $0x38] sm:$0xff]  }
   0x7   :  { %493 = vmatpush3.bf16.msra.mxu0 %v573_v3  ;;  %563 = vmatpush3.bf16.msra.mxu1 %v573_v3  ;;  %v586_v18 = vld [vmem:[%s875_s0] ss:$8 sps:$4 sm:$0xff]   ;;  %v592_v20 = vld [vmem:[%s875_s0 + $0x14] ss:$8 sps:$4 sm:$0xff]   ;;  %v596_v22 = vld [vmem:[%s875_s0 + $0x10] ss:$8 sps:$4 sm:$0xff]  }
   0x8   :  { %494 = vmatprep.subr.bf16.mxu0 %v574_v4  ;;  %556 = vmatprep.subr.bf16.mxu1 %v574_v4  ;;  %v589_v19 = vld [vmem:[%s875_s0 + $0x40] ss:$8 sps:$4 sm:$0xff]   ;;  %v594_v21 = vld [vmem:[%s875_s0 + $0x54] ss:$8 sps:$4 sm:$0xff]   ;;  %v597_v23 = vld [vmem:[%s875_s0 + $0x50] ss:$8 sps:$4 sm:$0xff]  }
   0x9   :  { %309 = vmatprep.mubr.bf16.mxu1 %v591_v12  ;;  %v598_v24 = vld [vmem:[%s875_s0 + $0x24] ss:$8 sps:$4 sm:$0xff]   ;;  %v602_v26 = vld [vmem:[%s875_s0 + $0x20] ss:$8 sps:$4 sm:$0xff]   ;;  %v604_v28 = vld [vmem:[%s875_s0 + $0x34] ss:$8 sps:$4 sm:$0xff]  }
   0xa   :  { %v600_v25 = vld [vmem:[%s875_s0 + $0x64] ss:$8 sps:$4 sm:$0xff]   ;;  %v603_v27 = vld [vmem:[%s875_s0 + $0x60] ss:$8 sps:$4 sm:$0xff]   ;;  %v606_v29 = vld [vmem:[%s875_s0 + $0x74] ss:$8 sps:$4 sm:$0xff]  }
   0xb   :  { %495 = vmatpush3.bf16.msra.mxu0 %v575_v5  ;;  %564 = vmatpush3.bf16.msra.mxu1 %v575_v5  ;;  %v608_v30 = vld [vmem:[%s875_s0 + $0x30] ss:$8 sps:$4 sm:$0xff]   ;;  %v739_v35 = vld [vmem:[%s876_s2] ss:$0 sm:$0xff]  ;;  %v389_v54 = vld [vmem:[%s878_s4 + $0x8] sm:$0xff] }
   0xc   :  { %496 = vmatprep.subr.bf16.mxu0 %v576_v6  ;;  %557 = vmatprep.subr.bf16.mxu1 %v576_v6  ;;  %v609_v31 = vld [vmem:[%s875_s0 + $0x70] ss:$8 sps:$4 sm:$0xff]   ;;  %v744_v41 = vld [vmem:[%s877_s3] ss:$0 sm:$0xff]  ;;  %v397_v55 = vld [vmem:[%s878_s4 + $0x48] sm:$0xff] }
   0xd   :  { %v388_v48 = vld [vmem:[%s878_s4] sm:$0xff] }
   0xe   :  { %v396_v49 = vld [vmem:[%s878_s4 + $0x40] sm:$0xff] }
   0xf   :  { %497 = vmatpush3.bf16.msra.mxu0 %v577_v7  ;;  %565 = vmatpush3.bf16.msra.mxu1 %v577_v7 }
  0x10   :  { %498 = vmatprep.subr.bf16.mxu0 %v578_v8  ;;  %558 = vmatprep.subr.bf16.mxu1 %v578_v8 }
  0x13   :  { %499 = vmatpush3.bf16.msra.mxu0 %v579_v9  ;;  %566 = vmatpush3.bf16.msra.mxu1 %v579_v9 }
  0x14   :  { %500 = vmatprep.subr.bf16.mxu0 %v580_v10  ;;  %559 = vmatprep.subr.bf16.mxu1 %v580_v10 }
  0x17   :  { %501 = vmatpush3.bf16.msra.mxu0 %v581_v13  ;;  %567 = vmatpush3.bf16.msra.mxu1 %v581_v13 }
  0x18   :  { %502 = vmatprep.subr.bf16.mxu0 %v582_v14  ;;  %560 = vmatprep.subr.bf16.mxu1 %v582_v14 }
  0x1b   :  { %503 = vmatpush3.bf16.msra.mxu0 %v583_v15  ;;  %568 = vmatpush3.bf16.msra.mxu1 %v583_v15 }
  0x1c   :  { %504 = vmatprep.subr.bf16.mxu0 %v584_v16  ;;  %561 = vmatprep.subr.bf16.mxu1 %v584_v16  ;;  %v390_v16 = vld [vmem:[%s878_s4 + $0x10] sm:$0xff] }
  0x1f   :  { %505 = vmatpush3.bf16.msra.mxu0 %v585_v17  ;;  %569 = vmatpush3.bf16.msra.mxu1 %v585_v17  ;;  %v398_v17 = vld [vmem:[%s878_s4 + $0x50] sm:$0xff] }
  0x22   :  { %278 = vmatmul.mubr.bf16.vlgmr.msra.gmra.mrb[0].mxu0 %v586_v18  ;;  %310 = vmatmul.mubr.bf16.vlgmr.msra.gmra.mrb[0].mxu1 %v589_v19 }
  0x23   :  { %285 = vmatprep.mubr.bf16.mxu0 %v592_v20  ;;  %317 = vmatprep.mubr.bf16.mxu1 %v594_v21 }
  0x2a   :  { %286 = vmatmul.mubr.bf16.gmra.mrb[4].mxu0 %v596_v22  ;;  %318 = vmatmul.mubr.bf16.gmra.mrb[4].mxu1 %v597_v23  ;;  %v391_v22 = vld [vmem:[%s878_s4 + $0x18] sm:$0xff] }
  0x2b   :  { %293 = vmatprep.mubr.bf16.mxu0 %v598_v24  ;;  %325 = vmatprep.mubr.bf16.mxu1 %v600_v25  ;;  %v399_v23 = vld [vmem:[%s878_s4 + $0x58] sm:$0xff] }
  0x32   :  { %294 = vmatmul.mubr.bf16.gmra.mrb[8].mxu0 %v602_v26  ;;  %326 = vmatmul.mubr.bf16.gmra.mrb[8].mxu1 %v603_v27 }
  0x33   :  { %301 = vmatprep.mubr.bf16.mxu0 %v604_v28  ;;  %333 = vmatprep.mubr.bf16.mxu1 %v606_v29 }
  0x3a   :  { %302 = vmatmul.mubr.bf16.gmra.mrb[12].mxu0 %v608_v30  ;;  %334 = vmatmul.mubr.bf16.gmra.mrb[12].mxu1 %v609_v31 }
  0xf5   :  { %v506_v32 = vpop.f32.mrb[0].mxu0  ;;  %v530_v33 = vpop.f32.mrb[0].mxu1 }
  0xf6   :  { %v507_v34 = vpop.f32.mrb[1].mxu0  ;;  %v531_v36 = vpop.f32.mrb[1].mxu1 }
  0xf7   :  { %v508_v37 = vadd.f32 %v507_v34, %v506_v32  ;;  %v532_v38 = vadd.f32 %v531_v36, %v530_v33  ;;  %v509_v39 = vpop.f32.mrb[2].mxu0  ;;  %v533_v40 = vpop.f32.mrb[2].mxu1 }
  0xf8   :  { %v510_v42 = vpop.f32.mrb[3].mxu0  ;;  %v534_v43 = vpop.f32.mrb[3].mxu1 }
  0xf9   :  { %v349_v44 = vmul.f32 %v508_v37, %v739_v35  ;;  %v357_v45 = vmul.f32 %v532_v38, %v739_v35  ;;  %v511_v46 = vadd.f32 %v510_v42, %v509_v39  ;;  %v535_v47 = vadd.f32 %v534_v43, %v533_v40 }
  0xfb   :  { %v372_v50 = vadd.f32 %v744_v41, %v349_v44  ;;  %v380_v51 = vadd.f32 %v744_v41, %v357_v45  ;;  %v350_v52 = vmul.f32 %v511_v46, %v739_v35  ;;  %v358_v53 = vmul.f32 %v535_v47, %v739_v35 }
  0xfd   :  { %v404_v56 = vadd.f32 %v388_v48, %v372_v50  ;;  %v412_v57 = vadd.f32 %v396_v49, %v380_v51  ;;  %v373_v58 = vadd.f32 %v744_v41, %v350_v52  ;;  %v381_v59 = vadd.f32 %v744_v41, %v358_v53  ;;  %v512_v60 = vpop.f32.mrb[4].mxu0  ;;  %v536_v61 = vpop.f32.mrb[4].mxu1  ;;  %v392_v48 = vld [vmem:[%s878_s4 + $0x20] sm:$0xff] }
  0xfe   :  { %v513_v62 = vpop.f32.mrb[5].mxu0  ;;  %v537_v63 = vpop.f32.mrb[5].mxu1  ;;  %v400_v49 = vld [vmem:[%s878_s4 + $0x60] sm:$0xff] }
  0xff   :  { %v420_v0 = vmax.f32 %v404_v56, 0.0  ;;  %v428_v1 = vmax.f32 %v412_v57, 0.0  ;;  %v405_v2 = vadd.f32 %v389_v54, %v373_v58  ;;  %v413_v3 = vadd.f32 %v397_v55, %v381_v59  ;;  %v515_v4 = vpop.f32.mrb[6].mxu0  ;;  %v539_v5 = vpop.f32.mrb[6].mxu1  ;;  %v393_v58 = vld [vmem:[%s878_s4 + $0x28] sm:$0xff] }
 0x100   :  { %v514_v6 = vadd.f32 %v513_v62, %v512_v60  ;;  %v538_v7 = vadd.f32 %v537_v63, %v536_v61  ;;  %v516_v8 = vpop.f32.mrb[7].mxu0  ;;  %v540_v9 = vpop.f32.mrb[7].mxu1  ;;  %v401_v59 = vld [vmem:[%s878_s4 + $0x68] sm:$0xff] }
 0x101   :  { %436 = vst [vmem:[%s879_s5] sm:$0xff] %v420_v0  ;;  %444 = vst [vmem:[%s879_s5 + $0x40] sm:$0xff] %v428_v1  ;;  %v421_v10 = vmax.f32 %v405_v2, 0.0  ;;  %v429_v11 = vmax.f32 %v413_v3, 0.0  ;;  %v517_v12 = vadd.f32 %v516_v8, %v515_v4  ;;  %v541_v13 = vadd.f32 %v540_v9, %v539_v5 }
 0x102   :  { %v351_v14 = vmul.f32 %v514_v6, %v739_v35  ;;  %v359_v15 = vmul.f32 %v538_v7, %v739_v35 }
 0x103   :  { %437 = vst [vmem:[%s879_s5 + $0x8] sm:$0xff] %v421_v10  ;;  %445 = vst [vmem:[%s879_s5 + $0x48] sm:$0xff] %v429_v11  ;;  %v352_v18 = vmul.f32 %v517_v12, %v739_v35  ;;  %v360_v19 = vmul.f32 %v541_v13, %v739_v35 }
 0x104   :  { %v374_v20 = vadd.f32 %v744_v41, %v351_v14  ;;  %v382_v21 = vadd.f32 %v744_v41, %v359_v15 }
 0x105   :  { %v375_v24 = vadd.f32 %v744_v41, %v352_v18  ;;  %v383_v25 = vadd.f32 %v744_v41, %v360_v19  ;;  %v518_v26 = vpop.f32.mrb[8].mxu0  ;;  %v542_v27 = vpop.f32.mrb[8].mxu1  ;;  %v394_v18 = vld [vmem:[%s878_s4 + $0x30] sm:$0xff] }
 0x106   :  { %v406_v28 = vadd.f32 %v390_v16, %v374_v20  ;;  %v414_v29 = vadd.f32 %v398_v17, %v382_v21  ;;  %v519_v30 = vpop.f32.mrb[9].mxu0  ;;  %v543_v31 = vpop.f32.mrb[9].mxu1  ;;  %v402_v19 = vld [vmem:[%s878_s4 + $0x70] sm:$0xff] }
 0x107   :  { %v407_v32 = vadd.f32 %v391_v22, %v375_v24  ;;  %v415_v33 = vadd.f32 %v399_v23, %v383_v25  ;;  %v520_v34 = vadd.f32 %v519_v30, %v518_v26  ;;  %v544_v36 = vadd.f32 %v543_v31, %v542_v27  ;;  %v521_v37 = vpop.f32.mrb[10].mxu0  ;;  %v545_v38 = vpop.f32.mrb[10].mxu1  ;;  %v395_v24 = vld [vmem:[%s878_s4 + $0x38] sm:$0xff] }
 0x108   :  { %v422_v39 = vmax.f32 %v406_v28, 0.0  ;;  %v430_v40 = vmax.f32 %v414_v29, 0.0  ;;  %v522_v42 = vpop.f32.mrb[11].mxu0  ;;  %v546_v43 = vpop.f32.mrb[11].mxu1  ;;  %v403_v25 = vld [vmem:[%s878_s4 + $0x78] sm:$0xff] }
 0x109   :  { %v423_v44 = vmax.f32 %v407_v32, 0.0  ;;  %v431_v45 = vmax.f32 %v415_v33, 0.0  ;;  %v353_v46 = vmul.f32 %v520_v34, %v739_v35  ;;  %v361_v47 = vmul.f32 %v544_v36, %v739_v35 }
 0x10a   :  { %438 = vst [vmem:[%s879_s5 + $0x10] sm:$0xff] %v422_v39  ;;  %446 = vst [vmem:[%s879_s5 + $0x50] sm:$0xff] %v430_v40  ;;  %v523_v50 = vadd.f32 %v522_v42, %v521_v37  ;;  %v547_v51 = vadd.f32 %v546_v43, %v545_v38 }
 0x10b   :  { %439 = vst [vmem:[%s879_s5 + $0x18] sm:$0xff] %v423_v44  ;;  %447 = vst [vmem:[%s879_s5 + $0x58] sm:$0xff] %v431_v45  ;;  %v376_v52 = vadd.f32 %v744_v41, %v353_v46  ;;  %v384_v53 = vadd.f32 %v744_v41, %v361_v47 }
 0x10c   :  { %v354_v54 = vmul.f32 %v523_v50, %v739_v35  ;;  %v362_v55 = vmul.f32 %v547_v51, %v739_v35 }
 0x10d   :  { %v408_v56 = vadd.f32 %v392_v48, %v376_v52  ;;  %v416_v57 = vadd.f32 %v400_v49, %v384_v53  ;;  %v524_v60 = vpop.f32.mrb[12].mxu0  ;;  %v548_v61 = vpop.f32.mrb[12].mxu1 }
 0x10e   :  { %v377_v62 = vadd.f32 %v744_v41, %v354_v54  ;;  %v385_v63 = vadd.f32 %v744_v41, %v362_v55  ;;  %v525_v0 = vpop.f32.mrb[13].mxu0  ;;  %v549_v1 = vpop.f32.mrb[13].mxu1 }
 0x10f   :  { %v424_v2 = vmax.f32 %v408_v56, 0.0  ;;  %v432_v3 = vmax.f32 %v416_v57, 0.0  ;;  %v526_v4 = vadd.f32 %v525_v0, %v524_v60  ;;  %v550_v5 = vadd.f32 %v549_v1, %v548_v61  ;;  %v527_v6 = vpop.f32.mrb[14].mxu0  ;;  %v551_v7 = vpop.f32.mrb[14].mxu1 }
 0x110   :  { %v409_v8 = vadd.f32 %v393_v58, %v377_v62  ;;  %v417_v9 = vadd.f32 %v401_v59, %v385_v63  ;;  %v528_v10 = vpop.f32.mrb[15].mxu0  ;;  %v552_v11 = vpop.f32.mrb[15].mxu1 }
 0x111   :  { %440 = vst [vmem:[%s879_s5 + $0x20] sm:$0xff] %v424_v2  ;;  %448 = vst [vmem:[%s879_s5 + $0x60] sm:$0xff] %v432_v3  ;;  %v355_v12 = vmul.f32 %v526_v4, %v739_v35  ;;  %v363_v13 = vmul.f32 %v550_v5, %v739_v35  ;;  %v529_v14 = vadd.f32 %v528_v10, %v527_v6 }
 0x112   :  { %v553_v15 = vadd.f32 %v552_v11, %v551_v7  ;;  %v425_v16 = vmax.f32 %v409_v8, 0.0  ;;  %v433_v17 = vmax.f32 %v417_v9, 0.0 }
 0x113   :  { %v378_v20 = vadd.f32 %v744_v41, %v355_v12  ;;  %v386_v21 = vadd.f32 %v744_v41, %v363_v13  ;;  %v356_v22 = vmul.f32 %v529_v14, %v739_v35 }
 0x114   :  { %v364_v23 = vmul.f32 %v553_v15, %v739_v35  ;;  %441 = vst [vmem:[%s879_s5 + $0x28] sm:$0xff] %v425_v16  ;;  %449 = vst [vmem:[%s879_s5 + $0x68] sm:$0xff] %v433_v17 }
 0x115   :  { %v410_v26 = vadd.f32 %v394_v18, %v378_v20  ;;  %v418_v27 = vadd.f32 %v402_v19, %v386_v21  ;;  %v379_v35 = vadd.f32 %v744_v41, %v356_v22 }
 0x116   :  { %v387_v28 = vadd.f32 %v744_v41, %v364_v23 }
 0x117   :  { %v426_v29 = vmax.f32 %v410_v26, 0.0  ;;  %v434_v30 = vmax.f32 %v418_v27, 0.0  ;;  %v411_v31 = vadd.f32 %v395_v24, %v379_v35 }
 0x118   :  { %v419_v32 = vadd.f32 %v403_v25, %v387_v28 }
 0x119   :  { %442 = vst [vmem:[%s879_s5 + $0x30] sm:$0xff] %v426_v29  ;;  %450 = vst [vmem:[%s879_s5 + $0x70] sm:$0xff] %v434_v30  ;;  %v427_v33 = vmax.f32 %v411_v31, 0.0 }
 0x11a   :  { %v435_v34 = vmax.f32 %v419_v32, 0.0 }
 0x11b   :  { %443 = vst [vmem:[%s879_s5 + $0x38] sm:$0xff] %v427_v33 }
 0x11c   :  { %451 = vst [vmem:[%s879_s5 + $0x78] sm:$0xff] %v435_v34 }

// kernel: resnet_encoder_forward.30
= control target key start
LH: loop header
LB: loop body
LE: loop exit
PB: predicated region body
PF: predicated region fallthrough
CT: control target
= control target key end

     0   :  { %s786_s1 = inlined_call_operand.vmem [shape: bf16[256,128], index: 1, kind: input, shape index: {}]   ;;  %s787_s0 = inlined_call_operand.vmem [shape: bf16[128,256], index: 0, kind: input, shape index: {}]   ;;  %s788_s2 = inlined_call_operand.vmem [shape: f32[1,128], index: 2, kind: input, shape index: {}]   ;;  %s789_s3 = inlined_call_operand.vmem [shape: f32[1,128], index: 3, kind: input, shape index: {}]   ;;  %s790_s4 = inlined_call_operand.vmem [shape: f32[128,128], index: 4, kind: output, shape index: {}]  }
   0x1   :  { %v535_v0 = vld [vmem:[%s786_s1 + $0x40] sm:$0xff]   ;;  %v537_v2 = vld [vmem:[%s786_s1 + $0x48] sm:$0xff]   ;;  %v539_v4 = vld [vmem:[%s786_s1 + $0x50] sm:$0xff]  }
   0x2   :  { %v536_v1 = vld [vmem:[%s786_s1] sm:$0xff]   ;;  %455 = vmatprep.subr.bf16.mxu0 %v535_v0  ;;  %519 = vmatprep.subr.bf16.mxu1 %v535_v0  ;;  %v538_v3 = vld [vmem:[%s786_s1 + $0x8] sm:$0xff]   ;;  %v540_v5 = vld [vmem:[%s786_s1 + $0x10] sm:$0xff]  }
   0x3   :  { %456 = vmatpush3.bf16.msra.mxu0 %v536_v1  ;;  %527 = vmatpush3.bf16.msra.mxu1 %v536_v1  ;;  %v541_v6 = vld [vmem:[%s786_s1 + $0x58] sm:$0xff]   ;;  %v543_v8 = vld [vmem:[%s786_s1 + $0x60] sm:$0xff]   ;;  %v545_v10 = vld [vmem:[%s786_s1 + $0x68] sm:$0xff]  }
   0x4   :  { %457 = vmatprep.subr.bf16.mxu0 %v537_v2  ;;  %520 = vmatprep.subr.bf16.mxu1 %v537_v2  ;;  %v542_v7 = vld [vmem:[%s786_s1 + $0x18] sm:$0xff]   ;;  %v544_v9 = vld [vmem:[%s786_s1 + $0x20] sm:$0xff]   ;;  %v546_v13 = vld [vmem:[%s786_s1 + $0x28] sm:$0xff]  }
   0x5   :  { %v553_v11 = vld [vmem:[%s787_s0 + $0x4] ss:$8 sps:$4 sm:$0xff]   ;;  %v547_v14 = vld [vmem:[%s786_s1 + $0x70] sm:$0xff]   ;;  %v549_v16 = vld [vmem:[%s786_s1 + $0x78] sm:$0xff]  }
   0x6   :  { %v556_v12 = vld [vmem:[%s787_s0 + $0x44] ss:$8 sps:$4 sm:$0xff]   ;;  %274 = vmatprep.mubr.bf16.mxu0 %v553_v11  ;;  %v548_v15 = vld [vmem:[%s786_s1 + $0x30] sm:$0xff]   ;;  %v550_v17 = vld [vmem:[%s786_s1 + $0x38] sm:$0xff]  }
   0x7   :  { %458 = vmatpush3.bf16.msra.mxu0 %v538_v3  ;;  %528 = vmatpush3.bf16.msra.mxu1 %v538_v3  ;;  %v551_v18 = vld [vmem:[%s787_s0] ss:$8 sps:$4 sm:$0xff]   ;;  %v557_v20 = vld [vmem:[%s787_s0 + $0x14] ss:$8 sps:$4 sm:$0xff]   ;;  %v561_v22 = vld [vmem:[%s787_s0 + $0x10] ss:$8 sps:$4 sm:$0xff]  }
   0x8   :  { %459 = vmatprep.subr.bf16.mxu0 %v539_v4  ;;  %521 = vmatprep.subr.bf16.mxu1 %v539_v4  ;;  %v554_v19 = vld [vmem:[%s787_s0 + $0x40] ss:$8 sps:$4 sm:$0xff]   ;;  %v559_v21 = vld [vmem:[%s787_s0 + $0x54] ss:$8 sps:$4 sm:$0xff]   ;;  %v562_v23 = vld [vmem:[%s787_s0 + $0x50] ss:$8 sps:$4 sm:$0xff]  }
   0x9   :  { %306 = vmatprep.mubr.bf16.mxu1 %v556_v12  ;;  %v563_v24 = vld [vmem:[%s787_s0 + $0x24] ss:$8 sps:$4 sm:$0xff]   ;;  %v567_v26 = vld [vmem:[%s787_s0 + $0x20] ss:$8 sps:$4 sm:$0xff]   ;;  %v569_v28 = vld [vmem:[%s787_s0 + $0x34] ss:$8 sps:$4 sm:$0xff]  }
   0xa   :  { %v565_v25 = vld [vmem:[%s787_s0 + $0x64] ss:$8 sps:$4 sm:$0xff]   ;;  %v568_v27 = vld [vmem:[%s787_s0 + $0x60] ss:$8 sps:$4 sm:$0xff]   ;;  %v571_v29 = vld [vmem:[%s787_s0 + $0x74] ss:$8 sps:$4 sm:$0xff]  }
   0xb   :  { %460 = vmatpush3.bf16.msra.mxu0 %v540_v5  ;;  %529 = vmatpush3.bf16.msra.mxu1 %v540_v5  ;;  %v573_v30 = vld [vmem:[%s787_s0 + $0x30] ss:$8 sps:$4 sm:$0xff]   ;;  %v699_v35 = vld [vmem:[%s788_s2] ss:$0 sm:$0xff] }
   0xc   :  { %461 = vmatprep.subr.bf16.mxu0 %v541_v6  ;;  %522 = vmatprep.subr.bf16.mxu1 %v541_v6  ;;  %v574_v31 = vld [vmem:[%s787_s0 + $0x70] ss:$8 sps:$4 sm:$0xff]   ;;  %v704_v41 = vld [vmem:[%s789_s3] ss:$0 sm:$0xff] }
   0xf   :  { %462 = vmatpush3.bf16.msra.mxu0 %v542_v7  ;;  %530 = vmatpush3.bf16.msra.mxu1 %v542_v7 }
  0x10   :  { %463 = vmatprep.subr.bf16.mxu0 %v543_v8  ;;  %523 = vmatprep.subr.bf16.mxu1 %v543_v8 }
  0x13   :  { %464 = vmatpush3.bf16.msra.mxu0 %v544_v9  ;;  %531 = vmatpush3.bf16.msra.mxu1 %v544_v9 }
  0x14   :  { %465 = vmatprep.subr.bf16.mxu0 %v545_v10  ;;  %524 = vmatprep.subr.bf16.mxu1 %v545_v10 }
  0x17   :  { %466 = vmatpush3.bf16.msra.mxu0 %v546_v13  ;;  %532 = vmatpush3.bf16.msra.mxu1 %v546_v13 }
  0x18   :  { %467 = vmatprep.subr.bf16.mxu0 %v547_v14  ;;  %525 = vmatprep.subr.bf16.mxu1 %v547_v14 }
  0x1b   :  { %468 = vmatpush3.bf16.msra.mxu0 %v548_v15  ;;  %533 = vmatpush3.bf16.msra.mxu1 %v548_v15 }
  0x1c   :  { %469 = vmatprep.subr.bf16.mxu0 %v549_v16  ;;  %526 = vmatprep.subr.bf16.mxu1 %v549_v16 }
  0x1f   :  { %470 = vmatpush3.bf16.msra.mxu0 %v550_v17  ;;  %534 = vmatpush3.bf16.msra.mxu1 %v550_v17 }
  0x22   :  { %275 = vmatmul.mubr.bf16.vlgmr.msra.gmra.mrb[0].mxu0 %v551_v18  ;;  %307 = vmatmul.mubr.bf16.vlgmr.msra.gmra.mrb[0].mxu1 %v554_v19 }
  0x23   :  { %282 = vmatprep.mubr.bf16.mxu0 %v557_v20  ;;  %314 = vmatprep.mubr.bf16.mxu1 %v559_v21 }
  0x2a   :  { %283 = vmatmul.mubr.bf16.gmra.mrb[4].mxu0 %v561_v22  ;;  %315 = vmatmul.mubr.bf16.gmra.mrb[4].mxu1 %v562_v23 }
  0x2b   :  { %290 = vmatprep.mubr.bf16.mxu0 %v563_v24  ;;  %322 = vmatprep.mubr.bf16.mxu1 %v565_v25 }
  0x32   :  { %291 = vmatmul.mubr.bf16.gmra.mrb[8].mxu0 %v567_v26  ;;  %323 = vmatmul.mubr.bf16.gmra.mrb[8].mxu1 %v568_v27 }
  0x33   :  { %298 = vmatprep.mubr.bf16.mxu0 %v569_v28  ;;  %330 = vmatprep.mubr.bf16.mxu1 %v571_v29 }
  0x3a   :  { %299 = vmatmul.mubr.bf16.gmra.mrb[12].mxu0 %v573_v30  ;;  %331 = vmatmul.mubr.bf16.gmra.mrb[12].mxu1 %v574_v31 }
  0xf5   :  { %v471_v32 = vpop.f32.mrb[0].mxu0  ;;  %v495_v33 = vpop.f32.mrb[0].mxu1 }
  0xf6   :  { %v472_v34 = vpop.f32.mrb[1].mxu0  ;;  %v496_v36 = vpop.f32.mrb[1].mxu1 }
  0xf7   :  { %v473_v37 = vadd.f32 %v472_v34, %v471_v32  ;;  %v497_v38 = vadd.f32 %v496_v36, %v495_v33  ;;  %v474_v39 = vpop.f32.mrb[2].mxu0  ;;  %v498_v40 = vpop.f32.mrb[2].mxu1 }
  0xf8   :  { %v475_v42 = vpop.f32.mrb[3].mxu0  ;;  %v499_v43 = vpop.f32.mrb[3].mxu1 }
  0xf9   :  { %v346_v44 = vmul.f32 %v473_v37, %v699_v35  ;;  %v354_v45 = vmul.f32 %v497_v38, %v699_v35  ;;  %v476_v46 = vadd.f32 %v475_v42, %v474_v39  ;;  %v500_v47 = vadd.f32 %v499_v43, %v498_v40 }
  0xfb   :  { %v369_v48 = vadd.f32 %v704_v41, %v346_v44  ;;  %v377_v49 = vadd.f32 %v704_v41, %v354_v45  ;;  %v347_v50 = vmul.f32 %v476_v46, %v699_v35  ;;  %v355_v51 = vmul.f32 %v500_v47, %v699_v35 }
  0xfd   :  { %v385_v52 = vmax.f32 %v369_v48, 0.0  ;;  %v393_v53 = vmax.f32 %v377_v49, 0.0  ;;  %v370_v54 = vadd.f32 %v704_v41, %v347_v50  ;;  %v378_v55 = vadd.f32 %v704_v41, %v355_v51  ;;  %v477_v56 = vpop.f32.mrb[4].mxu0  ;;  %v501_v57 = vpop.f32.mrb[4].mxu1 }
  0xfe   :  { %v478_v58 = vpop.f32.mrb[5].mxu0  ;;  %v502_v59 = vpop.f32.mrb[5].mxu1 }
  0xff   :  { %401 = vst [vmem:[%s790_s4] sm:$0xff] %v385_v52  ;;  %409 = vst [vmem:[%s790_s4 + $0x40] sm:$0xff] %v393_v53  ;;  %v386_v60 = vmax.f32 %v370_v54, 0.0  ;;  %v394_v61 = vmax.f32 %v378_v55, 0.0  ;;  %v479_v62 = vadd.f32 %v478_v58, %v477_v56  ;;  %v503_v63 = vadd.f32 %v502_v59, %v501_v57  ;;  %v480_v0 = vpop.f32.mrb[6].mxu0  ;;  %v504_v1 = vpop.f32.mrb[6].mxu1 }
 0x100   :  { %v481_v2 = vpop.f32.mrb[7].mxu0  ;;  %v505_v3 = vpop.f32.mrb[7].mxu1 }
 0x101   :  { %402 = vst [vmem:[%s790_s4 + $0x8] sm:$0xff] %v386_v60  ;;  %410 = vst [vmem:[%s790_s4 + $0x48] sm:$0xff] %v394_v61  ;;  %v348_v4 = vmul.f32 %v479_v62, %v699_v35  ;;  %v356_v5 = vmul.f32 %v503_v63, %v699_v35  ;;  %v482_v6 = vadd.f32 %v481_v2, %v480_v0 }
 0x102   :  { %v506_v7 = vadd.f32 %v505_v3, %v504_v1 }
 0x103   :  { %v371_v8 = vadd.f32 %v704_v41, %v348_v4  ;;  %v379_v9 = vadd.f32 %v704_v41, %v356_v5  ;;  %v349_v10 = vmul.f32 %v482_v6, %v699_v35 }
 0x104   :  { %v357_v11 = vmul.f32 %v506_v7, %v699_v35 }
 0x105   :  { %v387_v12 = vmax.f32 %v371_v8, 0.0  ;;  %v395_v13 = vmax.f32 %v379_v9, 0.0  ;;  %v372_v14 = vadd.f32 %v704_v41, %v349_v10  ;;  %v483_v16 = vpop.f32.mrb[8].mxu0  ;;  %v507_v17 = vpop.f32.mrb[8].mxu1 }
 0x106   :  { %v380_v15 = vadd.f32 %v704_v41, %v357_v11  ;;  %v484_v18 = vpop.f32.mrb[9].mxu0  ;;  %v508_v19 = vpop.f32.mrb[9].mxu1 }
 0x107   :  { %403 = vst [vmem:[%s790_s4 + $0x10] sm:$0xff] %v387_v12  ;;  %411 = vst [vmem:[%s790_s4 + $0x50] sm:$0xff] %v395_v13  ;;  %v388_v20 = vmax.f32 %v372_v14, 0.0  ;;  %v485_v22 = vadd.f32 %v484_v18, %v483_v16  ;;  %v509_v23 = vadd.f32 %v508_v19, %v507_v17  ;;  %v486_v24 = vpop.f32.mrb[10].mxu0  ;;  %v510_v25 = vpop.f32.mrb[10].mxu1 }
 0x108   :  { %v396_v21 = vmax.f32 %v380_v15, 0.0  ;;  %v487_v26 = vpop.f32.mrb[11].mxu0  ;;  %v511_v27 = vpop.f32.mrb[11].mxu1 }
 0x109   :  { %404 = vst [vmem:[%s790_s4 + $0x18] sm:$0xff] %v388_v20  ;;  %v350_v28 = vmul.f32 %v485_v22, %v699_v35  ;;  %v358_v29 = vmul.f32 %v509_v23, %v699_v35  ;;  %v488_v30 = vadd.f32 %v487_v26, %v486_v24  ;;  %v512_v31 = vadd.f32 %v511_v27, %v510_v25 }
 0x10a   :  { %412 = vst [vmem:[%s790_s4 + $0x58] sm:$0xff] %v396_v21 }
 0x10b   :  { %v373_v32 = vadd.f32 %v704_v41, %v350_v28  ;;  %v381_v33 = vadd.f32 %v704_v41, %v358_v29  ;;  %v351_v34 = vmul.f32 %v488_v30, %v699_v35  ;;  %v359_v36 = vmul.f32 %v512_v31, %v699_v35 }
 0x10d   :  { %v389_v37 = vmax.f32 %v373_v32, 0.0  ;;  %v397_v38 = vmax.f32 %v381_v33, 0.0  ;;  %v374_v39 = vadd.f32 %v704_v41, %v351_v34  ;;  %v382_v40 = vadd.f32 %v704_v41, %v359_v36  ;;  %v489_v42 = vpop.f32.mrb[12].mxu0  ;;  %v513_v43 = vpop.f32.mrb[12].mxu1 }
 0x10e   :  { %v490_v44 = vpop.f32.mrb[13].mxu0  ;;  %v514_v45 = vpop.f32.mrb[13].mxu1 }
 0x10f   :  { %405 = vst [vmem:[%s790_s4 + $0x20] sm:$0xff] %v389_v37  ;;  %413 = vst [vmem:[%s790_s4 + $0x60] sm:$0xff] %v397_v38  ;;  %v390_v46 = vmax.f32 %v374_v39, 0.0  ;;  %v398_v47 = vmax.f32 %v382_v40, 0.0  ;;  %v491_v48 = vadd.f32 %v490_v44, %v489_v42  ;;  %v515_v49 = vadd.f32 %v514_v45, %v513_v43  ;;  %v492_v50 = vpop.f32.mrb[14].mxu0  ;;  %v516_v51 = vpop.f32.mrb[14].mxu1 }
 0x110   :  { %v493_v52 = vpop.f32.mrb[15].mxu0  ;;  %v517_v53 = vpop.f32.mrb[15].mxu1 }
 0x111   :  { %406 = vst [vmem:[%s790_s4 + $0x28] sm:$0xff] %v390_v46  ;;  %414 = vst [vmem:[%s790_s4 + $0x68] sm:$0xff] %v398_v47  ;;  %v352_v54 = vmul.f32 %v491_v48, %v699_v35  ;;  %v360_v55 = vmul.f32 %v515_v49, %v699_v35  ;;  %v494_v56 = vadd.f32 %v493_v52, %v492_v50 }
 0x112   :  { %v518_v57 = vadd.f32 %v517_v53, %v516_v51 }
 0x113   :  { %v375_v58 = vadd.f32 %v704_v41, %v352_v54  ;;  %v383_v59 = vadd.f32 %v704_v41, %v360_v55  ;;  %v353_v60 = vmul.f32 %v494_v56, %v699_v35 }
 0x114   :  { %v361_v61 = vmul.f32 %v518_v57, %v699_v35 }
 0x115   :  { %v391_v62 = vmax.f32 %v375_v58, 0.0  ;;  %v399_v63 = vmax.f32 %v383_v59, 0.0  ;;  %v376_v0 = vadd.f32 %v704_v41, %v353_v60 }
 0x116   :  { %v384_v1 = vadd.f32 %v704_v41, %v361_v61 }
 0x117   :  { %407 = vst [vmem:[%s790_s4 + $0x30] sm:$0xff] %v391_v62  ;;  %415 = vst [vmem:[%s790_s4 + $0x70] sm:$0xff] %v399_v63  ;;  %v392_v2 = vmax.f32 %v376_v0, 0.0 }
 0x118   :  { %v400_v3 = vmax.f32 %v384_v1, 0.0 }
 0x119   :  { %408 = vst [vmem:[%s790_s4 + $0x38] sm:$0xff] %v392_v2 }
 0x11a   :  { %416 = vst [vmem:[%s790_s4 + $0x78] sm:$0xff] %v400_v3 }

// kernel: resnet_encoder_forward.33
= control target key start
LH: loop header
LB: loop body
LE: loop exit
PB: predicated region body
PF: predicated region fallthrough
CT: control target
= control target key end

     0   :  { %s302_s1 = inlined_call_operand.vmem [shape: bf16[128,128], index: 1, kind: input, shape index: {}]   ;;  %s303_s0 = inlined_call_operand.vmem [shape: bf16[32,128], index: 0, kind: input, shape index: {}]   ;;  %s304_s2 = inlined_call_operand.vmem [shape: f32[1,128], index: 2, kind: input, shape index: {}]   ;;  %s305_s3 = inlined_call_operand.vmem [shape: f32[1,128], index: 3, kind: input, shape index: {}]   ;;  %s306_s4 = inlined_call_operand.vmem [shape: f32[32,128], index: 4, kind: output, shape index: {}]  }
   0x1   :  { %v219_v0 = vld [vmem:[%s302_s1] sm:$0xff]   ;;  %v220_v1 = vld [vmem:[%s302_s1 + $0x8] sm:$0xff]   ;;  %v221_v2 = vld [vmem:[%s302_s1 + $0x10] sm:$0xff]  }
   0x2   :  { %199 = vmatprep.subr.bf16.mxu0 %v219_v0  ;;  %v222_v3 = vld [vmem:[%s302_s1 + $0x18] sm:$0xff]   ;;  %v227_v4 = vld [vmem:[%s303_s0] sm:$0xff]   ;;  %v224_v6 = vld [vmem:[%s302_s1 + $0x28] sm:$0xff]  }
   0x3   :  { %200 = vmatpush3.bf16.msra.mxu0 %v219_v0  ;;  %215 = vmatprep.mubr.bf16.mxu0 %v227_v4  ;;  %v223_v5 = vld [vmem:[%s302_s1 + $0x20] sm:$0xff]   ;;  %v225_v7 = vld [vmem:[%s302_s1 + $0x30] sm:$0xff]   ;;  %v226_v8 = vld [vmem:[%s302_s1 + $0x38] sm:$0xff]  }
   0x4   :  { %201 = vmatprep.subr.bf16.mxu0 %v220_v1  ;;  %v228_v9 = vld [vmem:[%s303_s0 + $0x8] sm:$0xff]   ;;  %v187_v10 = vld [vmem:[%s304_s2] ss:$0 sm:$0xff] }
   0x5   :  { %v188_v12 = vld [vmem:[%s305_s3] ss:$0 sm:$0xff] }
   0x7   :  { %202 = vmatpush3.bf16.msra.mxu0 %v220_v1 }
   0x8   :  { %203 = vmatprep.subr.bf16.mxu0 %v221_v2 }
   0xb   :  { %204 = vmatpush3.bf16.msra.mxu0 %v221_v2 }
   0xc   :  { %205 = vmatprep.subr.bf16.mxu0 %v222_v3 }
   0xf   :  { %206 = vmatpush3.bf16.msra.mxu0 %v222_v3 }
  0x10   :  { %207 = vmatprep.subr.bf16.mxu0 %v223_v5 }
  0x13   :  { %208 = vmatpush3.bf16.msra.mxu0 %v223_v5 }
  0x14   :  { %209 = vmatprep.subr.bf16.mxu0 %v224_v6 }
  0x17   :  { %210 = vmatpush3.bf16.msra.mxu0 %v224_v6 }
  0x18   :  { %211 = vmatprep.subr.bf16.mxu0 %v225_v7 }
  0x1b   :  { %212 = vmatpush3.bf16.msra.mxu0 %v225_v7 }
  0x1c   :  { %213 = vmatprep.subr.bf16.mxu0 %v226_v8 }
  0x1f   :  { %214 = vmatpush3.bf16.msra.mxu0 %v226_v8 }
  0x22   :  { %216 = vmatmul.mubr.bf16.vlgmr.msra.gmra.mrb[0].mxu0 %v228_v9 }
  0xf5   :  { %v217_v11 = vpop.f32.mrb[0].mxu0 }
  0xf6   :  { %v156_v13 = vmul.f32 %v217_v11, %v187_v10  ;;  %v132_v14 = vpop.f32.mrb[1].mxu0 }
  0xf7   :  { %v154_v15 = vmul.f32 %v187_v10, %v132_v14  ;;  %v218_v16 = vpop.f32.mrb[2].mxu0 }
  0xf8   :  { %v167_v17 = vadd.f32 %v188_v12, %v156_v13  ;;  %v157_v18 = vmul.f32 %v218_v16, %v187_v10  ;;  %v135_v19 = vpop.f32.mrb[3].mxu0 }
  0xf9   :  { %v165_v20 = vadd.f32 %v188_v12, %v154_v15  ;;  %v155_v21 = vmul.f32 %v187_v10, %v135_v19 }
  0xfa   :  { %171 = vst [vmem:[%s306_s4 + $0x10] sm:$0xff] %v167_v17  ;;  %v168_v22 = vadd.f32 %v188_v12, %v157_v18 }
  0xfb   :  { %169 = vst [vmem:[%s306_s4] sm:$0xff] %v165_v20  ;;  %v166_v23 = vadd.f32 %v188_v12, %v155_v21 }
  0xfc   :  { %172 = vst [vmem:[%s306_s4 + $0x18] sm:$0xff] %v168_v22 }
  0xfd   :  { %170 = vst [vmem:[%s306_s4 + $0x8] sm:$0xff] %v166_v23 }

// kernel: resnet_encoder_forward.32
= control target key start
LH: loop header
LB: loop body
LE: loop exit
PB: predicated region body
PF: predicated region fallthrough
CT: control target
= control target key end

     0   :  { %s444_s1 = inlined_call_operand.vmem [shape: bf16[256,128], index: 1, kind: input, shape index: {}]   ;;  %s445_s0 = inlined_call_operand.vmem [shape: bf16[32,256], index: 0, kind: input, shape index: {}]   ;;  %s446_s2 = inlined_call_operand.vmem [shape: f32[1,128], index: 2, kind: input, shape index: {}]   ;;  %s447_s3 = inlined_call_operand.vmem [shape: f32[1,128], index: 3, kind: input, shape index: {}]   ;;  %s448_s4 = inlined_call_operand.vmem [shape: f32[32,128], index: 4, kind: output, shape index: {}]  }
   0x1   :  { %v319_v0 = vld [vmem:[%s444_s1 + $0x40] sm:$0xff]   ;;  %v321_v2 = vld [vmem:[%s444_s1 + $0x48] sm:$0xff]   ;;  %v323_v4 = vld [vmem:[%s444_s1 + $0x50] sm:$0xff]  }
   0x2   :  { %v320_v1 = vld [vmem:[%s444_s1] sm:$0xff]   ;;  %275 = vmatprep.subr.bf16.mxu0 %v319_v0  ;;  %303 = vmatprep.subr.bf16.mxu1 %v319_v0  ;;  %v322_v3 = vld [vmem:[%s444_s1 + $0x8] sm:$0xff]   ;;  %v324_v5 = vld [vmem:[%s444_s1 + $0x10] sm:$0xff]  }
   0x3   :  { %276 = vmatpush3.bf16.msra.mxu0 %v320_v1  ;;  %311 = vmatpush3.bf16.msra.mxu1 %v320_v1  ;;  %v325_v6 = vld [vmem:[%s444_s1 + $0x58] sm:$0xff]   ;;  %v327_v8 = vld [vmem:[%s444_s1 + $0x60] sm:$0xff]   ;;  %v329_v10 = vld [vmem:[%s444_s1 + $0x68] sm:$0xff]  }
   0x4   :  { %277 = vmatprep.subr.bf16.mxu0 %v321_v2  ;;  %304 = vmatprep.subr.bf16.mxu1 %v321_v2  ;;  %v326_v7 = vld [vmem:[%s444_s1 + $0x18] sm:$0xff]   ;;  %v328_v9 = vld [vmem:[%s444_s1 + $0x20] sm:$0xff]   ;;  %v330_v13 = vld [vmem:[%s444_s1 + $0x28] sm:$0xff]  }
   0x5   :  { %v337_v11 = vld [vmem:[%s445_s0 + $0x4] ss:$8 sps:$4 sm:$0xff]   ;;  %v340_v12 = vld [vmem:[%s445_s0 + $0x14] ss:$8 sps:$4 sm:$0xff]   ;;  %v335_v18 = vld [vmem:[%s445_s0] ss:$8 sps:$4 sm:$0xff]  }
   0x6   :  { %v331_v14 = vld [vmem:[%s444_s1 + $0x70] sm:$0xff]   ;;  %202 = vmatprep.mubr.bf16.mxu0 %v337_v11  ;;  %210 = vmatprep.mubr.bf16.mxu1 %v340_v12  ;;  %v333_v16 = vld [vmem:[%s444_s1 + $0x78] sm:$0xff]   ;;  %v273_v23 = vld [vmem:[%s446_s2] ss:$0 sm:$0xff] }
   0x7   :  { %278 = vmatpush3.bf16.msra.mxu0 %v322_v3  ;;  %312 = vmatpush3.bf16.msra.mxu1 %v322_v3  ;;  %v332_v15 = vld [vmem:[%s444_s1 + $0x30] sm:$0xff]   ;;  %v334_v17 = vld [vmem:[%s444_s1 + $0x38] sm:$0xff]   ;;  %v274_v29 = vld [vmem:[%s447_s3] ss:$0 sm:$0xff] }
   0x8   :  { %279 = vmatprep.subr.bf16.mxu0 %v323_v4  ;;  %305 = vmatprep.subr.bf16.mxu1 %v323_v4  ;;  %v338_v19 = vld [vmem:[%s445_s0 + $0x10] ss:$8 sps:$4 sm:$0xff]  }
   0xb   :  { %280 = vmatpush3.bf16.msra.mxu0 %v324_v5  ;;  %313 = vmatpush3.bf16.msra.mxu1 %v324_v5 }
   0xc   :  { %281 = vmatprep.subr.bf16.mxu0 %v325_v6  ;;  %306 = vmatprep.subr.bf16.mxu1 %v325_v6 }
   0xf   :  { %282 = vmatpush3.bf16.msra.mxu0 %v326_v7  ;;  %314 = vmatpush3.bf16.msra.mxu1 %v326_v7 }
  0x10   :  { %283 = vmatprep.subr.bf16.mxu0 %v327_v8  ;;  %307 = vmatprep.subr.bf16.mxu1 %v327_v8 }
  0x13   :  { %284 = vmatpush3.bf16.msra.mxu0 %v328_v9  ;;  %315 = vmatpush3.bf16.msra.mxu1 %v328_v9 }
  0x14   :  { %285 = vmatprep.subr.bf16.mxu0 %v329_v10  ;;  %308 = vmatprep.subr.bf16.mxu1 %v329_v10 }
  0x17   :  { %286 = vmatpush3.bf16.msra.mxu0 %v330_v13  ;;  %316 = vmatpush3.bf16.msra.mxu1 %v330_v13 }
  0x18   :  { %287 = vmatprep.subr.bf16.mxu0 %v331_v14  ;;  %309 = vmatprep.subr.bf16.mxu1 %v331_v14 }
  0x1b   :  { %288 = vmatpush3.bf16.msra.mxu0 %v332_v15  ;;  %317 = vmatpush3.bf16.msra.mxu1 %v332_v15 }
  0x1c   :  { %289 = vmatprep.subr.bf16.mxu0 %v333_v16  ;;  %310 = vmatprep.subr.bf16.mxu1 %v333_v16 }
  0x1f   :  { %290 = vmatpush3.bf16.msra.mxu0 %v334_v17  ;;  %318 = vmatpush3.bf16.msra.mxu1 %v334_v17 }
  0x22   :  { %203 = vmatmul.mubr.bf16.vlgmr.msra.gmra.mrb[0].mxu0 %v335_v18  ;;  %211 = vmatmul.mubr.bf16.vlgmr.msra.gmra.mrb[0].mxu1 %v338_v19 }
  0xf5   :  { %v291_v20 = vpop.f32.mrb[0].mxu0  ;;  %v297_v21 = vpop.f32.mrb[0].mxu1 }
  0xf6   :  { %v292_v22 = vpop.f32.mrb[1].mxu0  ;;  %v298_v24 = vpop.f32.mrb[1].mxu1 }
  0xf7   :  { %v293_v25 = vadd.f32 %v292_v22, %v291_v20  ;;  %v299_v26 = vadd.f32 %v298_v24, %v297_v21  ;;  %v294_v27 = vpop.f32.mrb[2].mxu0  ;;  %v300_v28 = vpop.f32.mrb[2].mxu1 }
  0xf8   :  { %v295_v30 = vpop.f32.mrb[3].mxu0  ;;  %v301_v31 = vpop.f32.mrb[3].mxu1 }
  0xf9   :  { %v226_v32 = vmul.f32 %v293_v25, %v273_v23  ;;  %v228_v33 = vmul.f32 %v299_v26, %v273_v23  ;;  %v296_v34 = vadd.f32 %v295_v30, %v294_v27  ;;  %v302_v35 = vadd.f32 %v301_v31, %v300_v28 }
  0xfb   :  { %v237_v36 = vadd.f32 %v274_v29, %v226_v32  ;;  %v239_v37 = vadd.f32 %v274_v29, %v228_v33  ;;  %v227_v38 = vmul.f32 %v296_v34, %v273_v23  ;;  %v229_v39 = vmul.f32 %v302_v35, %v273_v23 }
  0xfd   :  { %v241_v40 = vmax.f32 %v237_v36, 0.0  ;;  %v243_v41 = vmax.f32 %v239_v37, 0.0  ;;  %v238_v42 = vadd.f32 %v274_v29, %v227_v38  ;;  %v240_v43 = vadd.f32 %v274_v29, %v229_v39 }
  0xff   :  { %245 = vst [vmem:[%s448_s4] sm:$0xff] %v241_v40  ;;  %247 = vst [vmem:[%s448_s4 + $0x10] sm:$0xff] %v243_v41  ;;  %v242_v44 = vmax.f32 %v238_v42, 0.0  ;;  %v244_v45 = vmax.f32 %v240_v43, 0.0 }
 0x101   :  { %246 = vst [vmem:[%s448_s4 + $0x8] sm:$0xff] %v242_v44  ;;  %248 = vst [vmem:[%s448_s4 + $0x18] sm:$0xff] %v244_v45 }

// kernel: resnet_encoder_forward.34
= control target key start
LH: loop header
LB: loop body
LE: loop exit
PB: predicated region body
PF: predicated region fallthrough
CT: control target
= control target key end

     0   :  { %s665_s1 = inlined_call_operand.vmem [shape: bf16[384,128], index: 1, kind: input, shape index: {}]   ;;  %s666_s0 = inlined_call_operand.vmem [shape: bf16[32,384], index: 0, kind: input, shape index: {}]   ;;  %s667_s2 = inlined_call_operand.vmem [shape: f32[1,128], index: 2, kind: input, shape index: {}]   ;;  %s668_s3 = inlined_call_operand.vmem [shape: f32[1,128], index: 3, kind: input, shape index: {}]   ;;  %s669_s4 = inlined_call_operand.vmem [shape: f32[32,128], index: 4, kind: input, shape index: {}]   ;;  %s670_s5 = inlined_call_operand.vmem [shape: f32[32,128], index: 5, kind: output, shape index: {}]  }
   0x1   :  { %v483_v0 = vld [vmem:[%s665_s1 + $0x40] sm:$0xff]   ;;  %v486_v3 = vld [vmem:[%s665_s1 + $0x48] sm:$0xff]   ;;  %v489_v6 = vld [vmem:[%s665_s1 + $0x50] sm:$0xff]  }
   0x2   :  { %v484_v1 = vld [vmem:[%s665_s1] sm:$0xff]   ;;  %425 = vmatprep.subr.bf16.mxu0 %v483_v0  ;;  %v487_v4 = vld [vmem:[%s665_s1 + $0x8] sm:$0xff]   ;;  %v490_v7 = vld [vmem:[%s665_s1 + $0x10] sm:$0xff]  }
   0x3   :  { %v485_v2 = vld [vmem:[%s665_s1 + $0x80] sm:$0xff]   ;;  %426 = vmatpush3.bf16.msra.mxu0 %v484_v1  ;;  %v488_v5 = vld [vmem:[%s665_s1 + $0x88] sm:$0xff]   ;;  %v491_v8 = vld [vmem:[%s665_s1 + $0x90] sm:$0xff]  }
   0x4   :  { %463 = vmatprep.subr.bf16.mxu1 %v485_v2  ;;  %427 = vmatprep.subr.bf16.mxu0 %v486_v3  ;;  %v492_v9 = vld [vmem:[%s665_s1 + $0x58] sm:$0xff]   ;;  %v495_v12 = vld [vmem:[%s665_s1 + $0x60] sm:$0xff]   ;;  %v498_v15 = vld [vmem:[%s665_s1 + $0x68] sm:$0xff]  }
   0x5   :  { %464 = vmatpush3.bf16.msra.mxu1 %v485_v2  ;;  %v493_v10 = vld [vmem:[%s665_s1 + $0x18] sm:$0xff]   ;;  %v497_v13 = vld [vmem:[%s665_s1 + $0xa0] sm:$0xff]   ;;  %v500_v16 = vld [vmem:[%s665_s1 + $0xa8] sm:$0xff]  }
   0x6   :  { %465 = vmatprep.subr.bf16.mxu1 %v488_v5  ;;  %v494_v11 = vld [vmem:[%s665_s1 + $0x98] sm:$0xff]   ;;  %v496_v14 = vld [vmem:[%s665_s1 + $0x20] sm:$0xff]   ;;  %v499_v17 = vld [vmem:[%s665_s1 + $0x28] sm:$0xff]  }
   0x7   :  { %428 = vmatpush3.bf16.msra.mxu0 %v487_v4  ;;  %v501_v18 = vld [vmem:[%s665_s1 + $0x70] sm:$0xff]   ;;  %v504_v21 = vld [vmem:[%s665_s1 + $0x78] sm:$0xff]   ;;  %v507_v26 = vld [vmem:[%s666_s0] ss:$12 sps:$4 sm:$0xff]  }
   0x8   :  { %429 = vmatprep.subr.bf16.mxu0 %v489_v6  ;;  %v502_v19 = vld [vmem:[%s665_s1 + $0x30] sm:$0xff]   ;;  %v506_v22 = vld [vmem:[%s665_s1 + $0xb8] sm:$0xff]   ;;  %v511_v28 = vld [vmem:[%s666_s0 + $0x20] ss:$12 sps:$4 sm:$0xff]  }
   0x9   :  { %466 = vmatpush3.bf16.msra.mxu1 %v488_v5  ;;  %v503_v20 = vld [vmem:[%s665_s1 + $0xb0] sm:$0xff]   ;;  %v505_v25 = vld [vmem:[%s665_s1 + $0x38] sm:$0xff]   ;;  %v423_v37 = vld [vmem:[%s667_s2] ss:$0 sm:$0xff] }
   0xa   :  { %467 = vmatprep.subr.bf16.mxu1 %v491_v8  ;;  %v509_v23 = vld [vmem:[%s666_s0 + $0x4] ss:$12 sps:$4 sm:$0xff]   ;;  %v510_v24 = vld [vmem:[%s666_s0 + $0x8] ss:$12 sps:$4 sm:$0xff]   ;;  %v424_v41 = vld [vmem:[%s668_s3] ss:$0 sm:$0xff] }
   0xb   :  { %430 = vmatpush3.bf16.msra.mxu0 %v490_v7  ;;  %285 = vmatprep.mubr.bf16.mxu0 %v509_v23  ;;  %v512_v27 = vld [vmem:[%s666_s0 + $0x1c] ss:$12 sps:$4 sm:$0xff]   ;;  %v514_v29 = vld [vmem:[%s666_s0 + $0x18] ss:$12 sps:$4 sm:$0xff]   ;;  %v375_v63 = vld [vmem:[%s669_s4 + $0x10] sm:$0xff] }
   0xc   :  { %431 = vmatprep.subr.bf16.mxu0 %v492_v9  ;;  %479 = vmatprep.mubr.bf16.mxu1 %v510_v24  ;;  %v373_v45 = vld [vmem:[%s669_s4] sm:$0xff]  ;;  %v374_v49 = vld [vmem:[%s669_s4 + $0x8] sm:$0xff]  ;;  %v376_v2 = vld [vmem:[%s669_s4 + $0x18] sm:$0xff] }
   0xd   :  { %468 = vmatpush3.bf16.msra.mxu1 %v491_v8 }
   0xe   :  { %469 = vmatprep.subr.bf16.mxu1 %v494_v11 }
   0xf   :  { %432 = vmatpush3.bf16.msra.mxu0 %v493_v10 }
  0x10   :  { %433 = vmatprep.subr.bf16.mxu0 %v495_v12 }
  0x11   :  { %470 = vmatpush3.bf16.msra.mxu1 %v494_v11 }
  0x12   :  { %471 = vmatprep.subr.bf16.mxu1 %v497_v13 }
  0x13   :  { %434 = vmatpush3.bf16.msra.mxu0 %v496_v14 }
  0x14   :  { %435 = vmatprep.subr.bf16.mxu0 %v498_v15 }
  0x15   :  { %472 = vmatpush3.bf16.msra.mxu1 %v497_v13 }
  0x16   :  { %473 = vmatprep.subr.bf16.mxu1 %v500_v16 }
  0x17   :  { %436 = vmatpush3.bf16.msra.mxu0 %v499_v17 }
  0x18   :  { %437 = vmatprep.subr.bf16.mxu0 %v501_v18 }
  0x19   :  { %474 = vmatpush3.bf16.msra.mxu1 %v500_v16 }
  0x1a   :  { %475 = vmatprep.subr.bf16.mxu1 %v503_v20 }
  0x1b   :  { %438 = vmatpush3.bf16.msra.mxu0 %v502_v19 }
  0x1c   :  { %439 = vmatprep.subr.bf16.mxu0 %v504_v21 }
  0x1d   :  { %476 = vmatpush3.bf16.msra.mxu1 %v503_v20 }
  0x1e   :  { %477 = vmatprep.subr.bf16.mxu1 %v506_v22 }
  0x1f   :  { %440 = vmatpush3.bf16.msra.mxu0 %v505_v25 }
  0x21   :  { %478 = vmatpush3.bf16.msra.mxu1 %v506_v22 }
  0x22   :  { %286 = vmatmul.mubr.bf16.vlgmr.msra.gmra.mrb[0].mxu0 %v507_v26 }
  0x23   :  { %293 = vmatprep.mubr.bf16.mxu0 %v512_v27 }
  0x24   :  { %480 = vmatmul.mubr.bf16.vlgmr.msra.gmra.mrb[0].mxu1 %v511_v28 }
  0x2a   :  { %294 = vmatmul.mubr.bf16.gmra.mrb[4].mxu0 %v514_v29 }
  0xf5   :  { %v441_v30 = vpop.f32.mrb[0].mxu0 }
  0xf6   :  { %v442_v31 = vpop.f32.mrb[1].mxu0 }
  0xf7   :  { %v443_v32 = vadd.f32 %v442_v31, %v441_v30  ;;  %v444_v33 = vpop.f32.mrb[2].mxu0  ;;  %v481_v34 = vpop.f32.mrb[0].mxu1 }
  0xf8   :  { %v445_v35 = vpop.f32.mrb[3].mxu0  ;;  %v336_v36 = vpop.f32.mrb[1].mxu1 }
  0xf9   :  { %v446_v38 = vadd.f32 %v445_v35, %v444_v33  ;;  %v337_v39 = vadd.f32 %v443_v32, %v336_v36  ;;  %v482_v40 = vpop.f32.mrb[2].mxu1 }
  0xfa   :  { %v339_v42 = vpop.f32.mrb[3].mxu1 }
  0xfb   :  { %v358_v43 = vmul.f32 %v423_v37, %v337_v39  ;;  %v340_v44 = vadd.f32 %v446_v38, %v339_v42 }
  0xfd   :  { %v369_v46 = vadd.f32 %v424_v41, %v358_v43  ;;  %v359_v47 = vmul.f32 %v423_v37, %v340_v44  ;;  %v447_v48 = vpop.f32.mrb[4].mxu0 }
  0xfe   :  { %v448_v50 = vpop.f32.mrb[5].mxu0 }
  0xff   :  { %v377_v51 = vadd.f32 %v373_v45, %v369_v46  ;;  %v370_v52 = vadd.f32 %v424_v41, %v359_v47  ;;  %v449_v53 = vadd.f32 %v448_v50, %v447_v48  ;;  %v450_v54 = vpop.f32.mrb[6].mxu0 }
 0x100   :  { %v451_v55 = vpop.f32.mrb[7].mxu0 }
 0x101   :  { %v381_v56 = vmax.f32 %v377_v51, 0.0  ;;  %v378_v57 = vadd.f32 %v374_v49, %v370_v52  ;;  %v345_v58 = vadd.f32 %v481_v34, %v449_v53  ;;  %v452_v59 = vadd.f32 %v451_v55, %v450_v54 }
 0x103   :  { %385 = vst [vmem:[%s670_s5] sm:$0xff] %v381_v56  ;;  %v382_v60 = vmax.f32 %v378_v57, 0.0  ;;  %v360_v61 = vmul.f32 %v423_v37, %v345_v58  ;;  %v348_v62 = vadd.f32 %v482_v40, %v452_v59 }
 0x105   :  { %386 = vst [vmem:[%s670_s5 + $0x8] sm:$0xff] %v382_v60  ;;  %v371_v0 = vadd.f32 %v424_v41, %v360_v61  ;;  %v361_v1 = vmul.f32 %v423_v37, %v348_v62 }
 0x107   :  { %v379_v3 = vadd.f32 %v375_v63, %v371_v0  ;;  %v372_v4 = vadd.f32 %v424_v41, %v361_v1 }
 0x109   :  { %v383_v5 = vmax.f32 %v379_v3, 0.0  ;;  %v380_v6 = vadd.f32 %v376_v2, %v372_v4 }
 0x10b   :  { %387 = vst [vmem:[%s670_s5 + $0x10] sm:$0xff] %v383_v5  ;;  %v384_v7 = vmax.f32 %v380_v6, 0.0 }
 0x10d   :  { %388 = vst [vmem:[%s670_s5 + $0x18] sm:$0xff] %v384_v7 }

// kernel: resnet_encoder_forward.38
= control target key start
LH: loop header
LB: loop body
LE: loop exit
PB: predicated region body
PF: predicated region fallthrough
CT: control target
= control target key end

     0   :  { %v206_v0 = vmov 0.0   ;;  %vm207_vm0 = vmmov 0   ;;  %s272_s1 = inlined_call_operand.vmem [shape: bf16[128,128], index: 1, kind: input, shape index: {}]   ;;  %s273_s0 = inlined_call_operand.vmem [shape: bf16[16,128], index: 0, kind: input, shape index: {}]   ;;  %s274_s2 = inlined_call_operand.vmem [shape: f32[1,128], index: 2, kind: input, shape index: {}]   ;;  %s275_s3 = inlined_call_operand.vmem [shape: f32[1,128], index: 3, kind: input, shape index: {}]   ;;  %s276_s4 = inlined_call_operand.vmem [shape: f32[16,128], index: 4, kind: output, shape index: {}]  }
   0x1   :  { %175 = vmatprep.subr.bf16.mxu0 %v206_v0  ;;  %v197_v1 = vld [vmem:[%s272_s1] sm:$0xff]   ;;  %191 = vmatprep.mubr.msk.bf16.mxu0 %vm207_vm0, %v206_v0  ;;  %v198_v2 = vld [vmem:[%s272_s1 + $0x8] sm:$0xff]   ;;  %v199_v3 = vld [vmem:[%s272_s1 + $0x10] sm:$0xff]  }
   0x2   :  { %176 = vmatpush3.bf16.msra.mxu0 %v197_v1  ;;  %v200_v4 = vld [vmem:[%s272_s1 + $0x18] sm:$0xff]   ;;  %v201_v5 = vld [vmem:[%s272_s1 + $0x20] sm:$0xff]   ;;  %v202_v6 = vld [vmem:[%s272_s1 + $0x28] sm:$0xff]  }
   0x3   :  { %177 = vmatprep.subr.bf16.mxu0 %v206_v0  ;;  %v203_v7 = vld [vmem:[%s272_s1 + $0x30] sm:$0xff]   ;;  %v204_v8 = vld [vmem:[%s272_s1 + $0x38] sm:$0xff]   ;;  %v205_v9 = vld [vmem:[%s273_s0] sm:$0xff]  }
   0x4   :  { %v164_v10 = vld [vmem:[%s274_s2] ss:$0 sm:$0xff] }
   0x5   :  { %v165_v12 = vld [vmem:[%s275_s3] ss:$0 sm:$0xff] }
   0x6   :  { %178 = vmatpush3.bf16.msra.mxu0 %v198_v2 }
   0x7   :  { %179 = vmatprep.subr.bf16.mxu0 %v206_v0 }
   0xa   :  { %180 = vmatpush3.bf16.msra.mxu0 %v199_v3 }
   0xb   :  { %181 = vmatprep.subr.bf16.mxu0 %v206_v0 }
   0xe   :  { %182 = vmatpush3.bf16.msra.mxu0 %v200_v4 }
   0xf   :  { %183 = vmatprep.subr.bf16.mxu0 %v206_v0 }
  0x12   :  { %184 = vmatpush3.bf16.msra.mxu0 %v201_v5 }
  0x13   :  { %185 = vmatprep.subr.bf16.mxu0 %v206_v0 }
  0x16   :  { %186 = vmatpush3.bf16.msra.mxu0 %v202_v6 }
  0x17   :  { %187 = vmatprep.subr.bf16.mxu0 %v206_v0 }
  0x1a   :  { %188 = vmatpush3.bf16.msra.mxu0 %v203_v7 }
  0x1b   :  { %189 = vmatprep.subr.bf16.mxu0 %v206_v0 }
  0x1e   :  { %190 = vmatpush3.bf16.msra.mxu0 %v204_v8 }
  0x21   :  { %192 = vmatmul.mubr.bf16.vlgmr.msra.gmra.mrb[0].mxu0 %v205_v9 }
  0xf4   :  { %v124_v11 = vpop.f32.mrb[0].mxu0 }
  0xf5   :  { %v138_v13 = vmul.f32 %v164_v10, %v124_v11  ;;  %v193_v14 = vpop.f32.mrb[1].mxu0 }
  0xf6   :  { %v127_v15 = vpop.f32.mrb[2].mxu0 }
  0xf7   :  { %v147_v16 = vadd.f32 %v165_v12, %v138_v13  ;;  %v139_v17 = vmul.f32 %v164_v10, %v127_v15  ;;  %v194_v18 = vpop.f32.mrb[3].mxu0 }
  0xf9   :  { %149 = vst [vmem:[%s276_s4] sm:$0xff] %v147_v16  ;;  %v148_v19 = vadd.f32 %v165_v12, %v139_v17 }
  0xfb   :  { %150 = vst [vmem:[%s276_s4 + $0x8] sm:$0xff] %v148_v19 }

// kernel: resnet_encoder_forward.35
= control target key start
LH: loop header
LB: loop body
LE: loop exit
PB: predicated region body
PF: predicated region fallthrough
CT: control target
= control target key end

     0   :  { %s637_s1 = inlined_call_operand.vmem [shape: bf16[384,128], index: 1, kind: input, shape index: {}]   ;;  %s638_s0 = inlined_call_operand.vmem [shape: bf16[32,384], index: 0, kind: input, shape index: {}]   ;;  %s639_s2 = inlined_call_operand.vmem [shape: f32[1,128], index: 2, kind: input, shape index: {}]   ;;  %s640_s3 = inlined_call_operand.vmem [shape: f32[1,128], index: 3, kind: input, shape index: {}]   ;;  %s641_s4 = inlined_call_operand.vmem [shape: f32[32,128], index: 4, kind: output, shape index: {}]  }
   0x1   :  { %v472_v0 = vld [vmem:[%s637_s1 + $0x40] sm:$0xff]   ;;  %v475_v3 = vld [vmem:[%s637_s1 + $0x48] sm:$0xff]   ;;  %v478_v6 = vld [vmem:[%s637_s1 + $0x50] sm:$0xff]  }
   0x2   :  { %v473_v1 = vld [vmem:[%s637_s1] sm:$0xff]   ;;  %414 = vmatprep.subr.bf16.mxu0 %v472_v0  ;;  %v476_v4 = vld [vmem:[%s637_s1 + $0x8] sm:$0xff]   ;;  %v479_v7 = vld [vmem:[%s637_s1 + $0x10] sm:$0xff]  }
   0x3   :  { %v474_v2 = vld [vmem:[%s637_s1 + $0x80] sm:$0xff]   ;;  %415 = vmatpush3.bf16.msra.mxu0 %v473_v1  ;;  %v477_v5 = vld [vmem:[%s637_s1 + $0x88] sm:$0xff]   ;;  %v480_v8 = vld [vmem:[%s637_s1 + $0x90] sm:$0xff]  }
   0x4   :  { %452 = vmatprep.subr.bf16.mxu1 %v474_v2  ;;  %416 = vmatprep.subr.bf16.mxu0 %v475_v3  ;;  %v481_v9 = vld [vmem:[%s637_s1 + $0x58] sm:$0xff]   ;;  %v484_v12 = vld [vmem:[%s637_s1 + $0x60] sm:$0xff]   ;;  %v487_v15 = vld [vmem:[%s637_s1 + $0x68] sm:$0xff]  }
   0x5   :  { %453 = vmatpush3.bf16.msra.mxu1 %v474_v2  ;;  %v482_v10 = vld [vmem:[%s637_s1 + $0x18] sm:$0xff]   ;;  %v486_v13 = vld [vmem:[%s637_s1 + $0xa0] sm:$0xff]   ;;  %v489_v16 = vld [vmem:[%s637_s1 + $0xa8] sm:$0xff]  }
   0x6   :  { %454 = vmatprep.subr.bf16.mxu1 %v477_v5  ;;  %v483_v11 = vld [vmem:[%s637_s1 + $0x98] sm:$0xff]   ;;  %v485_v14 = vld [vmem:[%s637_s1 + $0x20] sm:$0xff]   ;;  %v488_v17 = vld [vmem:[%s637_s1 + $0x28] sm:$0xff]  }
   0x7   :  { %417 = vmatpush3.bf16.msra.mxu0 %v476_v4  ;;  %v490_v18 = vld [vmem:[%s637_s1 + $0x70] sm:$0xff]   ;;  %v493_v21 = vld [vmem:[%s637_s1 + $0x78] sm:$0xff]   ;;  %v496_v26 = vld [vmem:[%s638_s0] ss:$12 sps:$4 sm:$0xff]  }
   0x8   :  { %418 = vmatprep.subr.bf16.mxu0 %v478_v6  ;;  %v491_v19 = vld [vmem:[%s637_s1 + $0x30] sm:$0xff]   ;;  %v495_v22 = vld [vmem:[%s637_s1 + $0xb8] sm:$0xff]   ;;  %v500_v28 = vld [vmem:[%s638_s0 + $0x20] ss:$12 sps:$4 sm:$0xff]  }
   0x9   :  { %455 = vmatpush3.bf16.msra.mxu1 %v477_v5  ;;  %v492_v20 = vld [vmem:[%s637_s1 + $0xb0] sm:$0xff]   ;;  %v494_v25 = vld [vmem:[%s637_s1 + $0x38] sm:$0xff]   ;;  %v412_v37 = vld [vmem:[%s639_s2] ss:$0 sm:$0xff] }
   0xa   :  { %456 = vmatprep.subr.bf16.mxu1 %v480_v8  ;;  %v498_v23 = vld [vmem:[%s638_s0 + $0x4] ss:$12 sps:$4 sm:$0xff]   ;;  %v499_v24 = vld [vmem:[%s638_s0 + $0x8] ss:$12 sps:$4 sm:$0xff]   ;;  %v413_v41 = vld [vmem:[%s640_s3] ss:$0 sm:$0xff] }
   0xb   :  { %419 = vmatpush3.bf16.msra.mxu0 %v479_v7  ;;  %282 = vmatprep.mubr.bf16.mxu0 %v498_v23  ;;  %v501_v27 = vld [vmem:[%s638_s0 + $0x1c] ss:$12 sps:$4 sm:$0xff]   ;;  %v503_v29 = vld [vmem:[%s638_s0 + $0x18] ss:$12 sps:$4 sm:$0xff]  }
   0xc   :  { %420 = vmatprep.subr.bf16.mxu0 %v481_v9  ;;  %468 = vmatprep.mubr.bf16.mxu1 %v499_v24 }
   0xd   :  { %457 = vmatpush3.bf16.msra.mxu1 %v480_v8 }
   0xe   :  { %458 = vmatprep.subr.bf16.mxu1 %v483_v11 }
   0xf   :  { %421 = vmatpush3.bf16.msra.mxu0 %v482_v10 }
  0x10   :  { %422 = vmatprep.subr.bf16.mxu0 %v484_v12 }
  0x11   :  { %459 = vmatpush3.bf16.msra.mxu1 %v483_v11 }
  0x12   :  { %460 = vmatprep.subr.bf16.mxu1 %v486_v13 }
  0x13   :  { %423 = vmatpush3.bf16.msra.mxu0 %v485_v14 }
  0x14   :  { %424 = vmatprep.subr.bf16.mxu0 %v487_v15 }
  0x15   :  { %461 = vmatpush3.bf16.msra.mxu1 %v486_v13 }
  0x16   :  { %462 = vmatprep.subr.bf16.mxu1 %v489_v16 }
  0x17   :  { %425 = vmatpush3.bf16.msra.mxu0 %v488_v17 }
  0x18   :  { %426 = vmatprep.subr.bf16.mxu0 %v490_v18 }
  0x19   :  { %463 = vmatpush3.bf16.msra.mxu1 %v489_v16 }
  0x1a   :  { %464 = vmatprep.subr.bf16.mxu1 %v492_v20 }
  0x1b   :  { %427 = vmatpush3.bf16.msra.mxu0 %v491_v19 }
  0x1c   :  { %428 = vmatprep.subr.bf16.mxu0 %v493_v21 }
  0x1d   :  { %465 = vmatpush3.bf16.msra.mxu1 %v492_v20 }
  0x1e   :  { %466 = vmatprep.subr.bf16.mxu1 %v495_v22 }
  0x1f   :  { %429 = vmatpush3.bf16.msra.mxu0 %v494_v25 }
  0x21   :  { %467 = vmatpush3.bf16.msra.mxu1 %v495_v22 }
  0x22   :  { %283 = vmatmul.mubr.bf16.vlgmr.msra.gmra.mrb[0].mxu0 %v496_v26 }
  0x23   :  { %290 = vmatprep.mubr.bf16.mxu0 %v501_v27 }
  0x24   :  { %469 = vmatmul.mubr.bf16.vlgmr.msra.gmra.mrb[0].mxu1 %v500_v28 }
  0x2a   :  { %291 = vmatmul.mubr.bf16.gmra.mrb[4].mxu0 %v503_v29 }
  0xf5   :  { %v430_v30 = vpop.f32.mrb[0].mxu0 }
  0xf6   :  { %v431_v31 = vpop.f32.mrb[1].mxu0 }
  0xf7   :  { %v432_v32 = vadd.f32 %v431_v31, %v430_v30  ;;  %v433_v33 = vpop.f32.mrb[2].mxu0  ;;  %v470_v34 = vpop.f32.mrb[0].mxu1 }
  0xf8   :  { %v434_v35 = vpop.f32.mrb[3].mxu0  ;;  %v333_v36 = vpop.f32.mrb[1].mxu1 }
  0xf9   :  { %v435_v38 = vadd.f32 %v434_v35, %v433_v33  ;;  %v334_v39 = vadd.f32 %v432_v32, %v333_v36  ;;  %v471_v40 = vpop.f32.mrb[2].mxu1 }
  0xfa   :  { %v336_v42 = vpop.f32.mrb[3].mxu1 }
  0xfb   :  { %v355_v43 = vmul.f32 %v412_v37, %v334_v39  ;;  %v337_v44 = vadd.f32 %v435_v38, %v336_v42 }
  0xfd   :  { %v366_v45 = vadd.f32 %v413_v41, %v355_v43  ;;  %v356_v46 = vmul.f32 %v412_v37, %v337_v44  ;;  %v436_v47 = vpop.f32.mrb[4].mxu0 }
  0xfe   :  { %v437_v48 = vpop.f32.mrb[5].mxu0 }
  0xff   :  { %v370_v49 = vmax.f32 %v366_v45, 0.0  ;;  %v367_v50 = vadd.f32 %v413_v41, %v356_v46  ;;  %v438_v51 = vadd.f32 %v437_v48, %v436_v47  ;;  %v439_v52 = vpop.f32.mrb[6].mxu0 }
 0x100   :  { %v440_v53 = vpop.f32.mrb[7].mxu0 }
 0x101   :  { %374 = vst [vmem:[%s641_s4] sm:$0xff] %v370_v49  ;;  %v371_v54 = vmax.f32 %v367_v50, 0.0  ;;  %v342_v55 = vadd.f32 %v470_v34, %v438_v51  ;;  %v441_v56 = vadd.f32 %v440_v53, %v439_v52 }
 0x103   :  { %375 = vst [vmem:[%s641_s4 + $0x8] sm:$0xff] %v371_v54  ;;  %v357_v57 = vmul.f32 %v412_v37, %v342_v55  ;;  %v345_v58 = vadd.f32 %v471_v40, %v441_v56 }
 0x105   :  { %v368_v59 = vadd.f32 %v413_v41, %v357_v57  ;;  %v358_v60 = vmul.f32 %v412_v37, %v345_v58 }
 0x107   :  { %v372_v61 = vmax.f32 %v368_v59, 0.0  ;;  %v369_v62 = vadd.f32 %v413_v41, %v358_v60 }
 0x109   :  { %376 = vst [vmem:[%s641_s4 + $0x10] sm:$0xff] %v372_v61  ;;  %v373_v63 = vmax.f32 %v369_v62, 0.0 }
 0x10b   :  { %377 = vst [vmem:[%s641_s4 + $0x18] sm:$0xff] %v373_v63 }

// kernel: resnet_encoder_forward.37
= control target key start
LH: loop header
LB: loop body
LE: loop exit
PB: predicated region body
PF: predicated region fallthrough
CT: control target
= control target key end

     0   :  { %v448_v1 = vmov 0.0   ;;  %vm449_vm0 = vmmov 0   ;;  %s568_s1 = inlined_call_operand.vmem [shape: bf16[384,128], index: 1, kind: input, shape index: {}]   ;;  %s569_s0 = inlined_call_operand.vmem [shape: bf16[16,384], index: 0, kind: input, shape index: {}]   ;;  %s570_s2 = inlined_call_operand.vmem [shape: f32[1,128], index: 2, kind: input, shape index: {}]   ;;  %s571_s3 = inlined_call_operand.vmem [shape: f32[1,128], index: 3, kind: input, shape index: {}]   ;;  %s572_s4 = inlined_call_operand.vmem [shape: f32[16,128], index: 4, kind: output, shape index: {}]  }
   0x1   :  { %v420_v0 = vld [vmem:[%s568_s1 + $0x40] sm:$0xff]   ;;  %398 = vmatprep.subr.bf16.mxu1 %v448_v1  ;;  %414 = vmatprep.mubr.msk.bf16.mxu1 %vm449_vm0, %v448_v1  ;;  %v423_v4 = vld [vmem:[%s568_s1 + $0x48] sm:$0xff]   ;;  %v426_v7 = vld [vmem:[%s568_s1 + $0x50] sm:$0xff]  }
   0x2   :  { %v421_v2 = vld [vmem:[%s568_s1] sm:$0xff]   ;;  %367 = vmatprep.subr.bf16.mxu0 %v420_v0  ;;  %v424_v5 = vld [vmem:[%s568_s1 + $0x8] sm:$0xff]   ;;  %v427_v8 = vld [vmem:[%s568_s1 + $0x10] sm:$0xff]  }
   0x3   :  { %v422_v3 = vld [vmem:[%s568_s1 + $0x80] sm:$0xff]   ;;  %368 = vmatpush3.bf16.msra.mxu0 %v421_v2  ;;  %v425_v6 = vld [vmem:[%s568_s1 + $0x88] sm:$0xff]   ;;  %v428_v9 = vld [vmem:[%s568_s1 + $0x90] sm:$0xff]  }
   0x4   :  { %399 = vmatpush3.bf16.msra.mxu1 %v422_v3  ;;  %369 = vmatprep.subr.bf16.mxu0 %v423_v4  ;;  %v429_v10 = vld [vmem:[%s568_s1 + $0x58] sm:$0xff]   ;;  %v432_v13 = vld [vmem:[%s568_s1 + $0x60] sm:$0xff]   ;;  %v435_v16 = vld [vmem:[%s568_s1 + $0x68] sm:$0xff]  }
   0x5   :  { %400 = vmatprep.subr.bf16.mxu1 %v448_v1  ;;  %v430_v11 = vld [vmem:[%s568_s1 + $0x18] sm:$0xff]   ;;  %v433_v14 = vld [vmem:[%s568_s1 + $0x20] sm:$0xff]   ;;  %v436_v17 = vld [vmem:[%s568_s1 + $0x28] sm:$0xff]  }
   0x6   :  { %v431_v12 = vld [vmem:[%s568_s1 + $0x98] sm:$0xff]   ;;  %v434_v15 = vld [vmem:[%s568_s1 + $0xa0] sm:$0xff]   ;;  %v437_v18 = vld [vmem:[%s568_s1 + $0xa8] sm:$0xff]  }
   0x7   :  { %370 = vmatpush3.bf16.msra.mxu0 %v424_v5  ;;  %v438_v19 = vld [vmem:[%s568_s1 + $0x70] sm:$0xff]   ;;  %v441_v22 = vld [vmem:[%s568_s1 + $0x78] sm:$0xff]   ;;  %v444_v26 = vld [vmem:[%s569_s0] ss:$12 sps:$4 sm:$0xff]  }
   0x8   :  { %401 = vmatpush3.bf16.msra.mxu1 %v425_v6  ;;  %371 = vmatprep.subr.bf16.mxu0 %v426_v7  ;;  %v439_v20 = vld [vmem:[%s568_s1 + $0x30] sm:$0xff]   ;;  %v442_v24 = vld [vmem:[%s568_s1 + $0x38] sm:$0xff]   ;;  %v365_v34 = vld [vmem:[%s570_s2] ss:$0 sm:$0xff] }
   0x9   :  { %402 = vmatprep.subr.bf16.mxu1 %v448_v1  ;;  %v440_v21 = vld [vmem:[%s568_s1 + $0xb0] sm:$0xff]   ;;  %v443_v25 = vld [vmem:[%s568_s1 + $0xb8] sm:$0xff]   ;;  %v366_v40 = vld [vmem:[%s571_s3] ss:$0 sm:$0xff] }
   0xa   :  { %v446_v23 = vld [vmem:[%s569_s0 + $0x4] ss:$12 sps:$4 sm:$0xff]   ;;  %v447_v27 = vld [vmem:[%s569_s0 + $0x8] ss:$12 sps:$4 sm:$0xff]  }
   0xb   :  { %372 = vmatpush3.bf16.msra.mxu0 %v427_v8  ;;  %262 = vmatprep.mubr.bf16.mxu0 %v446_v23 }
   0xc   :  { %403 = vmatpush3.bf16.msra.mxu1 %v428_v9  ;;  %373 = vmatprep.subr.bf16.mxu0 %v429_v10 }
   0xd   :  { %404 = vmatprep.subr.bf16.mxu1 %v448_v1 }
   0xf   :  { %374 = vmatpush3.bf16.msra.mxu0 %v430_v11 }
  0x10   :  { %405 = vmatpush3.bf16.msra.mxu1 %v431_v12  ;;  %375 = vmatprep.subr.bf16.mxu0 %v432_v13 }
  0x11   :  { %406 = vmatprep.subr.bf16.mxu1 %v448_v1 }
  0x13   :  { %376 = vmatpush3.bf16.msra.mxu0 %v433_v14 }
  0x14   :  { %407 = vmatpush3.bf16.msra.mxu1 %v434_v15  ;;  %377 = vmatprep.subr.bf16.mxu0 %v435_v16 }
  0x15   :  { %408 = vmatprep.subr.bf16.mxu1 %v448_v1 }
  0x17   :  { %378 = vmatpush3.bf16.msra.mxu0 %v436_v17 }
  0x18   :  { %409 = vmatpush3.bf16.msra.mxu1 %v437_v18  ;;  %379 = vmatprep.subr.bf16.mxu0 %v438_v19 }
  0x19   :  { %410 = vmatprep.subr.bf16.mxu1 %v448_v1 }
  0x1b   :  { %380 = vmatpush3.bf16.msra.mxu0 %v439_v20 }
  0x1c   :  { %411 = vmatpush3.bf16.msra.mxu1 %v440_v21  ;;  %381 = vmatprep.subr.bf16.mxu0 %v441_v22 }
  0x1d   :  { %412 = vmatprep.subr.bf16.mxu1 %v448_v1 }
  0x1f   :  { %382 = vmatpush3.bf16.msra.mxu0 %v442_v24 }
  0x20   :  { %413 = vmatpush3.bf16.msra.mxu1 %v443_v25 }
  0x22   :  { %263 = vmatmul.mubr.bf16.vlgmr.msra.gmra.mrb[0].mxu0 %v444_v26 }
  0x23   :  { %415 = vmatmul.mubr.bf16.vlgmr.msra.gmra.mrb[0].mxu1 %v447_v27 }
  0xf5   :  { %v383_v28 = vpop.f32.mrb[0].mxu0 }
  0xf6   :  { %v305_v29 = vpop.f32.mrb[0].mxu1  ;;  %v384_v30 = vpop.f32.mrb[1].mxu0 }
  0xf7   :  { %v385_v31 = vadd.f32 %v384_v30, %v383_v28  ;;  %v416_v32 = vpop.f32.mrb[1].mxu1  ;;  %v386_v33 = vpop.f32.mrb[2].mxu0 }
  0xf8   :  { %v308_v35 = vpop.f32.mrb[2].mxu1  ;;  %v387_v36 = vpop.f32.mrb[3].mxu0 }
  0xf9   :  { %v306_v37 = vadd.f32 %v385_v31, %v305_v29  ;;  %v388_v38 = vadd.f32 %v387_v36, %v386_v33  ;;  %v417_v39 = vpop.f32.mrb[3].mxu1 }
  0xfb   :  { %v319_v41 = vmul.f32 %v365_v34, %v306_v37  ;;  %v309_v42 = vadd.f32 %v388_v38, %v308_v35 }
  0xfd   :  { %v328_v43 = vadd.f32 %v366_v40, %v319_v41  ;;  %v320_v44 = vmul.f32 %v365_v34, %v309_v42 }
  0xff   :  { %v330_v45 = vmax.f32 %v328_v43, 0.0  ;;  %v329_v46 = vadd.f32 %v366_v40, %v320_v44 }
 0x101   :  { %332 = vst [vmem:[%s572_s4] sm:$0xff] %v330_v45  ;;  %v331_v47 = vmax.f32 %v329_v46, 0.0 }
 0x103   :  { %333 = vst [vmem:[%s572_s4 + $0x8] sm:$0xff] %v331_v47 }

// kernel: resnet_encoder_forward.40
= control target key start
LH: loop header
LB: loop body
LE: loop exit
PB: predicated region body
PF: predicated region fallthrough
CT: control target
= control target key end

     0   :  { %v688_v34 = vmov 0.0   ;;  %vm689_vm0 = vmmov 0   ;;  %s862_s1 = inlined_call_operand.vmem [shape: bf16[640,128], index: 1, kind: input, shape index: {}]   ;;  %s863_s0 = inlined_call_operand.vmem [shape: bf16[16,640], index: 0, kind: input, shape index: {}]   ;;  %s864_s2 = inlined_call_operand.vmem [shape: f32[1,128], index: 2, kind: input, shape index: {}]   ;;  %s865_s3 = inlined_call_operand.vmem [shape: f32[1,128], index: 3, kind: input, shape index: {}]   ;;  %s866_s4 = inlined_call_operand.vmem [shape: f32[16,128], index: 4, kind: output, shape index: {}]  }
   0x1   :  { %v641_v0 = vld [vmem:[%s862_s1 + $0x40] sm:$0xff]   ;;  %v645_v4 = vld [vmem:[%s862_s1 + $0x48] sm:$0xff]   ;;  %v649_v8 = vld [vmem:[%s862_s1 + $0x50] sm:$0xff]  }
   0x2   :  { %v642_v1 = vld [vmem:[%s862_s1 + $0xc0] sm:$0xff]   ;;  %566 = vmatprep.subr.bf16.mxu0 %v641_v0  ;;  %v646_v5 = vld [vmem:[%s862_s1 + $0xc8] sm:$0xff]   ;;  %v650_v9 = vld [vmem:[%s862_s1 + $0xd0] sm:$0xff]  }
   0x3   :  { %v643_v2 = vld [vmem:[%s862_s1] sm:$0xff]   ;;  %588 = vmatprep.subr.bf16.mxu1 %v642_v1  ;;  %v647_v6 = vld [vmem:[%s862_s1 + $0x8] sm:$0xff]   ;;  %v651_v10 = vld [vmem:[%s862_s1 + $0x10] sm:$0xff]  }
   0x4   :  { %v644_v3 = vld [vmem:[%s862_s1 + $0x80] sm:$0xff]   ;;  %567 = vmatpush3.bf16.msra.mxu0 %v643_v2  ;;  %v648_v7 = vld [vmem:[%s862_s1 + $0x88] sm:$0xff]   ;;  %v652_v11 = vld [vmem:[%s862_s1 + $0x90] sm:$0xff]  }
   0x5   :  { %589 = vmatpush3.bf16.msra.mxu1 %v644_v3  ;;  %568 = vmatprep.subr.bf16.mxu0 %v645_v4  ;;  %v653_v12 = vld [vmem:[%s862_s1 + $0x58] sm:$0xff]   ;;  %v657_v16 = vld [vmem:[%s862_s1 + $0x60] sm:$0xff]   ;;  %v661_v20 = vld [vmem:[%s862_s1 + $0x68] sm:$0xff]  }
   0x6   :  { %590 = vmatprep.subr.bf16.mxu1 %v646_v5  ;;  %v654_v13 = vld [vmem:[%s862_s1 + $0xd8] sm:$0xff]   ;;  %v658_v17 = vld [vmem:[%s862_s1 + $0xe0] sm:$0xff]   ;;  %v662_v21 = vld [vmem:[%s862_s1 + $0xe8] sm:$0xff]  }
   0x7   :  { %v655_v14 = vld [vmem:[%s862_s1 + $0x18] sm:$0xff]   ;;  %v659_v18 = vld [vmem:[%s862_s1 + $0x20] sm:$0xff]   ;;  %v663_v22 = vld [vmem:[%s862_s1 + $0x28] sm:$0xff]  }
   0x8   :  { %569 = vmatpush3.bf16.msra.mxu0 %v647_v6  ;;  %v656_v15 = vld [vmem:[%s862_s1 + $0x98] sm:$0xff]   ;;  %v660_v19 = vld [vmem:[%s862_s1 + $0xa0] sm:$0xff]   ;;  %v664_v23 = vld [vmem:[%s862_s1 + $0xa8] sm:$0xff]  }
   0x9   :  { %591 = vmatpush3.bf16.msra.mxu1 %v648_v7  ;;  %570 = vmatprep.subr.bf16.mxu0 %v649_v8  ;;  %v665_v24 = vld [vmem:[%s862_s1 + $0x70] sm:$0xff]   ;;  %v669_v28 = vld [vmem:[%s862_s1 + $0x78] sm:$0xff]   ;;  %v678_v36 = vld [vmem:[%s863_s0 + $0xc] ss:$20 sps:$4 sm:$0xff]  }
   0xa   :  { %592 = vmatprep.subr.bf16.mxu1 %v650_v9  ;;  %v666_v25 = vld [vmem:[%s862_s1 + $0xf0] sm:$0xff]   ;;  %v670_v29 = vld [vmem:[%s862_s1 + $0xf8] sm:$0xff]   ;;  %v679_v37 = vld [vmem:[%s862_s1 + $0x100] sm:$0xff]   ;;  %443 = vmatprep.mubr.bf16.mxu1 %v678_v36 }
   0xb   :  { %v667_v26 = vld [vmem:[%s862_s1 + $0x30] sm:$0xff]   ;;  %v671_v30 = vld [vmem:[%s862_s1 + $0x38] sm:$0xff]   ;;  %v680_v38 = vld [vmem:[%s862_s1 + $0x108] sm:$0xff]  }
   0xc   :  { %571 = vmatpush3.bf16.msra.mxu0 %v651_v10  ;;  %v668_v27 = vld [vmem:[%s862_s1 + $0xb0] sm:$0xff]   ;;  %v672_v31 = vld [vmem:[%s862_s1 + $0xb8] sm:$0xff]   ;;  %v683_v41 = vld [vmem:[%s862_s1 + $0x120] sm:$0xff]  }
   0xd   :  { %593 = vmatpush3.bf16.msra.mxu1 %v652_v11  ;;  %572 = vmatprep.subr.bf16.mxu0 %v653_v12  ;;  %v673_v32 = vld [vmem:[%s863_s0] ss:$20 sps:$4 sm:$0xff]   ;;  %v675_v33 = vld [vmem:[%s863_s0 + $0x4] ss:$20 sps:$4 sm:$0xff]   ;;  %v676_v35 = vld [vmem:[%s863_s0 + $0x8] ss:$20 sps:$4 sm:$0xff]  }
   0xe   :  { %594 = vmatprep.subr.bf16.mxu1 %v654_v13  ;;  %402 = vmatprep.mubr.bf16.mxu0 %v675_v33  ;;  %v681_v39 = vld [vmem:[%s862_s1 + $0x110] sm:$0xff]   ;;  %v682_v40 = vld [vmem:[%s862_s1 + $0x118] sm:$0xff]   ;;  %v684_v42 = vld [vmem:[%s862_s1 + $0x128] sm:$0xff]  }
   0xf   :  { %v685_v43 = vld [vmem:[%s862_s1 + $0x130] sm:$0xff]   ;;  %v686_v44 = vld [vmem:[%s862_s1 + $0x138] sm:$0xff]   ;;  %v564_v61 = vld [vmem:[%s864_s2] ss:$0 sm:$0xff] }
  0x10   :  { %573 = vmatpush3.bf16.msra.mxu0 %v655_v14  ;;  %v687_v45 = vld [vmem:[%s863_s0 + $0x10] ss:$20 sps:$4 sm:$0xff]   ;;  %v565_v0 = vld [vmem:[%s865_s3] ss:$0 sm:$0xff] }
  0x11   :  { %595 = vmatpush3.bf16.msra.mxu1 %v656_v15  ;;  %574 = vmatprep.subr.bf16.mxu0 %v657_v16 }
  0x12   :  { %596 = vmatprep.subr.bf16.mxu1 %v658_v17 }
  0x14   :  { %575 = vmatpush3.bf16.msra.mxu0 %v659_v18 }
  0x15   :  { %597 = vmatpush3.bf16.msra.mxu1 %v660_v19  ;;  %576 = vmatprep.subr.bf16.mxu0 %v661_v20 }
  0x16   :  { %598 = vmatprep.subr.bf16.mxu1 %v662_v21 }
  0x18   :  { %577 = vmatpush3.bf16.msra.mxu0 %v663_v22 }
  0x19   :  { %599 = vmatpush3.bf16.msra.mxu1 %v664_v23  ;;  %578 = vmatprep.subr.bf16.mxu0 %v665_v24 }
  0x1a   :  { %600 = vmatprep.subr.bf16.mxu1 %v666_v25 }
  0x1c   :  { %579 = vmatpush3.bf16.msra.mxu0 %v667_v26 }
  0x1d   :  { %601 = vmatpush3.bf16.msra.mxu1 %v668_v27  ;;  %580 = vmatprep.subr.bf16.mxu0 %v669_v28 }
  0x1e   :  { %602 = vmatprep.subr.bf16.mxu1 %v670_v29 }
  0x20   :  { %581 = vmatpush3.bf16.msra.mxu0 %v671_v30 }
  0x21   :  { %603 = vmatpush3.bf16.msra.mxu1 %v672_v31  ;;  %619 = vmatprep.subr.bf16.mxu0 %v688_v34 }
  0x23   :  { %403 = vmatmul.mubr.bf16.vlgmr.msra.gmra.mrb[0].mxu0 %v673_v32 }
  0x24   :  { %444 = vmatmul.mubr.bf16.vlgmr.msra.gmra.mrb[0].mxu1 %v676_v35  ;;  %620 = vmatpush3.bf16.msra.mxu0 %v679_v37 }
  0x25   :  { %621 = vmatprep.subr.bf16.mxu0 %v688_v34  ;;  %635 = vmatprep.mubr.msk.bf16.mxu0 %vm689_vm0, %v688_v34 }
  0x28   :  { %622 = vmatpush3.bf16.msra.mxu0 %v680_v38 }
  0x29   :  { %623 = vmatprep.subr.bf16.mxu0 %v688_v34 }
  0x2c   :  { %624 = vmatpush3.bf16.msra.mxu0 %v681_v39 }
  0x2d   :  { %625 = vmatprep.subr.bf16.mxu0 %v688_v34 }
  0x30   :  { %626 = vmatpush3.bf16.msra.mxu0 %v682_v40 }
  0x31   :  { %627 = vmatprep.subr.bf16.mxu0 %v688_v34 }
  0x34   :  { %628 = vmatpush3.bf16.msra.mxu0 %v683_v41 }
  0x35   :  { %629 = vmatprep.subr.bf16.mxu0 %v688_v34 }
  0x38   :  { %630 = vmatpush3.bf16.msra.mxu0 %v684_v42 }
  0x39   :  { %631 = vmatprep.subr.bf16.mxu0 %v688_v34 }
  0x3c   :  { %632 = vmatpush3.bf16.msra.mxu0 %v685_v43 }
  0x3d   :  { %633 = vmatprep.subr.bf16.mxu0 %v688_v34 }
  0x40   :  { %634 = vmatpush3.bf16.msra.mxu0 %v686_v44 }
  0x43   :  { %636 = vmatmul.mubr.bf16.vlgmr.msra.gmra.mrb[4].mxu0 %v687_v45 }
  0xf6   :  { %v582_v46 = vpop.f32.mrb[0].mxu0 }
  0xf7   :  { %v604_v47 = vpop.f32.mrb[0].mxu1  ;;  %v583_v48 = vpop.f32.mrb[1].mxu0 }
  0xf8   :  { %v584_v49 = vadd.f32 %v583_v48, %v582_v46  ;;  %v605_v50 = vpop.f32.mrb[1].mxu1  ;;  %v585_v51 = vpop.f32.mrb[2].mxu0 }
  0xf9   :  { %v606_v52 = vadd.f32 %v605_v50, %v604_v47  ;;  %v607_v53 = vpop.f32.mrb[2].mxu1  ;;  %v586_v54 = vpop.f32.mrb[3].mxu0 }
  0xfa   :  { %v587_v55 = vadd.f32 %v586_v54, %v585_v51  ;;  %v608_v56 = vpop.f32.mrb[3].mxu1 }
  0xfb   :  { %v609_v57 = vadd.f32 %v608_v56, %v607_v53  ;;  %v446_v58 = vadd.f32 %v606_v52, %v584_v49 }
  0xfd   :  { %v449_v59 = vadd.f32 %v609_v57, %v587_v55 }
 0x116   :  { %v486_v60 = vpop.f32.mrb[4].mxu0 }
 0x117   :  { %v487_v62 = vadd.f32 %v486_v60, %v446_v58  ;;  %v637_v63 = vpop.f32.mrb[5].mxu0 }
 0x118   :  { %v489_v1 = vpop.f32.mrb[6].mxu0 }
 0x119   :  { %v500_v2 = vmul.f32 %v564_v61, %v487_v62  ;;  %v490_v3 = vadd.f32 %v489_v1, %v449_v59  ;;  %v638_v4 = vpop.f32.mrb[7].mxu0 }
 0x11b   :  { %v509_v5 = vadd.f32 %v565_v0, %v500_v2  ;;  %v501_v6 = vmul.f32 %v564_v61, %v490_v3 }
 0x11d   :  { %v511_v7 = vmax.f32 %v509_v5, 0.0  ;;  %v510_v8 = vadd.f32 %v565_v0, %v501_v6 }
 0x11f   :  { %513 = vst [vmem:[%s866_s4] sm:$0xff] %v511_v7  ;;  %v512_v9 = vmax.f32 %v510_v8, 0.0 }
 0x121   :  { %514 = vst [vmem:[%s866_s4 + $0x8] sm:$0xff] %v512_v9 }

// kernel: resnet_encoder_forward.39
= control target key start
LH: loop header
LB: loop body
LE: loop exit
PB: predicated region body
PF: predicated region fallthrough
CT: control target
= control target key end

     0   :  { %v695_v34 = vmov 0.0   ;;  %vm696_vm0 = vmmov 0   ;;  %s880_s1 = inlined_call_operand.vmem [shape: bf16[640,128], index: 1, kind: input, shape index: {}]   ;;  %s881_s0 = inlined_call_operand.vmem [shape: bf16[16,640], index: 0, kind: input, shape index: {}]   ;;  %s882_s2 = inlined_call_operand.vmem [shape: f32[1,128], index: 2, kind: input, shape index: {}]   ;;  %s883_s3 = inlined_call_operand.vmem [shape: f32[1,128], index: 3, kind: input, shape index: {}]   ;;  %s884_s4 = inlined_call_operand.vmem [shape: f32[16,128], index: 4, kind: input, shape index: {}]   ;;  %s885_s5 = inlined_call_operand.vmem [shape: f32[16,128], index: 5, kind: output, shape index: {}]  }
   0x1   :  { %v648_v0 = vld [vmem:[%s880_s1 + $0x40] sm:$0xff]   ;;  %v652_v4 = vld [vmem:[%s880_s1 + $0x48] sm:$0xff]   ;;  %v656_v8 = vld [vmem:[%s880_s1 + $0x50] sm:$0xff]  }
   0x2   :  { %v649_v1 = vld [vmem:[%s880_s1 + $0xc0] sm:$0xff]   ;;  %573 = vmatprep.subr.bf16.mxu0 %v648_v0  ;;  %v653_v5 = vld [vmem:[%s880_s1 + $0xc8] sm:$0xff]   ;;  %v657_v9 = vld [vmem:[%s880_s1 + $0xd0] sm:$0xff]  }
   0x3   :  { %v650_v2 = vld [vmem:[%s880_s1] sm:$0xff]   ;;  %595 = vmatprep.subr.bf16.mxu1 %v649_v1  ;;  %v654_v6 = vld [vmem:[%s880_s1 + $0x8] sm:$0xff]   ;;  %v658_v10 = vld [vmem:[%s880_s1 + $0x10] sm:$0xff]  }
   0x4   :  { %v651_v3 = vld [vmem:[%s880_s1 + $0x80] sm:$0xff]   ;;  %574 = vmatpush3.bf16.msra.mxu0 %v650_v2  ;;  %v655_v7 = vld [vmem:[%s880_s1 + $0x88] sm:$0xff]   ;;  %v659_v11 = vld [vmem:[%s880_s1 + $0x90] sm:$0xff]  }
   0x5   :  { %596 = vmatpush3.bf16.msra.mxu1 %v651_v3  ;;  %575 = vmatprep.subr.bf16.mxu0 %v652_v4  ;;  %v660_v12 = vld [vmem:[%s880_s1 + $0x58] sm:$0xff]   ;;  %v664_v16 = vld [vmem:[%s880_s1 + $0x60] sm:$0xff]   ;;  %v668_v20 = vld [vmem:[%s880_s1 + $0x68] sm:$0xff]  }
   0x6   :  { %597 = vmatprep.subr.bf16.mxu1 %v653_v5  ;;  %v661_v13 = vld [vmem:[%s880_s1 + $0xd8] sm:$0xff]   ;;  %v665_v17 = vld [vmem:[%s880_s1 + $0xe0] sm:$0xff]   ;;  %v669_v21 = vld [vmem:[%s880_s1 + $0xe8] sm:$0xff]  }
   0x7   :  { %v662_v14 = vld [vmem:[%s880_s1 + $0x18] sm:$0xff]   ;;  %v666_v18 = vld [vmem:[%s880_s1 + $0x20] sm:$0xff]   ;;  %v670_v22 = vld [vmem:[%s880_s1 + $0x28] sm:$0xff]  }
   0x8   :  { %576 = vmatpush3.bf16.msra.mxu0 %v654_v6  ;;  %v663_v15 = vld [vmem:[%s880_s1 + $0x98] sm:$0xff]   ;;  %v667_v19 = vld [vmem:[%s880_s1 + $0xa0] sm:$0xff]   ;;  %v671_v23 = vld [vmem:[%s880_s1 + $0xa8] sm:$0xff]  }
   0x9   :  { %598 = vmatpush3.bf16.msra.mxu1 %v655_v7  ;;  %577 = vmatprep.subr.bf16.mxu0 %v656_v8  ;;  %v672_v24 = vld [vmem:[%s880_s1 + $0x70] sm:$0xff]   ;;  %v676_v28 = vld [vmem:[%s880_s1 + $0x78] sm:$0xff]   ;;  %v685_v36 = vld [vmem:[%s881_s0 + $0xc] ss:$20 sps:$4 sm:$0xff]  }
   0xa   :  { %599 = vmatprep.subr.bf16.mxu1 %v657_v9  ;;  %v673_v25 = vld [vmem:[%s880_s1 + $0xf0] sm:$0xff]   ;;  %v677_v29 = vld [vmem:[%s880_s1 + $0xf8] sm:$0xff]   ;;  %v686_v37 = vld [vmem:[%s880_s1 + $0x100] sm:$0xff]   ;;  %446 = vmatprep.mubr.bf16.mxu1 %v685_v36 }
   0xb   :  { %v674_v26 = vld [vmem:[%s880_s1 + $0x30] sm:$0xff]   ;;  %v678_v30 = vld [vmem:[%s880_s1 + $0x38] sm:$0xff]   ;;  %v687_v38 = vld [vmem:[%s880_s1 + $0x108] sm:$0xff]  }
   0xc   :  { %578 = vmatpush3.bf16.msra.mxu0 %v658_v10  ;;  %v675_v27 = vld [vmem:[%s880_s1 + $0xb0] sm:$0xff]   ;;  %v679_v31 = vld [vmem:[%s880_s1 + $0xb8] sm:$0xff]   ;;  %v690_v41 = vld [vmem:[%s880_s1 + $0x120] sm:$0xff]  }
   0xd   :  { %600 = vmatpush3.bf16.msra.mxu1 %v659_v11  ;;  %579 = vmatprep.subr.bf16.mxu0 %v660_v12  ;;  %v680_v32 = vld [vmem:[%s881_s0] ss:$20 sps:$4 sm:$0xff]   ;;  %v682_v33 = vld [vmem:[%s881_s0 + $0x4] ss:$20 sps:$4 sm:$0xff]   ;;  %v683_v35 = vld [vmem:[%s881_s0 + $0x8] ss:$20 sps:$4 sm:$0xff]  }
   0xe   :  { %601 = vmatprep.subr.bf16.mxu1 %v661_v13  ;;  %405 = vmatprep.mubr.bf16.mxu0 %v682_v33  ;;  %v688_v39 = vld [vmem:[%s880_s1 + $0x110] sm:$0xff]   ;;  %v689_v40 = vld [vmem:[%s880_s1 + $0x118] sm:$0xff]   ;;  %v691_v42 = vld [vmem:[%s880_s1 + $0x128] sm:$0xff]  }
   0xf   :  { %v692_v43 = vld [vmem:[%s880_s1 + $0x130] sm:$0xff]   ;;  %v693_v44 = vld [vmem:[%s880_s1 + $0x138] sm:$0xff]   ;;  %v571_v61 = vld [vmem:[%s882_s2] ss:$0 sm:$0xff] }
  0x10   :  { %580 = vmatpush3.bf16.msra.mxu0 %v662_v14  ;;  %v694_v45 = vld [vmem:[%s881_s0 + $0x10] ss:$20 sps:$4 sm:$0xff]   ;;  %v572_v0 = vld [vmem:[%s883_s3] ss:$0 sm:$0xff]  ;;  %v515_v8 = vld [vmem:[%s884_s4 + $0x8] sm:$0xff] }
  0x11   :  { %602 = vmatpush3.bf16.msra.mxu1 %v663_v15  ;;  %581 = vmatprep.subr.bf16.mxu0 %v664_v16  ;;  %v514_v5 = vld [vmem:[%s884_s4] sm:$0xff] }
  0x12   :  { %603 = vmatprep.subr.bf16.mxu1 %v665_v17 }
  0x14   :  { %582 = vmatpush3.bf16.msra.mxu0 %v666_v18 }
  0x15   :  { %604 = vmatpush3.bf16.msra.mxu1 %v667_v19  ;;  %583 = vmatprep.subr.bf16.mxu0 %v668_v20 }
  0x16   :  { %605 = vmatprep.subr.bf16.mxu1 %v669_v21 }
  0x18   :  { %584 = vmatpush3.bf16.msra.mxu0 %v670_v22 }
  0x19   :  { %606 = vmatpush3.bf16.msra.mxu1 %v671_v23  ;;  %585 = vmatprep.subr.bf16.mxu0 %v672_v24 }
  0x1a   :  { %607 = vmatprep.subr.bf16.mxu1 %v673_v25 }
  0x1c   :  { %586 = vmatpush3.bf16.msra.mxu0 %v674_v26 }
  0x1d   :  { %608 = vmatpush3.bf16.msra.mxu1 %v675_v27  ;;  %587 = vmatprep.subr.bf16.mxu0 %v676_v28 }
  0x1e   :  { %609 = vmatprep.subr.bf16.mxu1 %v677_v29 }
  0x20   :  { %588 = vmatpush3.bf16.msra.mxu0 %v678_v30 }
  0x21   :  { %610 = vmatpush3.bf16.msra.mxu1 %v679_v31  ;;  %626 = vmatprep.subr.bf16.mxu0 %v695_v34 }
  0x23   :  { %406 = vmatmul.mubr.bf16.vlgmr.msra.gmra.mrb[0].mxu0 %v680_v32 }
  0x24   :  { %447 = vmatmul.mubr.bf16.vlgmr.msra.gmra.mrb[0].mxu1 %v683_v35  ;;  %627 = vmatpush3.bf16.msra.mxu0 %v686_v37 }
  0x25   :  { %628 = vmatprep.subr.bf16.mxu0 %v695_v34  ;;  %642 = vmatprep.mubr.msk.bf16.mxu0 %vm696_vm0, %v695_v34 }
  0x28   :  { %629 = vmatpush3.bf16.msra.mxu0 %v687_v38 }
  0x29   :  { %630 = vmatprep.subr.bf16.mxu0 %v695_v34 }
  0x2c   :  { %631 = vmatpush3.bf16.msra.mxu0 %v688_v39 }
  0x2d   :  { %632 = vmatprep.subr.bf16.mxu0 %v695_v34 }
  0x30   :  { %633 = vmatpush3.bf16.msra.mxu0 %v689_v40 }
  0x31   :  { %634 = vmatprep.subr.bf16.mxu0 %v695_v34 }
  0x34   :  { %635 = vmatpush3.bf16.msra.mxu0 %v690_v41 }
  0x35   :  { %636 = vmatprep.subr.bf16.mxu0 %v695_v34 }
  0x38   :  { %637 = vmatpush3.bf16.msra.mxu0 %v691_v42 }
  0x39   :  { %638 = vmatprep.subr.bf16.mxu0 %v695_v34 }
  0x3c   :  { %639 = vmatpush3.bf16.msra.mxu0 %v692_v43 }
  0x3d   :  { %640 = vmatprep.subr.bf16.mxu0 %v695_v34 }
  0x40   :  { %641 = vmatpush3.bf16.msra.mxu0 %v693_v44 }
  0x43   :  { %643 = vmatmul.mubr.bf16.vlgmr.msra.gmra.mrb[4].mxu0 %v694_v45 }
  0xf6   :  { %v589_v46 = vpop.f32.mrb[0].mxu0 }
  0xf7   :  { %v611_v47 = vpop.f32.mrb[0].mxu1  ;;  %v590_v48 = vpop.f32.mrb[1].mxu0 }
  0xf8   :  { %v591_v49 = vadd.f32 %v590_v48, %v589_v46  ;;  %v612_v50 = vpop.f32.mrb[1].mxu1  ;;  %v592_v51 = vpop.f32.mrb[2].mxu0 }
  0xf9   :  { %v613_v52 = vadd.f32 %v612_v50, %v611_v47  ;;  %v614_v53 = vpop.f32.mrb[2].mxu1  ;;  %v593_v54 = vpop.f32.mrb[3].mxu0 }
  0xfa   :  { %v594_v55 = vadd.f32 %v593_v54, %v592_v51  ;;  %v615_v56 = vpop.f32.mrb[3].mxu1 }
  0xfb   :  { %v616_v57 = vadd.f32 %v615_v56, %v614_v53  ;;  %v449_v58 = vadd.f32 %v613_v52, %v591_v49 }
  0xfd   :  { %v452_v59 = vadd.f32 %v616_v57, %v594_v55 }
 0x116   :  { %v489_v60 = vpop.f32.mrb[4].mxu0 }
 0x117   :  { %v490_v62 = vadd.f32 %v489_v60, %v449_v58  ;;  %v644_v63 = vpop.f32.mrb[5].mxu0 }
 0x118   :  { %v492_v1 = vpop.f32.mrb[6].mxu0 }
 0x119   :  { %v503_v2 = vmul.f32 %v571_v61, %v490_v62  ;;  %v493_v3 = vadd.f32 %v492_v1, %v452_v59  ;;  %v645_v4 = vpop.f32.mrb[7].mxu0 }
 0x11b   :  { %v512_v6 = vadd.f32 %v572_v0, %v503_v2  ;;  %v504_v7 = vmul.f32 %v571_v61, %v493_v3 }
 0x11d   :  { %v516_v9 = vadd.f32 %v514_v5, %v512_v6  ;;  %v513_v10 = vadd.f32 %v572_v0, %v504_v7 }
 0x11f   :  { %v518_v11 = vmax.f32 %v516_v9, 0.0  ;;  %v517_v12 = vadd.f32 %v515_v8, %v513_v10 }
 0x121   :  { %520 = vst [vmem:[%s885_s5] sm:$0xff] %v518_v11  ;;  %v519_v13 = vmax.f32 %v517_v12, 0.0 }
 0x123   :  { %521 = vst [vmem:[%s885_s5 + $0x8] sm:$0xff] %v519_v13 }

</bundles_post_ra>
